<compile_context>
chip_gen: v7x
topology: tpu7x:2x2x1
jax: 0.10.0
libtpu: 0.0.40
codegen_flags: <defaults>
</compile_context>

<pallas_src>
import math

import jax
import jax.numpy as jnp
from jax.experimental import pallas as pl
from jax.experimental.pallas import tpu as pltpu


# ----------------------------------------------------------------------------
# Generation-aware VMEM budgeting (queried once, cached)
# ----------------------------------------------------------------------------
_VMEM_CACHE = None


def _vmem_budgets():
    """Returns (per-call tile budget, scoped vmem_limit_bytes)."""
    global _VMEM_CACHE
    if _VMEM_CACHE is None:
        cap = 64 * 1024 * 1024                      # conservative default
        try:
            info = pltpu.get_tpu_info()
            cap = int(getattr(info, "vmem_capacity_bytes", cap)) or cap
        except Exception:
            pass
        limit = max(min(cap * 3 // 4, cap - (4 << 20)), 12 << 20)
        _VMEM_CACHE = (limit // 2, limit)
    return _VMEM_CACHE


def _round_up(n, m):
    return ((n + m - 1) // m) * m


def _plan_cols(hw, per_col_bytes, fixed_bytes, budget):
    """Pick the pixel-tile width T (lane axis).  T is either the full H*W
    (always legal) or a multiple-of-128 divisor of H*W (lane-dense, no padding
    copy).  Returns (T, padded_hw)."""
    avail = max(budget - fixed_bytes, 128 * per_col_bytes)
    max_t = int(min(avail // max(per_col_bytes, 1), 8192))
    if hw % 128 == 0:
        max_t = max(128, (max_t // 128) * 128)
        t = min(max_t, hw)
        while hw % t != 0:
            t -= 128
        # aim for >=4 grid steps (pipelining / megacore) while keeping T >= 512
        while hw // t < 4 and t >= 1024 and (t // 2) % 128 == 0 and hw % (t // 2) == 0:
            t //= 2
        return t, hw
    if hw <= max_t:
        return hw, hw                               # small ragged: one full tile
    # TODO(synk): handle the ragged last tile in-kernel instead of lane-padding.
    t = max(128, (max_t // 128) * 128)
    return t, _round_up(hw, t)


# ----------------------------------------------------------------------------
# Kernel bodies (channel-major: activations are (C, T), weights are (Cout, Cin))
# ----------------------------------------------------------------------------
def _fused5_kernel(x_ref, w1, w2, w3, w4, w5, b1, b2, b3, b4, b5, o_ref):
    """Whole non-residual chain: 5 x (1x1 conv + bias + act), weights resident."""
    bf16, f32 = jnp.bfloat16, jnp.float32
    h = x_ref[...].astype(bf16)                                        # (2048, T)
    h = jnp.tanh(jnp.dot(w1[...], h, preferred_element_type=f32) + b1[...]).astype(bf16)
    h = jnp.tanh(jnp.dot(w2[...], h, preferred_element_type=f32) + b2[...]).astype(bf16)
    h = jnp.tanh(jnp.dot(w3[...], h, preferred_element_type=f32) + b3[...]).astype(bf16)
    h = jnp.tanh(jnp.dot(w4[...], h, preferred_element_type=f32) + b4[...]).astype(bf16)
    y = jax.nn.sigmoid(jnp.dot(w5[...], h, preferred_element_type=f32) + b5[...])
    o_ref[...] = y.astype(o_ref.dtype)


def _head_kernel(x_ref, w1_ref, b1_ref, wx2_ref, b2_ref, o_ref):
    """Residual path stage 1 + the stage-2 x-branch partial (all at input res)."""
    bf16, f32 = jnp.bfloat16, jnp.float32
    h = x_ref[...].astype(bf16)
    a = jnp.tanh(jnp.dot(w1_ref[...], h, preferred_element_type=f32) + b1_ref[...])
    p = jnp.dot(wx2_ref[...], a.astype(bf16), preferred_element_type=f32) + b2_ref[...]
    o_ref[...] = p.astype(o_ref.dtype)


def _mid_kernel(p_ref, r_ref, wr_ref, wn_ref, bn_ref, o_ref):
    """a = tanh(partial_up + Wr @ r);  out = Wx_next @ a + b_next."""
    bf16, f32 = jnp.bfloat16, jnp.float32
    r = r_ref[...].astype(bf16)
    a = jnp.tanh(p_ref[...] + jnp.dot(wr_ref[...], r, preferred_element_type=f32))
    p = jnp.dot(wn_ref[...], a.astype(bf16), preferred_element_type=f32) + bn_ref[...]
    o_ref[...] = p.astype(o_ref.dtype)


def _tail_kernel(p_ref, r_ref, wr_ref, o_ref):
    """Final stage: sigmoid(partial_up + Wr5 @ r)."""
    r = r_ref[...].astype(jnp.bfloat16)
    y = jax.nn.sigmoid(p_ref[...] + jnp.dot(wr_ref[...], r,
                                            preferred_element_type=jnp.float32))
    o_ref[...] = y.astype(o_ref.dtype)


# ----------------------------------------------------------------------------
# Generic channel-major stage launcher
# ----------------------------------------------------------------------------
def _conv_stage_call(kernel_body, tensor_inputs, const_inputs, cout_p, out_dtype,
                     internal_ch=0):
    """Run `kernel_body` over channel-major (B, C, H*W) tensors tiled along the
    pixel (lane) axis.  Weights/biases in `const_inputs` are passed whole with
    grid-invariant index maps (loaded once, resident in VMEM).  Returns a
    (B, cout_p, H*W) array."""
    B, _, hw = tensor_inputs[0].shape
    tile_budget, vmem_limit = _vmem_budgets()

    # Rough per-pixel-column VMEM accounting (double-buffered I/O + working set).
    per_col = 2 * cout_p * jnp.dtype(out_dtype).itemsize + 6 * internal_ch
    for a in tensor_inputs:
        c, isz = a.shape[1], jnp.dtype(a.dtype).itemsize
        per_col += 2 * c * isz                  # double-buffered input tile
        if isz == 4:
            per_col += 2 * c                    # in-kernel bf16 working copy
    fixed = sum(2 * w.size * jnp.dtype(w.dtype).itemsize for w in const_inputs)

    T, hw_p = _plan_cols(hw, per_col, fixed, tile_budget)
    if hw_p != hw:
        tensor_inputs = [jnp.pad(a, ((0, 0), (0, 0), (0, hw_p - hw)))
                         for a in tensor_inputs]
    grid = (B, hw_p // T)

    in_specs = [pl.BlockSpec((None, a.shape[1], T), lambda b, i: (b, 0, i))
                for a in tensor_inputs]
    # Grid-invariant weight/bias blocks: block index is always (0, 0) so the
    # pipeliner DMAs them exactly once and keeps them resident.
    in_specs += [pl.BlockSpec(w.shape, lambda b, i: (0, 0)) for w in const_inputs]
    out_spec = pl.BlockSpec((None, cout_p, T), lambda b, i: (b, 0, i))

    out = pl.pallas_call(
        kernel_body,
        out_shape=jax.ShapeDtypeStruct((B, cout_p, hw_p), out_dtype),
        grid_spec=pltpu.PrefetchScalarGridSpec(
            num_scalar_prefetch=0,
            grid=grid,
            in_specs=in_specs,
            out_specs=out_spec),
        compiler_params=pltpu.CompilerParams(
            dimension_semantics=("parallel", "parallel"),
            vmem_limit_bytes=vmem_limit),
    )(*tensor_inputs, *const_inputs)

    if hw_p != hw:
        out = out[..., :hw]
    return out


# ----------------------------------------------------------------------------
# Nearest-neighbour upsample glue (pure data movement: broadcast + reshape)
# ----------------------------------------------------------------------------
def _nearest_up_nchw(x, s):
    B, C, H, W = x.shape
    x = jnp.broadcast_to(x[:, :, :, None, :, None], (B, C, H, s, W, s))
    return x.reshape(B, C, H * s, W * s)


def _up2_cm(p, h, w):
    B, C, _ = p.shape
    return _nearest_up_nchw(p.reshape(B, C, h, w), 2).reshape(B, C, 4 * h * w)


# ----------------------------------------------------------------------------
# One-time parameter preparation (hoisted out of the jitted forward)
# ----------------------------------------------------------------------------
def prepare_params(params, out_channels=3, use_residuals=False):
    """bf16 cast, native (Cout, Cin) layout, stage-5 channel padding to 128
    sublanes, and residual concat split into separate x/r weight halves."""
    def bf(w):
        return jnp.asarray(w, jnp.bfloat16)

    def col(b, pad_to=None):
        b = jnp.asarray(b, jnp.float32)
        if pad_to is not None and b.shape[0] != pad_to:
            b = jnp.pad(b, (0, pad_to - b.shape[0]))
        return b.reshape(-1, 1)

    co_p = max(128, _round_up(out_channels, 128))
    w5 = jnp.asarray(params["w5"], jnp.float32)
    w5 = jnp.pad(w5, ((0, co_p - w5.shape[0]), (0, 0)))

    if not use_residuals:
        return {
            "w1": bf(params["w1"]), "b1": col(params["b1"]),
            "w2": bf(params["w2"]), "b2": col(params["b2"]),
            "w3": bf(params["w3"]), "b3": col(params["b3"]),
            "w4": bf(params["w4"]), "b4": col(params["b4"]),
            "w5": bf(w5), "b5": col(params["b5"], co_p),
        }
    w2 = jnp.asarray(params["w2"], jnp.float32)
    w3 = jnp.asarray(params["w3"], jnp.float32)
    w4 = jnp.asarray(params["w4"], jnp.float32)
    return {
        "w1": bf(params["w1"]), "b1": col(params["b1"]),
        "wx2": bf(w2[:, :512]), "wr2": bf(w2[:, 512:]), "b2": col(params["b2"]),
        "wx3": bf(w3[:, :512]), "wr3": bf(w3[:, 512:]), "b3": col(params["b3"]),
        "wx4": bf(w4[:, :256]), "wr4": bf(w4[:, 256:]), "b4": col(params["b4"]),
        "wx5": bf(w5[:, :128]), "wr5": bf(w5[:, 128:]), "b5": col(params["b5"], co_p),
    }


# ----------------------------------------------------------------------------
# Full decoder forward (matches the PyTorch module semantics)
# ----------------------------------------------------------------------------
def fredv3_decoder_forward(prep, x_nchw, residuals=None, *,
                           use_residuals=False, out_channels=3):
    """x_nchw: (B, 2048, H, W) f32.  residuals (if used): NCHW list
    [x1(64ch,16H), x2(128ch,8H), x3(256ch,4H), x4(512ch,2H)].
    Returns the NCHW f32 output at 32x the input spatial resolution."""
    B, C, H, W = x_nchw.shape
    x_cm = x_nchw.reshape(B, C, H * W)          # channel-major view (no copy)

    if not use_residuals:
        consts = [prep["w1"], prep["w2"], prep["w3"], prep["w4"], prep["w5"],
                  prep["b1"], prep["b2"], prep["b3"], prep["b4"], prep["b5"]]
        y = _conv_stage_call(_fused5_kernel, [x_cm], consts,
                             cout_p=prep["w5"].shape[0], out_dtype=jnp.bfloat16,
                             internal_ch=1536)
        y = y[:, :out_channels].reshape(B, out_channels, H, W)
        return _nearest_up_nchw(y, 32).astype(jnp.float32)

    x1, x2, x3, x4 = residuals
    r4 = x4.reshape(B, x4.shape[1], -1)
    r3 = x3.reshape(B, x3.shape[1], -1)
    r2 = x2.reshape(B, x2.shape[1], -1)
    r1 = x1.reshape(B, x1.shape[1], -1)

    # Stage 1 + the stage-2 x-branch partial, both at the input resolution.
    p = _conv_stage_call(_head_kernel, [x_cm],
                         [prep["w1"], prep["b1"], prep["wx2"], prep["b2"]],
                         cout_p=prep["wx2"].shape[0], out_dtype=jnp.float32,
                         internal_ch=1024)
    h, w = H, W
    mids = [
        (r4, prep["wr2"], prep["wx3"], prep["b3"]),
        (r3, prep["wr3"], prep["wx4"], prep["b4"]),
        (r2, prep["wr4"], prep["wx5"], prep["b5"]),
    ]
    for r, wr, wn, bn in mids:
        p = _up2_cm(p, h, w)                    # nearest-up the partial (f32)
        h, w = 2 * h, 2 * w
        p = _conv_stage_call(_mid_kernel, [p, r], [wr, wn, bn],
                             cout_p=wn.shape[0], out_dtype=jnp.float32,
                             internal_ch=2 * wr.shape[0])
    p = _up2_cm(p, h, w)
    h, w = 2 * h, 2 * w
    y = _conv_stage_call(_tail_kernel, [p, r1], [prep["wr5"]],
                         cout_p=prep["wr5"].shape[0], out_dtype=jnp.bfloat16,
                         internal_ch=128)
    y = y[:, :out_channels].reshape(B, out_channels, h, w)
    return _nearest_up_nchw(y, 2).astype(jnp.float32)


# ----------------------------------------------------------------------------
# Deterministic parameter init (PyTorch Conv2d (Cout, Cin) 1x1 layout)
# ----------------------------------------------------------------------------
def init_params(key, out_channels=3, use_residuals=False):
    if use_residuals:
        dims = [(2048, 512), (1024, 512), (768, 256), (384, 128), (192, out_channels)]
    else:
        dims = [(2048, 512), (512, 512), (512, 256), (256, 128), (128, out_channels)]
    params = {}
    for i, (cin, cout) in enumerate(dims, start=1):
        key, kw, kb = jax.random.split(key, 3)
        bound = 1.0 / math.sqrt(cin)
        params[f"w{i}"] = jax.random.uniform(kw, (cout, cin), jnp.float32,
                                             minval=-bound, maxval=bound)
        params[f"b{i}"] = jax.random.uniform(kb, (cout,), jnp.float32,
                                             minval=-bound, maxval=bound)
    return params


# ----------------------------------------------------------------------------
# Pure-JAX f32 reference following the PyTorch op order exactly
# ----------------------------------------------------------------------------
def _ref_forward(params, x_nchw, residuals=None, use_residuals=False):
    x = jnp.transpose(x_nchw, (0, 2, 3, 1))
    res = ([jnp.transpose(t, (0, 2, 3, 1)) for t in residuals]
           if use_residuals else None)
    for i, act in zip(range(1, 6), ("tanh",) * 4 + ("sigmoid",)):
        x = jnp.repeat(jnp.repeat(x, 2, axis=1), 2, axis=2)
        x = jnp.einsum("bhwc,dc->bhwd", x, params[f"w{i}"]) + params[f"b{i}"]
        x = jnp.tanh(x) if act == "tanh" else jax.nn.sigmoid(x)
        if use_residuals and i < 5:
            x = jnp.concatenate([x, res[4 - i]], axis=-1)
    return jnp.transpose(x, (0, 3, 1, 2))


if __name__ == "__main__":
    key = jax.random.PRNGKey(0)
    k_p1, k_p2, k_x, k_r = jax.random.split(key, 4)

    B, C, H, W = 1, 2048, 2, 2
    x = jax.random.normal(k_x, (B, C, H, W), jnp.float32)

    fwd = jax.jit(fredv3_decoder_forward,
                  static_argnames=("use_residuals", "out_channels"))

    # ---- default module configuration: use_residuals=False ----
    params = init_params(k_p1, out_channels=3, use_residuals=False)
    prep = prepare_params(params, out_channels=3, use_residuals=False)
    out = jax.block_until_ready(fwd(prep, x, use_residuals=False))
    assert out.shape == (B, 3, 32 * H, 32 * W), out.shape
    ref = jax.block_until_ready(_ref_forward(params, x, use_residuals=False))
    err = float(jnp.max(jnp.abs(out - ref)))
    assert err < 3e-2, f"non-residual path mismatch (max abs err {err})"

    # ---- residual configuration (also supported) ----
    params_r = init_params(k_p2, out_channels=3, use_residuals=True)
    prep_r = prepare_params(params_r, out_channels=3, use_residuals=True)
    kr = jax.random.split(k_r, 4)
    residuals = [
        jax.random.normal(kr[0], (B, 64, 16 * H, 16 * W), jnp.float32),
        jax.random.normal(kr[1], (B, 128, 8 * H, 8 * W), jnp.float32),
        jax.random.normal(kr[2], (B, 256, 4 * H, 4 * W), jnp.float32),
        jax.random.normal(kr[3], (B, 512, 2 * H, 2 * W), jnp.float32),
    ]
    out_r = jax.block_until_ready(
        fwd(prep_r, x, residuals, use_residuals=True))
    assert out_r.shape == (B, 3, 32 * H, 32 * W), out_r.shape
    ref_r = jax.block_until_ready(
        _ref_forward(params_r, x, residuals=residuals, use_residuals=True))
    err_r = float(jnp.max(jnp.abs(out_r - ref_r)))
    assert err_r < 3e-2, f"residual path mismatch (max abs err {err_r})"

    print("KERNEL_OK")
</pallas_src>

<mosaic_0001>
module attributes {stable_mosaic.version = 11 : i64} {
  func.func @_fused5_kernel(%arg0: i32, %arg1: i32, %arg2: memref<1x2048x4xf32, #tpu.memory_space<vmem>>, %arg3: memref<512x2048xbf16, #tpu.memory_space<vmem>>, %arg4: memref<512x512xbf16, #tpu.memory_space<vmem>>, %arg5: memref<256x512xbf16, #tpu.memory_space<vmem>>, %arg6: memref<128x256xbf16, #tpu.memory_space<vmem>>, %arg7: memref<128x128xbf16, #tpu.memory_space<vmem>>, %arg8: memref<512x1xf32, #tpu.memory_space<vmem>>, %arg9: memref<512x1xf32, #tpu.memory_space<vmem>>, %arg10: memref<256x1xf32, #tpu.memory_space<vmem>>, %arg11: memref<128x1xf32, #tpu.memory_space<vmem>>, %arg12: memref<128x1xf32, #tpu.memory_space<vmem>>, %arg13: memref<1x128x4xbf16, #tpu.memory_space<vmem>>) attributes {dimension_semantics = [#tpu.dimension_semantics<parallel>, #tpu.dimension_semantics<parallel>], iteration_bounds = array<i64: 1, 1>, scalar_prefetch = 0 : i64, scratch_operands = 0 : i64, tpu.core_type = #tpu.core_type<tc>, window_params = [{transform_indices = @transform_0, window_bounds = array<i64: 1, 2048, 4>}, {pipeline_mode = #tpu.pipeline_mode<synchronous>, transform_indices = @transform_1, window_bounds = array<i64: 512, 2048>}, {pipeline_mode = #tpu.pipeline_mode<synchronous>, transform_indices = @transform_2, window_bounds = array<i64: 512, 512>}, {pipeline_mode = #tpu.pipeline_mode<synchronous>, transform_indices = @transform_3, window_bounds = array<i64: 256, 512>}, {pipeline_mode = #tpu.pipeline_mode<synchronous>, transform_indices = @transform_4, window_bounds = array<i64: 128, 256>}, {pipeline_mode = #tpu.pipeline_mode<synchronous>, transform_indices = @transform_5, window_bounds = array<i64: 128, 128>}, {pipeline_mode = #tpu.pipeline_mode<synchronous>, transform_indices = @transform_6, window_bounds = array<i64: 512, 1>}, {pipeline_mode = #tpu.pipeline_mode<synchronous>, transform_indices = @transform_7, window_bounds = array<i64: 512, 1>}, {pipeline_mode = #tpu.pipeline_mode<synchronous>, transform_indices = @transform_8, window_bounds = array<i64: 256, 1>}, {pipeline_mode = #tpu.pipeline_mode<synchronous>, transform_indices = @transform_9, window_bounds = array<i64: 128, 1>}, {pipeline_mode = #tpu.pipeline_mode<synchronous>, transform_indices = @transform_10, window_bounds = array<i64: 128, 1>}, {transform_indices = @transform_11, window_bounds = array<i64: 1, 128, 4>}]} {
    %c0 = arith.constant 0 : index
    %c0_0 = arith.constant 0 : index
    %c0_1 = arith.constant 0 : index
    %0 = vector.load %arg2[%c0, %c0_0, %c0_1] : memref<1x2048x4xf32, #tpu.memory_space<vmem>>, vector<1x2048x4xf32>
    %1 = vector.shape_cast %0 : vector<1x2048x4xf32> to vector<2048x4xf32>
    %2 = arith.truncf %1 : vector<2048x4xf32> to vector<2048x4xbf16>
    %c0_2 = arith.constant 0 : index
    %c0_3 = arith.constant 0 : index
    %3 = vector.load %arg3[%c0_2, %c0_3] : memref<512x2048xbf16, #tpu.memory_space<vmem>>, vector<512x2048xbf16>
    %cst = arith.constant dense<0.000000e+00> : vector<512x4xf32>
    %4 = tpu.matmul %3, %2, %cst {dimension_numbers = #tpu.dot_dimension_numbers<[1], [0], [0], [1], [0, 0, 1, 1], [], []>} : vector<512x2048xbf16>, vector<2048x4xbf16>, vector<512x4xf32> -> vector<512x4xf32>
    %c0_4 = arith.constant 0 : index
    %c0_5 = arith.constant 0 : index
    %5 = vector.load %arg8[%c0_4, %c0_5] : memref<512x1xf32, #tpu.memory_space<vmem>>, vector<512x1xf32>
    %6 = vector.broadcast %5 : vector<512x1xf32> to vector<512x4xf32>
    %7 = arith.addf %4, %6 : vector<512x4xf32>
    %8 = math.tanh %7 : vector<512x4xf32>
    %9 = arith.truncf %8 : vector<512x4xf32> to vector<512x4xbf16>
    %c0_6 = arith.constant 0 : index
    %c0_7 = arith.constant 0 : index
    %10 = vector.load %arg4[%c0_6, %c0_7] : memref<512x512xbf16, #tpu.memory_space<vmem>>, vector<512x512xbf16>
    %cst_8 = arith.constant dense<0.000000e+00> : vector<512x4xf32>
    %11 = tpu.matmul %10, %9, %cst_8 {dimension_numbers = #tpu.dot_dimension_numbers<[1], [0], [0], [1], [0, 0, 1, 1], [], []>} : vector<512x512xbf16>, vector<512x4xbf16>, vector<512x4xf32> -> vector<512x4xf32>
    %c0_9 = arith.constant 0 : index
    %c0_10 = arith.constant 0 : index
    %12 = vector.load %arg9[%c0_9, %c0_10] : memref<512x1xf32, #tpu.memory_space<vmem>>, vector<512x1xf32>
    %13 = vector.broadcast %12 : vector<512x1xf32> to vector<512x4xf32>
    %14 = arith.addf %11, %13 : vector<512x4xf32>
    %15 = math.tanh %14 : vector<512x4xf32>
    %16 = arith.truncf %15 : vector<512x4xf32> to vector<512x4xbf16>
    %c0_11 = arith.constant 0 : index
    %c0_12 = arith.constant 0 : index
    %17 = vector.load %arg5[%c0_11, %c0_12] : memref<256x512xbf16, #tpu.memory_space<vmem>>, vector<256x512xbf16>
    %cst_13 = arith.constant dense<0.000000e+00> : vector<256x4xf32>
    %18 = tpu.matmul %17, %16, %cst_13 {dimension_numbers = #tpu.dot_dimension_numbers<[1], [0], [0], [1], [0, 0, 1, 1], [], []>} : vector<256x512xbf16>, vector<512x4xbf16>, vector<256x4xf32> -> vector<256x4xf32>
    %c0_14 = arith.constant 0 : index
    %c0_15 = arith.constant 0 : index
    %19 = vector.load %arg10[%c0_14, %c0_15] : memref<256x1xf32, #tpu.memory_space<vmem>>, vector<256x1xf32>
    %20 = vector.broadcast %19 : vector<256x1xf32> to vector<256x4xf32>
    %21 = arith.addf %18, %20 : vector<256x4xf32>
    %22 = math.tanh %21 : vector<256x4xf32>
    %23 = arith.truncf %22 : vector<256x4xf32> to vector<256x4xbf16>
    %c0_16 = arith.constant 0 : index
    %c0_17 = arith.constant 0 : index
    %24 = vector.load %arg6[%c0_16, %c0_17] : memref<128x256xbf16, #tpu.memory_space<vmem>>, vector<128x256xbf16>
    %cst_18 = arith.constant dense<0.000000e+00> : vector<128x4xf32>
    %25 = tpu.matmul %24, %23, %cst_18 {dimension_numbers = #tpu.dot_dimension_numbers<[1], [0], [0], [1], [0, 0, 1, 1], [], []>} : vector<128x256xbf16>, vector<256x4xbf16>, vector<128x4xf32> -> vector<128x4xf32>
    %c0_19 = arith.constant 0 : index
    %c0_20 = arith.constant 0 : index
    %26 = vector.load %arg11[%c0_19, %c0_20] : memref<128x1xf32, #tpu.memory_space<vmem>>, vector<128x1xf32>
    %27 = vector.broadcast %26 : vector<128x1xf32> to vector<128x4xf32>
    %28 = arith.addf %25, %27 : vector<128x4xf32>
    %29 = math.tanh %28 : vector<128x4xf32>
    %30 = arith.truncf %29 : vector<128x4xf32> to vector<128x4xbf16>
    %c0_21 = arith.constant 0 : index
    %c0_22 = arith.constant 0 : index
    %31 = vector.load %arg7[%c0_21, %c0_22] : memref<128x128xbf16, #tpu.memory_space<vmem>>, vector<128x128xbf16>
    %cst_23 = arith.constant dense<0.000000e+00> : vector<128x4xf32>
    %32 = tpu.matmul %31, %30, %cst_23 {dimension_numbers = #tpu.dot_dimension_numbers<[1], [0], [0], [1], [0, 0, 1, 1], [], []>} : vector<128x128xbf16>, vector<128x4xbf16>, vector<128x4xf32> -> vector<128x4xf32>
    %c0_24 = arith.constant 0 : index
    %c0_25 = arith.constant 0 : index
    %33 = vector.load %arg12[%c0_24, %c0_25] : memref<128x1xf32, #tpu.memory_space<vmem>>, vector<128x1xf32>
    %34 = vector.broadcast %33 : vector<128x1xf32> to vector<128x4xf32>
    %35 = arith.addf %32, %34 : vector<128x4xf32>
    %36 = arith.negf %35 : vector<128x4xf32>
    %37 = math.exp %36 : vector<128x4xf32>
    %cst_26 = arith.constant 1.000000e+00 : f32
    %38 = vector.broadcast %cst_26 : f32 to vector<128x4xf32>
    %39 = arith.addf %38, %37 : vector<128x4xf32>
    %40 = arith.divf %38, %39 : vector<128x4xf32>
    %41 = arith.truncf %40 : vector<128x4xf32> to vector<128x4xbf16>
    %c0_27 = arith.constant 0 : index
    %c0_28 = arith.constant 0 : index
    %c0_29 = arith.constant 0 : index
    %42 = vector.load %arg13[%c0_27, %c0_28, %c0_29] : memref<1x128x4xbf16, #tpu.memory_space<vmem>>, vector<1x128x4xbf16>
    %43 = vector.shape_cast %42 : vector<1x128x4xbf16> to vector<128x4xbf16>
    %44 = vector.shape_cast %41 : vector<128x4xbf16> to vector<1x128x4xbf16>
    tpu.vector_store %arg13[%c0_27, %c0_28, %c0_29], %44 {strides = array<i32>} : memref<1x128x4xbf16, #tpu.memory_space<vmem>>, vector<1x128x4xbf16>,
    return
  }
  func.func @transform_0(%arg0: i32, %arg1: i32) -> (i32, i32, i32) {
    %c0_i32 = arith.constant 0 : i32
    %c0_i32_0 = arith.constant 0 : i32
    return %arg0, %c0_i32, %arg1 : i32, i32, i32
  }
  func.func @transform_1(%arg0: i32, %arg1: i32) -> (i32, i32) {
    %c0_i32 = arith.constant 0 : i32
    %c0_i32_0 = arith.constant 0 : i32
    %c0_i32_1 = arith.constant 0 : i32
    return %c0_i32, %c0_i32_0 : i32, i32
  }
  func.func @transform_2(%arg0: i32, %arg1: i32) -> (i32, i32) {
    %c0_i32 = arith.constant 0 : i32
    %c0_i32_0 = arith.constant 0 : i32
    %c0_i32_1 = arith.constant 0 : i32
    return %c0_i32, %c0_i32_0 : i32, i32
  }
  func.func @transform_3(%arg0: i32, %arg1: i32) -> (i32, i32) {
    %c0_i32 = arith.constant 0 : i32
    %c0_i32_0 = arith.constant 0 : i32
    %c0_i32_1 = arith.constant 0 : i32
    return %c0_i32, %c0_i32_0 : i32, i32
  }
  func.func @transform_4(%arg0: i32, %arg1: i32) -> (i32, i32) {
    %c0_i32 = arith.constant 0 : i32
    %c0_i32_0 = arith.constant 0 : i32
    %c0_i32_1 = arith.constant 0 : i32
    return %c0_i32, %c0_i32_0 : i32, i32
  }
  func.func @transform_5(%arg0: i32, %arg1: i32) -> (i32, i32) {
    %c0_i32 = arith.constant 0 : i32
    %c0_i32_0 = arith.constant 0 : i32
    %c0_i32_1 = arith.constant 0 : i32
    return %c0_i32, %c0_i32_0 : i32, i32
  }
  func.func @transform_6(%arg0: i32, %arg1: i32) -> (i32, i32) {
    %c0_i32 = arith.constant 0 : i32
    %c0_i32_0 = arith.constant 0 : i32
    %c0_i32_1 = arith.constant 0 : i32
    return %c0_i32, %c0_i32_0 : i32, i32
  }
  func.func @transform_7(%arg0: i32, %arg1: i32) -> (i32, i32) {
    %c0_i32 = arith.constant 0 : i32
    %c0_i32_0 = arith.constant 0 : i32
    %c0_i32_1 = arith.constant 0 : i32
    return %c0_i32, %c0_i32_0 : i32, i32
  }
  func.func @transform_8(%arg0: i32, %arg1: i32) -> (i32, i32) {
    %c0_i32 = arith.constant 0 : i32
    %c0_i32_0 = arith.constant 0 : i32
    %c0_i32_1 = arith.constant 0 : i32
    return %c0_i32, %c0_i32_0 : i32, i32
  }
  func.func @transform_9(%arg0: i32, %arg1: i32) -> (i32, i32) {
    %c0_i32 = arith.constant 0 : i32
    %c0_i32_0 = arith.constant 0 : i32
    %c0_i32_1 = arith.constant 0 : i32
    return %c0_i32, %c0_i32_0 : i32, i32
  }
  func.func @transform_10(%arg0: i32, %arg1: i32) -> (i32, i32) {
    %c0_i32 = arith.constant 0 : i32
    %c0_i32_0 = arith.constant 0 : i32
    %c0_i32_1 = arith.constant 0 : i32
    return %c0_i32, %c0_i32_0 : i32, i32
  }
  func.func @transform_11(%arg0: i32, %arg1: i32) -> (i32, i32, i32) {
    %c0_i32 = arith.constant 0 : i32
    %c0_i32_0 = arith.constant 0 : i32
    return %arg0, %c0_i32, %arg1 : i32, i32, i32
  }
}

</mosaic_0001>

<bundles_post_ra>
// kernel: fredv3_decoder_forward.1
= control target key start
LH: loop header
LB: loop body
LE: loop exit
PB: predicated region body
PF: predicated region fallthrough
CT: control target
= control target key end

     0   :  { %16 = vsyncpa [#allocation3], 0  ;;  %s16123_s0 = inlined_call_operand.vmem [shape: f32[1,2048,4], index: 0, kind: input, shape index: {}]   ;;  %s16124_s1 = inlined_call_operand.hbm [shape: bf16[512,2048], index: 1, kind: input, shape index: {}]   ;;  %s16125_s2 = inlined_call_operand.vmem [shape: bf16[512,512], index: 2, kind: input, shape index: {}]   ;;  %s16126_s3 = inlined_call_operand.vmem [shape: bf16[256,512], index: 3, kind: input, shape index: {}]   ;;  %s16127_s4 = inlined_call_operand.hbm [shape: bf16[128,256], index: 4, kind: input, shape index: {}]   ;;  %s16128_s5 = inlined_call_operand.hbm [shape: bf16[128,128], index: 5, kind: input, shape index: {}]   ;;  %s16129_s6 = inlined_call_operand.vmem [shape: f32[512,1], index: 6, kind: input, shape index: {}]   ;;  %s16130_s7 = inlined_call_operand.vmem [shape: f32[512,1], index: 7, kind: input, shape index: {}]   ;;  %s16131_s8 = inlined_call_operand.vmem [shape: f32[256,1], index: 8, kind: input, shape index: {}]   ;;  %s16132_s9 = inlined_call_operand.vmem [shape: f32[128,1], index: 9, kind: input, shape index: {}]   ;;  %s16133_s10 = inlined_call_operand.vmem [shape: f32[128,1], index: 10, kind: input, shape index: {}]   ;;  %s16134_s11 = inlined_call_operand.vmem [shape: bf16[1,128,4], index: 11, kind: output, shape index: {}]  }
   0x1   :  { %17 = vsyncpa [#allocation5], 0  ;;  %s12902_s17 = smov [#allocation4]   ;;  %s12832_s21 = scalar_lea.hbm %s16127_s4, 2048 }
   0x2   :  { %s41_s18 = sshll.u32 %s12902_s17, 4  ;;  %p12833_p0 = scmp.ne.s32.totalorder %s16127_s4, %s12832_s21  ;;  %s42_s18 = int_to_ptr.vmem [resolvable:$true] %s41_s18 }
   0x3   :  { %p12836_p1 = scmp.lt.u32.totalorder %s12832_s21, %s16127_s4 }
   0x5   :  { %p12838_p2 = pnand %p12836_p1, %p12833_p0 }
   0x7   :  { %12841 = shalt.err (!%p12838_p2)
}
   0x8   :  { %s12842_s26 = scalar_lea.vmem %s42_s18, 2048  ;;  %p12847_p4 = scmp.lt.s32.totalorder %s42_s18, %s42_s18 }
   0x9   :  { %p12843_p3 = scmp.ne.s32.totalorder %s42_s18, %s12842_s26  ;;  %p12848_p5 = scmp.lt.s32.totalorder %s12842_s26, %s12842_s26 }
   0xb   :  { %p12849_p6 = por %p12848_p5, %p12847_p4 }
   0xd   :  { %p12850_p7 = pnand %p12849_p6, %p12843_p3 }
   0xf   :  { %12853 = shalt.err (!%p12850_p7)
}
  0x10   :  { %s12903_s27 = smov 128   ;;  %s12904_s28 = smov 8  }
  0x11   :  { %47 = dma.hbm_to_vmem [thread:$0]  %s16127_s4, 2048, %s42_s18, [#allocation5], %s12903_s27, %s12903_s27, %s12904_s28  }
  0x12   :  { %s12905_s12 = smov [#allocation2]   ;;  %s12854_s16 = scalar_lea.hbm %s16124_s1, 65536 }
  0x13   :  { %s25_s13 = sshll.u32 %s12905_s12, 4  ;;  %p12855_p8 = scmp.ne.s32.totalorder %s16124_s1, %s12854_s16  ;;  %s26_s13 = int_to_ptr.vmem [resolvable:$true] %s25_s13 }
  0x14   :  { %p12858_p9 = scmp.lt.u32.totalorder %s12854_s16, %s16124_s1 }
  0x16   :  { %p12860_p10 = pnand %p12858_p9, %p12855_p8 }
  0x18   :  { %12863 = shalt.err (!%p12860_p10)
}
  0x19   :  { %s12864_s22 = scalar_lea.vmem %s26_s13, 65536  ;;  %p12869_p12 = scmp.lt.s32.totalorder %s26_s13, %s26_s13 }
  0x1a   :  { %p12865_p11 = scmp.ne.s32.totalorder %s26_s13, %s12864_s22  ;;  %p12870_p13 = scmp.lt.s32.totalorder %s12864_s22, %s12864_s22 }
  0x1c   :  { %p12871_p0 = por %p12870_p13, %p12869_p12 }
  0x1e   :  { %p12872_p1 = pnand %p12871_p0, %p12865_p11 }
  0x20   :  { %12875 = shalt.err (!%p12872_p1)
}
  0x21   :  { %s12906_s4 = smov 1024   ;;  %s12907_s18 = smov 64  }
  0x22   :  { %31 = dma.hbm_to_vmem [thread:$0]  %s16124_s1, 65536, %s26_s13, [#allocation3], %s12906_s4, %s12906_s4, %s12907_s18  }
  0x23   :  { %s12908_s25 = smov [#allocation6]   ;;  %s12876_s29 = scalar_lea.hbm %s16128_s5, 1024 }
  0x24   :  { %s53_s26 = sshll.u32 %s12908_s25, 4  ;;  %p12877_p2 = scmp.ne.s32.totalorder %s16128_s5, %s12876_s29  ;;  %s54_s26 = int_to_ptr.vmem [resolvable:$true] %s53_s26 }
  0x25   :  { %p12880_p3 = scmp.lt.u32.totalorder %s12876_s29, %s16128_s5 }
  0x27   :  { %p12882_p4 = pnand %p12880_p3, %p12877_p2 }
  0x29   :  { %12885 = shalt.err (!%p12882_p4)
}
  0x2a   :  { %s12886_s16 = scalar_lea.vmem %s54_s26, 1024  ;;  %p12891_p6 = scmp.lt.s32.totalorder %s54_s26, %s54_s26 }
  0x2b   :  { %p12887_p5 = scmp.ne.s32.totalorder %s54_s26, %s12886_s16  ;;  %p12892_p7 = scmp.lt.s32.totalorder %s12886_s16, %s12886_s16 }
  0x2d   :  { %p12893_p8 = por %p12892_p7, %p12891_p6 }
  0x2f   :  { %p12894_p9 = pnand %p12893_p8, %p12887_p5 }
  0x31   :  { %12897 = shalt.err (!%p12894_p9)
}
  0x32   :  { %s12909_s1 = smov 4  }
  0x33   :  { %59 = dma.hbm_to_vmem [thread:$0]  %s16128_s5, 1024, %s54_s26, [#allocation5], %s12907_s18, %s12907_s18, %s12909_s1  }
  0x34   :  { %12898 = dma.done.wait [#allocation3], 65536  }
  0x35   :  { %12899 = vsyncadd [#allocation3], 4294901760 }
  0x36   :  { %12900 = dma.done.wait [#allocation5], 3072  }
  0x37   :  { %12901 = vsyncadd [#allocation5], 4294964224  ;;  %v16135_v0 = vmov 0   ;;  %v144_v1 = vld [vmem:[%s16123_s0 + $0x200] sm:$0xff]  ;;  %v145_v2 = vld [vmem:[%s16123_s0 + $0x208] sm:$0xff]  ;;  %vm9830_vm0 = vcmask 27648  }
  0x38   :  { %4498 = vmatprep.subr.bf16.mxu0 %v16135_v0  ;;  %3920 = vmatprep.subr.bf16.mxu1 %v16135_v0  ;;  %v146_v3 = vld [vmem:[%s16123_s0 + $0x210] sm:$0xff]  ;;  %v13020_v4 = vpack.c.bf16 %v145_v2, %v144_v1  ;;  %v147_v5 = vld [vmem:[%s16123_s0 + $0x218] sm:$0xff]  ;;  %v148_v7 = vld [vmem:[%s16123_s0 + $0x220] sm:$0xff] }
  0x39   :  { %12094 = vset.pattern.permute.xlu0 %v16135_v0  ;;  %12095 = vset.pattern.permute.xlu1 %v16135_v0  ;;  %v13026_v6 = vpack.c.bf16 %v147_v5, %v146_v3  ;;  %v149_v8 = vld [vmem:[%s16123_s0 + $0x228] sm:$0xff]  ;;  %v150_v10 = vld [vmem:[%s16123_s0 + $0x230] sm:$0xff]  ;;  %v151_v11 = vld [vmem:[%s16123_s0 + $0x238] sm:$0xff] }
  0x3a   :  { %4499 = vmatpush1.bf16.msra.mxu0 %v13020_v4  ;;  %v13036_v9 = vpack.c.bf16 %v149_v8, %v148_v7  ;;  %v13045_v12 = vld [vmem:[#allocation2 + $0x10] sm:$0xff]  ;;  %v13048_v13 = vpack.c.bf16 %v151_v11, %v150_v10  ;;  %v152_v15 = vld [vmem:[%s16123_s0 + $0x240] sm:$0xff]  ;;  %v153_v16 = vld [vmem:[%s16123_s0 + $0x248] sm:$0xff] }
  0x3b   :  { %4500 = vmatprep.subr.bf16.mxu0 %v16135_v0  ;;  %v13050_v14 = vld [vmem:[#allocation2 + $0x50] sm:$0xff]  ;;  %v13062_v18 = vpack.c.bf16 %v153_v16, %v152_v15  ;;  %v155_v20 = vld [vmem:[%s16123_s0 + $0x258] sm:$0xff]  ;;  %v156_v21 = vld [vmem:[%s16123_s0 + $0x260] sm:$0xff] }
  0x3c   :  { %v9858_v17 = vcombine.high %v13045_v12, %v13050_v14  ;;  %v154_v19 = vld [vmem:[%s16123_s0 + $0x250] sm:$0xff]  ;;  %v157_v22 = vld [vmem:[%s16123_s0 + $0x268] sm:$0xff]  ;;  %v159_v25 = vld [vmem:[%s16123_s0 + $0x278] sm:$0xff]  ;;  %v9857_v56 = vcombine.low %v13045_v12, %v13050_v14 }
  0x3d   :  { %v13078_v23 = vpack.c.bf16 %v155_v20, %v154_v19  ;;  %v158_v24 = vld [vmem:[%s16123_s0 + $0x270] sm:$0xff]  ;;  %v13088_v26 = vpack.c.bf16 %v157_v22, %v156_v21  ;;  %v160_v27 = vld [vmem:[%s16123_s0 + $0x280] sm:$0xff]  ;;  %v161_v28 = vld [vmem:[%s16123_s0 + $0x288] sm:$0xff] }
  0x3e   :  { %4501 = vmatpush1.bf16.msra.mxu0 %v13026_v6  ;;  %4530 = vmatprep.mubr.bf16.mxu0 %v9858_v17  ;;  %v13098_v29 = vpack.c.bf16 %v159_v25, %v158_v24  ;;  %v162_v30 = vld [vmem:[%s16123_s0 + $0x290] sm:$0xff]  ;;  %v163_v31 = vld [vmem:[%s16123_s0 + $0x298] sm:$0xff]  ;;  %v13108_v32 = vpack.c.bf16 %v161_v28, %v160_v27  ;;  %v164_v33 = vld [vmem:[%s16123_s0 + $0x2a0] sm:$0xff] }
  0x3f   :  { %4502 = vmatprep.subr.bf16.mxu0 %v16135_v0  ;;  %v165_v34 = vld [vmem:[%s16123_s0 + $0x2a8] sm:$0xff]  ;;  %v13118_v35 = vpack.c.bf16 %v163_v31, %v162_v30  ;;  %v166_v36 = vld [vmem:[%s16123_s0 + $0x2b0] sm:$0xff]  ;;  %v167_v37 = vld [vmem:[%s16123_s0 + $0x2b8] sm:$0xff] }
  0x40   :  { %v13128_v38 = vpack.c.bf16 %v165_v34, %v164_v33  ;;  %v168_v39 = vld [vmem:[%s16123_s0 + $0x2c0] sm:$0xff]  ;;  %v169_v40 = vld [vmem:[%s16123_s0 + $0x2c8] sm:$0xff]  ;;  %v13138_v41 = vpack.c.bf16 %v167_v37, %v166_v36  ;;  %v170_v43 = vld [vmem:[%s16123_s0 + $0x2d0] sm:$0xff] }
  0x41   :  { %v13142_v42 = vpack.c.bf16 %v169_v40, %v168_v39  ;;  %v171_v44 = vld [vmem:[%s16123_s0 + $0x2d8] sm:$0xff]  ;;  %v172_v45 = vld [vmem:[%s16123_s0 + $0x2e0] sm:$0xff]  ;;  %v173_v47 = vld [vmem:[%s16123_s0 + $0x2e8] sm:$0xff] }
  0x42   :  { %4503 = vmatpush1.bf16.msra.mxu0 %v13036_v9  ;;  %v13155_v46 = vpack.c.bf16 %v171_v44, %v170_v43  ;;  %v13162_v48 = vpack.c.bf16 %v173_v47, %v172_v45  ;;  %v174_v49 = vld [vmem:[%s16123_s0 + $0x2f0] sm:$0xff]  ;;  %v175_v50 = vld [vmem:[%s16123_s0 + $0x2f8] sm:$0xff]  ;;  %v176_v53 = vld [vmem:[%s16123_s0 + $0x300] sm:$0xff] }
  0x43   :  { %4504 = vmatprep.subr.bf16.mxu0 %v16135_v0  ;;  %v482_v51 = vld [vmem:[#allocation2 + $0x90] sm:$0xff]  ;;  %v13175_v54 = vpack.c.bf16 %v175_v50, %v174_v49  ;;  %v177_v55 = vld [vmem:[%s16123_s0 + $0x308] sm:$0xff]  ;;  %v179_v60 = vld [vmem:[%s16123_s0 + $0x318] sm:$0xff] }
  0x44   :  { %v490_v52 = vld [vmem:[#allocation2 + $0xd0] sm:$0xff]  ;;  %v384_v58 = vpack.c.bf16 %v177_v55, %v176_v53  ;;  %v180_v63 = vld [vmem:[%s16123_s0 + $0x320] sm:$0xff]  ;;  %v181_v2 = vld [vmem:[%s16123_s0 + $0x328] sm:$0xff] }
  0x45   :  { %v9874_v57 = vcombine.high %v482_v51, %v490_v52  ;;  %v178_v59 = vld [vmem:[%s16123_s0 + $0x310] sm:$0xff]  ;;  %v9873_v3 = vcombine.low %v482_v51, %v490_v52  ;;  %v386_v7 = vpack.c.bf16 %v181_v2, %v180_v63  ;;  %v183_v10 = vld [vmem:[%s16123_s0 + $0x338] sm:$0xff]  ;;  %v184_v14 = vld [vmem:[%s16123_s0 + $0x340] sm:$0xff] }
  0x46   :  { %4505 = vmatpush1.bf16.msra.mxu0 %v13048_v13  ;;  %v498_v61 = vld [vmem:[#allocation2 + $0x110] sm:$0xff]  ;;  %v385_v1 = vpack.c.bf16 %v179_v60, %v178_v59  ;;  %v185_v16 = vld [vmem:[%s16123_s0 + $0x348] sm:$0xff]  ;;  %v187_v22 = vld [vmem:[%s16123_s0 + $0x358] sm:$0xff] }
  0x47   :  { %4506 = vmatprep.subr.bf16.mxu0 %v16135_v0  ;;  %v506_v62 = vld [vmem:[#allocation2 + $0x150] sm:$0xff]  ;;  %v388_v20 = vpack.c.bf16 %v185_v16, %v184_v14  ;;  %v188_v27 = vld [vmem:[%s16123_s0 + $0x360] sm:$0xff]  ;;  %v189_v30 = vld [vmem:[%s16123_s0 + $0x368] sm:$0xff] }
  0x48   :  { %v9890_v5 = vcombine.high %v498_v61, %v506_v62  ;;  %v182_v8 = vld [vmem:[%s16123_s0 + $0x330] sm:$0xff]  ;;  %v9889_v17 = vcombine.low %v498_v61, %v506_v62  ;;  %v390_v34 = vpack.c.bf16 %v189_v30, %v188_v27  ;;  %v191_v37 = vld [vmem:[%s16123_s0 + $0x378] sm:$0xff]  ;;  %v192_v43 = vld [vmem:[%s16123_s0 + $0x380] sm:$0xff] }
  0x49   :  { %v514_v11 = vld [vmem:[#allocation2 + $0x190] sm:$0xff]  ;;  %v387_v15 = vpack.c.bf16 %v183_v10, %v182_v8  ;;  %v193_v45 = vld [vmem:[%s16123_s0 + $0x388] sm:$0xff]  ;;  %v195_v52 = vld [vmem:[%s16123_s0 + $0x398] sm:$0xff] }
  0x4a   :  { %4507 = vmatpush1.bf16.msra.mxu0 %v13062_v18  ;;  %v522_v12 = vld [vmem:[#allocation2 + $0x1d0] sm:$0xff]  ;;  %v392_v50 = vpack.c.bf16 %v193_v45, %v192_v43  ;;  %v199_v63 = vld [vmem:[%s16123_s0 + $0x3b8] sm:$0xff] }
  0x4b   :  { %4508 = vmatprep.subr.bf16.mxu0 %v16135_v0  ;;  %v9906_v19 = vcombine.high %v514_v11, %v522_v12  ;;  %v186_v21 = vld [vmem:[%s16123_s0 + $0x350] sm:$0xff]  ;;  %v9905_v31 = vcombine.low %v514_v11, %v522_v12  ;;  %v203_v14 = vld [vmem:[%s16123_s0 + $0x3d8] sm:$0xff] }
  0x4c   :  { %v530_v24 = vld [vmem:[#allocation2 + $0x210] sm:$0xff]  ;;  %v389_v28 = vpack.c.bf16 %v187_v22, %v186_v21  ;;  %v207_v27 = vld [vmem:[%s16123_s0 + $0x3f8] sm:$0xff] }
  0x4d   :  { %v538_v25 = vld [vmem:[#allocation2 + $0x250] sm:$0xff] }
  0x4e   :  { %4509 = vmatpush1.bf16.msra.mxu0 %v13078_v23  ;;  %v9922_v33 = vcombine.high %v530_v24, %v538_v25  ;;  %v190_v36 = vld [vmem:[%s16123_s0 + $0x370] sm:$0xff]  ;;  %v9921_v47 = vcombine.low %v530_v24, %v538_v25 }
  0x4f   :  { %4510 = vmatprep.subr.bf16.mxu0 %v16135_v0  ;;  %v546_v39 = vld [vmem:[#allocation2 + $0x290] sm:$0xff]  ;;  %v391_v44 = vpack.c.bf16 %v191_v37, %v190_v36 }
  0x50   :  { %v554_v40 = vld [vmem:[#allocation2 + $0x2d0] sm:$0xff] }
  0x51   :  { %v9938_v49 = vcombine.high %v546_v39, %v554_v40  ;;  %v194_v51 = vld [vmem:[%s16123_s0 + $0x390] sm:$0xff]  ;;  %v9937_v59 = vcombine.low %v546_v39, %v554_v40 }
  0x52   :  { %4511 = vmatpush1.bf16.msra.mxu0 %v13088_v26  ;;  %v562_v53 = vld [vmem:[#allocation2 + $0x310] sm:$0xff] }
  0x53   :  { %4512 = vmatprep.subr.bf16.mxu0 %v16135_v0  ;;  %v570_v55 = vld [vmem:[#allocation2 + $0x350] sm:$0xff] }
  0x54   :  { %v9954_v60 = vcombine.high %v562_v53, %v570_v55  ;;  %v198_v62 = vld [vmem:[%s16123_s0 + $0x3b0] sm:$0xff]  ;;  %v9953_v8 = vcombine.low %v562_v53, %v570_v55 }
  0x55   :  { %v586_v2 = vld [vmem:[#allocation2 + $0x3d0] sm:$0xff] }
  0x56   :  { %4513 = vmatpush1.bf16.msra.mxu0 %v13098_v29  ;;  %v202_v12 = vld [vmem:[%s16123_s0 + $0x3d0] sm:$0xff] }
  0x57   :  { %4514 = vmatprep.subr.bf16.mxu0 %v16135_v0  ;;  %v397_v16 = vpack.c.bf16 %v203_v14, %v202_v12  ;;  %v206_v25 = vld [vmem:[%s16123_s0 + $0x3f0] sm:$0xff] }
  0x58   :  { %v610_v30 = vld [vmem:[#allocation2 + $0x490] sm:$0xff] }
  0x59   :  { %v626_v36 = vld [vmem:[#allocation2 + $0x510] sm:$0xff] }
  0x5a   :  { %4515 = vmatpush1.bf16.msra.mxu0 %v13108_v32  ;;  %v634_v37 = vld [vmem:[#allocation2 + $0x550] sm:$0xff] }
  0x5b   :  { %4516 = vmatprep.subr.bf16.mxu0 %v16135_v0  ;;  %v10018_v40 = vcombine.high %v626_v36, %v634_v37  ;;  %v642_v43 = vld [vmem:[#allocation2 + $0x590] sm:$0xff]  ;;  %v10017_v45 = vcombine.low %v626_v36, %v634_v37  ;;  %v467_v37 = vld [vmem:[#allocation2 + $0x18] sm:$0xff] }
  0x5c   :  { %v674_v53 = vld [vmem:[#allocation2 + $0x690] sm:$0xff] }
  0x5d   :  { %v682_v55 = vld [vmem:[#allocation2 + $0x6d0] sm:$0xff] }
  0x5e   :  { %4517 = vmatpush1.bf16.msra.mxu0 %v13118_v35 }
  0x5f   :  { %4518 = vmatprep.subr.bf16.mxu0 %v16135_v0 }
  0x62   :  { %4519 = vmatpush1.bf16.msra.mxu0 %v13128_v38 }
  0x63   :  { %4520 = vmatprep.subr.bf16.mxu0 %v16135_v0 }
  0x66   :  { %4521 = vmatpush1.bf16.msra.mxu0 %v13138_v41 }
  0x67   :  { %4522 = vmatprep.subr.bf16.mxu0 %v16135_v0 }
  0x6a   :  { %4523 = vmatpush1.bf16.msra.mxu0 %v13142_v42 }
  0x6b   :  { %4524 = vmatprep.subr.bf16.mxu0 %v16135_v0 }
  0x6e   :  { %4525 = vmatpush1.bf16.msra.mxu0 %v13155_v46 }
  0x6f   :  { %4526 = vmatprep.subr.bf16.mxu0 %v16135_v0 }
  0x72   :  { %4527 = vmatpush1.bf16.msra.mxu0 %v13162_v48 }
  0x73   :  { %4528 = vmatprep.subr.bf16.mxu0 %v16135_v0 }
  0x76   :  { %4529 = vmatpush1.bf16.msra.mxu0 %v13175_v54 }
  0x77   :  { %4787 = vmatprep.subr.bf16.mxu0 %v16135_v0 }
  0x79   :  { %4531 = vmatmul.mubr.bf16.vlgmr.msra.gmra.mrb[0].mxu0 %v9857_v56  ;;  %v196_v56 = vld [vmem:[%s16123_s0 + $0x3a0] sm:$0xff] }
  0x7a   :  { %4538 = vmatprep.mubr.bf16.mxu0 %v9874_v57  ;;  %4788 = vmatpush1.bf16.msra.mxu0 %v384_v58  ;;  %v393_v57 = vpack.c.bf16 %v195_v52, %v194_v51  ;;  %v197_v58 = vld [vmem:[%s16123_s0 + $0x3a8] sm:$0xff] }
  0x7b   :  { %4789 = vmatprep.subr.bf16.mxu0 %v16135_v0  ;;  %v394_v61 = vpack.c.bf16 %v197_v58, %v196_v56  ;;  %v690_v58 = vld [vmem:[#allocation2 + $0x710] sm:$0xff] }
  0x7e   :  { %4790 = vmatpush1.bf16.msra.mxu0 %v385_v1  ;;  %v578_v1 = vld [vmem:[#allocation2 + $0x390] sm:$0xff] }
  0x7f   :  { %4791 = vmatprep.subr.bf16.mxu0 %v16135_v0  ;;  %v9970_v10 = vcombine.high %v578_v1, %v586_v2  ;;  %v9969_v21 = vcombine.low %v578_v1, %v586_v2 }
  0x81   :  { %4539 = vmatmul.mubr.bf16.gmra.mrb[4].mxu0 %v9873_v3  ;;  %v200_v3 = vld [vmem:[%s16123_s0 + $0x3c0] sm:$0xff] }
  0x82   :  { %4546 = vmatprep.mubr.bf16.mxu0 %v9890_v5  ;;  %4792 = vmatpush1.bf16.msra.mxu0 %v386_v7  ;;  %v395_v5 = vpack.c.bf16 %v199_v63, %v198_v62  ;;  %v201_v7 = vld [vmem:[%s16123_s0 + $0x3c8] sm:$0xff]  ;;  %v706_v62 = vld [vmem:[#allocation2 + $0x790] sm:$0xff] }
  0x83   :  { %4793 = vmatprep.subr.bf16.mxu0 %v16135_v0  ;;  %v396_v11 = vpack.c.bf16 %v201_v7, %v200_v3  ;;  %v714_v63 = vld [vmem:[#allocation2 + $0x7d0] sm:$0xff] }
  0x84   :  { %v10098_v2 = vcombine.high %v706_v62, %v714_v63  ;;  %v722_v3 = vld [vmem:[#allocation2 + $0x810] sm:$0xff]  ;;  %v10097_v7 = vcombine.low %v706_v62, %v714_v63  ;;  %v547_v63 = vld [vmem:[#allocation2 + $0x298] sm:$0xff] }
  0x86   :  { %4794 = vmatpush1.bf16.msra.mxu0 %v387_v15  ;;  %v594_v15 = vld [vmem:[#allocation2 + $0x410] sm:$0xff] }
  0x87   :  { %4795 = vmatprep.subr.bf16.mxu0 %v16135_v0 }
  0x89   :  { %4547 = vmatmul.mubr.bf16.gmra.mrb[8].mxu0 %v9889_v17  ;;  %v602_v17 = vld [vmem:[#allocation2 + $0x450] sm:$0xff] }
  0x8a   :  { %4554 = vmatprep.mubr.bf16.mxu0 %v9906_v19  ;;  %4796 = vmatpush1.bf16.msra.mxu0 %v388_v20  ;;  %v204_v19 = vld [vmem:[%s16123_s0 + $0x3e0] sm:$0xff]  ;;  %v205_v20 = vld [vmem:[%s16123_s0 + $0x3e8] sm:$0xff]  ;;  %v9986_v22 = vcombine.high %v594_v15, %v602_v17 }
  0x8b   :  { %4797 = vmatprep.subr.bf16.mxu0 %v16135_v0  ;;  %v398_v24 = vpack.c.bf16 %v205_v20, %v204_v19  ;;  %v770_v20 = vld [vmem:[#allocation2 + $0x990] sm:$0xff] }
  0x8e   :  { %4798 = vmatpush1.bf16.msra.mxu0 %v389_v28  ;;  %v399_v28 = vpack.c.bf16 %v207_v27, %v206_v25  ;;  %v786_v25 = vld [vmem:[#allocation2 + $0xa10] sm:$0xff] }
  0x8f   :  { %4799 = vmatprep.subr.bf16.mxu0 %v16135_v0  ;;  %v794_v27 = vld [vmem:[#allocation2 + $0xa50] sm:$0xff] }
  0x91   :  { %4555 = vmatmul.mubr.bf16.gmra.mrb[12].mxu0 %v9905_v31  ;;  %v618_v31 = vld [vmem:[#allocation2 + $0x4d0] sm:$0xff] }
  0x92   :  { %4562 = vmatprep.mubr.bf16.mxu0 %v9922_v33  ;;  %4800 = vmatpush1.bf16.msra.mxu0 %v390_v34  ;;  %v9985_v33 = vcombine.low %v594_v15, %v602_v17  ;;  %v10002_v34 = vcombine.high %v610_v30, %v618_v31  ;;  %v10001_v39 = vcombine.low %v610_v30, %v618_v31  ;;  %v754_v15 = vld [vmem:[#allocation2 + $0x910] sm:$0xff] }
  0x93   :  { %4801 = vmatprep.subr.bf16.mxu0 %v16135_v0  ;;  %v10178_v30 = vcombine.high %v786_v25, %v794_v27  ;;  %v802_v31 = vld [vmem:[#allocation2 + $0xa90] sm:$0xff] }
  0x96   :  { %4802 = vmatpush1.bf16.msra.mxu0 %v391_v44  ;;  %v650_v44 = vld [vmem:[#allocation2 + $0x5d0] sm:$0xff] }
  0x97   :  { %4803 = vmatprep.subr.bf16.mxu0 %v16135_v0  ;;  %v10033_v51 = vcombine.low %v642_v43, %v650_v44 }
  0x99   :  { %4563 = vmatmul.mubr.bf16.gmra.mrb[16].mxu0 %v9921_v47  ;;  %v10034_v47 = vcombine.high %v642_v43, %v650_v44  ;;  %v483_v44 = vld [vmem:[#allocation2 + $0x98] sm:$0xff] }
  0x9a   :  { %4570 = vmatprep.mubr.bf16.mxu0 %v9938_v49  ;;  %4804 = vmatpush1.bf16.msra.mxu0 %v392_v50  ;;  %v658_v49 = vld [vmem:[#allocation2 + $0x610] sm:$0xff] }
  0x9b   :  { %4805 = vmatprep.subr.bf16.mxu0 %v16135_v0  ;;  %v666_v50 = vld [vmem:[#allocation2 + $0x650] sm:$0xff] }
  0x9c   :  { %v10050_v52 = vcombine.high %v658_v49, %v666_v50  ;;  %v10049_v56 = vcombine.low %v658_v49, %v666_v50  ;;  %v499_v50 = vld [vmem:[#allocation2 + $0x118] sm:$0xff] }
  0x9e   :  { %4806 = vmatpush1.bf16.msra.mxu0 %v393_v57  ;;  %v10066_v57 = vcombine.high %v674_v53, %v682_v55 }
  0x9f   :  { %4807 = vmatprep.subr.bf16.mxu0 %v16135_v0 }
  0xa1   :  { %4571 = vmatmul.mubr.bf16.gmra.mrb[20].mxu0 %v9937_v59  ;;  %v698_v59 = vld [vmem:[#allocation2 + $0x750] sm:$0xff] }
  0xa2   :  { %4578 = vmatprep.mubr.bf16.mxu0 %v9954_v60  ;;  %4808 = vmatpush1.bf16.msra.mxu0 %v394_v61  ;;  %v10065_v60 = vcombine.low %v674_v53, %v682_v55  ;;  %v10082_v61 = vcombine.high %v690_v58, %v698_v59  ;;  %v10081_v1 = vcombine.low %v690_v58, %v698_v59  ;;  %v515_v55 = vld [vmem:[#allocation2 + $0x198] sm:$0xff] }
  0xa3   :  { %4809 = vmatprep.subr.bf16.mxu0 %v16135_v0  ;;  %v531_v59 = vld [vmem:[#allocation2 + $0x218] sm:$0xff] }
  0xa6   :  { %4810 = vmatpush1.bf16.msra.mxu0 %v395_v5  ;;  %v730_v5 = vld [vmem:[#allocation2 + $0x850] sm:$0xff] }
  0xa7   :  { %4811 = vmatprep.subr.bf16.mxu0 %v16135_v0  ;;  %v10113_v12 = vcombine.low %v722_v3, %v730_v5 }
  0xa9   :  { %4579 = vmatmul.mubr.bf16.gmra.mrb[24].mxu0 %v9953_v8  ;;  %v10114_v8 = vcombine.high %v722_v3, %v730_v5  ;;  %v563_v5 = vld [vmem:[#allocation2 + $0x318] sm:$0xff] }
  0xaa   :  { %4586 = vmatprep.mubr.bf16.mxu0 %v9970_v10  ;;  %4812 = vmatpush1.bf16.msra.mxu0 %v396_v11  ;;  %v738_v10 = vld [vmem:[#allocation2 + $0x890] sm:$0xff] }
  0xab   :  { %4813 = vmatprep.subr.bf16.mxu0 %v16135_v0  ;;  %v746_v11 = vld [vmem:[#allocation2 + $0x8d0] sm:$0xff] }
  0xac   :  { %v10130_v14 = vcombine.high %v738_v10, %v746_v11  ;;  %v10129_v17 = vcombine.low %v738_v10, %v746_v11  ;;  %v579_v11 = vld [vmem:[#allocation2 + $0x398] sm:$0xff] }
  0xae   :  { %4814 = vmatpush1.bf16.msra.mxu0 %v397_v16  ;;  %v762_v16 = vld [vmem:[#allocation2 + $0x950] sm:$0xff] }
  0xaf   :  { %4815 = vmatprep.subr.bf16.mxu0 %v16135_v0  ;;  %v10146_v19 = vcombine.high %v754_v15, %v762_v16 }
  0xb1   :  { %4587 = vmatmul.mubr.bf16.gmra.mrb[28].mxu0 %v9969_v21  ;;  %v778_v21 = vld [vmem:[#allocation2 + $0x9d0] sm:$0xff] }
  0xb2   :  { %4594 = vmatprep.mubr.bf16.mxu0 %v9986_v22  ;;  %4816 = vmatpush1.bf16.msra.mxu0 %v398_v24  ;;  %v10145_v22 = vcombine.low %v754_v15, %v762_v16  ;;  %v10162_v24 = vcombine.high %v770_v20, %v778_v21  ;;  %v595_v16 = vld [vmem:[#allocation2 + $0x418] sm:$0xff] }
  0xb3   :  { %4817 = vmatprep.subr.bf16.mxu0 %v16135_v0 }
  0xb6   :  { %4818 = vmatpush1.bf16.msra.mxu0 %v399_v28  ;;  %v10161_v28 = vcombine.low %v770_v20, %v778_v21  ;;  %v611_v21 = vld [vmem:[#allocation2 + $0x498] sm:$0xff] }
  0xb7   :  { %5076 = vmatprep.subr.bf16.mxu0 %v16135_v0 }
  0xb9   :  { %4595 = vmatmul.mubr.bf16.gmra.mrb[32].mxu0 %v9985_v33  ;;  %v810_v33 = vld [vmem:[#allocation2 + $0xad0] sm:$0xff] }
  0xba   :  { %4602 = vmatprep.mubr.bf16.mxu0 %v10002_v34  ;;  %v10177_v34 = vcombine.low %v786_v25, %v794_v27  ;;  %v10194_v36 = vcombine.high %v802_v31, %v810_v33  ;;  %v208_v27 = vld [vmem:[%s16123_s0 + $0x400] sm:$0xff] }
  0xc1   :  { %4603 = vmatmul.mubr.bf16.gmra.mrb[36].mxu0 %v10001_v39  ;;  %v475_v39 = vld [vmem:[#allocation2 + $0x58] sm:$0xff] }
  0xc2   :  { %4610 = vmatprep.mubr.bf16.mxu0 %v10018_v40  ;;  %v10193_v40 = vcombine.low %v802_v31, %v810_v33  ;;  %v9860_v43 = vcombine.high %v467_v37, %v475_v39  ;;  %v210_v31 = vld [vmem:[%s16123_s0 + $0x410] sm:$0xff]  ;;  %v211_v33 = vld [vmem:[%s16123_s0 + $0x418] sm:$0xff] }
  0xc9   :  { %4611 = vmatmul.mubr.bf16.gmra.mrb[40].mxu0 %v10017_v45  ;;  %v491_v45 = vld [vmem:[#allocation2 + $0xd8] sm:$0xff] }
  0xca   :  { %4618 = vmatprep.mubr.bf16.mxu0 %v10034_v47  ;;  %v9859_v47 = vcombine.low %v467_v37, %v475_v39  ;;  %v9876_v49 = vcombine.high %v483_v44, %v491_v45  ;;  %v635_v37 = vld [vmem:[#allocation2 + $0x558] sm:$0xff] }
  0xd1   :  { %4619 = vmatmul.mubr.bf16.gmra.mrb[44].mxu0 %v10033_v51  ;;  %v507_v51 = vld [vmem:[#allocation2 + $0x158] sm:$0xff] }
  0xd2   :  { %4626 = vmatprep.mubr.bf16.mxu0 %v10050_v52  ;;  %v9875_v52 = vcombine.low %v483_v44, %v491_v45  ;;  %v9892_v53 = vcombine.high %v499_v50, %v507_v51  ;;  %v213_v44 = vld [vmem:[%s16123_s0 + $0x428] sm:$0xff] }
  0xd9   :  { %4627 = vmatmul.mubr.bf16.gmra.mrb[48].mxu0 %v10049_v56  ;;  %v523_v56 = vld [vmem:[#allocation2 + $0x1d8] sm:$0xff] }
  0xda   :  { %4634 = vmatprep.mubr.bf16.mxu0 %v10066_v57  ;;  %v9891_v57 = vcombine.low %v499_v50, %v507_v51  ;;  %v9908_v58 = vcombine.high %v515_v55, %v523_v56  ;;  %v643_v51 = vld [vmem:[#allocation2 + $0x598] sm:$0xff] }
  0xe1   :  { %4635 = vmatmul.mubr.bf16.gmra.mrb[52].mxu0 %v10065_v60  ;;  %v539_v60 = vld [vmem:[#allocation2 + $0x258] sm:$0xff] }
  0xe2   :  { %4642 = vmatprep.mubr.bf16.mxu0 %v10082_v61  ;;  %v9907_v61 = vcombine.low %v515_v55, %v523_v56  ;;  %v9924_v62 = vcombine.high %v531_v59, %v539_v60  ;;  %v216_v56 = vld [vmem:[%s16123_s0 + $0x440] sm:$0xff] }
  0xe9   :  { %4643 = vmatmul.mubr.bf16.gmra.mrb[56].mxu0 %v10081_v1  ;;  %v555_v1 = vld [vmem:[#allocation2 + $0x2d8] sm:$0xff] }
  0xea   :  { %4650 = vmatprep.mubr.bf16.mxu0 %v10098_v2  ;;  %v9923_v2 = vcombine.low %v531_v59, %v539_v60  ;;  %v9940_v3 = vcombine.high %v547_v63, %v555_v1  ;;  %v218_v59 = vld [vmem:[%s16123_s0 + $0x450] sm:$0xff]  ;;  %v219_v60 = vld [vmem:[%s16123_s0 + $0x458] sm:$0xff] }
  0xf1   :  { %4651 = vmatmul.mubr.bf16.gmra.mrb[60].mxu0 %v10097_v7  ;;  %v571_v7 = vld [vmem:[#allocation2 + $0x358] sm:$0xff] }
  0xf2   :  { %4658 = vmatprep.mubr.bf16.mxu0 %v10114_v8  ;;  %v9939_v8 = vcombine.low %v547_v63, %v555_v1  ;;  %v9956_v10 = vcombine.high %v563_v5, %v571_v7  ;;  %v667_v63 = vld [vmem:[#allocation2 + $0x658] sm:$0xff] }
  0xf9   :  { %4659 = vmatmul.mubr.bf16.gmra.mrb[64].mxu0 %v10113_v12  ;;  %v587_v12 = vld [vmem:[#allocation2 + $0x3d8] sm:$0xff] }
  0xfa   :  { %4666 = vmatprep.mubr.bf16.mxu0 %v10130_v14  ;;  %v9955_v14 = vcombine.low %v563_v5, %v571_v7  ;;  %v9972_v15 = vcombine.high %v579_v11, %v587_v12  ;;  %v221_v5 = vld [vmem:[%s16123_s0 + $0x468] sm:$0xff] }
 0x101   :  { %4667 = vmatmul.mubr.bf16.gmra.mrb[68].mxu0 %v10129_v17  ;;  %v603_v17 = vld [vmem:[#allocation2 + $0x458] sm:$0xff] }
 0x102   :  { %4674 = vmatprep.mubr.bf16.mxu0 %v10146_v19  ;;  %v9971_v19 = vcombine.low %v579_v11, %v587_v12  ;;  %v9988_v20 = vcombine.high %v595_v16, %v603_v17  ;;  %v675_v12 = vld [vmem:[#allocation2 + $0x698] sm:$0xff] }
 0x109   :  { %4675 = vmatmul.mubr.bf16.gmra.mrb[72].mxu0 %v10145_v22  ;;  %v619_v22 = vld [vmem:[#allocation2 + $0x4d8] sm:$0xff] }
 0x10a   :  { %4682 = vmatprep.mubr.bf16.mxu0 %v10162_v24  ;;  %v9987_v24 = vcombine.low %v595_v16, %v603_v17  ;;  %v10004_v25 = vcombine.high %v611_v21, %v619_v22  ;;  %v10003_v39 = vcombine.low %v611_v21, %v619_v22  ;;  %v224_v17 = vld [vmem:[%s16123_s0 + $0x480] sm:$0xff]  ;;  %v226_v21 = vld [vmem:[%s16123_s0 + $0x490] sm:$0xff]  ;;  %v227_v22 = vld [vmem:[%s16123_s0 + $0x498] sm:$0xff] }
 0x111   :  { %4683 = vmatmul.mubr.bf16.gmra.mrb[76].mxu0 %v10161_v28  ;;  %v209_v28 = vld [vmem:[%s16123_s0 + $0x408] sm:$0xff] }
 0x112   :  { %4690 = vmatprep.mubr.bf16.mxu0 %v10178_v30  ;;  %v400_v30 = vpack.c.bf16 %v209_v28, %v208_v27  ;;  %v699_v27 = vld [vmem:[#allocation2 + $0x758] sm:$0xff] }
 0x119   :  { %4691 = vmatmul.mubr.bf16.gmra.mrb[80].mxu0 %v10177_v34  ;;  %v401_v34 = vpack.c.bf16 %v211_v33, %v210_v31  ;;  %v228_v31 = vld [vmem:[%s16123_s0 + $0x4a0] sm:$0xff]  ;;  %v229_v33 = vld [vmem:[%s16123_s0 + $0x4a8] sm:$0xff] }
 0x11a   :  { %4698 = vmatprep.mubr.bf16.mxu0 %v10194_v36  ;;  %v627_v36 = vld [vmem:[#allocation2 + $0x518] sm:$0xff] }
 0x121   :  { %4699 = vmatmul.mubr.bf16.gmra.mrb[84].mxu0 %v10193_v40  ;;  %v10020_v40 = vcombine.high %v627_v36, %v635_v37 }
 0x122   :  { %4819 = vmatprep.mubr.bf16.mxu0 %v9860_v43  ;;  %v212_v43 = vld [vmem:[%s16123_s0 + $0x420] sm:$0xff] }
 0x123   :  { %v402_v45 = vpack.c.bf16 %v213_v44, %v212_v43  ;;  %v715_v43 = vld [vmem:[#allocation2 + $0x7d8] sm:$0xff] }
 0x129   :  { %4820 = vmatmul.mubr.bf16.vlgmr.msra.gmra.mrb[0].mxu0 %v9859_v47  ;;  %v214_v47 = vld [vmem:[%s16123_s0 + $0x430] sm:$0xff] }
 0x12a   :  { %4827 = vmatprep.mubr.bf16.mxu0 %v9876_v49  ;;  %5077 = vmatpush1.bf16.msra.mxu0 %v400_v30  ;;  %v215_v49 = vld [vmem:[%s16123_s0 + $0x438] sm:$0xff] }
 0x12b   :  { %5078 = vmatprep.subr.bf16.mxu0 %v16135_v0  ;;  %v403_v50 = vpack.c.bf16 %v215_v49, %v214_v47  ;;  %v232_v47 = vld [vmem:[%s16123_s0 + $0x4c0] sm:$0xff]  ;;  %v233_v49 = vld [vmem:[%s16123_s0 + $0x4c8] sm:$0xff] }
 0x12e   :  { %5079 = vmatpush1.bf16.msra.mxu0 %v401_v34  ;;  %v410_v34 = vpack.c.bf16 %v229_v33, %v228_v31  ;;  %v827_v31 = vld [vmem:[#allocation2 + $0xb58] sm:$0xff] }
 0x12f   :  { %5080 = vmatprep.subr.bf16.mxu0 %v16135_v0 }
 0x131   :  { %4828 = vmatmul.mubr.bf16.gmra.mrb[4].mxu0 %v9875_v52  ;;  %v651_v52 = vld [vmem:[#allocation2 + $0x5d8] sm:$0xff] }
 0x132   :  { %4835 = vmatprep.mubr.bf16.mxu0 %v9892_v53  ;;  %5081 = vmatpush1.bf16.msra.mxu0 %v402_v45  ;;  %v10019_v53 = vcombine.low %v627_v36, %v635_v37  ;;  %v10036_v55 = vcombine.high %v643_v51, %v651_v52  ;;  %v10035_v1 = vcombine.low %v643_v51, %v651_v52  ;;  %v230_v36 = vld [vmem:[%s16123_s0 + $0x4b0] sm:$0xff]  ;;  %v231_v37 = vld [vmem:[%s16123_s0 + $0x4b8] sm:$0xff] }
 0x133   :  { %5082 = vmatprep.subr.bf16.mxu0 %v16135_v0  ;;  %v234_v51 = vld [vmem:[%s16123_s0 + $0x4d0] sm:$0xff]  ;;  %v235_v52 = vld [vmem:[%s16123_s0 + $0x4d8] sm:$0xff] }
 0x136   :  { %5083 = vmatpush1.bf16.msra.mxu0 %v403_v50  ;;  %v412_v50 = vpack.c.bf16 %v233_v49, %v232_v47  ;;  %v867_v49 = vld [vmem:[#allocation2 + $0xc98] sm:$0xff] }
 0x137   :  { %5084 = vmatprep.subr.bf16.mxu0 %v16135_v0 }
 0x139   :  { %4836 = vmatmul.mubr.bf16.gmra.mrb[8].mxu0 %v9891_v57  ;;  %v217_v57 = vld [vmem:[%s16123_s0 + $0x448] sm:$0xff] }
 0x13a   :  { %4843 = vmatprep.mubr.bf16.mxu0 %v9908_v58  ;;  %v404_v58 = vpack.c.bf16 %v217_v57, %v216_v56  ;;  %v731_v56 = vld [vmem:[#allocation2 + $0x858] sm:$0xff] }
 0x13c   :  { %5085 = vmatpush1.bf16.msra.mxu0 %v404_v58 }
 0x13d   :  { %5086 = vmatprep.subr.bf16.mxu0 %v16135_v0 }
 0x141   :  { %4844 = vmatmul.mubr.bf16.gmra.mrb[12].mxu0 %v9907_v61  ;;  %v405_v61 = vpack.c.bf16 %v219_v60, %v218_v59  ;;  %v236_v59 = vld [vmem:[%s16123_s0 + $0x4e0] sm:$0xff]  ;;  %v237_v60 = vld [vmem:[%s16123_s0 + $0x4e8] sm:$0xff] }
 0x142   :  { %4851 = vmatprep.mubr.bf16.mxu0 %v9924_v62  ;;  %v659_v62 = vld [vmem:[#allocation2 + $0x618] sm:$0xff] }
 0x143   :  { %5087 = vmatpush1.bf16.msra.mxu0 %v405_v61  ;;  %v414_v61 = vpack.c.bf16 %v237_v60, %v236_v59  ;;  %v907_v59 = vld [vmem:[#allocation2 + $0xdd8] sm:$0xff] }
 0x144   :  { %5088 = vmatprep.subr.bf16.mxu0 %v16135_v0 }
 0x149   :  { %4852 = vmatmul.mubr.bf16.gmra.mrb[16].mxu0 %v9923_v2  ;;  %v10052_v2 = vcombine.high %v659_v62, %v667_v63 }
 0x14a   :  { %4859 = vmatprep.mubr.bf16.mxu0 %v9940_v3  ;;  %v220_v3 = vld [vmem:[%s16123_s0 + $0x460] sm:$0xff] }
 0x14b   :  { %v406_v7 = vpack.c.bf16 %v221_v5, %v220_v3  ;;  %v747_v3 = vld [vmem:[#allocation2 + $0x8d8] sm:$0xff] }
 0x14d   :  { %5089 = vmatpush1.bf16.msra.mxu0 %v406_v7 }
 0x14e   :  { %5090 = vmatprep.subr.bf16.mxu0 %v16135_v0 }
 0x151   :  { %4860 = vmatmul.mubr.bf16.gmra.mrb[20].mxu0 %v9939_v8  ;;  %v222_v8 = vld [vmem:[%s16123_s0 + $0x470] sm:$0xff] }
 0x152   :  { %4867 = vmatprep.mubr.bf16.mxu0 %v9956_v10  ;;  %v223_v10 = vld [vmem:[%s16123_s0 + $0x478] sm:$0xff] }
 0x153   :  { %v407_v11 = vpack.c.bf16 %v223_v10, %v222_v8  ;;  %v755_v8 = vld [vmem:[#allocation2 + $0x918] sm:$0xff] }
 0x154   :  { %v763_v10 = vld [vmem:[#allocation2 + $0x958] sm:$0xff] }
 0x155   :  { %5091 = vmatpush1.bf16.msra.mxu0 %v407_v11 }
 0x156   :  { %5092 = vmatprep.subr.bf16.mxu0 %v16135_v0 }
 0x159   :  { %4868 = vmatmul.mubr.bf16.gmra.mrb[24].mxu0 %v9955_v14  ;;  %v683_v14 = vld [vmem:[#allocation2 + $0x6d8] sm:$0xff] }
 0x15a   :  { %4875 = vmatprep.mubr.bf16.mxu0 %v9972_v15  ;;  %v10051_v15 = vcombine.low %v659_v62, %v667_v63  ;;  %v10068_v16 = vcombine.high %v675_v12, %v683_v14  ;;  %v10067_v28 = vcombine.low %v675_v12, %v683_v14  ;;  %v238_v62 = vld [vmem:[%s16123_s0 + $0x4f0] sm:$0xff]  ;;  %v239_v63 = vld [vmem:[%s16123_s0 + $0x4f8] sm:$0xff]  ;;  %v10148_v12 = vcombine.high %v755_v8, %v763_v10 }
 0x15b   :  { %v771_v14 = vld [vmem:[#allocation2 + $0x998] sm:$0xff] }
 0x161   :  { %4876 = vmatmul.mubr.bf16.gmra.mrb[28].mxu0 %v9971_v19  ;;  %v225_v19 = vld [vmem:[%s16123_s0 + $0x488] sm:$0xff] }
 0x162   :  { %4883 = vmatprep.mubr.bf16.mxu0 %v9988_v20  ;;  %v408_v20 = vpack.c.bf16 %v225_v19, %v224_v17  ;;  %v787_v19 = vld [vmem:[#allocation2 + $0xa18] sm:$0xff] }
 0x164   :  { %5093 = vmatpush1.bf16.msra.mxu0 %v408_v20  ;;  %v795_v20 = vld [vmem:[#allocation2 + $0xa58] sm:$0xff] }
 0x165   :  { %5094 = vmatprep.subr.bf16.mxu0 %v16135_v0 }
 0x169   :  { %4884 = vmatmul.mubr.bf16.gmra.mrb[32].mxu0 %v9987_v24  ;;  %v409_v24 = vpack.c.bf16 %v227_v22, %v226_v21  ;;  %v10180_v22 = vcombine.high %v787_v19, %v795_v20 }
 0x16a   :  { %4891 = vmatprep.mubr.bf16.mxu0 %v10004_v25  ;;  %v691_v25 = vld [vmem:[#allocation2 + $0x718] sm:$0xff] }
 0x16b   :  { %v10084_v30 = vcombine.high %v691_v25, %v699_v27  ;;  %5095 = vmatpush1.bf16.msra.mxu0 %v409_v24  ;;  %v10083_v44 = vcombine.low %v691_v25, %v699_v27  ;;  %v803_v24 = vld [vmem:[#allocation2 + $0xa98] sm:$0xff]  ;;  %v10179_v27 = vcombine.low %v787_v19, %v795_v20  ;;  %v82_v19 = vld [vmem:[%s16123_s0 + $0x10] sm:$0xff] }
 0x16c   :  { %5096 = vmatprep.subr.bf16.mxu0 %v16135_v0  ;;  %v811_v25 = vld [vmem:[#allocation2 + $0xad8] sm:$0xff] }
 0x16d   :  { %v10195_v33 = vcombine.low %v803_v24, %v811_v25  ;;  %v83_v20 = vld [vmem:[%s16123_s0 + $0x18] sm:$0xff] }
 0x16f   :  { %5097 = vmatpush1.bf16.msra.mxu0 %v410_v34 }
 0x170   :  { %5098 = vmatprep.subr.bf16.mxu0 %v16135_v0 }
 0x171   :  { %4892 = vmatmul.mubr.bf16.gmra.mrb[36].mxu0 %v10003_v39  ;;  %v411_v39 = vpack.c.bf16 %v231_v37, %v230_v36  ;;  %v835_v36 = vld [vmem:[#allocation2 + $0xb98] sm:$0xff] }
 0x172   :  { %4899 = vmatprep.mubr.bf16.mxu0 %v10020_v40  ;;  %v707_v40 = vld [vmem:[#allocation2 + $0x798] sm:$0xff] }
 0x173   :  { %v10100_v45 = vcombine.high %v707_v40, %v715_v43  ;;  %5099 = vmatpush1.bf16.msra.mxu0 %v411_v39  ;;  %v10099_v57 = vcombine.low %v707_v40, %v715_v43  ;;  %v843_v37 = vld [vmem:[#allocation2 + $0xbd8] sm:$0xff] }
 0x174   :  { %5100 = vmatprep.subr.bf16.mxu0 %v16135_v0  ;;  %v10228_v40 = vcombine.high %v835_v36, %v843_v37  ;;  %v851_v43 = vld [vmem:[#allocation2 + $0xc18] sm:$0xff] }
 0x177   :  { %5101 = vmatpush1.bf16.msra.mxu0 %v412_v50  ;;  %v875_v50 = vld [vmem:[#allocation2 + $0xcd8] sm:$0xff] }
 0x178   :  { %5102 = vmatprep.subr.bf16.mxu0 %v16135_v0 }
 0x179   :  { %4900 = vmatmul.mubr.bf16.gmra.mrb[40].mxu0 %v10019_v53  ;;  %v413_v53 = vpack.c.bf16 %v235_v52, %v234_v51  ;;  %v10260_v52 = vcombine.high %v867_v49, %v875_v50 }
 0x17a   :  { %4907 = vmatprep.mubr.bf16.mxu0 %v10036_v55  ;;  %v723_v55 = vld [vmem:[#allocation2 + $0x818] sm:$0xff] }
 0x17b   :  { %v10116_v58 = vcombine.high %v723_v55, %v731_v56  ;;  %5103 = vmatpush1.bf16.msra.mxu0 %v413_v53  ;;  %v10115_v5 = vcombine.low %v723_v55, %v731_v56  ;;  %v883_v53 = vld [vmem:[#allocation2 + $0xd18] sm:$0xff]  ;;  %v10259_v56 = vcombine.low %v867_v49, %v875_v50  ;;  %v90_v49 = vld [vmem:[%s16123_s0 + $0x50] sm:$0xff] }
 0x17c   :  { %5104 = vmatprep.subr.bf16.mxu0 %v16135_v0  ;;  %v891_v55 = vld [vmem:[#allocation2 + $0xd58] sm:$0xff] }
 0x17d   :  { %v10275_v60 = vcombine.low %v883_v53, %v891_v55  ;;  %v91_v50 = vld [vmem:[%s16123_s0 + $0x58] sm:$0xff] }
 0x17f   :  { %5105 = vmatpush1.bf16.msra.mxu0 %v414_v61 }
 0x180   :  { %5106 = vmatprep.subr.bf16.mxu0 %v16135_v0 }
 0x181   :  { %4908 = vmatmul.mubr.bf16.gmra.mrb[44].mxu0 %v10035_v1  ;;  %v415_v1 = vpack.c.bf16 %v239_v63, %v238_v62  ;;  %v915_v62 = vld [vmem:[#allocation2 + $0xe18] sm:$0xff] }
 0x182   :  { %4915 = vmatprep.mubr.bf16.mxu0 %v10052_v2  ;;  %v739_v2 = vld [vmem:[#allocation2 + $0x898] sm:$0xff] }
 0x183   :  { %v10132_v7 = vcombine.high %v739_v2, %v747_v3  ;;  %5107 = vmatpush1.bf16.msra.mxu0 %v415_v1  ;;  %v10131_v11 = vcombine.low %v739_v2, %v747_v3  ;;  %v923_v63 = vld [vmem:[#allocation2 + $0xe58] sm:$0xff] }
 0x184   :  { %5365 = vmatprep.subr.bf16.mxu0 %v16135_v0  ;;  %v10308_v2 = vcombine.high %v915_v62, %v923_v63  ;;  %v931_v3 = vld [vmem:[#allocation2 + $0xe98] sm:$0xff] }
 0x189   :  { %4916 = vmatmul.mubr.bf16.gmra.mrb[48].mxu0 %v10051_v15  ;;  %v779_v15 = vld [vmem:[#allocation2 + $0x9d8] sm:$0xff] }
 0x18a   :  { %4923 = vmatprep.mubr.bf16.mxu0 %v10068_v16  ;;  %v10147_v16 = vcombine.low %v755_v8, %v763_v10  ;;  %v10164_v17 = vcombine.high %v771_v14, %v779_v15  ;;  %v10163_v21 = vcombine.low %v771_v14, %v779_v15  ;;  %v947_v10 = vld [vmem:[#allocation2 + $0xf18] sm:$0xff]  ;;  %v80_v15 = vld [vmem:[%s16123_s0] sm:$0xff] }
 0x191   :  { %4924 = vmatmul.mubr.bf16.gmra.mrb[52].mxu0 %v10067_v28  ;;  %v10196_v28 = vcombine.high %v803_v24, %v811_v25  ;;  %v337_v24 = vpack.c.bf16 %v83_v20, %v82_v19  ;;  %v100_v19 = vld [vmem:[%s16123_s0 + $0xa0] sm:$0xff]  ;;  %v101_v20 = vld [vmem:[%s16123_s0 + $0xa8] sm:$0xff] }
 0x192   :  { %4931 = vmatprep.mubr.bf16.mxu0 %v10084_v30  ;;  %v819_v30 = vld [vmem:[#allocation2 + $0xb18] sm:$0xff] }
 0x193   :  { %v10212_v34 = vcombine.high %v819_v30, %v827_v31  ;;  %v10211_v39 = vcombine.low %v819_v30, %v827_v31  ;;  %v85_v30 = vld [vmem:[%s16123_s0 + $0x28] sm:$0xff] }
 0x199   :  { %4932 = vmatmul.mubr.bf16.gmra.mrb[56].mxu0 %v10083_v44  ;;  %v859_v44 = vld [vmem:[#allocation2 + $0xc58] sm:$0xff] }
 0x19a   :  { %4939 = vmatprep.mubr.bf16.mxu0 %v10100_v45  ;;  %v10227_v45 = vcombine.low %v835_v36, %v843_v37  ;;  %v10244_v47 = vcombine.high %v851_v43, %v859_v44  ;;  %v10243_v51 = vcombine.low %v851_v43, %v859_v44  ;;  %v468_v36 = vld [vmem:[#allocation2 + $0x20] sm:$0xff] }
 0x19b   :  { %v476_v37 = vld [vmem:[#allocation2 + $0x60] sm:$0xff] }
 0x19c   :  { %v9862_v43 = vcombine.high %v468_v36, %v476_v37  ;;  %v88_v44 = vld [vmem:[%s16123_s0 + $0x40] sm:$0xff] }
 0x1a1   :  { %4940 = vmatmul.mubr.bf16.gmra.mrb[60].mxu0 %v10099_v57  ;;  %v10276_v57 = vcombine.high %v883_v53, %v891_v55  ;;  %v341_v53 = vpack.c.bf16 %v91_v50, %v90_v49  ;;  %v9861_v55 = vcombine.low %v468_v36, %v476_v37  ;;  %v106_v37 = vld [vmem:[%s16123_s0 + $0xd0] sm:$0xff]  ;;  %v108_v49 = vld [vmem:[%s16123_s0 + $0xe0] sm:$0xff]  ;;  %v109_v50 = vld [vmem:[%s16123_s0 + $0xe8] sm:$0xff] }
 0x1a2   :  { %4947 = vmatprep.mubr.bf16.mxu0 %v10116_v58  ;;  %v899_v58 = vld [vmem:[#allocation2 + $0xd98] sm:$0xff] }
 0x1a3   :  { %v10292_v61 = vcombine.high %v899_v58, %v907_v59  ;;  %v10291_v1 = vcombine.low %v899_v58, %v907_v59  ;;  %v93_v58 = vld [vmem:[%s16123_s0 + $0x68] sm:$0xff] }
 0x1a9   :  { %4948 = vmatmul.mubr.bf16.gmra.mrb[64].mxu0 %v10115_v5  ;;  %v939_v5 = vld [vmem:[#allocation2 + $0xed8] sm:$0xff] }
 0x1aa   :  { %4955 = vmatprep.mubr.bf16.mxu0 %v10132_v7  ;;  %v10307_v7 = vcombine.low %v915_v62, %v923_v63  ;;  %v10324_v8 = vcombine.high %v931_v3, %v939_v5  ;;  %v500_v62 = vld [vmem:[#allocation2 + $0x120] sm:$0xff] }
 0x1ab   :  { %v508_v63 = vld [vmem:[#allocation2 + $0x160] sm:$0xff] }
 0x1b1   :  { %4956 = vmatmul.mubr.bf16.gmra.mrb[68].mxu0 %v10131_v11  ;;  %v955_v11 = vld [vmem:[#allocation2 + $0xf58] sm:$0xff] }
 0x1b2   :  { %4963 = vmatprep.mubr.bf16.mxu0 %v10148_v12  ;;  %v10323_v12 = vcombine.low %v931_v3, %v939_v5  ;;  %v10340_v14 = vcombine.high %v947_v10, %v955_v11  ;;  %v10339_v25 = vcombine.low %v947_v10, %v955_v11  ;;  %v9894_v3 = vcombine.high %v500_v62, %v508_v63  ;;  %v96_v5 = vld [vmem:[%s16123_s0 + $0x80] sm:$0xff]  ;;  %v98_v10 = vld [vmem:[%s16123_s0 + $0x90] sm:$0xff]  ;;  %v99_v11 = vld [vmem:[%s16123_s0 + $0x98] sm:$0xff] }
 0x1b9   :  { %4964 = vmatmul.mubr.bf16.gmra.mrb[72].mxu0 %v10147_v16  ;;  %v81_v16 = vld [vmem:[%s16123_s0 + $0x8] sm:$0xff] }
 0x1ba   :  { %4971 = vmatprep.mubr.bf16.mxu0 %v10164_v17  ;;  %v336_v17 = vpack.c.bf16 %v81_v16, %v80_v15  ;;  %v345_v15 = vpack.c.bf16 %v99_v11, %v98_v10  ;;  %v9893_v16 = vcombine.low %v500_v62, %v508_v63 }
 0x1bc   :  { %3921 = vmatpush1.bf16.msra.mxu1 %v336_v17 }
 0x1bd   :  { %3922 = vmatprep.subr.bf16.mxu1 %v16135_v0 }
 0x1c0   :  { %3923 = vmatpush1.bf16.msra.mxu1 %v337_v24  ;;  %v103_v24 = vld [vmem:[%s16123_s0 + $0xb8] sm:$0xff] }
 0x1c1   :  { %4972 = vmatmul.mubr.bf16.gmra.mrb[76].mxu0 %v10163_v21  ;;  %v963_v21 = vld [vmem:[#allocation2 + $0xf98] sm:$0xff]  ;;  %3924 = vmatprep.subr.bf16.mxu1 %v16135_v0 }
 0x1c2   :  { %4979 = vmatprep.mubr.bf16.mxu0 %v10180_v22  ;;  %v971_v22 = vld [vmem:[#allocation2 + $0xfd8] sm:$0xff] }
 0x1c9   :  { %4980 = vmatmul.mubr.bf16.gmra.mrb[80].mxu0 %v10179_v27  ;;  %v10356_v27 = vcombine.high %v963_v21, %v971_v22 }
 0x1ca   :  { %4987 = vmatprep.mubr.bf16.mxu0 %v10196_v28  ;;  %v84_v28 = vld [vmem:[%s16123_s0 + $0x20] sm:$0xff] }
 0x1cb   :  { %v338_v31 = vpack.c.bf16 %v85_v30, %v84_v28 }
 0x1cd   :  { %3925 = vmatpush1.bf16.msra.mxu1 %v338_v31 }
 0x1ce   :  { %3926 = vmatprep.subr.bf16.mxu1 %v16135_v0 }
 0x1d1   :  { %4988 = vmatmul.mubr.bf16.gmra.mrb[84].mxu0 %v10195_v33  ;;  %v86_v33 = vld [vmem:[%s16123_s0 + $0x30] sm:$0xff] }
 0x1d2   :  { %4995 = vmatprep.mubr.bf16.mxu0 %v10212_v34  ;;  %v87_v34 = vld [vmem:[%s16123_s0 + $0x38] sm:$0xff] }
 0x1d9   :  { %4996 = vmatmul.mubr.bf16.gmra.mrb[88].mxu0 %v10211_v39  ;;  %v339_v39 = vpack.c.bf16 %v87_v34, %v86_v33  ;;  %v104_v33 = vld [vmem:[%s16123_s0 + $0xc0] sm:$0xff]  ;;  %v105_v34 = vld [vmem:[%s16123_s0 + $0xc8] sm:$0xff] }
 0x1da   :  { %5003 = vmatprep.mubr.bf16.mxu0 %v10228_v40  ;;  %v10355_v40 = vcombine.low %v963_v21, %v971_v22  ;;  %v346_v21 = vpack.c.bf16 %v101_v20, %v100_v19  ;;  %v102_v22 = vld [vmem:[%s16123_s0 + $0xb0] sm:$0xff]  ;;  %v348_v36 = vpack.c.bf16 %v105_v34, %v104_v33  ;;  %v504_v19 = vld [vmem:[#allocation2 + $0x140] sm:$0xff] }
 0x1db   :  { %3927 = vmatpush1.bf16.msra.mxu1 %v339_v39  ;;  %v347_v28 = vpack.c.bf16 %v103_v24, %v102_v22  ;;  %v107_v39 = vld [vmem:[%s16123_s0 + $0xd8] sm:$0xff]  ;;  %v612_v22 = vld [vmem:[#allocation2 + $0x4a0] sm:$0xff] }
 0x1dc   :  { %3928 = vmatprep.subr.bf16.mxu1 %v16135_v0  ;;  %v620_v24 = vld [vmem:[#allocation2 + $0x4e0] sm:$0xff] }
 0x1dd   :  { %v512_v33 = vld [vmem:[#allocation2 + $0x180] sm:$0xff] }
 0x1de   :  { %v520_v34 = vld [vmem:[#allocation2 + $0x1c0] sm:$0xff] }
 0x1e1   :  { %5004 = vmatmul.mubr.bf16.gmra.mrb[92].mxu0 %v10227_v45  ;;  %v89_v45 = vld [vmem:[%s16123_s0 + $0x48] sm:$0xff] }
 0x1e2   :  { %5011 = vmatprep.mubr.bf16.mxu0 %v10244_v47  ;;  %v340_v47 = vpack.c.bf16 %v89_v45, %v88_v44  ;;  %v349_v44 = vpack.c.bf16 %v107_v39, %v106_v37  ;;  %v9901_v37 = vcombine.low %v512_v33, %v520_v34  ;;  %v242_v39 = vld [vmem:[%s16123_s0 + $0x510] sm:$0xff] }
 0x1e4   :  { %3929 = vmatpush1.bf16.msra.mxu1 %v340_v47 }
 0x1e5   :  { %3930 = vmatprep.subr.bf16.mxu1 %v16135_v0 }
 0x1e8   :  { %3931 = vmatpush1.bf16.msra.mxu1 %v341_v53  ;;  %v111_v53 = vld [vmem:[%s16123_s0 + $0xf8] sm:$0xff] }
 0x1e9   :  { %5012 = vmatmul.mubr.bf16.gmra.mrb[96].mxu0 %v10243_v51  ;;  %v484_v51 = vld [vmem:[#allocation2 + $0xa0] sm:$0xff]  ;;  %3932 = vmatprep.subr.bf16.mxu1 %v16135_v0 }
 0x1ea   :  { %5019 = vmatprep.mubr.bf16.mxu0 %v10260_v52  ;;  %v492_v52 = vld [vmem:[#allocation2 + $0xe0] sm:$0xff] }
 0x1f1   :  { %5020 = vmatmul.mubr.bf16.gmra.mrb[100].mxu0 %v10259_v56  ;;  %v9878_v56 = vcombine.high %v484_v51, %v492_v52 }
 0x1f2   :  { %5027 = vmatprep.mubr.bf16.mxu0 %v10276_v57  ;;  %v92_v57 = vld [vmem:[%s16123_s0 + $0x60] sm:$0xff] }
 0x1f3   :  { %v342_v59 = vpack.c.bf16 %v93_v58, %v92_v57 }
 0x1f5   :  { %3933 = vmatpush1.bf16.msra.mxu1 %v342_v59 }
 0x1f6   :  { %3934 = vmatprep.subr.bf16.mxu1 %v16135_v0 }
 0x1f9   :  { %5028 = vmatmul.mubr.bf16.gmra.mrb[104].mxu0 %v10275_v60  ;;  %v94_v60 = vld [vmem:[%s16123_s0 + $0x70] sm:$0xff] }
 0x1fa   :  { %5035 = vmatprep.mubr.bf16.mxu0 %v10292_v61  ;;  %v95_v61 = vld [vmem:[%s16123_s0 + $0x78] sm:$0xff] }
 0x201   :  { %5036 = vmatmul.mubr.bf16.gmra.mrb[108].mxu0 %v10291_v1  ;;  %v343_v1 = vpack.c.bf16 %v95_v61, %v94_v60  ;;  %v464_v60 = vld [vmem:[#allocation2] sm:$0xff] }
 0x202   :  { %5043 = vmatprep.mubr.bf16.mxu0 %v10308_v2  ;;  %v9877_v2 = vcombine.low %v484_v51, %v492_v52  ;;  %v350_v51 = vpack.c.bf16 %v109_v50, %v108_v49  ;;  %v110_v52 = vld [vmem:[%s16123_s0 + $0xf0] sm:$0xff]  ;;  %v472_v61 = vld [vmem:[#allocation2 + $0x40] sm:$0xff] }
 0x203   :  { %3935 = vmatpush1.bf16.msra.mxu1 %v343_v1  ;;  %v351_v57 = vpack.c.bf16 %v111_v53, %v110_v52  ;;  %v9853_v62 = vcombine.low %v464_v60, %v472_v61  ;;  %v9854_v63 = vcombine.high %v464_v60, %v472_v61  ;;  %v580_v1 = vld [vmem:[#allocation2 + $0x3a0] sm:$0xff] }
 0x204   :  { %3936 = vmatprep.subr.bf16.mxu1 %v16135_v0  ;;  %v244_v50 = vld [vmem:[%s16123_s0 + $0x520] sm:$0xff] }
 0x205   :  { %3952 = vmatprep.mubr.bf16.mxu1 %v9854_v63  ;;  %v528_v53 = vld [vmem:[#allocation2 + $0x200] sm:$0xff] }
 0x206   :  { %v644_v61 = vld [vmem:[#allocation2 + $0x5a0] sm:$0xff] }
 0x209   :  { %5044 = vmatmul.mubr.bf16.gmra.mrb[112].mxu0 %v10307_v7  ;;  %v97_v7 = vld [vmem:[%s16123_s0 + $0x88] sm:$0xff] }
 0x20a   :  { %5051 = vmatprep.mubr.bf16.mxu0 %v10324_v8  ;;  %v344_v8 = vpack.c.bf16 %v97_v7, %v96_v5  ;;  %v480_v7 = vld [vmem:[#allocation2 + $0x80] sm:$0xff] }
 0x20c   :  { %3937 = vmatpush1.bf16.msra.mxu1 %v344_v8  ;;  %v488_v8 = vld [vmem:[#allocation2 + $0xc0] sm:$0xff] }
 0x20d   :  { %3938 = vmatprep.subr.bf16.mxu1 %v16135_v0  ;;  %v9870_v10 = vcombine.high %v480_v7, %v488_v8  ;;  %v9869_v11 = vcombine.low %v480_v7, %v488_v8  ;;  %v544_v7 = vld [vmem:[#allocation2 + $0x280] sm:$0xff] }
 0x20e   :  { %v552_v8 = vld [vmem:[#allocation2 + $0x2c0] sm:$0xff] }
 0x210   :  { %3939 = vmatpush1.bf16.msra.mxu1 %v345_v15 }
 0x211   :  { %5052 = vmatmul.mubr.bf16.gmra.mrb[116].mxu0 %v10323_v12  ;;  %v516_v12 = vld [vmem:[#allocation2 + $0x1a0] sm:$0xff]  ;;  %3940 = vmatprep.subr.bf16.mxu1 %v16135_v0 }
 0x212   :  { %5059 = vmatprep.mubr.bf16.mxu0 %v10340_v14  ;;  %v524_v14 = vld [vmem:[#allocation2 + $0x1e0] sm:$0xff] }
 0x213   :  { %v9910_v17 = vcombine.high %v516_v12, %v524_v14  ;;  %v9909_v30 = vcombine.low %v516_v12, %v524_v14  ;;  %v596_v12 = vld [vmem:[#allocation2 + $0x420] sm:$0xff] }
 0x214   :  { %3941 = vmatpush1.bf16.msra.mxu1 %v346_v21  ;;  %v604_v14 = vld [vmem:[#allocation2 + $0x460] sm:$0xff] }
 0x215   :  { %3942 = vmatprep.subr.bf16.mxu1 %v16135_v0 }
 0x218   :  { %3943 = vmatpush1.bf16.msra.mxu1 %v347_v28  ;;  %v240_v28 = vld [vmem:[%s16123_s0 + $0x500] sm:$0xff] }
 0x219   :  { %5060 = vmatmul.mubr.bf16.gmra.mrb[120].mxu0 %v10339_v25  ;;  %v532_v25 = vld [vmem:[#allocation2 + $0x220] sm:$0xff]  ;;  %3944 = vmatprep.subr.bf16.mxu1 %v16135_v0 }
 0x21a   :  { %5067 = vmatprep.mubr.bf16.mxu0 %v10356_v27  ;;  %v540_v27 = vld [vmem:[#allocation2 + $0x260] sm:$0xff] }
 0x21b   :  { %v9926_v31 = vcombine.high %v532_v25, %v540_v27  ;;  %v9925_v45 = vcombine.low %v532_v25, %v540_v27  ;;  %v9989_v25 = vcombine.low %v596_v12, %v604_v14  ;;  %v10006_v27 = vcombine.high %v612_v22, %v620_v24 }
 0x21c   :  { %3945 = vmatpush1.bf16.msra.mxu1 %v348_v36  ;;  %v9902_v36 = vcombine.high %v512_v33, %v520_v34  ;;  %v255_v33 = vld [vmem:[%s16123_s0 + $0x578] sm:$0xff] }
 0x21d   :  { %3946 = vmatprep.subr.bf16.mxu1 %v16135_v0 }
 0x220   :  { %3947 = vmatpush1.bf16.msra.mxu1 %v349_v44  ;;  %v628_v44 = vld [vmem:[#allocation2 + $0x520] sm:$0xff] }
 0x221   :  { %5068 = vmatmul.mubr.bf16.gmra.mrb[124].mxu0 %v10355_v40  ;;  %v548_v40 = vld [vmem:[#allocation2 + $0x2a0] sm:$0xff]  ;;  %3948 = vmatprep.subr.bf16.mxu1 %v16135_v0 }
 0x222   :  { %5108 = vmatprep.mubr.bf16.mxu0 %v9862_v43  ;;  %v556_v43 = vld [vmem:[#allocation2 + $0x2e0] sm:$0xff] }
 0x223   :  { %v9942_v47 = vcombine.high %v548_v40, %v556_v43  ;;  %v9941_v58 = vcombine.low %v548_v40, %v556_v43  ;;  %v243_v40 = vld [vmem:[%s16123_s0 + $0x518] sm:$0xff] }
 0x224   :  { %3949 = vmatpush1.bf16.msra.mxu1 %v350_v51  ;;  %v417_v43 = vpack.c.bf16 %v243_v40, %v242_v39  ;;  %v245_v51 = vld [vmem:[%s16123_s0 + $0x528] sm:$0xff] }
 0x225   :  { %3950 = vmatprep.subr.bf16.mxu1 %v16135_v0  ;;  %v418_v52 = vpack.c.bf16 %v245_v51, %v244_v50 }
 0x228   :  { %3951 = vmatpush1.bf16.msra.mxu1 %v351_v57 }
 0x229   :  { %5109 = vmatmul.mubr.bf16.vlgmr.msra.gmra.mrb[0].mxu0 %v9861_v55  ;;  %v564_v55 = vld [vmem:[#allocation2 + $0x320] sm:$0xff]  ;;  %4209 = vmatprep.subr.bf16.mxu1 %v16135_v0 }
 0x22a   :  { %5116 = vmatprep.mubr.bf16.mxu0 %v9878_v56  ;;  %v572_v56 = vld [vmem:[#allocation2 + $0x360] sm:$0xff] }
 0x22b   :  { %v9958_v59 = vcombine.high %v564_v55, %v572_v56  ;;  %3953 = vmatmul.mubr.bf16.vlgmr.msra.gmra.mrb[0].mxu1 %v9853_v62  ;;  %v652_v62 = vld [vmem:[#allocation2 + $0x5e0] sm:$0xff] }
 0x22c   :  { %3960 = vmatprep.mubr.bf16.mxu1 %v9870_v10  ;;  %v9934_v10 = vcombine.high %v544_v7, %v552_v8 }
 0x231   :  { %5117 = vmatmul.mubr.bf16.gmra.mrb[4].mxu0 %v9877_v2  ;;  %v588_v2 = vld [vmem:[#allocation2 + $0x3e0] sm:$0xff] }
 0x232   :  { %5124 = vmatprep.mubr.bf16.mxu0 %v9894_v3  ;;  %v9957_v3 = vcombine.low %v564_v55, %v572_v56  ;;  %v9974_v5 = vcombine.high %v580_v1, %v588_v2  ;;  %v9973_v15 = vcombine.low %v580_v1, %v588_v2  ;;  %v536_v55 = vld [vmem:[#allocation2 + $0x240] sm:$0xff]  ;;  %v10038_v1 = vcombine.high %v644_v61, %v652_v62 }
 0x233   :  { %3961 = vmatmul.mubr.bf16.gmra.mrb[4].mxu1 %v9869_v11  ;;  %v9918_v56 = vcombine.high %v528_v53, %v536_v55  ;;  %v9917_v57 = vcombine.low %v528_v53, %v536_v55  ;;  %v248_v2 = vld [vmem:[%s16123_s0 + $0x540] sm:$0xff]  ;;  %v9933_v11 = vcombine.low %v544_v7, %v552_v8  ;;  %v259_v53 = vld [vmem:[%s16123_s0 + $0x598] sm:$0xff] }
 0x234   :  { %v263_v7 = vld [vmem:[%s16123_s0 + $0x5b8] sm:$0xff] }
 0x239   :  { %5125 = vmatmul.mubr.bf16.gmra.mrb[8].mxu0 %v9893_v16  ;;  %v9990_v16 = vcombine.high %v596_v12, %v604_v14  ;;  %v250_v12 = vld [vmem:[%s16123_s0 + $0x550] sm:$0xff]  ;;  %v251_v14 = vld [vmem:[%s16123_s0 + $0x558] sm:$0xff] }
 0x23a   :  { %5132 = vmatprep.mubr.bf16.mxu0 %v9910_v17  ;;  %v496_v17 = vld [vmem:[#allocation2 + $0x100] sm:$0xff] }
 0x23b   :  { %v9886_v20 = vcombine.high %v496_v17, %v504_v19  ;;  %v9885_v21 = vcombine.low %v496_v17, %v504_v19  ;;  %v668_v17 = vld [vmem:[#allocation2 + $0x660] sm:$0xff]  ;;  %v10037_v19 = vcombine.low %v644_v61, %v652_v62  ;;  %v261_v61 = vld [vmem:[%s16123_s0 + $0x5a8] sm:$0xff] }
 0x23d   :  { %3968 = vmatprep.mubr.bf16.mxu1 %v9886_v20 }
 0x23e   :  { %3969 = vmatmul.mubr.bf16.gmra.mrb[8].mxu1 %v9885_v21  ;;  %v252_v21 = vld [vmem:[%s16123_s0 + $0x560] sm:$0xff] }
 0x23f   :  { %3976 = vmatprep.mubr.bf16.mxu1 %v9902_v36  ;;  %v676_v36 = vld [vmem:[#allocation2 + $0x6a0] sm:$0xff] }
 0x241   :  { %5133 = vmatmul.mubr.bf16.gmra.mrb[12].mxu0 %v9909_v30  ;;  %v241_v30 = vld [vmem:[%s16123_s0 + $0x508] sm:$0xff] }
 0x242   :  { %5140 = vmatprep.mubr.bf16.mxu0 %v9926_v31  ;;  %v416_v31 = vpack.c.bf16 %v241_v30, %v240_v28 }
 0x244   :  { %5366 = vmatpush1.bf16.msra.mxu0 %v416_v31  ;;  %v254_v31 = vld [vmem:[%s16123_s0 + $0x570] sm:$0xff] }
 0x245   :  { %5367 = vmatprep.subr.bf16.mxu0 %v16135_v0  ;;  %v423_v34 = vpack.c.bf16 %v255_v33, %v254_v31 }
 0x246   :  { %3977 = vmatmul.mubr.bf16.gmra.mrb[12].mxu1 %v9901_v37  ;;  %v684_v37 = vld [vmem:[#allocation2 + $0x6e0] sm:$0xff] }
 0x247   :  { %3984 = vmatprep.mubr.bf16.mxu1 %v9918_v56  ;;  %v10070_v40 = vcombine.high %v676_v36, %v684_v37  ;;  %v692_v56 = vld [vmem:[#allocation2 + $0x720] sm:$0xff] }
 0x248   :  { %5368 = vmatpush1.bf16.msra.mxu0 %v417_v43  ;;  %v256_v43 = vld [vmem:[%s16123_s0 + $0x580] sm:$0xff] }
 0x249   :  { %5141 = vmatmul.mubr.bf16.gmra.mrb[16].mxu0 %v9925_v45  ;;  %v636_v45 = vld [vmem:[#allocation2 + $0x560] sm:$0xff]  ;;  %5369 = vmatprep.subr.bf16.mxu0 %v16135_v0 }
 0x24a   :  { %5148 = vmatprep.mubr.bf16.mxu0 %v9942_v47  ;;  %v10005_v47 = vcombine.low %v612_v22, %v620_v24  ;;  %v10022_v49 = vcombine.high %v628_v44, %v636_v45  ;;  %v10021_v63 = vcombine.low %v628_v44, %v636_v45  ;;  %v253_v22 = vld [vmem:[%s16123_s0 + $0x568] sm:$0xff] }
 0x24b   :  { %v422_v24 = vpack.c.bf16 %v253_v22, %v252_v21  ;;  %v257_v44 = vld [vmem:[%s16123_s0 + $0x588] sm:$0xff] }
 0x24c   :  { %5370 = vmatpush1.bf16.msra.mxu0 %v418_v52  ;;  %v424_v45 = vpack.c.bf16 %v257_v44, %v256_v43  ;;  %v258_v52 = vld [vmem:[%s16123_s0 + $0x590] sm:$0xff] }
 0x24d   :  { %5371 = vmatprep.subr.bf16.mxu0 %v16135_v0  ;;  %v425_v55 = vpack.c.bf16 %v259_v53, %v258_v52 }
 0x24e   :  { %3985 = vmatmul.mubr.bf16.gmra.mrb[16].mxu1 %v9917_v57  ;;  %v700_v57 = vld [vmem:[#allocation2 + $0x760] sm:$0xff] }
 0x24f   :  { %3992 = vmatprep.mubr.bf16.mxu1 %v9934_v10  ;;  %v708_v10 = vld [vmem:[#allocation2 + $0x7a0] sm:$0xff] }
 0x251   :  { %5149 = vmatmul.mubr.bf16.gmra.mrb[20].mxu0 %v9941_v58  ;;  %v246_v58 = vld [vmem:[%s16123_s0 + $0x530] sm:$0xff] }
 0x252   :  { %5156 = vmatprep.mubr.bf16.mxu0 %v9958_v59  ;;  %v247_v59 = vld [vmem:[%s16123_s0 + $0x538] sm:$0xff] }
 0x253   :  { %v419_v60 = vpack.c.bf16 %v247_v59, %v246_v58  ;;  %v10069_v58 = vcombine.low %v676_v36, %v684_v37  ;;  %v10086_v59 = vcombine.high %v692_v56, %v700_v57  ;;  %v269_v36 = vld [vmem:[%s16123_s0 + $0x5e8] sm:$0xff] }
 0x255   :  { %5372 = vmatpush1.bf16.msra.mxu0 %v419_v60  ;;  %v260_v60 = vld [vmem:[%s16123_s0 + $0x5a0] sm:$0xff] }
 0x256   :  { %5373 = vmatprep.subr.bf16.mxu0 %v16135_v0  ;;  %3993 = vmatmul.mubr.bf16.gmra.mrb[20].mxu1 %v9933_v11  ;;  %v426_v62 = vpack.c.bf16 %v261_v61, %v260_v60  ;;  %v716_v11 = vld [vmem:[#allocation2 + $0x7e0] sm:$0xff] }
 0x257   :  { %v10101_v31 = vcombine.low %v708_v10, %v716_v11  ;;  %v764_v60 = vld [vmem:[#allocation2 + $0x960] sm:$0xff] }
 0x259   :  { %5157 = vmatmul.mubr.bf16.gmra.mrb[24].mxu0 %v9957_v3  ;;  %v249_v3 = vld [vmem:[%s16123_s0 + $0x548] sm:$0xff] }
 0x25a   :  { %5164 = vmatprep.mubr.bf16.mxu0 %v9974_v5  ;;  %v420_v5 = vpack.c.bf16 %v249_v3, %v248_v2 }
 0x25c   :  { %5374 = vmatpush1.bf16.msra.mxu0 %v420_v5  ;;  %v262_v5 = vld [vmem:[%s16123_s0 + $0x5b0] sm:$0xff] }
 0x25d   :  { %5375 = vmatprep.subr.bf16.mxu0 %v16135_v0  ;;  %v427_v8 = vpack.c.bf16 %v263_v7, %v262_v5  ;;  %v772_v5 = vld [vmem:[#allocation2 + $0x9a0] sm:$0xff] }
 0x25e   :  { %v780_v7 = vld [vmem:[#allocation2 + $0x9e0] sm:$0xff] }
 0x261   :  { %5165 = vmatmul.mubr.bf16.gmra.mrb[28].mxu0 %v9973_v15  ;;  %v421_v15 = vpack.c.bf16 %v251_v14, %v250_v12  ;;  %v10085_v12 = vcombine.low %v692_v56, %v700_v57  ;;  %v10102_v14 = vcombine.high %v708_v10, %v716_v11  ;;  %v648_v56 = vld [vmem:[#allocation2 + $0x5c0] sm:$0xff]  ;;  %v10166_v10 = vcombine.high %v772_v5, %v780_v7 }
 0x262   :  { %5172 = vmatprep.mubr.bf16.mxu0 %v9990_v16  ;;  %v660_v16 = vld [vmem:[#allocation2 + $0x620] sm:$0xff] }
 0x263   :  { %v10054_v20 = vcombine.high %v660_v16, %v668_v17  ;;  %5376 = vmatpush1.bf16.msra.mxu0 %v421_v15  ;;  %v10053_v39 = vcombine.low %v660_v16, %v668_v17  ;;  %v264_v15 = vld [vmem:[%s16123_s0 + $0x5c0] sm:$0xff]  ;;  %v265_v16 = vld [vmem:[%s16123_s0 + $0x5c8] sm:$0xff] }
 0x264   :  { %5377 = vmatprep.subr.bf16.mxu0 %v16135_v0  ;;  %v428_v17 = vpack.c.bf16 %v265_v16, %v264_v15  ;;  %v672_v11 = vld [vmem:[#allocation2 + $0x680] sm:$0xff] }
 0x265   :  { %v788_v16 = vld [vmem:[#allocation2 + $0xa20] sm:$0xff] }
 0x267   :  { %5378 = vmatpush1.bf16.msra.mxu0 %v422_v24  ;;  %v266_v24 = vld [vmem:[%s16123_s0 + $0x5d0] sm:$0xff] }
 0x268   :  { %5379 = vmatprep.subr.bf16.mxu0 %v16135_v0 }
 0x269   :  { %5173 = vmatmul.mubr.bf16.gmra.mrb[32].mxu0 %v9989_v25  ;;  %v560_v25 = vld [vmem:[#allocation2 + $0x300] sm:$0xff] }
 0x26a   :  { %5180 = vmatprep.mubr.bf16.mxu0 %v10006_v27  ;;  %v568_v27 = vld [vmem:[#allocation2 + $0x340] sm:$0xff] }
 0x26b   :  { %v9950_v28 = vcombine.high %v560_v25, %v568_v27  ;;  %v9949_v30 = vcombine.low %v560_v25, %v568_v27  ;;  %5380 = vmatpush1.bf16.msra.mxu0 %v423_v34  ;;  %v267_v25 = vld [vmem:[%s16123_s0 + $0x5d8] sm:$0xff]  ;;  %v268_v34 = vld [vmem:[%s16123_s0 + $0x5e0] sm:$0xff] }
 0x26c   :  { %5381 = vmatprep.subr.bf16.mxu0 %v16135_v0  ;;  %v429_v27 = vpack.c.bf16 %v267_v25, %v266_v24  ;;  %v430_v37 = vpack.c.bf16 %v269_v36, %v268_v34  ;;  %v712_v34 = vld [vmem:[#allocation2 + $0x7c0] sm:$0xff] }
 0x26d   :  { %4000 = vmatprep.mubr.bf16.mxu1 %v9950_v28  ;;  %v724_v28 = vld [vmem:[#allocation2 + $0x820] sm:$0xff] }
 0x26e   :  { %4001 = vmatmul.mubr.bf16.gmra.mrb[24].mxu1 %v9949_v30  ;;  %v732_v30 = vld [vmem:[#allocation2 + $0x860] sm:$0xff] }
 0x26f   :  { %5382 = vmatpush1.bf16.msra.mxu0 %v424_v45  ;;  %v10118_v33 = vcombine.high %v724_v28, %v732_v30  ;;  %v270_v45 = vld [vmem:[%s16123_s0 + $0x5f0] sm:$0xff]  ;;  %v10117_v52 = vcombine.low %v724_v28, %v732_v30  ;;  %v812_v28 = vld [vmem:[#allocation2 + $0xae0] sm:$0xff] }
 0x270   :  { %5383 = vmatprep.subr.bf16.mxu0 %v16135_v0 }
 0x271   :  { %5181 = vmatmul.mubr.bf16.gmra.mrb[36].mxu0 %v10005_v47  ;;  %v576_v47 = vld [vmem:[#allocation2 + $0x380] sm:$0xff] }
 0x272   :  { %5188 = vmatprep.mubr.bf16.mxu0 %v10022_v49  ;;  %v584_v49 = vld [vmem:[#allocation2 + $0x3c0] sm:$0xff] }
 0x273   :  { %v9966_v50 = vcombine.high %v576_v47, %v584_v49  ;;  %v9965_v51 = vcombine.low %v576_v47, %v584_v49  ;;  %5384 = vmatpush1.bf16.msra.mxu0 %v425_v55  ;;  %v271_v47 = vld [vmem:[%s16123_s0 + $0x5f8] sm:$0xff]  ;;  %v640_v55 = vld [vmem:[#allocation2 + $0x580] sm:$0xff] }
 0x274   :  { %5385 = vmatprep.subr.bf16.mxu0 %v16135_v0  ;;  %v431_v49 = vpack.c.bf16 %v271_v47, %v270_v45  ;;  %v10030_v57 = vcombine.high %v640_v55, %v648_v56  ;;  %v720_v45 = vld [vmem:[#allocation2 + $0x800] sm:$0xff] }
 0x275   :  { %4008 = vmatprep.mubr.bf16.mxu1 %v9966_v50  ;;  %v740_v50 = vld [vmem:[#allocation2 + $0x8a0] sm:$0xff] }
 0x276   :  { %4009 = vmatmul.mubr.bf16.gmra.mrb[28].mxu1 %v9965_v51  ;;  %v748_v51 = vld [vmem:[#allocation2 + $0x8e0] sm:$0xff] }
 0x277   :  { %5386 = vmatpush1.bf16.msra.mxu0 %v426_v62  ;;  %v10134_v53 = vcombine.high %v740_v50, %v748_v51  ;;  %v10133_v61 = vcombine.low %v740_v50, %v748_v51  ;;  %v728_v47 = vld [vmem:[#allocation2 + $0x840] sm:$0xff] }
 0x278   :  { %5387 = vmatprep.subr.bf16.mxu0 %v16135_v0  ;;  %v10109_v50 = vcombine.low %v720_v45, %v728_v47  ;;  %v836_v51 = vld [vmem:[#allocation2 + $0xba0] sm:$0xff] }
 0x279   :  { %5189 = vmatmul.mubr.bf16.gmra.mrb[40].mxu0 %v10021_v63  ;;  %v592_v63 = vld [vmem:[#allocation2 + $0x400] sm:$0xff] }
 0x27a   :  { %5196 = vmatprep.mubr.bf16.mxu0 %v10038_v1  ;;  %v600_v1 = vld [vmem:[#allocation2 + $0x440] sm:$0xff] }
 0x27b   :  { %v9982_v2 = vcombine.high %v592_v63, %v600_v1  ;;  %v9981_v3 = vcombine.low %v592_v63, %v600_v1  ;;  %5388 = vmatpush1.bf16.msra.mxu0 %v427_v8  ;;  %v656_v63 = vld [vmem:[#allocation2 + $0x600] sm:$0xff] }
 0x27c   :  { %5389 = vmatprep.subr.bf16.mxu0 %v16135_v0  ;;  %v664_v1 = vld [vmem:[#allocation2 + $0x640] sm:$0xff] }
 0x27d   :  { %4016 = vmatprep.mubr.bf16.mxu1 %v9982_v2  ;;  %v10046_v2 = vcombine.high %v656_v63, %v664_v1 }
 0x27e   :  { %4017 = vmatmul.mubr.bf16.gmra.mrb[32].mxu1 %v9981_v3  ;;  %v10045_v3 = vcombine.low %v656_v63, %v664_v1  ;;  %v752_v1 = vld [vmem:[#allocation2 + $0x900] sm:$0xff] }
 0x27f   :  { %5390 = vmatpush1.bf16.msra.mxu0 %v428_v17  ;;  %v796_v17 = vld [vmem:[#allocation2 + $0xa60] sm:$0xff] }
 0x280   :  { %5391 = vmatprep.subr.bf16.mxu0 %v16135_v0  ;;  %v10181_v30 = vcombine.low %v788_v16, %v796_v17 }
 0x281   :  { %5197 = vmatmul.mubr.bf16.gmra.mrb[44].mxu0 %v10037_v19  ;;  %v608_v19 = vld [vmem:[#allocation2 + $0x480] sm:$0xff] }
 0x282   :  { %5204 = vmatprep.mubr.bf16.mxu0 %v10054_v20  ;;  %v616_v20 = vld [vmem:[#allocation2 + $0x4c0] sm:$0xff] }
 0x283   :  { %v9998_v21 = vcombine.high %v608_v19, %v616_v20  ;;  %v9997_v22 = vcombine.low %v608_v19, %v616_v20  ;;  %5392 = vmatpush1.bf16.msra.mxu0 %v429_v27  ;;  %v10165_v19 = vcombine.low %v772_v5, %v780_v7  ;;  %v10182_v20 = vcombine.high %v788_v16, %v796_v17  ;;  %v804_v27 = vld [vmem:[#allocation2 + $0xaa0] sm:$0xff] }
 0x284   :  { %5393 = vmatprep.subr.bf16.mxu0 %v16135_v0  ;;  %v868_v7 = vld [vmem:[#allocation2 + $0xca0] sm:$0xff] }
 0x285   :  { %4024 = vmatprep.mubr.bf16.mxu1 %v9998_v21  ;;  %v688_v21 = vld [vmem:[#allocation2 + $0x700] sm:$0xff] }
 0x286   :  { %4025 = vmatmul.mubr.bf16.gmra.mrb[36].mxu1 %v9997_v22  ;;  %v696_v22 = vld [vmem:[#allocation2 + $0x740] sm:$0xff] }
 0x287   :  { %5394 = vmatpush1.bf16.msra.mxu0 %v430_v37  ;;  %v10078_v24 = vcombine.high %v688_v21, %v696_v22  ;;  %v10077_v25 = vcombine.low %v688_v21, %v696_v22  ;;  %v884_v17 = vld [vmem:[#allocation2 + $0xd20] sm:$0xff] }
 0x288   :  { %5395 = vmatprep.subr.bf16.mxu0 %v16135_v0  ;;  %v784_v22 = vld [vmem:[#allocation2 + $0xa00] sm:$0xff] }
 0x289   :  { %5205 = vmatmul.mubr.bf16.gmra.mrb[48].mxu0 %v10053_v39  ;;  %v624_v39 = vld [vmem:[#allocation2 + $0x500] sm:$0xff] }
 0x28a   :  { %5212 = vmatprep.mubr.bf16.mxu0 %v10070_v40  ;;  %v632_v40 = vld [vmem:[#allocation2 + $0x540] sm:$0xff] }
 0x28b   :  { %v10014_v43 = vcombine.high %v624_v39, %v632_v40  ;;  %v10013_v44 = vcombine.low %v624_v39, %v632_v40  ;;  %5396 = vmatpush1.bf16.msra.mxu0 %v431_v49  ;;  %v820_v39 = vld [vmem:[#allocation2 + $0xb20] sm:$0xff]  ;;  %v10110_v49 = vcombine.high %v720_v45, %v728_v47 }
 0x28c   :  { %5654 = vmatprep.subr.bf16.mxu0 %v16135_v0  ;;  %v828_v40 = vld [vmem:[#allocation2 + $0xb60] sm:$0xff] }
 0x28d   :  { %4032 = vmatprep.mubr.bf16.mxu1 %v10014_v43  ;;  %v10197_v43 = vcombine.low %v804_v27, %v812_v28  ;;  %v816_v47 = vld [vmem:[#allocation2 + $0xb00] sm:$0xff] }
 0x28e   :  { %4033 = vmatmul.mubr.bf16.gmra.mrb[40].mxu1 %v10013_v44  ;;  %v10214_v44 = vcombine.high %v820_v39, %v828_v40 }
 0x28f   :  { %4040 = vmatprep.mubr.bf16.mxu1 %v10030_v57  ;;  %v744_v57 = vld [vmem:[#allocation2 + $0x8c0] sm:$0xff] }
 0x291   :  { %5213 = vmatmul.mubr.bf16.gmra.mrb[52].mxu0 %v10069_v58  ;;  %v10029_v58 = vcombine.low %v640_v55, %v648_v56  ;;  %v736_v56 = vld [vmem:[#allocation2 + $0x880] sm:$0xff] }
 0x292   :  { %5220 = vmatprep.mubr.bf16.mxu0 %v10086_v59  ;;  %v756_v59 = vld [vmem:[#allocation2 + $0x920] sm:$0xff] }
 0x293   :  { %v10150_v62 = vcombine.high %v756_v59, %v764_v60  ;;  %v10149_v8 = vcombine.low %v756_v59, %v764_v60  ;;  %v10125_v59 = vcombine.low %v736_v56, %v744_v57  ;;  %v852_v60 = vld [vmem:[#allocation2 + $0xc20] sm:$0xff] }
 0x296   :  { %4041 = vmatmul.mubr.bf16.gmra.mrb[44].mxu1 %v10029_v58  ;;  %v10126_v58 = vcombine.high %v736_v56, %v744_v57  ;;  %v832_v57 = vld [vmem:[#allocation2 + $0xb80] sm:$0xff] }
 0x297   :  { %4048 = vmatprep.mubr.bf16.mxu1 %v10046_v2  ;;  %v760_v2 = vld [vmem:[#allocation2 + $0x940] sm:$0xff] }
 0x298   :  { %v10141_v5 = vcombine.low %v752_v1, %v760_v2 }
 0x299   :  { %5221 = vmatmul.mubr.bf16.gmra.mrb[56].mxu0 %v10085_v12  ;;  %v680_v12 = vld [vmem:[#allocation2 + $0x6c0] sm:$0xff] }
 0x29a   :  { %5228 = vmatprep.mubr.bf16.mxu0 %v10102_v14  ;;  %v10062_v14 = vcombine.high %v672_v11, %v680_v12  ;;  %v10061_v15 = vcombine.low %v672_v11, %v680_v12  ;;  %v768_v12 = vld [vmem:[#allocation2 + $0x980] sm:$0xff] }
 0x29e   :  { %4049 = vmatmul.mubr.bf16.gmra.mrb[48].mxu1 %v10045_v3  ;;  %v10142_v3 = vcombine.high %v752_v1, %v760_v2  ;;  %v848_v2 = vld [vmem:[#allocation2 + $0xc00] sm:$0xff] }
 0x29f   :  { %4056 = vmatprep.mubr.bf16.mxu1 %v10062_v14  ;;  %v776_v14 = vld [vmem:[#allocation2 + $0x9c0] sm:$0xff] }
 0x2a0   :  { %v10157_v16 = vcombine.low %v768_v12, %v776_v14 }
 0x2a1   :  { %5229 = vmatmul.mubr.bf16.gmra.mrb[60].mxu0 %v10101_v31  ;;  %v10198_v31 = vcombine.high %v804_v27, %v812_v28  ;;  %v900_v28 = vld [vmem:[#allocation2 + $0xda0] sm:$0xff] }
 0x2a2   :  { %5236 = vmatprep.mubr.bf16.mxu0 %v10118_v33  ;;  %v704_v33 = vld [vmem:[#allocation2 + $0x780] sm:$0xff] }
 0x2a3   :  { %v10094_v36 = vcombine.high %v704_v33, %v712_v34  ;;  %v10093_v37 = vcombine.low %v704_v33, %v712_v34  ;;  %v800_v34 = vld [vmem:[#allocation2 + $0xa80] sm:$0xff] }
 0x2a6   :  { %4057 = vmatmul.mubr.bf16.gmra.mrb[52].mxu1 %v10061_v15  ;;  %v10158_v15 = vcombine.high %v768_v12, %v776_v14  ;;  %v114_v12 = vld [vmem:[%s16123_s0 + $0x110] sm:$0xff]  ;;  %v115_v14 = vld [vmem:[%s16123_s0 + $0x118] sm:$0xff] }
 0x2a7   :  { %4064 = vmatprep.mubr.bf16.mxu1 %v10078_v24  ;;  %v792_v24 = vld [vmem:[#allocation2 + $0xa40] sm:$0xff] }
 0x2a8   :  { %v10173_v27 = vcombine.low %v784_v22, %v792_v24 }
 0x2a9   :  { %5237 = vmatmul.mubr.bf16.gmra.mrb[64].mxu0 %v10117_v52  ;;  %v844_v52 = vld [vmem:[#allocation2 + $0xbe0] sm:$0xff] }
 0x2aa   :  { %5244 = vmatprep.mubr.bf16.mxu0 %v10134_v53  ;;  %v10213_v53 = vcombine.low %v820_v39, %v828_v40  ;;  %v10230_v55 = vcombine.high %v836_v51, %v844_v52  ;;  %v916_v40 = vld [vmem:[#allocation2 + $0xe20] sm:$0xff] }
 0x2ae   :  { %4065 = vmatmul.mubr.bf16.gmra.mrb[56].mxu1 %v10077_v25  ;;  %v10174_v25 = vcombine.high %v784_v22, %v792_v24  ;;  %v872_v22 = vld [vmem:[#allocation2 + $0xcc0] sm:$0xff] }
 0x2af   :  { %4072 = vmatprep.mubr.bf16.mxu1 %v10094_v36  ;;  %v808_v36 = vld [vmem:[#allocation2 + $0xac0] sm:$0xff] }
 0x2b0   :  { %v10189_v39 = vcombine.low %v800_v34, %v808_v36 }
 0x2b1   :  { %5245 = vmatmul.mubr.bf16.gmra.mrb[68].mxu0 %v10133_v61  ;;  %v860_v61 = vld [vmem:[#allocation2 + $0xc60] sm:$0xff] }
 0x2b2   :  { %5252 = vmatprep.mubr.bf16.mxu0 %v10150_v62  ;;  %v10229_v62 = vcombine.low %v836_v51, %v844_v52  ;;  %v10246_v63 = vcombine.high %v852_v60, %v860_v61  ;;  %v932_v52 = vld [vmem:[#allocation2 + $0xea0] sm:$0xff] }
 0x2b6   :  { %4073 = vmatmul.mubr.bf16.gmra.mrb[60].mxu1 %v10093_v37  ;;  %v10190_v37 = vcombine.high %v800_v34, %v808_v36  ;;  %v469_v34 = vld [vmem:[#allocation2 + $0x28] sm:$0xff] }
 0x2b7   :  { %4080 = vmatprep.mubr.bf16.mxu1 %v10110_v49  ;;  %v824_v49 = vld [vmem:[#allocation2 + $0xb40] sm:$0xff]  ;;  %v477_v36 = vld [vmem:[#allocation2 + $0x68] sm:$0xff] }
 0x2b8   :  { %v10205_v51 = vcombine.low %v816_v47, %v824_v49 }
 0x2b9   :  { %5253 = vmatmul.mubr.bf16.gmra.mrb[72].mxu0 %v10149_v8  ;;  %v876_v8 = vld [vmem:[#allocation2 + $0xce0] sm:$0xff] }
 0x2ba   :  { %5260 = vmatprep.mubr.bf16.mxu0 %v10166_v10  ;;  %v10245_v10 = vcombine.low %v852_v60, %v860_v61  ;;  %v10262_v11 = vcombine.high %v868_v7, %v876_v8  ;;  %v948_v61 = vld [vmem:[#allocation2 + $0xf20] sm:$0xff] }
 0x2be   :  { %4081 = vmatmul.mubr.bf16.gmra.mrb[64].mxu1 %v10109_v50  ;;  %v10206_v50 = vcombine.high %v816_v47, %v824_v49  ;;  %v120_v49 = vld [vmem:[%s16123_s0 + $0x140] sm:$0xff] }
 0x2bf   :  { %4088 = vmatprep.mubr.bf16.mxu1 %v10126_v58  ;;  %v840_v58 = vld [vmem:[#allocation2 + $0xbc0] sm:$0xff] }
 0x2c0   :  { %v10221_v60 = vcombine.low %v832_v57, %v840_v58 }
 0x2c1   :  { %5261 = vmatmul.mubr.bf16.gmra.mrb[76].mxu0 %v10165_v19  ;;  %v892_v19 = vld [vmem:[#allocation2 + $0xd60] sm:$0xff] }
 0x2c2   :  { %5268 = vmatprep.mubr.bf16.mxu0 %v10182_v20  ;;  %v10261_v20 = vcombine.low %v868_v7, %v876_v8  ;;  %v10278_v21 = vcombine.high %v884_v17, %v892_v19  ;;  %v112_v8 = vld [vmem:[%s16123_s0 + $0x100] sm:$0xff] }
 0x2c6   :  { %4089 = vmatmul.mubr.bf16.gmra.mrb[68].mxu1 %v10125_v59  ;;  %v10222_v59 = vcombine.high %v832_v57, %v840_v58  ;;  %v9863_v57 = vcombine.low %v469_v34, %v477_v36 }
 0x2c7   :  { %4096 = vmatprep.mubr.bf16.mxu1 %v10142_v3  ;;  %v856_v3 = vld [vmem:[#allocation2 + $0xc40] sm:$0xff] }
 0x2c8   :  { %v10237_v7 = vcombine.low %v848_v2, %v856_v3 }
 0x2c9   :  { %5269 = vmatmul.mubr.bf16.gmra.mrb[80].mxu0 %v10181_v30  ;;  %v908_v30 = vld [vmem:[#allocation2 + $0xde0] sm:$0xff] }
 0x2ca   :  { %5276 = vmatprep.mubr.bf16.mxu0 %v10198_v31  ;;  %v10277_v31 = vcombine.low %v884_v17, %v892_v19  ;;  %v10294_v33 = vcombine.high %v900_v28, %v908_v30  ;;  %v353_v19 = vpack.c.bf16 %v115_v14, %v114_v12 }
 0x2ce   :  { %4097 = vmatmul.mubr.bf16.gmra.mrb[72].mxu1 %v10141_v5  ;;  %v10238_v5 = vcombine.high %v848_v2, %v856_v3  ;;  %v125_v2 = vld [vmem:[%s16123_s0 + $0x168] sm:$0xff] }
 0x2cf   :  { %4104 = vmatprep.mubr.bf16.mxu1 %v10158_v15  ;;  %v964_v15 = vld [vmem:[#allocation2 + $0xfa0] sm:$0xff] }
 0x2d1   :  { %5277 = vmatmul.mubr.bf16.gmra.mrb[84].mxu0 %v10197_v43  ;;  %v924_v43 = vld [vmem:[#allocation2 + $0xe60] sm:$0xff] }
 0x2d2   :  { %5284 = vmatprep.mubr.bf16.mxu0 %v10214_v44  ;;  %v10293_v44 = vcombine.low %v900_v28, %v908_v30  ;;  %v10310_v45 = vcombine.high %v916_v40, %v924_v43  ;;  %v117_v28 = vld [vmem:[%s16123_s0 + $0x128] sm:$0xff] }
 0x2d6   :  { %4105 = vmatmul.mubr.bf16.gmra.mrb[76].mxu1 %v10157_v16  ;;  %v972_v16 = vld [vmem:[#allocation2 + $0xfe0] sm:$0xff] }
 0x2d7   :  { %4112 = vmatprep.mubr.bf16.mxu1 %v10174_v25 }
 0x2d9   :  { %5285 = vmatmul.mubr.bf16.gmra.mrb[88].mxu0 %v10213_v53  ;;  %v940_v53 = vld [vmem:[#allocation2 + $0xee0] sm:$0xff] }
 0x2da   :  { %5292 = vmatprep.mubr.bf16.mxu0 %v10230_v55  ;;  %v10309_v55 = vcombine.low %v916_v40, %v924_v43  ;;  %v10326_v56 = vcombine.high %v932_v52, %v940_v53  ;;  %v9864_v40 = vcombine.high %v469_v34, %v477_v36  ;;  %v880_v43 = vld [vmem:[#allocation2 + $0xd00] sm:$0xff] }
 0x2db   :  { %v928_v34 = vld [vmem:[#allocation2 + $0xe80] sm:$0xff] }
 0x2dc   :  { %v936_v36 = vld [vmem:[#allocation2 + $0xec0] sm:$0xff] }
 0x2de   :  { %4113 = vmatmul.mubr.bf16.gmra.mrb[80].mxu1 %v10173_v27  ;;  %v116_v27 = vld [vmem:[%s16123_s0 + $0x120] sm:$0xff] }
 0x2df   :  { %4120 = vmatprep.mubr.bf16.mxu1 %v10190_v37  ;;  %v354_v30 = vpack.c.bf16 %v117_v28, %v116_v27  ;;  %v10357_v37 = vcombine.low %v964_v15, %v972_v16  ;;  %v517_v27 = vld [vmem:[#allocation2 + $0x1a8] sm:$0xff] }
 0x2e0   :  { %v525_v28 = vld [vmem:[#allocation2 + $0x1e8] sm:$0xff] }
 0x2e1   :  { %5293 = vmatmul.mubr.bf16.gmra.mrb[92].mxu0 %v10229_v62  ;;  %v956_v62 = vld [vmem:[#allocation2 + $0xf60] sm:$0xff] }
 0x2e2   :  { %5300 = vmatprep.mubr.bf16.mxu0 %v10246_v63  ;;  %v10325_v63 = vcombine.low %v932_v52, %v940_v53  ;;  %v10342_v1 = vcombine.high %v948_v61, %v956_v62  ;;  %v10341_v17 = vcombine.low %v948_v61, %v956_v62  ;;  %v122_v52 = vld [vmem:[%s16123_s0 + $0x150] sm:$0xff]  ;;  %v123_v53 = vld [vmem:[%s16123_s0 + $0x158] sm:$0xff]  ;;  %v904_v61 = vld [vmem:[#allocation2 + $0xdc0] sm:$0xff] }
 0x2e3   :  { %v357_v58 = vpack.c.bf16 %v123_v53, %v122_v52 }
 0x2e6   :  { %4121 = vmatmul.mubr.bf16.gmra.mrb[84].mxu1 %v10189_v39 }
 0x2e7   :  { %4128 = vmatprep.mubr.bf16.mxu1 %v10206_v50  ;;  %v121_v50 = vld [vmem:[%s16123_s0 + $0x148] sm:$0xff] }
 0x2e9   :  { %5301 = vmatmul.mubr.bf16.gmra.mrb[96].mxu0 %v10245_v10  ;;  %v113_v10 = vld [vmem:[%s16123_s0 + $0x108] sm:$0xff] }
 0x2ea   :  { %5308 = vmatprep.mubr.bf16.mxu0 %v10262_v11  ;;  %v352_v11 = vpack.c.bf16 %v113_v10, %v112_v8  ;;  %v501_v8 = vld [vmem:[#allocation2 + $0x128] sm:$0xff] }
 0x2eb   :  { %v509_v10 = vld [vmem:[#allocation2 + $0x168] sm:$0xff] }
 0x2ec   :  { %4210 = vmatpush1.bf16.msra.mxu1 %v352_v11  ;;  %v9896_v14 = vcombine.high %v501_v8, %v509_v10 }
 0x2ed   :  { %4211 = vmatprep.subr.bf16.mxu1 %v16135_v0 }
 0x2ee   :  { %4129 = vmatmul.mubr.bf16.gmra.mrb[88].mxu1 %v10205_v51  ;;  %v356_v51 = vpack.c.bf16 %v121_v50, %v120_v49  ;;  %v533_v49 = vld [vmem:[#allocation2 + $0x228] sm:$0xff] }
 0x2ef   :  { %4136 = vmatprep.mubr.bf16.mxu1 %v10222_v59  ;;  %v541_v50 = vld [vmem:[#allocation2 + $0x268] sm:$0xff] }
 0x2f0   :  { %4212 = vmatpush1.bf16.msra.mxu1 %v353_v19  ;;  %v9928_v53 = vcombine.high %v533_v49, %v541_v50 }
 0x2f1   :  { %5309 = vmatmul.mubr.bf16.gmra.mrb[100].mxu0 %v10261_v20  ;;  %v10358_v20 = vcombine.high %v964_v15, %v972_v16  ;;  %4213 = vmatprep.subr.bf16.mxu1 %v16135_v0  ;;  %v912_v15 = vld [vmem:[#allocation2 + $0xe00] sm:$0xff] }
 0x2f2   :  { %5316 = vmatprep.mubr.bf16.mxu0 %v10278_v21  ;;  %v864_v21 = vld [vmem:[#allocation2 + $0xc80] sm:$0xff] }
 0x2f3   :  { %v10254_v24 = vcombine.high %v864_v21, %v872_v22  ;;  %v10253_v25 = vcombine.low %v864_v21, %v872_v22  ;;  %v920_v16 = vld [vmem:[#allocation2 + $0xe40] sm:$0xff]  ;;  %v129_v21 = vld [vmem:[%s16123_s0 + $0x188] sm:$0xff] }
 0x2f4   :  { %4214 = vmatpush1.bf16.msra.mxu1 %v354_v30  ;;  %v10301_v19 = vcombine.low %v912_v15, %v920_v16  ;;  %v9895_v30 = vcombine.low %v501_v8, %v509_v10  ;;  %v960_v8 = vld [vmem:[#allocation2 + $0xf80] sm:$0xff] }
 0x2f5   :  { %4215 = vmatprep.subr.bf16.mxu1 %v16135_v0  ;;  %v968_v10 = vld [vmem:[#allocation2 + $0xfc0] sm:$0xff] }
 0x2f6   :  { %4137 = vmatmul.mubr.bf16.gmra.mrb[92].mxu1 %v10221_v60  ;;  %v896_v60 = vld [vmem:[#allocation2 + $0xd80] sm:$0xff] }
 0x2f7   :  { %4144 = vmatprep.mubr.bf16.mxu1 %v10238_v5  ;;  %v10286_v62 = vcombine.high %v896_v60, %v904_v61  ;;  %v126_v5 = vld [vmem:[%s16123_s0 + $0x170] sm:$0xff] }
 0x2f9   :  { %5317 = vmatmul.mubr.bf16.gmra.mrb[104].mxu0 %v10277_v31  ;;  %v118_v31 = vld [vmem:[%s16123_s0 + $0x130] sm:$0xff] }
 0x2fa   :  { %5324 = vmatprep.mubr.bf16.mxu0 %v10294_v33  ;;  %v119_v33 = vld [vmem:[%s16123_s0 + $0x138] sm:$0xff] }
 0x2fb   :  { %v355_v39 = vpack.c.bf16 %v119_v33, %v118_v31  ;;  %v9912_v33 = vcombine.high %v517_v27, %v525_v28 }
 0x2fd   :  { %4216 = vmatpush1.bf16.msra.mxu1 %v355_v39  ;;  %v10317_v39 = vcombine.low %v928_v34, %v936_v36 }
 0x2fe   :  { %4145 = vmatmul.mubr.bf16.gmra.mrb[96].mxu1 %v10237_v7  ;;  %4217 = vmatprep.subr.bf16.mxu1 %v16135_v0  ;;  %v127_v7 = vld [vmem:[%s16123_s0 + $0x178] sm:$0xff] }
 0x2ff   :  { %4152 = vmatprep.mubr.bf16.mxu1 %v10254_v24  ;;  %v359_v12 = vpack.c.bf16 %v127_v7, %v126_v5  ;;  %v130_v24 = vld [vmem:[%s16123_s0 + $0x190] sm:$0xff] }
 0x301   :  { %5325 = vmatmul.mubr.bf16.gmra.mrb[108].mxu0 %v10293_v44  ;;  %v888_v44 = vld [vmem:[#allocation2 + $0xd40] sm:$0xff]  ;;  %4218 = vmatpush1.bf16.msra.mxu1 %v356_v51  ;;  %v9911_v51 = vcombine.low %v517_v27, %v525_v28  ;;  %v465_v27 = vld [vmem:[#allocation2 + $0x8] sm:$0xff] }
 0x302   :  { %5332 = vmatprep.mubr.bf16.mxu0 %v10310_v45  ;;  %v10270_v45 = vcombine.high %v880_v43, %v888_v44  ;;  %v10269_v47 = vcombine.low %v880_v43, %v888_v44  ;;  %4219 = vmatprep.subr.bf16.mxu1 %v16135_v0  ;;  %v133_v43 = vld [vmem:[%s16123_s0 + $0x1a8] sm:$0xff] }
 0x303   :  { %v473_v28 = vld [vmem:[#allocation2 + $0x48] sm:$0xff] }
 0x305   :  { %4220 = vmatpush1.bf16.msra.mxu1 %v357_v58 }
 0x306   :  { %4153 = vmatmul.mubr.bf16.gmra.mrb[100].mxu1 %v10253_v25  ;;  %4221 = vmatprep.subr.bf16.mxu1 %v16135_v0  ;;  %v131_v25 = vld [vmem:[%s16123_s0 + $0x198] sm:$0xff] }
 0x307   :  { %4160 = vmatprep.mubr.bf16.mxu1 %v10270_v45  ;;  %v361_v31 = vpack.c.bf16 %v131_v25, %v130_v24  ;;  %v134_v45 = vld [vmem:[%s16123_s0 + $0x1b0] sm:$0xff] }
 0x309   :  { %5333 = vmatmul.mubr.bf16.gmra.mrb[112].mxu0 %v10309_v55  ;;  %v485_v55 = vld [vmem:[#allocation2 + $0xa8] sm:$0xff] }
 0x30a   :  { %5340 = vmatprep.mubr.bf16.mxu0 %v10326_v56  ;;  %v493_v56 = vld [vmem:[#allocation2 + $0xe8] sm:$0xff] }
 0x30b   :  { %v9880_v59 = vcombine.high %v485_v55, %v493_v56  ;;  %v9879_v11 = vcombine.low %v485_v55, %v493_v56  ;;  %v944_v55 = vld [vmem:[#allocation2 + $0xf00] sm:$0xff] }
 0x30c   :  { %v952_v56 = vld [vmem:[#allocation2 + $0xf40] sm:$0xff] }
 0x30d   :  { %v10333_v58 = vcombine.low %v944_v55, %v952_v56 }
 0x30e   :  { %4161 = vmatmul.mubr.bf16.gmra.mrb[104].mxu1 %v10269_v47  ;;  %v135_v47 = vld [vmem:[%s16123_s0 + $0x1b8] sm:$0xff] }
 0x30f   :  { %4168 = vmatprep.mubr.bf16.mxu1 %v10286_v62  ;;  %v363_v52 = vpack.c.bf16 %v135_v47, %v134_v45  ;;  %v138_v62 = vld [vmem:[%s16123_s0 + $0x1d0] sm:$0xff]  ;;  %v597_v45 = vld [vmem:[#allocation2 + $0x428] sm:$0xff] }
 0x310   :  { %v605_v47 = vld [vmem:[#allocation2 + $0x468] sm:$0xff] }
 0x311   :  { %5341 = vmatmul.mubr.bf16.gmra.mrb[116].mxu0 %v10325_v63  ;;  %v10285_v63 = vcombine.low %v896_v60, %v904_v61  ;;  %v137_v60 = vld [vmem:[%s16123_s0 + $0x1c8] sm:$0xff] }
 0x312   :  { %5348 = vmatprep.mubr.bf16.mxu0 %v10342_v1  ;;  %v124_v1 = vld [vmem:[%s16123_s0 + $0x160] sm:$0xff] }
 0x313   :  { %v358_v3 = vpack.c.bf16 %v125_v2, %v124_v1  ;;  %v549_v1 = vld [vmem:[#allocation2 + $0x2a8] sm:$0xff] }
 0x314   :  { %v557_v2 = vld [vmem:[#allocation2 + $0x2e8] sm:$0xff] }
 0x315   :  { %4222 = vmatpush1.bf16.msra.mxu1 %v358_v3  ;;  %v9927_v3 = vcombine.low %v533_v49, %v541_v50  ;;  %v9944_v7 = vcombine.high %v549_v1, %v557_v2  ;;  %v497_v50 = vld [vmem:[#allocation2 + $0x108] sm:$0xff] }
 0x316   :  { %4169 = vmatmul.mubr.bf16.gmra.mrb[108].mxu1 %v10285_v63  ;;  %4223 = vmatprep.subr.bf16.mxu1 %v16135_v0  ;;  %v139_v63 = vld [vmem:[%s16123_s0 + $0x1d8] sm:$0xff] }
 0x317   :  { %v365_v5 = vpack.c.bf16 %v139_v63, %v138_v62  ;;  %v275_v63 = vld [vmem:[%s16123_s0 + $0x618] sm:$0xff] }
 0x319   :  { %5349 = vmatmul.mubr.bf16.gmra.mrb[120].mxu0 %v10341_v17  ;;  %4224 = vmatpush1.bf16.msra.mxu1 %v359_v12  ;;  %v10302_v17 = vcombine.high %v912_v15, %v920_v16  ;;  %v10349_v12 = vcombine.low %v960_v8, %v968_v10  ;;  %v141_v15 = vld [vmem:[%s16123_s0 + $0x1e8] sm:$0xff] }
 0x31a   :  { %5356 = vmatprep.mubr.bf16.mxu0 %v10358_v20  ;;  %v128_v20 = vld [vmem:[%s16123_s0 + $0x180] sm:$0xff]  ;;  %4225 = vmatprep.subr.bf16.mxu1 %v16135_v0 }
 0x31b   :  { %v360_v22 = vpack.c.bf16 %v129_v21, %v128_v20  ;;  %4176 = vmatprep.mubr.bf16.mxu1 %v10302_v17  ;;  %v142_v17 = vld [vmem:[%s16123_s0 + $0x1f0] sm:$0xff]  ;;  %v565_v20 = vld [vmem:[#allocation2 + $0x328] sm:$0xff] }
 0x31c   :  { %v573_v21 = vld [vmem:[#allocation2 + $0x368] sm:$0xff] }
 0x31d   :  { %4226 = vmatpush1.bf16.msra.mxu1 %v360_v22  ;;  %v9943_v22 = vcombine.low %v549_v1, %v557_v2  ;;  %v9960_v25 = vcombine.high %v565_v20, %v573_v21  ;;  %v629_v2 = vld [vmem:[#allocation2 + $0x528] sm:$0xff] }
 0x31e   :  { %4177 = vmatmul.mubr.bf16.gmra.mrb[112].mxu1 %v10301_v19  ;;  %4227 = vmatprep.subr.bf16.mxu1 %v16135_v0  ;;  %v143_v19 = vld [vmem:[%s16123_s0 + $0x1f8] sm:$0xff] }
 0x31f   :  { %v367_v24 = vpack.c.bf16 %v143_v19, %v142_v17  ;;  %v645_v19 = vld [vmem:[#allocation2 + $0x5a8] sm:$0xff] }
 0x321   :  { %5357 = vmatmul.mubr.bf16.gmra.mrb[124].mxu0 %v10357_v37  ;;  %4228 = vmatpush1.bf16.msra.mxu1 %v361_v31  ;;  %v10318_v37 = vcombine.high %v928_v34, %v936_v36  ;;  %v9856_v31 = vcombine.high %v465_v27, %v473_v28  ;;  %v589_v34 = vld [vmem:[#allocation2 + $0x3e8] sm:$0xff]  ;;  %v9959_v36 = vcombine.low %v565_v20, %v573_v21 }
 0x322   :  { %5397 = vmatprep.mubr.bf16.mxu0 %v9864_v40  ;;  %v132_v40 = vld [vmem:[%s16123_s0 + $0x1a0] sm:$0xff]  ;;  %4229 = vmatprep.subr.bf16.mxu1 %v16135_v0  ;;  %v653_v20 = vld [vmem:[#allocation2 + $0x5e8] sm:$0xff] }
 0x323   :  { %v362_v44 = vpack.c.bf16 %v133_v43, %v132_v40  ;;  %4184 = vmatprep.mubr.bf16.mxu1 %v10318_v37  ;;  %v489_v40 = vld [vmem:[#allocation2 + $0xc8] sm:$0xff] }
 0x325   :  { %4230 = vmatpush1.bf16.msra.mxu1 %v362_v44 }
 0x326   :  { %4185 = vmatmul.mubr.bf16.gmra.mrb[116].mxu1 %v10317_v39  ;;  %4231 = vmatprep.subr.bf16.mxu1 %v16135_v0  ;;  %v481_v39 = vld [vmem:[#allocation2 + $0x88] sm:$0xff] }
 0x327   :  { %v9872_v43 = vcombine.high %v481_v39, %v489_v40  ;;  %v9871_v44 = vcombine.low %v481_v39, %v489_v40  ;;  %v10039_v39 = vcombine.low %v645_v19, %v653_v20 }
 0x329   :  { %5398 = vmatmul.mubr.bf16.vlgmr.msra.gmra.mrb[0].mxu0 %v9863_v57  ;;  %4232 = vmatpush1.bf16.msra.mxu1 %v363_v52  ;;  %v10334_v57 = vcombine.high %v944_v55, %v952_v56  ;;  %v621_v55 = vld [vmem:[#allocation2 + $0x4e8] sm:$0xff]  ;;  %v9991_v56 = vcombine.low %v597_v45, %v605_v47 }
 0x32a   :  { %5405 = vmatprep.mubr.bf16.mxu0 %v9880_v59  ;;  %v136_v59 = vld [vmem:[%s16123_s0 + $0x1c0] sm:$0xff]  ;;  %4233 = vmatprep.subr.bf16.mxu1 %v16135_v0 }
 0x32b   :  { %v364_v61 = vpack.c.bf16 %v137_v60, %v136_v59  ;;  %4192 = vmatprep.mubr.bf16.mxu1 %v10334_v57  ;;  %v272_v57 = vld [vmem:[%s16123_s0 + $0x600] sm:$0xff]  ;;  %v513_v59 = vld [vmem:[#allocation2 + $0x188] sm:$0xff] }
 0x32c   :  { %v521_v60 = vld [vmem:[#allocation2 + $0x1c8] sm:$0xff] }
 0x32d   :  { %4234 = vmatpush1.bf16.msra.mxu1 %v364_v61  ;;  %v9904_v61 = vcombine.high %v513_v59, %v521_v60  ;;  %v9903_v62 = vcombine.low %v513_v59, %v521_v60  ;;  %v290_v59 = vld [vmem:[%s16123_s0 + $0x690] sm:$0xff]  ;;  %v291_v60 = vld [vmem:[%s16123_s0 + $0x698] sm:$0xff] }
 0x32e   :  { %4193 = vmatmul.mubr.bf16.gmra.mrb[120].mxu1 %v10333_v58  ;;  %4235 = vmatprep.subr.bf16.mxu1 %v16135_v0 }
 0x331   :  { %5406 = vmatmul.mubr.bf16.gmra.mrb[4].mxu0 %v9879_v11  ;;  %4236 = vmatpush1.bf16.msra.mxu1 %v365_v5  ;;  %v10350_v11 = vcombine.high %v960_v8, %v968_v10  ;;  %v277_v8 = vld [vmem:[%s16123_s0 + $0x628] sm:$0xff] }
 0x332   :  { %5413 = vmatprep.mubr.bf16.mxu0 %v9896_v14  ;;  %v140_v14 = vld [vmem:[%s16123_s0 + $0x1e0] sm:$0xff]  ;;  %4237 = vmatprep.subr.bf16.mxu1 %v16135_v0 }
 0x333   :  { %v366_v16 = vpack.c.bf16 %v141_v15, %v140_v14  ;;  %4200 = vmatprep.mubr.bf16.mxu1 %v10350_v11  ;;  %v529_v11 = vld [vmem:[#allocation2 + $0x208] sm:$0xff]  ;;  %v278_v15 = vld [vmem:[%s16123_s0 + $0x630] sm:$0xff] }
 0x335   :  { %4238 = vmatpush1.bf16.msra.mxu1 %v366_v16  ;;  %v279_v16 = vld [vmem:[%s16123_s0 + $0x638] sm:$0xff] }
 0x336   :  { %4201 = vmatmul.mubr.bf16.gmra.mrb[124].mxu1 %v10349_v12  ;;  %4239 = vmatprep.subr.bf16.mxu1 %v16135_v0  ;;  %v537_v12 = vld [vmem:[#allocation2 + $0x248] sm:$0xff]  ;;  %v435_v17 = vpack.c.bf16 %v279_v16, %v278_v15 }
 0x337   :  { %4241 = vmatprep.mubr.bf16.mxu1 %v9856_v31  ;;  %v9920_v14 = vcombine.high %v529_v11, %v537_v12  ;;  %v282_v31 = vld [vmem:[%s16123_s0 + $0x650] sm:$0xff]  ;;  %v297_v16 = vld [vmem:[%s16123_s0 + $0x6c8] sm:$0xff] }
 0x339   :  { %5414 = vmatmul.mubr.bf16.gmra.mrb[8].mxu0 %v9895_v30  ;;  %4240 = vmatpush1.bf16.msra.mxu1 %v367_v24  ;;  %v9855_v30 = vcombine.low %v465_v27, %v473_v28  ;;  %v281_v24 = vld [vmem:[%s16123_s0 + $0x648] sm:$0xff] }
 0x33a   :  { %5421 = vmatprep.mubr.bf16.mxu0 %v9912_v33  ;;  %10965 = vmatprep.subr.bf16.mxu1 %v16135_v0  ;;  %v581_v33 = vld [vmem:[#allocation2 + $0x3a8] sm:$0xff] }
 0x33b   :  { %v9976_v37 = vcombine.high %v581_v33, %v589_v34  ;;  %v9975_v49 = vcombine.low %v581_v33, %v589_v34  ;;  %v545_v27 = vld [vmem:[#allocation2 + $0x288] sm:$0xff]  ;;  %v283_v33 = vld [vmem:[%s16123_s0 + $0x658] sm:$0xff] }
 0x33c   :  { %v553_v28 = vld [vmem:[#allocation2 + $0x2c8] sm:$0xff]  ;;  %v437_v34 = vpack.c.bf16 %v283_v33, %v282_v31  ;;  %v300_v31 = vld [vmem:[%s16123_s0 + $0x6e0] sm:$0xff] }
 0x33d   :  { %v301_v33 = vld [vmem:[%s16123_s0 + $0x6e8] sm:$0xff] }
 0x33e   :  { %4242 = vmatmul.mubr.bf16.vlgmr.msra.gmra.mrb[0].mxu1 %v9855_v30  ;;  %v9936_v30 = vcombine.high %v545_v27, %v553_v28 }
 0x33f   :  { %10981 = vmatpush1.bf16.msra.mxu1 %v13020_v4  ;;  %4249 = vmatprep.mubr.bf16.mxu1 %v9872_v43  ;;  %v9992_v4 = vcombine.high %v597_v45, %v605_v47  ;;  %v285_v43 = vld [vmem:[%s16123_s0 + $0x668] sm:$0xff] }
 0x340   :  { %10966 = vmatprep.subr.bf16.mxu1 %v16135_v0  ;;  %v561_v45 = vld [vmem:[#allocation2 + $0x308] sm:$0xff] }
 0x341   :  { %5422 = vmatmul.mubr.bf16.gmra.mrb[12].mxu0 %v9911_v51  ;;  %v505_v51 = vld [vmem:[#allocation2 + $0x148] sm:$0xff] }
 0x342   :  { %5429 = vmatprep.mubr.bf16.mxu0 %v9928_v53  ;;  %v9888_v52 = vcombine.high %v497_v50, %v505_v51  ;;  %v9887_v53 = vcombine.low %v497_v50, %v505_v51  ;;  %v569_v47 = vld [vmem:[#allocation2 + $0x348] sm:$0xff]  ;;  %v287_v50 = vld [vmem:[%s16123_s0 + $0x678] sm:$0xff] }
 0x343   :  { %10982 = vmatpush1.bf16.msra.mxu1 %v13026_v6  ;;  %v613_v6 = vld [vmem:[#allocation2 + $0x4a8] sm:$0xff] }
 0x344   :  { %10967 = vmatprep.subr.bf16.mxu1 %v16135_v0  ;;  %v10007_v5 = vcombine.low %v613_v6, %v621_v55 }
 0x346   :  { %4250 = vmatmul.mubr.bf16.gmra.mrb[4].mxu1 %v9871_v44 }
 0x347   :  { %10983 = vmatpush1.bf16.msra.mxu1 %v13036_v9  ;;  %4257 = vmatprep.mubr.bf16.mxu1 %v9888_v52  ;;  %v10008_v9 = vcombine.high %v613_v6, %v621_v55  ;;  %v677_v52 = vld [vmem:[#allocation2 + $0x6a8] sm:$0xff] }
 0x348   :  { %10968 = vmatprep.subr.bf16.mxu1 %v16135_v0 }
 0x349   :  { %5430 = vmatmul.mubr.bf16.gmra.mrb[16].mxu0 %v9927_v3  ;;  %v637_v3 = vld [vmem:[#allocation2 + $0x568] sm:$0xff] }
 0x34a   :  { %5437 = vmatprep.mubr.bf16.mxu0 %v9944_v7  ;;  %v10024_v7 = vcombine.high %v629_v2, %v637_v3  ;;  %v10023_v21 = vcombine.low %v629_v2, %v637_v3  ;;  %v293_v2 = vld [vmem:[%s16123_s0 + $0x6a8] sm:$0xff] }
 0x34b   :  { %10984 = vmatpush1.bf16.msra.mxu1 %v13048_v13  ;;  %v273_v13 = vld [vmem:[%s16123_s0 + $0x608] sm:$0xff] }
 0x34c   :  { %10969 = vmatprep.subr.bf16.mxu1 %v16135_v0  ;;  %v432_v58 = vpack.c.bf16 %v273_v13, %v272_v57  ;;  %v577_v57 = vld [vmem:[#allocation2 + $0x388] sm:$0xff] }
 0x34d   :  { %v585_v13 = vld [vmem:[#allocation2 + $0x3c8] sm:$0xff] }
 0x34e   :  { %4258 = vmatmul.mubr.bf16.gmra.mrb[8].mxu1 %v9887_v53  ;;  %5655 = vmatpush1.bf16.msra.mxu0 %v432_v58  ;;  %v685_v53 = vld [vmem:[#allocation2 + $0x6e8] sm:$0xff]  ;;  %v9968_v58 = vcombine.high %v577_v57, %v585_v13 }
 0x34f   :  { %10985 = vmatpush1.bf16.msra.mxu1 %v13062_v18  ;;  %v274_v18 = vld [vmem:[%s16123_s0 + $0x610] sm:$0xff]  ;;  %4265 = vmatprep.mubr.bf16.mxu1 %v9904_v61  ;;  %v10072_v55 = vcombine.high %v677_v52, %v685_v53  ;;  %v441_v61 = vpack.c.bf16 %v291_v60, %v290_v59  ;;  %v781_v59 = vld [vmem:[#allocation2 + $0x9e8] sm:$0xff] }
 0x350   :  { %10970 = vmatprep.subr.bf16.mxu1 %v16135_v0  ;;  %v433_v1 = vpack.c.bf16 %v275_v63, %v274_v18  ;;  %5656 = vmatprep.subr.bf16.mxu0 %v16135_v0  ;;  %v701_v18 = vld [vmem:[#allocation2 + $0x768] sm:$0xff]  ;;  %v10071_v63 = vcombine.low %v677_v52, %v685_v53 }
 0x351   :  { %5438 = vmatmul.mubr.bf16.gmra.mrb[20].mxu0 %v9943_v22  ;;  %v10040_v22 = vcombine.high %v645_v19, %v653_v20  ;;  %v609_v19 = vld [vmem:[#allocation2 + $0x488] sm:$0xff] }
 0x352   :  { %5445 = vmatprep.mubr.bf16.mxu0 %v9960_v25  ;;  %5657 = vmatpush1.bf16.msra.mxu0 %v433_v1  ;;  %v617_v20 = vld [vmem:[#allocation2 + $0x4c8] sm:$0xff] }
 0x353   :  { %10986 = vmatpush1.bf16.msra.mxu1 %v13078_v23  ;;  %5658 = vmatprep.subr.bf16.mxu0 %v16135_v0  ;;  %v276_v23 = vld [vmem:[%s16123_s0 + $0x620] sm:$0xff]  ;;  %v757_v53 = vld [vmem:[#allocation2 + $0x928] sm:$0xff] }
 0x354   :  { %10971 = vmatprep.subr.bf16.mxu1 %v16135_v0  ;;  %v434_v10 = vpack.c.bf16 %v277_v8, %v276_v23  ;;  %v294_v8 = vld [vmem:[%s16123_s0 + $0x6b0] sm:$0xff] }
 0x356   :  { %4266 = vmatmul.mubr.bf16.gmra.mrb[12].mxu1 %v9903_v62  ;;  %5659 = vmatpush1.bf16.msra.mxu0 %v434_v10  ;;  %v693_v62 = vld [vmem:[#allocation2 + $0x728] sm:$0xff]  ;;  %v295_v10 = vld [vmem:[%s16123_s0 + $0x6b8] sm:$0xff] }
 0x357   :  { %10987 = vmatpush1.bf16.msra.mxu1 %v13088_v26  ;;  %v9919_v26 = vcombine.low %v529_v11, %v537_v12  ;;  %4273 = vmatprep.mubr.bf16.mxu1 %v9920_v14  ;;  %v10088_v1 = vcombine.high %v693_v62, %v701_v18  ;;  %v443_v11 = vpack.c.bf16 %v295_v10, %v294_v8  ;;  %v709_v12 = vld [vmem:[#allocation2 + $0x7a8] sm:$0xff] }
 0x358   :  { %10972 = vmatprep.subr.bf16.mxu1 %v16135_v0  ;;  %5660 = vmatprep.subr.bf16.mxu0 %v16135_v0  ;;  %v717_v14 = vld [vmem:[#allocation2 + $0x7e8] sm:$0xff] }
 0x359   :  { %5446 = vmatmul.mubr.bf16.gmra.mrb[24].mxu0 %v9959_v36  ;;  %v661_v36 = vld [vmem:[#allocation2 + $0x628] sm:$0xff]  ;;  %v10104_v15 = vcombine.high %v709_v12, %v717_v14 }
 0x35a   :  { %5453 = vmatprep.mubr.bf16.mxu0 %v9976_v37  ;;  %5661 = vmatpush1.bf16.msra.mxu0 %v435_v17  ;;  %v669_v37 = vld [vmem:[#allocation2 + $0x668] sm:$0xff] }
 0x35b   :  { %10988 = vmatpush1.bf16.msra.mxu1 %v13098_v29  ;;  %5662 = vmatprep.subr.bf16.mxu0 %v16135_v0  ;;  %v280_v29 = vld [vmem:[%s16123_s0 + $0x640] sm:$0xff]  ;;  %v10056_v40 = vcombine.high %v661_v36, %v669_v37  ;;  %v10055_v6 = vcombine.low %v661_v36, %v669_v37  ;;  %v625_v36 = vld [vmem:[#allocation2 + $0x508] sm:$0xff] }
 0x35c   :  { %10973 = vmatprep.subr.bf16.mxu1 %v16135_v0  ;;  %v436_v25 = vpack.c.bf16 %v281_v24, %v280_v29  ;;  %v298_v29 = vld [vmem:[%s16123_s0 + $0x6d0] sm:$0xff]  ;;  %v299_v24 = vld [vmem:[%s16123_s0 + $0x6d8] sm:$0xff]  ;;  %v633_v37 = vld [vmem:[#allocation2 + $0x548] sm:$0xff] }
 0x35d   :  { %v689_v10 = vld [vmem:[#allocation2 + $0x708] sm:$0xff] }
 0x35e   :  { %4274 = vmatmul.mubr.bf16.gmra.mrb[16].mxu1 %v9919_v26  ;;  %5663 = vmatpush1.bf16.msra.mxu0 %v436_v25  ;;  %v10087_v26 = vcombine.low %v693_v62, %v701_v18  ;;  %v445_v25 = vpack.c.bf16 %v299_v24, %v298_v29  ;;  %v673_v62 = vld [vmem:[#allocation2 + $0x688] sm:$0xff] }
 0x35f   :  { %10989 = vmatpush1.bf16.msra.mxu1 %v13108_v32  ;;  %v9935_v32 = vcombine.low %v545_v27, %v553_v28  ;;  %4281 = vmatprep.mubr.bf16.mxu1 %v9936_v30  ;;  %v725_v27 = vld [vmem:[#allocation2 + $0x828] sm:$0xff]  ;;  %v10103_v30 = vcombine.low %v709_v12, %v717_v14 }
 0x360   :  { %10974 = vmatprep.subr.bf16.mxu1 %v16135_v0  ;;  %5664 = vmatprep.subr.bf16.mxu0 %v16135_v0  ;;  %v733_v28 = vld [vmem:[#allocation2 + $0x868] sm:$0xff] }
 0x361   :  { %5454 = vmatmul.mubr.bf16.gmra.mrb[28].mxu0 %v9975_v49  ;;  %v9952_v49 = vcombine.high %v561_v45, %v569_v47  ;;  %v681_v18 = vld [vmem:[#allocation2 + $0x6c8] sm:$0xff] }
 0x362   :  { %5461 = vmatprep.mubr.bf16.mxu0 %v9992_v4  ;;  %5665 = vmatpush1.bf16.msra.mxu0 %v437_v34  ;;  %v286_v4 = vld [vmem:[%s16123_s0 + $0x670] sm:$0xff]  ;;  %v446_v34 = vpack.c.bf16 %v301_v33, %v300_v31  ;;  %v713_v29 = vld [vmem:[#allocation2 + $0x7c8] sm:$0xff]  ;;  %v987_v31 = vld [vmem:[%s16129_s6 + $0x58] sm:$0xff] }
 0x363   :  { %10990 = vmatpush1.bf16.msra.mxu1 %v13118_v35  ;;  %5666 = vmatprep.subr.bf16.mxu0 %v16135_v0  ;;  %v284_v35 = vld [vmem:[%s16123_s0 + $0x660] sm:$0xff]  ;;  %v439_v51 = vpack.c.bf16 %v287_v50, %v286_v4  ;;  %v641_v4 = vld [vmem:[#allocation2 + $0x588] sm:$0xff] }
 0x364   :  { %10975 = vmatprep.subr.bf16.mxu1 %v16135_v0  ;;  %v438_v44 = vpack.c.bf16 %v285_v43, %v284_v35  ;;  %v302_v35 = vld [vmem:[%s16123_s0 + $0x6f0] sm:$0xff]  ;;  %v303_v43 = vld [vmem:[%s16123_s0 + $0x6f8] sm:$0xff]  ;;  %v649_v50 = vld [vmem:[#allocation2 + $0x5c8] sm:$0xff] }
 0x365   :  { %v10031_v52 = vcombine.low %v641_v4, %v649_v50  ;;  %v988_v33 = vld [vmem:[%s16129_s6 + $0x60] sm:$0xff] }
 0x366   :  { %4282 = vmatmul.mubr.bf16.gmra.mrb[20].mxu1 %v9935_v32  ;;  %5667 = vmatpush1.bf16.msra.mxu0 %v438_v44  ;;  %v10120_v32 = vcombine.high %v725_v27, %v733_v28  ;;  %v447_v44 = vpack.c.bf16 %v303_v43, %v302_v35  ;;  %v989_v43 = vld [vmem:[%s16129_s6 + $0x68] sm:$0xff] }
 0x367   :  { %10991 = vmatpush1.bf16.msra.mxu1 %v13128_v38  ;;  %v9951_v38 = vcombine.low %v561_v45, %v569_v47  ;;  %4289 = vmatprep.mubr.bf16.mxu1 %v9952_v49  ;;  %v741_v45 = vld [vmem:[#allocation2 + $0x8a8] sm:$0xff]  ;;  %v10119_v49 = vcombine.low %v725_v27, %v733_v28  ;;  %v986_v28 = vld [vmem:[%s16129_s6 + $0x50] sm:$0xff] }
 0x368   :  { %10976 = vmatprep.subr.bf16.mxu1 %v16135_v0  ;;  %5668 = vmatprep.subr.bf16.mxu0 %v16135_v0  ;;  %v749_v47 = vld [vmem:[#allocation2 + $0x8e8] sm:$0xff] }
 0x369   :  { %5462 = vmatmul.mubr.bf16.gmra.mrb[32].mxu0 %v9991_v56  ;;  %v289_v56 = vld [vmem:[%s16123_s0 + $0x688] sm:$0xff] }
 0x36a   :  { %5469 = vmatprep.mubr.bf16.mxu0 %v10008_v9  ;;  %5669 = vmatpush1.bf16.msra.mxu0 %v439_v51  ;;  %v10032_v51 = vcombine.high %v641_v4, %v649_v50  ;;  %v985_v27 = vld [vmem:[%s16129_s6 + $0x48] sm:$0xff] }
 0x36b   :  { %10992 = vmatpush1.bf16.msra.mxu1 %v13138_v41  ;;  %5670 = vmatprep.subr.bf16.mxu0 %v16135_v0  ;;  %v288_v41 = vld [vmem:[%s16123_s0 + $0x680] sm:$0xff] }
 0x36c   :  { %10977 = vmatprep.subr.bf16.mxu1 %v16135_v0  ;;  %v440_v9 = vpack.c.bf16 %v289_v56, %v288_v41  ;;  %v657_v56 = vld [vmem:[#allocation2 + $0x608] sm:$0xff] }
 0x36e   :  { %4290 = vmatmul.mubr.bf16.gmra.mrb[24].mxu1 %v9951_v38  ;;  %5671 = vmatpush1.bf16.msra.mxu0 %v440_v9  ;;  %v10136_v38 = vcombine.high %v741_v45, %v749_v47  ;;  %v665_v9 = vld [vmem:[#allocation2 + $0x648] sm:$0xff] }
 0x36f   :  { %10993 = vmatpush1.bf16.msra.mxu1 %v13142_v42  ;;  %v9967_v42 = vcombine.low %v577_v57, %v585_v13  ;;  %4297 = vmatprep.mubr.bf16.mxu1 %v9968_v58  ;;  %v10048_v57 = vcombine.high %v657_v56, %v665_v9  ;;  %v10047_v13 = vcombine.low %v657_v56, %v665_v9  ;;  %v976_v58 = vld [vmem:[%s16129_s6] sm:$0xff]  ;;  %v853_v56 = vld [vmem:[#allocation2 + $0xc28] sm:$0xff] }
 0x370   :  { %10978 = vmatprep.subr.bf16.mxu1 %v16135_v0  ;;  %5672 = vmatprep.subr.bf16.mxu0 %v16135_v0  ;;  %v861_v9 = vld [vmem:[#allocation2 + $0xc68] sm:$0xff] }
 0x371   :  { %5470 = vmatmul.mubr.bf16.gmra.mrb[36].mxu0 %v10007_v5  ;;  %v593_v5 = vld [vmem:[#allocation2 + $0x408] sm:$0xff]  ;;  %1042 = vperm.xlu0 %12094, %v976_v58  }
 0x372   :  { %5477 = vmatprep.mubr.bf16.mxu0 %v10024_v7  ;;  %5673 = vmatpush1.bf16.msra.mxu0 %v441_v61  ;;  %v601_v7 = vld [vmem:[#allocation2 + $0x448] sm:$0xff] }
 0x373   :  { %10994 = vmatpush1.bf16.msra.mxu1 %v13155_v46  ;;  %5674 = vmatprep.subr.bf16.mxu0 %v16135_v0  ;;  %v292_v46 = vld [vmem:[%s16123_s0 + $0x6a0] sm:$0xff]  ;;  %v9984_v23 = vcombine.high %v593_v5, %v601_v7 }
 0x374   :  { %10979 = vmatprep.subr.bf16.mxu1 %v16135_v0  ;;  %v442_v3 = vpack.c.bf16 %v293_v2, %v292_v46  ;;  %v978_v46 = vld [vmem:[%s16129_s6 + $0x10] sm:$0xff]  ;;  %v977_v2 = vld [vmem:[%s16129_s6 + $0x8] sm:$0xff] }
 0x375   :  { %1052 = vperm.xlu1 %12095, %v978_v46   ;;  %1047 = vperm.xlu0 %12094, %v977_v2   ;;  %v877_v46 = vld [vmem:[#allocation2 + $0xce8] sm:$0xff]  ;;  %v999_v2 = vld [vmem:[%s16129_s6 + $0xb8] sm:$0xff] }
 0x376   :  { %4298 = vmatmul.mubr.bf16.gmra.mrb[28].mxu1 %v9967_v42  ;;  %5675 = vmatpush1.bf16.msra.mxu0 %v442_v3  ;;  %v773_v42 = vld [vmem:[#allocation2 + $0x9a8] sm:$0xff] }
 0x377   :  { %10995 = vmatpush1.bf16.msra.mxu1 %v13162_v48  ;;  %v9983_v48 = vcombine.low %v593_v5, %v601_v7  ;;  %4305 = vmatprep.mubr.bf16.mxu1 %v9984_v23  ;;  %v10168_v61 = vcombine.high %v773_v42, %v781_v59  ;;  %v789_v3 = vld [vmem:[#allocation2 + $0xa28] sm:$0xff]  ;;  %v979_v7 = vld [vmem:[%s16129_s6 + $0x18] sm:$0xff]  ;;  %v980_v23 = vld [vmem:[%s16129_s6 + $0x20] sm:$0xff] }
 0x378   :  { %10980 = vmatprep.subr.bf16.mxu1 %v16135_v0  ;;  %5676 = vmatprep.subr.bf16.mxu0 %v16135_v0  ;;  %v797_v5 = vld [vmem:[#allocation2 + $0xa68] sm:$0xff] }
 0x379   :  { %5478 = vmatmul.mubr.bf16.gmra.mrb[40].mxu0 %v10023_v21  ;;  %v10000_v21 = vcombine.high %v609_v19, %v617_v20  ;;  %v10184_v8 = vcombine.high %v789_v3, %v797_v5  ;;  %1057 = vperm.xlu1 %12095, %v979_v7  }
 0x37a   :  { %5485 = vmatprep.mubr.bf16.mxu0 %v10040_v22  ;;  %5677 = vmatpush1.bf16.msra.mxu0 %v443_v11  ;;  %v9999_v22 = vcombine.low %v609_v19, %v617_v20  ;;  %v697_v11 = vld [vmem:[#allocation2 + $0x748] sm:$0xff]  ;;  %v984_v19 = vld [vmem:[%s16129_s6 + $0x40] sm:$0xff]  ;;  %v10183_v20 = vcombine.low %v789_v3, %v797_v5  ;;  %v10247_v5 = vcombine.low %v853_v56, %v861_v9 }
 0x37b   :  { %10996 = vmatpush1.bf16.msra.mxu1 %v13175_v54  ;;  %5678 = vmatprep.subr.bf16.mxu0 %v16135_v0  ;;  %v296_v54 = vld [vmem:[%s16123_s0 + $0x6c0] sm:$0xff]  ;;  %v10080_v12 = vcombine.high %v689_v10, %v697_v11  ;;  %v10079_v14 = vcombine.low %v689_v10, %v697_v11  ;;  %v1001_v11 = vld [vmem:[%s16129_s6 + $0xc8] sm:$0xff] }
 0x37c   :  { %7480 = vmatprep.subr.bf16.mxu1 %v16135_v0  ;;  %v444_v17 = vpack.c.bf16 %v297_v16, %v296_v54  ;;  %1062 = vperm.xlu0 %12094, %v980_v23   ;;  %v805_v54 = vld [vmem:[#allocation2 + $0xaa8] sm:$0xff]  ;;  %v1000_v3 = vld [vmem:[%s16129_s6 + $0xc0] sm:$0xff] }
 0x37d   :  { %v813_v16 = vld [vmem:[#allocation2 + $0xae8] sm:$0xff] }
 0x37e   :  { %4306 = vmatmul.mubr.bf16.gmra.mrb[32].mxu1 %v9983_v48  ;;  %5679 = vmatpush1.bf16.msra.mxu0 %v444_v17  ;;  %v10167_v48 = vcombine.low %v773_v42, %v781_v59  ;;  %v983_v17 = vld [vmem:[%s16129_s6 + $0x38] sm:$0xff]  ;;  %v10248_v42 = vcombine.high %v853_v56, %v861_v9  ;;  %v753_v59 = vld [vmem:[#allocation2 + $0x908] sm:$0xff]  ;;  %v1016_v56 = vld [vmem:[%s16129_s6 + $0x140] sm:$0xff] }
 0x37f   :  { %4313 = vmatprep.mubr.bf16.mxu1 %v10000_v21  ;;  %5680 = vmatprep.subr.bf16.mxu0 %v16135_v0  ;;  %v10200_v21 = vcombine.high %v805_v54, %v813_v16  ;;  %v769_v23 = vld [vmem:[#allocation2 + $0x988] sm:$0xff] }
 0x381   :  { %5486 = vmatmul.mubr.bf16.gmra.mrb[44].mxu0 %v10039_v39  ;;  %v10016_v39 = vcombine.high %v625_v36, %v633_v37 }
 0x382   :  { %5493 = vmatprep.mubr.bf16.mxu0 %v10056_v40  ;;  %5681 = vmatpush1.bf16.msra.mxu0 %v445_v25  ;;  %v10015_v40 = vcombine.low %v625_v36, %v633_v37  ;;  %v721_v37 = vld [vmem:[#allocation2 + $0x808] sm:$0xff] }
 0x383   :  { %5682 = vmatprep.subr.bf16.mxu0 %v16135_v0 }
 0x386   :  { %4314 = vmatmul.mubr.bf16.gmra.mrb[36].mxu1 %v9999_v22  ;;  %5683 = vmatpush1.bf16.msra.mxu0 %v446_v34  ;;  %v705_v22 = vld [vmem:[#allocation2 + $0x788] sm:$0xff]  ;;  %v10199_v34 = vcombine.low %v805_v54, %v813_v16  ;;  %v1004_v54 = vld [vmem:[%s16129_s6 + $0xe0] sm:$0xff] }
 0x387   :  { %4321 = vmatprep.mubr.bf16.mxu1 %v10016_v39  ;;  %5684 = vmatprep.subr.bf16.mxu0 %v16135_v0  ;;  %v10096_v24 = vcombine.high %v705_v22, %v713_v29  ;;  %v10095_v25 = vcombine.low %v705_v22, %v713_v29  ;;  %v729_v39 = vld [vmem:[#allocation2 + $0x848] sm:$0xff] }
 0x388   :  { %v10111_v35 = vcombine.low %v721_v37, %v729_v39  ;;  %v1005_v29 = vld [vmem:[%s16129_s6 + $0xe8] sm:$0xff] }
 0x389   :  { %5494 = vmatmul.mubr.bf16.gmra.mrb[48].mxu0 %v10055_v6  ;;  %v765_v6 = vld [vmem:[#allocation2 + $0x968] sm:$0xff] }
 0x38a   :  { %5501 = vmatprep.mubr.bf16.mxu0 %v10072_v55  ;;  %5685 = vmatpush1.bf16.msra.mxu0 %v447_v44  ;;  %v10135_v55 = vcombine.low %v741_v45, %v749_v47  ;;  %v10152_v41 = vcombine.high %v757_v53, %v765_v6  ;;  %v10151_v60 = vcombine.low %v757_v53, %v765_v6  ;;  %v990_v44 = vld [vmem:[%s16129_s6 + $0x70] sm:$0xff]  ;;  %v837_v45 = vld [vmem:[#allocation2 + $0xba8] sm:$0xff] }
 0x38b   :  { %5943 = vmatprep.subr.bf16.mxu0 %v16135_v0  ;;  %v845_v47 = vld [vmem:[#allocation2 + $0xbe8] sm:$0xff] }
 0x38c   :  { %v10232_v50 = vcombine.high %v837_v45, %v845_v47  ;;  %v10231_v58 = vcombine.low %v837_v45, %v845_v47  ;;  %v1012_v45 = vld [vmem:[%s16129_s6 + $0x120] sm:$0xff] }
 0x38e   :  { %4322 = vmatmul.mubr.bf16.gmra.mrb[40].mxu1 %v10015_v40  ;;  %v10112_v40 = vcombine.high %v721_v37, %v729_v39  ;;  %v1009_v39 = vld [vmem:[%s16129_s6 + $0x108] sm:$0xff] }
 0x38f   :  { %4329 = vmatprep.mubr.bf16.mxu1 %v10032_v51  ;;  %v737_v51 = vld [vmem:[#allocation2 + $0x888] sm:$0xff] }
 0x391   :  { %5502 = vmatmul.mubr.bf16.gmra.mrb[52].mxu0 %v10071_v63  ;;  %v10064_v63 = vcombine.high %v673_v62, %v681_v18 }
 0x392   :  { %5509 = vmatprep.mubr.bf16.mxu0 %v10088_v1  ;;  %v10063_v1 = vcombine.low %v673_v62, %v681_v18  ;;  %v997_v18 = vld [vmem:[%s16129_s6 + $0xa8] sm:$0xff] }
 0x396   :  { %4330 = vmatmul.mubr.bf16.gmra.mrb[44].mxu1 %v10031_v52  ;;  %v745_v52 = vld [vmem:[#allocation2 + $0x8c8] sm:$0xff] }
 0x397   :  { %4337 = vmatprep.mubr.bf16.mxu1 %v10048_v57  ;;  %v10128_v53 = vcombine.high %v737_v51, %v745_v52  ;;  %v10127_v6 = vcombine.low %v737_v51, %v745_v52  ;;  %v995_v57 = vld [vmem:[%s16129_s6 + $0x98] sm:$0xff]  ;;  %v1013_v52 = vld [vmem:[%s16129_s6 + $0x128] sm:$0xff] }
 0x399   :  { %5510 = vmatmul.mubr.bf16.gmra.mrb[56].mxu0 %v10087_v26  ;;  %v981_v26 = vld [vmem:[%s16129_s6 + $0x28] sm:$0xff] }
 0x39a   :  { %5517 = vmatprep.mubr.bf16.mxu0 %v10104_v15  ;;  %v982_v15 = vld [vmem:[%s16129_s6 + $0x30] sm:$0xff]  ;;  %1067 = vperm.xlu1 %12095, %v981_v26   ;;  %v893_v26 = vld [vmem:[#allocation2 + $0xd68] sm:$0xff] }
 0x39b   :  { %1072 = vperm.xlu0 %12094, %v982_v15   ;;  %v1003_v15 = vld [vmem:[%s16129_s6 + $0xd8] sm:$0xff] }
 0x39e   :  { %4338 = vmatmul.mubr.bf16.gmra.mrb[48].mxu1 %v10047_v13  ;;  %1077 = vperm.xlu1 %12095, %v983_v17   ;;  %v996_v13 = vld [vmem:[%s16129_s6 + $0xa0] sm:$0xff] }
 0x39f   :  { %4345 = vmatprep.mubr.bf16.mxu1 %v10064_v63  ;;  %1082 = vperm.xlu0 %12094, %v984_v19   ;;  %v998_v63 = vld [vmem:[%s16129_s6 + $0xb0] sm:$0xff]  ;;  %v785_v19 = vld [vmem:[#allocation2 + $0xa08] sm:$0xff] }
 0x3a1   :  { %5518 = vmatmul.mubr.bf16.gmra.mrb[60].mxu0 %v10103_v30  ;;  %v821_v30 = vld [vmem:[#allocation2 + $0xb28] sm:$0xff] }
 0x3a2   :  { %5525 = vmatprep.mubr.bf16.mxu0 %v10120_v32  ;;  %1087 = vperm.xlu1 %12095, %v985_v27   ;;  %v829_v32 = vld [vmem:[#allocation2 + $0xb68] sm:$0xff] }
 0x3a3   :  { %1092 = vperm.xlu0 %12094, %v986_v28   ;;  %v10216_v36 = vcombine.high %v821_v30, %v829_v32  ;;  %v10215_v4 = vcombine.low %v821_v30, %v829_v32  ;;  %v909_v27 = vld [vmem:[#allocation2 + $0xde8] sm:$0xff]  ;;  %v1007_v28 = vld [vmem:[%s16129_s6 + $0xf8] sm:$0xff]  ;;  %v1008_v30 = vld [vmem:[%s16129_s6 + $0x100] sm:$0xff] }
 0x3a6   :  { %4346 = vmatmul.mubr.bf16.gmra.mrb[52].mxu1 %v10063_v1  ;;  %1097 = vperm.xlu1 %12095, %v987_v31   ;;  %v869_v1 = vld [vmem:[#allocation2 + $0xca8] sm:$0xff] }
 0x3a7   :  { %4353 = vmatprep.mubr.bf16.mxu1 %v10080_v12  ;;  %1102 = vperm.xlu0 %12094, %v988_v33   ;;  %v10264_v7 = vcombine.high %v869_v1, %v877_v46  ;;  %v1002_v12 = vld [vmem:[%s16129_s6 + $0xd0] sm:$0xff]  ;;  %v10263_v16 = vcombine.low %v869_v1, %v877_v46  ;;  %v801_v33 = vld [vmem:[#allocation2 + $0xa88] sm:$0xff]  ;;  %v1020_v1 = vld [vmem:[%s16129_s6 + $0x160] sm:$0xff] }
 0x3a9   :  { %5526 = vmatmul.mubr.bf16.gmra.mrb[64].mxu0 %v10119_v49  ;;  %v991_v49 = vld [vmem:[%s16129_s6 + $0x78] sm:$0xff] }
 0x3aa   :  { %5533 = vmatprep.mubr.bf16.mxu0 %v10136_v38  ;;  %1107 = vperm.xlu1 %12095, %v989_v43   ;;  %v992_v38 = vld [vmem:[%s16129_s6 + $0x80] sm:$0xff]  ;;  %v925_v43 = vld [vmem:[#allocation2 + $0xe68] sm:$0xff] }
 0x3ab   :  { %1112 = vperm.xlu0 %12094, %v990_v44   ;;  %v1011_v44 = vld [vmem:[%s16129_s6 + $0x118] sm:$0xff] }
 0x3ae   :  { %4354 = vmatmul.mubr.bf16.gmra.mrb[56].mxu1 %v10079_v14  ;;  %1117 = vperm.xlu1 %12095, %v991_v49   ;;  %v885_v14 = vld [vmem:[#allocation2 + $0xd28] sm:$0xff] }
 0x3af   :  { %4361 = vmatprep.mubr.bf16.mxu1 %v10096_v24  ;;  %1122 = vperm.xlu0 %12094, %v992_v38   ;;  %v10280_v17 = vcombine.high %v885_v14, %v893_v26  ;;  %v1006_v24 = vld [vmem:[%s16129_s6 + $0xf0] sm:$0xff]  ;;  %v10279_v32 = vcombine.low %v885_v14, %v893_v26  ;;  %v817_v38 = vld [vmem:[#allocation2 + $0xb08] sm:$0xff]  ;;  %v1024_v14 = vld [vmem:[%s16129_s6 + $0x180] sm:$0xff] }
 0x3b1   :  { %5534 = vmatmul.mubr.bf16.gmra.mrb[68].mxu0 %v10135_v55  ;;  %v993_v55 = vld [vmem:[%s16129_s6 + $0x88] sm:$0xff] }
 0x3b2   :  { %5541 = vmatprep.mubr.bf16.mxu0 %v10152_v41  ;;  %v994_v41 = vld [vmem:[%s16129_s6 + $0x90] sm:$0xff]  ;;  %1127 = vperm.xlu1 %12095, %v993_v55   ;;  %v941_v55 = vld [vmem:[#allocation2 + $0xee8] sm:$0xff] }
 0x3b3   :  { %1132 = vperm.xlu0 %12094, %v994_v41   ;;  %v1015_v41 = vld [vmem:[%s16129_s6 + $0x138] sm:$0xff] }
 0x3b6   :  { %4362 = vmatmul.mubr.bf16.gmra.mrb[60].mxu1 %v10095_v25  ;;  %1137 = vperm.xlu1 %12095, %v995_v57   ;;  %v901_v25 = vld [vmem:[#allocation2 + $0xda8] sm:$0xff] }
 0x3b7   :  { %4369 = vmatprep.mubr.bf16.mxu1 %v10112_v40  ;;  %1142 = vperm.xlu0 %12094, %v996_v13   ;;  %v10296_v31 = vcombine.high %v901_v25, %v909_v27  ;;  %v1010_v40 = vld [vmem:[%s16129_s6 + $0x110] sm:$0xff]  ;;  %v10295_v47 = vcombine.low %v901_v25, %v909_v27  ;;  %v833_v13 = vld [vmem:[#allocation2 + $0xb88] sm:$0xff]  ;;  %v1028_v25 = vld [vmem:[%s16129_s6 + $0x1a0] sm:$0xff] }
 0x3b9   :  { %5542 = vmatmul.mubr.bf16.gmra.mrb[72].mxu0 %v10151_v60  ;;  %v761_v60 = vld [vmem:[#allocation2 + $0x948] sm:$0xff] }
 0x3ba   :  { %5549 = vmatprep.mubr.bf16.mxu0 %v10168_v61  ;;  %v10144_v61 = vcombine.high %v753_v59, %v761_v60  ;;  %v10143_v62 = vcombine.low %v753_v59, %v761_v60  ;;  %1147 = vperm.xlu1 %12095, %v997_v18   ;;  %v1017_v60 = vld [vmem:[%s16129_s6 + $0x148] sm:$0xff] }
 0x3bb   :  { %1152 = vperm.xlu0 %12094, %v998_v63   ;;  %v957_v18 = vld [vmem:[#allocation2 + $0xf68] sm:$0xff]  ;;  %v1019_v63 = vld [vmem:[%s16129_s6 + $0x158] sm:$0xff] }
 0x3be   :  { %4370 = vmatmul.mubr.bf16.gmra.mrb[64].mxu1 %v10111_v35  ;;  %1157 = vperm.xlu1 %12095, %v999_v2   ;;  %v917_v35 = vld [vmem:[#allocation2 + $0xe28] sm:$0xff] }
 0x3bf   :  { %4377 = vmatprep.mubr.bf16.mxu1 %v10128_v53  ;;  %1162 = vperm.xlu0 %12094, %v1000_v3   ;;  %v10312_v49 = vcombine.high %v917_v35, %v925_v43  ;;  %v1014_v53 = vld [vmem:[%s16129_s6 + $0x130] sm:$0xff]  ;;  %v10311_v9 = vcombine.low %v917_v35, %v925_v43  ;;  %v849_v3 = vld [vmem:[#allocation2 + $0xc08] sm:$0xff]  ;;  %v1032_v35 = vld [vmem:[%s16129_s6 + $0x1c0] sm:$0xff] }
 0x3c1   :  { %5550 = vmatmul.mubr.bf16.gmra.mrb[76].mxu0 %v10167_v48  ;;  %v777_v48 = vld [vmem:[#allocation2 + $0x9c8] sm:$0xff] }
 0x3c2   :  { %5557 = vmatprep.mubr.bf16.mxu0 %v10184_v8  ;;  %v10160_v8 = vcombine.high %v769_v23, %v777_v48  ;;  %v10159_v10 = vcombine.low %v769_v23, %v777_v48  ;;  %1167 = vperm.xlu1 %12095, %v1001_v11   ;;  %v1021_v48 = vld [vmem:[%s16129_s6 + $0x168] sm:$0xff] }
 0x3c3   :  { %1172 = vperm.xlu0 %12094, %v1002_v12   ;;  %v973_v11 = vld [vmem:[#allocation2 + $0xfe8] sm:$0xff]  ;;  %v1023_v12 = vld [vmem:[%s16129_s6 + $0x178] sm:$0xff] }
 0x3c6   :  { %4378 = vmatmul.mubr.bf16.gmra.mrb[68].mxu1 %v10127_v6  ;;  %1177 = vperm.xlu1 %12095, %v1003_v15   ;;  %v933_v6 = vld [vmem:[#allocation2 + $0xea8] sm:$0xff] }
 0x3c7   :  { %4385 = vmatprep.mubr.bf16.mxu1 %v10144_v61  ;;  %1182 = vperm.xlu0 %12094, %v1004_v54   ;;  %v10328_v57 = vcombine.high %v933_v6, %v941_v55  ;;  %v1018_v61 = vld [vmem:[%s16129_s6 + $0x150] sm:$0xff]  ;;  %v10327_v46 = vcombine.low %v933_v6, %v941_v55  ;;  %v865_v54 = vld [vmem:[#allocation2 + $0xc88] sm:$0xff]  ;;  %v1036_v6 = vld [vmem:[%s16129_s6 + $0x1e0] sm:$0xff] }
 0x3c9   :  { %5558 = vmatmul.mubr.bf16.gmra.mrb[80].mxu0 %v10183_v20  ;;  %v793_v20 = vld [vmem:[#allocation2 + $0xa48] sm:$0xff] }
 0x3ca   :  { %5565 = vmatprep.mubr.bf16.mxu0 %v10200_v21  ;;  %v10176_v21 = vcombine.high %v785_v19, %v793_v20  ;;  %v10175_v22 = vcombine.low %v785_v19, %v793_v20  ;;  %1187 = vperm.xlu1 %12095, %v1005_v29   ;;  %v1025_v20 = vld [vmem:[%s16129_s6 + $0x188] sm:$0xff]  ;;  %v478_v29 = vld [vmem:[#allocation2 + $0x70] sm:$0xff] }
 0x3cb   :  { %1192 = vperm.xlu0 %12094, %v1006_v24   ;;  %v1027_v24 = vld [vmem:[%s16129_s6 + $0x198] sm:$0xff] }
 0x3ce   :  { %4386 = vmatmul.mubr.bf16.gmra.mrb[72].mxu1 %v10143_v62  ;;  %1197 = vperm.xlu1 %12095, %v1007_v28   ;;  %v949_v62 = vld [vmem:[#allocation2 + $0xf28] sm:$0xff] }
 0x3cf   :  { %4393 = vmatprep.mubr.bf16.mxu1 %v10160_v8  ;;  %1202 = vperm.xlu0 %12094, %v1008_v30   ;;  %v10344_v2 = vcombine.high %v949_v62, %v957_v18  ;;  %v1022_v8 = vld [vmem:[%s16129_s6 + $0x170] sm:$0xff]  ;;  %v10343_v26 = vcombine.low %v949_v62, %v957_v18  ;;  %v881_v30 = vld [vmem:[#allocation2 + $0xd08] sm:$0xff]  ;;  %v6472_v18 = vld [vmem:[%s16130_s7 + $0x80] sm:$0xff] }
 0x3d1   :  { %5566 = vmatmul.mubr.bf16.gmra.mrb[84].mxu0 %v10199_v34  ;;  %v809_v34 = vld [vmem:[#allocation2 + $0xac8] sm:$0xff] }
 0x3d2   :  { %5573 = vmatprep.mubr.bf16.mxu0 %v10216_v36  ;;  %v10192_v36 = vcombine.high %v801_v33, %v809_v34  ;;  %v10191_v37 = vcombine.low %v801_v33, %v809_v34  ;;  %1207 = vperm.xlu1 %12095, %v1009_v39   ;;  %v1029_v34 = vld [vmem:[%s16129_s6 + $0x1a8] sm:$0xff]  ;;  %v494_v39 = vld [vmem:[#allocation2 + $0xf0] sm:$0xff] }
 0x3d3   :  { %1212 = vperm.xlu0 %12094, %v1010_v40   ;;  %v1031_v40 = vld [vmem:[%s16129_s6 + $0x1b8] sm:$0xff] }
 0x3d6   :  { %4394 = vmatmul.mubr.bf16.gmra.mrb[76].mxu1 %v10159_v10  ;;  %1217 = vperm.xlu1 %12095, %v1011_v44   ;;  %v965_v10 = vld [vmem:[#allocation2 + $0xfa8] sm:$0xff] }
 0x3d7   :  { %4401 = vmatprep.mubr.bf16.mxu1 %v10176_v21  ;;  %1222 = vperm.xlu0 %12094, %v1012_v45   ;;  %v10360_v15 = vcombine.high %v965_v10, %v973_v11  ;;  %v1026_v21 = vld [vmem:[%s16129_s6 + $0x190] sm:$0xff]  ;;  %v10359_v27 = vcombine.low %v965_v10, %v973_v11  ;;  %v897_v45 = vld [vmem:[#allocation2 + $0xd88] sm:$0xff] }
 0x3d8   :  { %v534_v10 = vld [vmem:[#allocation2 + $0x230] sm:$0xff] }
 0x3d9   :  { %5574 = vmatmul.mubr.bf16.gmra.mrb[88].mxu0 %v10215_v4  ;;  %v825_v4 = vld [vmem:[#allocation2 + $0xb48] sm:$0xff]  ;;  %v542_v11 = vld [vmem:[#allocation2 + $0x270] sm:$0xff] }
 0x3da   :  { %5581 = vmatprep.mubr.bf16.mxu0 %v10232_v50  ;;  %v10208_v50 = vcombine.high %v817_v38, %v825_v4  ;;  %v10207_v51 = vcombine.low %v817_v38, %v825_v4  ;;  %1227 = vperm.xlu1 %12095, %v1013_v52   ;;  %v1033_v4 = vld [vmem:[%s16129_s6 + $0x1c8] sm:$0xff]  ;;  %v510_v52 = vld [vmem:[#allocation2 + $0x170] sm:$0xff] }
 0x3db   :  { %1232 = vperm.xlu0 %12094, %v1014_v53   ;;  %v1035_v53 = vld [vmem:[%s16129_s6 + $0x1d8] sm:$0xff] }
 0x3de   :  { %4402 = vmatmul.mubr.bf16.gmra.mrb[80].mxu1 %v10175_v22  ;;  %1237 = vperm.xlu1 %12095, %v1015_v41   ;;  %v470_v22 = vld [vmem:[#allocation2 + $0x30] sm:$0xff] }
 0x3df   :  { %4409 = vmatprep.mubr.bf16.mxu1 %v10192_v36  ;;  %1242 = vperm.xlu0 %12094, %v1016_v56   ;;  %v9866_v28 = vcombine.high %v470_v22, %v478_v29  ;;  %v1030_v36 = vld [vmem:[%s16129_s6 + $0x1b0] sm:$0xff]  ;;  %v9865_v43 = vcombine.low %v470_v22, %v478_v29  ;;  %v913_v56 = vld [vmem:[#allocation2 + $0xe08] sm:$0xff]  ;;  %v6475_v29 = vld [vmem:[%s16130_s7 + $0x98] sm:$0xff] }
 0x3e1   :  { %5582 = vmatmul.mubr.bf16.gmra.mrb[92].mxu0 %v10231_v58  ;;  %v841_v58 = vld [vmem:[#allocation2 + $0xbc8] sm:$0xff] }
 0x3e2   :  { %5589 = vmatprep.mubr.bf16.mxu0 %v10248_v42  ;;  %v10224_v42 = vcombine.high %v833_v13, %v841_v58  ;;  %v10223_v59 = vcombine.low %v833_v13, %v841_v58  ;;  %1247 = vperm.xlu1 %12095, %v1017_v60   ;;  %v1037_v58 = vld [vmem:[%s16129_s6 + $0x1e8] sm:$0xff]  ;;  %v526_v60 = vld [vmem:[#allocation2 + $0x1f0] sm:$0xff] }
 0x3e3   :  { %1252 = vperm.xlu0 %12094, %v1018_v61   ;;  %v1039_v61 = vld [vmem:[%s16129_s6 + $0x1f8] sm:$0xff] }
 0x3e6   :  { %4410 = vmatmul.mubr.bf16.gmra.mrb[84].mxu1 %v10191_v37  ;;  %1257 = vperm.xlu1 %12095, %v1019_v63   ;;  %v486_v37 = vld [vmem:[#allocation2 + $0xb0] sm:$0xff] }
 0x3e7   :  { %4417 = vmatprep.mubr.bf16.mxu1 %v10208_v50  ;;  %1262 = vperm.xlu0 %12094, %v1020_v1   ;;  %v9882_v44 = vcombine.high %v486_v37, %v494_v39  ;;  %v1034_v50 = vld [vmem:[%s16129_s6 + $0x1d0] sm:$0xff]  ;;  %v9881_v55 = vcombine.low %v486_v37, %v494_v39  ;;  %v961_v37 = vld [vmem:[#allocation2 + $0xf88] sm:$0xff] }
 0x3e8   :  { %v969_v39 = vld [vmem:[#allocation2 + $0xfc8] sm:$0xff] }
 0x3e9   :  { %5590 = vmatmul.mubr.bf16.gmra.mrb[96].mxu0 %v10247_v5  ;;  %v857_v5 = vld [vmem:[#allocation2 + $0xc48] sm:$0xff] }
 0x3ea   :  { %5597 = vmatprep.mubr.bf16.mxu0 %v10264_v7  ;;  %v10240_v7 = vcombine.high %v849_v3, %v857_v5  ;;  %v10239_v23 = vcombine.low %v849_v3, %v857_v5  ;;  %1267 = vperm.xlu1 %12095, %v1021_v48   ;;  %v6456_v48 = vld [vmem:[%s16130_s7] sm:$0xff] }
 0x3eb   :  { %1272 = vperm.xlu0 %12094, %v1022_v8  }
 0x3ee   :  { %4418 = vmatmul.mubr.bf16.gmra.mrb[88].mxu1 %v10207_v51  ;;  %1277 = vperm.xlu1 %12095, %v1023_v12   ;;  %v502_v51 = vld [vmem:[#allocation2 + $0x130] sm:$0xff]  ;;  %v6457_v12 = vld [vmem:[%s16130_s7 + $0x8] sm:$0xff] }
 0x3ef   :  { %4425 = vmatprep.mubr.bf16.mxu1 %v10224_v42  ;;  %1282 = vperm.xlu0 %12094, %v1024_v14   ;;  %v9898_v41 = vcombine.high %v502_v51, %v510_v52  ;;  %v1038_v42 = vld [vmem:[%s16129_s6 + $0x1f0] sm:$0xff]  ;;  %v9897_v63 = vcombine.low %v502_v51, %v510_v52 }
 0x3f0   :  { %v14075_v62 = vpop.permute.xlu0 %1042  ;;  %v6474_v14 = vld [vmem:[%s16130_s7 + $0x90] sm:$0xff] }
 0x3f1   :  { %5598 = vmatmul.mubr.bf16.gmra.mrb[100].mxu0 %v10263_v16  ;;  %v873_v16 = vld [vmem:[#allocation2 + $0xcc8] sm:$0xff] }
 0x3f2   :  { %5605 = vmatprep.mubr.bf16.mxu0 %v10280_v17  ;;  %v10256_v17 = vcombine.high %v865_v54, %v873_v16  ;;  %v10255_v19 = vcombine.low %v865_v54, %v873_v16  ;;  %1287 = vperm.xlu1 %12095, %v1025_v20   ;;  %v9930_v54 = vcombine.high %v534_v10, %v542_v11 }
 0x3f3   :  { %1292 = vperm.xlu0 %12094, %v1026_v21  }
 0x3f4   :  { %v14080_v5 = vpop.permute.xlu1 %1052  ;;  %v14088_v8 = vpop.permute.xlu0 %1047 }
 0x3f6   :  { %4426 = vmatmul.mubr.bf16.gmra.mrb[92].mxu1 %v10223_v59  ;;  %1297 = vperm.xlu1 %12095, %v1027_v24   ;;  %v518_v59 = vld [vmem:[#allocation2 + $0x1b0] sm:$0xff] }
 0x3f7   :  { %4433 = vmatprep.mubr.bf16.mxu1 %v10240_v7  ;;  %1302 = vperm.xlu0 %12094, %v1028_v25   ;;  %v9914_v1 = vcombine.high %v518_v59, %v526_v60  ;;  %v6458_v24 = vld [vmem:[%s16130_s7 + $0x10] sm:$0xff] }
 0x3f9   :  { %5606 = vmatmul.mubr.bf16.gmra.mrb[104].mxu0 %v10279_v32  ;;  %v889_v32 = vld [vmem:[#allocation2 + $0xd48] sm:$0xff] }
 0x3fa   :  { %5613 = vmatprep.mubr.bf16.mxu0 %v10296_v31  ;;  %v10272_v31 = vcombine.high %v881_v30, %v889_v32  ;;  %v10271_v33 = vcombine.low %v881_v30, %v889_v32  ;;  %1307 = vperm.xlu1 %12095, %v1029_v34   ;;  %v6459_v30 = vld [vmem:[%s16130_s7 + $0x18] sm:$0xff]  ;;  %v6476_v32 = vld [vmem:[%s16130_s7 + $0xa0] sm:$0xff] }
 0x3fb   :  { %1312 = vperm.xlu0 %12094, %v1030_v36   ;;  %v14098_v16 = vpop.permute.xlu0 %1062 }
 0x3fe   :  { %4434 = vmatmul.mubr.bf16.gmra.mrb[96].mxu1 %v10239_v23  ;;  %1317 = vperm.xlu1 %12095, %v1031_v40   ;;  %v6473_v23 = vld [vmem:[%s16130_s7 + $0x88] sm:$0xff]  ;;  %v10352_v40 = vcombine.high %v961_v37, %v969_v39 }
 0x3ff   :  { %4441 = vmatprep.mubr.bf16.mxu1 %v10256_v17  ;;  %1322 = vperm.xlu0 %12094, %v1032_v35   ;;  %v945_v17 = vld [vmem:[#allocation2 + $0xf08] sm:$0xff] }
 0x401   :  { %5614 = vmatmul.mubr.bf16.gmra.mrb[108].mxu0 %v10295_v47  ;;  %v905_v47 = vld [vmem:[#allocation2 + $0xdc8] sm:$0xff] }
 0x402   :  { %5621 = vmatprep.mubr.bf16.mxu0 %v10312_v49  ;;  %v10288_v49 = vcombine.high %v897_v45, %v905_v47  ;;  %v10287_v38 = vcombine.low %v897_v45, %v905_v47  ;;  %1327 = vperm.xlu1 %12095, %v1033_v4   ;;  %v6460_v45 = vld [vmem:[%s16130_s7 + $0x20] sm:$0xff]  ;;  %v6461_v4 = vld [vmem:[%s16130_s7 + $0x28] sm:$0xff] }
 0x403   :  { %1332 = vperm.xlu0 %12094, %v1034_v50   ;;  %v6478_v50 = vld [vmem:[%s16130_s7 + $0xb0] sm:$0xff] }
 0x406   :  { %4442 = vmatmul.mubr.bf16.gmra.mrb[100].mxu1 %v10255_v19  ;;  %1337 = vperm.xlu1 %12095, %v1035_v53   ;;  %v953_v19 = vld [vmem:[#allocation2 + $0xf48] sm:$0xff] }
 0x407   :  { %4449 = vmatprep.mubr.bf16.mxu1 %v10272_v31  ;;  %1342 = vperm.xlu0 %12094, %v1036_v6   ;;  %v10336_v20 = vcombine.high %v945_v17, %v953_v19  ;;  %v10335_v22 = vcombine.low %v945_v17, %v953_v19  ;;  %v9929_v31 = vcombine.low %v534_v10, %v542_v11  ;;  %v6481_v11 = vld [vmem:[%s16130_s7 + $0xc8] sm:$0xff]  ;;  %v6482_v19 = vld [vmem:[%s16130_s7 + $0xd0] sm:$0xff] }
 0x408   :  { %v6465_v17 = vld [vmem:[%s16130_s7 + $0x48] sm:$0xff] }
 0x409   :  { %5622 = vmatmul.mubr.bf16.gmra.mrb[112].mxu0 %v10311_v9  ;;  %v921_v9 = vld [vmem:[#allocation2 + $0xe48] sm:$0xff] }
 0x40a   :  { %5629 = vmatprep.mubr.bf16.mxu0 %v10328_v57  ;;  %v10304_v57 = vcombine.high %v913_v56, %v921_v9  ;;  %v10303_v13 = vcombine.low %v913_v56, %v921_v9  ;;  %1347 = vperm.xlu1 %12095, %v1037_v58   ;;  %v6462_v58 = vld [vmem:[%s16130_s7 + $0x30] sm:$0xff] }
 0x40b   :  { %1352 = vperm.xlu0 %12094, %v1038_v42  }
 0x40e   :  { %4450 = vmatmul.mubr.bf16.gmra.mrb[104].mxu1 %v10271_v33  ;;  %1357 = vperm.xlu1 %12095, %v1039_v61   ;;  %v6463_v61 = vld [vmem:[%s16130_s7 + $0x38] sm:$0xff] }
 0x40f   :  { %4457 = vmatprep.mubr.bf16.mxu1 %v10288_v49  ;;  %6602 = vperm.xlu0 %12094, %v6472_v18   ;;  %v566_v49 = vld [vmem:[#allocation2 + $0x330] sm:$0xff]  ;;  %v6480_v18 = vld [vmem:[%s16130_s7 + $0xc0] sm:$0xff] }
 0x411   :  { %5630 = vmatmul.mubr.bf16.gmra.mrb[116].mxu0 %v10327_v46  ;;  %v929_v46 = vld [vmem:[#allocation2 + $0xe88] sm:$0xff] }
 0x412   :  { %5637 = vmatprep.mubr.bf16.mxu0 %v10344_v2  ;;  %v937_v2 = vld [vmem:[#allocation2 + $0xec8] sm:$0xff]  ;;  %6607 = vperm.xlu1 %12095, %v6473_v23  }
 0x413   :  { %v10320_v3 = vcombine.high %v929_v46, %v937_v2  ;;  %v10319_v7 = vcombine.low %v929_v46, %v937_v2  ;;  %6522 = vperm.xlu0 %12094, %v6456_v48  }
 0x416   :  { %4458 = vmatmul.mubr.bf16.gmra.mrb[108].mxu1 %v10287_v38  ;;  %6527 = vperm.xlu1 %12095, %v6457_v12   ;;  %v574_v38 = vld [vmem:[#allocation2 + $0x370] sm:$0xff]  ;;  %v6464_v12 = vld [vmem:[%s16130_s7 + $0x40] sm:$0xff] }
 0x417   :  { %4465 = vmatprep.mubr.bf16.mxu1 %v10304_v57  ;;  %6612 = vperm.xlu0 %12094, %v6474_v14   ;;  %v9962_v53 = vcombine.high %v566_v49, %v574_v38 }
 0x419   :  { %5638 = vmatmul.mubr.bf16.gmra.mrb[120].mxu0 %v10343_v26  ;;  %v9913_v26 = vcombine.low %v518_v59, %v526_v60  ;;  %v582_v59 = vld [vmem:[#allocation2 + $0x3b0] sm:$0xff] }
 0x41a   :  { %5645 = vmatprep.mubr.bf16.mxu0 %v10360_v15  ;;  %v14096_v15 = vpop.permute.xlu1 %1057  ;;  %v14108_v25 = vpop.permute.xlu0 %1072  ;;  %6617 = vperm.xlu1 %12095, %v6475_v29   ;;  %v590_v60 = vld [vmem:[#allocation2 + $0x3f0] sm:$0xff] }
 0x41b   :  { %6532 = vperm.xlu0 %12094, %v6458_v24   ;;  %v9978_v46 = vcombine.high %v582_v59, %v590_v60 }
 0x41e   :  { %4466 = vmatmul.mubr.bf16.gmra.mrb[112].mxu1 %v10303_v13  ;;  %v14100_v21 = vpop.permute.xlu1 %1067  ;;  %v14118_v36 = vpop.permute.xlu0 %1082  ;;  %6537 = vperm.xlu1 %12095, %v6459_v30   ;;  %v6479_v13 = vld [vmem:[%s16130_s7 + $0xb8] sm:$0xff] }
 0x41f   :  { %4473 = vmatprep.mubr.bf16.mxu1 %v10320_v3  ;;  %6622 = vperm.xlu0 %12094, %v6476_v32   ;;  %v834_v3 = vld [vmem:[#allocation2 + $0xb90] sm:$0xff] }
 0x421   :  { %5646 = vmatmul.mubr.bf16.gmra.mrb[124].mxu0 %v10359_v27  ;;  %v550_v27 = vld [vmem:[#allocation2 + $0x2b0] sm:$0xff] }
 0x422   :  { %5686 = vmatprep.mubr.bf16.mxu0 %v9866_v28  ;;  %v558_v28 = vld [vmem:[#allocation2 + $0x2f0] sm:$0xff]  ;;  %v14116_v33 = vpop.permute.xlu1 %1077  ;;  %v14128_v47 = vpop.permute.xlu0 %1092 }
 0x423   :  { %v9946_v34 = vcombine.high %v550_v27, %v558_v28  ;;  %6542 = vperm.xlu0 %12094, %v6460_v45   ;;  %v9945_v51 = vcombine.low %v550_v27, %v558_v28  ;;  %v850_v27 = vld [vmem:[#allocation2 + $0xc10] sm:$0xff]  ;;  %v6484_v45 = vld [vmem:[%s16130_s7 + $0xe0] sm:$0xff] }
 0x424   :  { %v858_v28 = vld [vmem:[#allocation2 + $0xc50] sm:$0xff] }
 0x425   :  { %v10242_v30 = vcombine.high %v850_v27, %v858_v28 }
 0x426   :  { %4474 = vmatmul.mubr.bf16.gmra.mrb[116].mxu1 %v10319_v7  ;;  %v14120_v35 = vpop.permute.xlu1 %1087  ;;  %v14138_v6 = vpop.permute.xlu0 %1102  ;;  %v842_v7 = vld [vmem:[#allocation2 + $0xbd0] sm:$0xff] }
 0x427   :  { %4481 = vmatprep.mubr.bf16.mxu1 %v10336_v20  ;;  %6632 = vperm.xlu0 %12094, %v6478_v50   ;;  %v10226_v23 = vcombine.high %v834_v3, %v842_v7  ;;  %v10225_v10 = vcombine.low %v834_v3, %v842_v7  ;;  %v9977_v20 = vcombine.low %v582_v59, %v590_v60  ;;  %v304_v50 = vld [vmem:[%s16123_s0 + $0x700] sm:$0xff]  ;;  %v306_v60 = vld [vmem:[%s16123_s0 + $0x710] sm:$0xff]  ;;  %v6469_v7 = vld [vmem:[%s16130_s7 + $0x68] sm:$0xff] }
 0x428   :  { %v6468_v59 = vld [vmem:[%s16130_s7 + $0x60] sm:$0xff] }
 0x429   :  { %5687 = vmatmul.mubr.bf16.vlgmr.msra.gmra.mrb[0].mxu0 %v9865_v43  ;;  %v10351_v43 = vcombine.low %v961_v37, %v969_v39  ;;  %v6466_v37 = vld [vmem:[%s16130_s7 + $0x50] sm:$0xff] }
 0x42a   :  { %5694 = vmatprep.mubr.bf16.mxu0 %v9882_v44  ;;  %v6477_v44 = vld [vmem:[%s16130_s7 + $0xa8] sm:$0xff]  ;;  %v14136_v52 = vpop.permute.xlu1 %1097  ;;  %v14148_v42 = vpop.permute.xlu0 %1112 }
 0x42b   :  { %6627 = vperm.xlu1 %12095, %v6477_v44   ;;  %6552 = vperm.xlu0 %12094, %v6462_v58   ;;  %v6467_v44 = vld [vmem:[%s16130_s7 + $0x58] sm:$0xff]  ;;  %v6485_v58 = vld [vmem:[%s16130_s7 + $0xe8] sm:$0xff] }
 0x42e   :  { %4482 = vmatmul.mubr.bf16.gmra.mrb[120].mxu1 %v10335_v22  ;;  %v14140_v57 = vpop.permute.xlu1 %1107  ;;  %v14158_v2 = vpop.permute.xlu0 %1122 }
 0x42f   :  { %4489 = vmatprep.mubr.bf16.mxu1 %v10352_v40  ;;  %6547 = vperm.xlu1 %12095, %v6461_v4   ;;  %v614_v40 = vld [vmem:[#allocation2 + $0x4b0] sm:$0xff] }
 0x430   :  { %6642 = vperm.xlu0 %12094, %v6480_v18   ;;  %v630_v18 = vld [vmem:[#allocation2 + $0x530] sm:$0xff] }
 0x431   :  { %5695 = vmatmul.mubr.bf16.gmra.mrb[4].mxu0 %v9881_v55  ;;  %v818_v55 = vld [vmem:[#allocation2 + $0xb10] sm:$0xff] }
 0x432   :  { %5702 = vmatprep.mubr.bf16.mxu0 %v9898_v41  ;;  %v826_v41 = vld [vmem:[#allocation2 + $0xb50] sm:$0xff]  ;;  %v14168_v14 = vpop.permute.xlu0 %1132 }
 0x433   :  { %v10209_v56 = vcombine.low %v818_v55, %v826_v41  ;;  %v10210_v9 = vcombine.high %v818_v55, %v826_v41  ;;  %6637 = vperm.xlu1 %12095, %v6479_v13   ;;  %v866_v41 = vld [vmem:[#allocation2 + $0xc90] sm:$0xff] }
 0x434   :  { %6562 = vperm.xlu0 %12094, %v6464_v12  }
 0x436   :  { %4490 = vmatmul.mubr.bf16.gmra.mrb[124].mxu1 %v10351_v43  ;;  %v14178_v24 = vpop.permute.xlu0 %1142  ;;  %v622_v43 = vld [vmem:[#allocation2 + $0x4f0] sm:$0xff] }
 0x437   :  { %4706 = vmatprep.mubr.bf16.mxu1 %v10210_v9  ;;  %6557 = vperm.xlu1 %12095, %v6463_v61   ;;  %v10010_v4 = vcombine.high %v614_v40, %v622_v43  ;;  %v307_v61 = vld [vmem:[%s16123_s0 + $0x718] sm:$0xff] }
 0x438   :  { %6652 = vperm.xlu0 %12094, %v6482_v19   ;;  %v449_v3 = vpack.c.bf16 %v307_v61, %v306_v60  ;;  %v882_v19 = vld [vmem:[#allocation2 + $0xd10] sm:$0xff] }
 0x439   :  { %5703 = vmatmul.mubr.bf16.gmra.mrb[8].mxu0 %v9897_v63  ;;  %v9961_v63 = vcombine.low %v566_v49, %v574_v38  ;;  %v898_v61 = vld [vmem:[#allocation2 + $0xd90] sm:$0xff] }
 0x43a   :  { %5710 = vmatprep.mubr.bf16.mxu0 %v9914_v1  ;;  %v14156_v1 = vpop.permute.xlu1 %1117  ;;  %v14188_v39 = vpop.permute.xlu0 %1152 }
 0x43b   :  { %6647 = vperm.xlu1 %12095, %v6481_v11  }
 0x43c   :  { %6572 = vperm.xlu0 %12094, %v6466_v37   ;;  %v14247_v37 = vpop.f32.mrb[0].mxu1 }
 0x43e   :  { %4707 = vmatmul.mubr.bf16.vlgmr.msra.gmra.mrb[88].mxu1 %v10209_v56  ;;  %v14160_v48 = vpop.permute.xlu1 %1127  ;;  %v874_v56 = vld [vmem:[#allocation2 + $0xcd0] sm:$0xff] }
 0x43f   :  { %4714 = vmatprep.mubr.bf16.mxu1 %v10226_v23  ;;  %6567 = vperm.xlu1 %12095, %v6465_v17   ;;  %v10258_v9 = vcombine.high %v866_v41, %v874_v56  ;;  %v10257_v13 = vcombine.low %v866_v41, %v874_v56  ;;  %v10009_v23 = vcombine.low %v614_v40, %v622_v43  ;;  %v311_v40 = vld [vmem:[%s16123_s0 + $0x738] sm:$0xff]  ;;  %v4245_v43 = vpop.f32.mrb[1].mxu1  ;;  %v6504_v56 = vld [vmem:[%s16130_s7 + $0x180] sm:$0xff] }
 0x440   :  { %6662 = vperm.xlu0 %12094, %v6484_v45   ;;  %v654_v45 = vld [vmem:[#allocation2 + $0x5f0] sm:$0xff] }
 0x441   :  { %5711 = vmatmul.mubr.bf16.gmra.mrb[12].mxu0 %v9913_v26  ;;  %v598_v26 = vld [vmem:[#allocation2 + $0x430] sm:$0xff] }
 0x442   :  { %5718 = vmatprep.mubr.bf16.mxu0 %v9930_v54  ;;  %v606_v54 = vld [vmem:[#allocation2 + $0x470] sm:$0xff]  ;;  %v14176_v22 = vpop.permute.xlu1 %1137 }
 0x443   :  { %v9994_v29 = vcombine.high %v598_v26, %v606_v54  ;;  %v9993_v49 = vcombine.low %v598_v26, %v606_v54  ;;  %v308_v26 = vld [vmem:[%s16123_s0 + $0x720] sm:$0xff]  ;;  %v309_v54 = vld [vmem:[%s16123_s0 + $0x728] sm:$0xff]  ;;  %v6506_v43 = vld [vmem:[%s16130_s7 + $0x190] sm:$0xff] }
 0x444   :  { %6582 = vperm.xlu0 %12094, %v6468_v59   ;;  %v450_v17 = vpack.c.bf16 %v309_v54, %v308_v26  ;;  %v313_v59 = vld [vmem:[%s16123_s0 + $0x748] sm:$0xff]  ;;  %v315_v54 = vld [vmem:[%s16123_s0 + $0x758] sm:$0xff] }
 0x446   :  { %4715 = vmatmul.mubr.bf16.gmra.mrb[92].mxu1 %v10225_v10  ;;  %v14180_v32 = vpop.permute.xlu1 %1147  ;;  %v6486_v10 = vld [vmem:[%s16130_s7 + $0xf0] sm:$0xff] }
 0x447   :  { %4722 = vmatprep.mubr.bf16.mxu1 %v10242_v30  ;;  %v6487_v30 = vld [vmem:[%s16130_s7 + $0xf8] sm:$0xff] }
 0x448   :  { %6672 = vperm.xlu0 %12094, %v6486_v10   ;;  %v314_v10 = vld [vmem:[%s16123_s0 + $0x750] sm:$0xff] }
 0x449   :  { %5719 = vmatmul.mubr.bf16.gmra.mrb[16].mxu0 %v9929_v31  ;;  %v10241_v31 = vcombine.low %v850_v27, %v858_v28 }
 0x44a   :  { %5726 = vmatprep.mubr.bf16.mxu0 %v9946_v34  ;;  %v6483_v34 = vld [vmem:[%s16130_s7 + $0xd8] sm:$0xff]  ;;  %v14196_v38 = vpop.permute.xlu1 %1157 }
 0x44b   :  { %6657 = vperm.xlu1 %12095, %v6483_v34   ;;  %16137 = vst [vmem:[#allocation9_spill] sm:$0xff] %v14196_v38  ;;  %v310_v34 = vld [vmem:[%s16123_s0 + $0x730] sm:$0xff] }
 0x44e   :  { %4723 = vmatmul.mubr.bf16.gmra.mrb[96].mxu1 %v10241_v31  ;;  %v6470_v31 = vld [vmem:[%s16130_s7 + $0x70] sm:$0xff] }
 0x44f   :  { %6577 = vperm.xlu1 %12095, %v6467_v44   ;;  %4730 = vmatprep.mubr.bf16.mxu1 %v10258_v9  ;;  %v646_v44 = vld [vmem:[#allocation2 + $0x5b0] sm:$0xff] }
 0x450   :  { %6592 = vperm.xlu0 %12094, %v6470_v31   ;;  %v10042_v9 = vcombine.high %v646_v44, %v654_v45 }
 0x451   :  { %5727 = vmatmul.mubr.bf16.gmra.mrb[20].mxu0 %v9945_v51  ;;  %v305_v51 = vld [vmem:[%s16123_s0 + $0x708] sm:$0xff] }
 0x452   :  { %5734 = vmatprep.mubr.bf16.mxu0 %v9962_v53  ;;  %v14204_v53 = vpop.permute.xlu0 %1162  ;;  %v448_v55 = vpack.c.bf16 %v305_v51, %v304_v50  ;;  %v6471_v51 = vld [vmem:[%s16130_s7 + $0x78] sm:$0xff] }
 0x453   :  { %16138 = vst [vmem:[#allocation10_spill] sm:$0xff] %v14204_v53  ;;  %6667 = vperm.xlu1 %12095, %v6485_v58   ;;  %v312_v58 = vld [vmem:[%s16123_s0 + $0x740] sm:$0xff] }
 0x454   :  { %5944 = vmatpush1.bf16.msra.mxu0 %v448_v55  ;;  %6762 = vperm.xlu0 %12094, %v6504_v56   ;;  %v452_v60 = vpack.c.bf16 %v313_v59, %v312_v58  ;;  %v922_v56 = vld [vmem:[#allocation2 + $0xe50] sm:$0xff]  ;;  %v6507_v59 = vld [vmem:[%s16130_s7 + $0x198] sm:$0xff] }
 0x455   :  { %5945 = vmatprep.subr.bf16.mxu0 %v16135_v0 }
 0x456   :  { %4731 = vmatmul.mubr.bf16.gmra.mrb[100].mxu1 %v10257_v13  ;;  %v14227_v12 = vpop.permute.xlu0 %1172 }
 0x457   :  { %16140 = vst [vmem:[#allocation12_spill] sm:$0xff] %v14227_v12  ;;  %6587 = vperm.xlu1 %12095, %v6469_v7   ;;  %v6505_v7 = vld [vmem:[%s16130_s7 + $0x188] sm:$0xff]  ;;  %v8240_v12 = vld [vmem:[%s16131_s8 + $0xb0] sm:$0xff] }
 0x458   :  { %5946 = vmatpush1.bf16.msra.mxu0 %v449_v3 }
 0x459   :  { %5735 = vmatmul.mubr.bf16.gmra.mrb[24].mxu0 %v9961_v63  ;;  %v638_v63 = vld [vmem:[#allocation2 + $0x570] sm:$0xff]  ;;  %5947 = vmatprep.subr.bf16.mxu0 %v16135_v0 }
 0x45a   :  { %5742 = vmatprep.mubr.bf16.mxu0 %v9978_v46  ;;  %v14218_v46 = vpop.permute.xlu1 %1167  ;;  %v10026_v11 = vcombine.high %v630_v18, %v638_v63  ;;  %v14254_v50 = vpop.permute.xlu0 %1182  ;;  %v10025_v41 = vcombine.low %v630_v18, %v638_v63  ;;  %v906_v18 = vld [vmem:[#allocation2 + $0xdd0] sm:$0xff] }
 0x45b   :  { %16139 = vst [vmem:[#allocation11_spill] sm:$0xff] %v14218_v46  ;;  %6677 = vperm.xlu1 %12095, %v6487_v30   ;;  %16142 = vst [vmem:[#allocation14_spill] sm:$0xff] %v14254_v50  ;;  %v10290_v63 = vcombine.high %v898_v61, %v906_v18  ;;  %v10289_v3 = vcombine.low %v898_v61, %v906_v18  ;;  %v6489_v30 = vld [vmem:[%s16130_s7 + $0x108] sm:$0xff]  ;;  %v318_v61 = vld [vmem:[%s16123_s0 + $0x770] sm:$0xff] }
 0x45c   :  { %5948 = vmatpush1.bf16.msra.mxu0 %v450_v17  ;;  %v846_v46 = vld [vmem:[#allocation2 + $0xbf0] sm:$0xff] }
 0x45d   :  { %5949 = vmatprep.subr.bf16.mxu0 %v16135_v0 }
 0x45e   :  { %v14283_v26 = vpop.permute.xlu0 %1192 }
 0x45f   :  { %6597 = vperm.xlu1 %12095, %v6471_v51   ;;  %16144 = vst [vmem:[#allocation16_spill] sm:$0xff] %v14283_v26  ;;  %v316_v51 = vld [vmem:[%s16123_s0 + $0x760] sm:$0xff]  ;;  %v8236_v26 = vld [vmem:[%s16131_s8 + $0x90] sm:$0xff] }
 0x461   :  { %5743 = vmatmul.mubr.bf16.gmra.mrb[28].mxu0 %v9977_v20  ;;  %v890_v20 = vld [vmem:[#allocation2 + $0xd50] sm:$0xff] }
 0x462   :  { %5750 = vmatprep.mubr.bf16.mxu0 %v9994_v29  ;;  %v14236_v29 = vpop.permute.xlu1 %1177  ;;  %v10274_v27 = vcombine.high %v882_v19, %v890_v20  ;;  %v10273_v28 = vcombine.low %v882_v19, %v890_v20  ;;  %v662_v19 = vld [vmem:[#allocation2 + $0x630] sm:$0xff] }
 0x463   :  { %16141 = vst [vmem:[#allocation13_spill] sm:$0xff] %v14236_v29  ;;  %v670_v20 = vld [vmem:[#allocation2 + $0x670] sm:$0xff]  ;;  %6767 = vperm.xlu1 %12095, %v6505_v7  }
 0x464   :  { %4738 = vmatprep.mubr.bf16.mxu1 %v10274_v27  ;;  %v453_v27 = vpack.c.bf16 %v315_v54, %v314_v10  ;;  %v678_v7 = vld [vmem:[#allocation2 + $0x6b0] sm:$0xff] }
 0x465   :  { %4739 = vmatmul.mubr.bf16.gmra.mrb[104].mxu1 %v10273_v28 }
 0x466   :  { %v14263_v13 = vpop.permute.xlu1 %1187  ;;  %4746 = vmatprep.mubr.bf16.mxu1 %v10290_v63  ;;  %v319_v63 = vld [vmem:[%s16123_s0 + $0x778] sm:$0xff] }
 0x467   :  { %16143 = vst [vmem:[#allocation15_spill] sm:$0xff] %v14263_v13  ;;  %6687 = vperm.xlu1 %12095, %v6489_v30   ;;  %v455_v54 = vpack.c.bf16 %v319_v63, %v318_v61  ;;  %v323_v63 = vld [vmem:[%s16123_s0 + $0x798] sm:$0xff]  ;;  %v814_v13 = vld [vmem:[#allocation2 + $0xaf0] sm:$0xff] }
 0x469   :  { %5751 = vmatmul.mubr.bf16.gmra.mrb[32].mxu0 %v9993_v49  ;;  %v451_v49 = vpack.c.bf16 %v311_v40, %v310_v34  ;;  %v10041_v34 = vcombine.low %v646_v44, %v654_v45  ;;  %v317_v44 = vld [vmem:[%s16123_s0 + $0x768] sm:$0xff]  ;;  %v14306_v45 = vpop.permute.xlu0 %1202 }
 0x46a   :  { %5758 = vmatprep.mubr.bf16.mxu0 %v10010_v4  ;;  %v14252_v4 = vpop.f32.mrb[2].mxu1  ;;  %v14293_v40 = vpop.permute.xlu1 %1197  ;;  %16146 = vst [vmem:[#allocation18_spill] sm:$0xff] %v14306_v45  ;;  %v8234_v45 = vld [vmem:[%s16131_s8 + $0x80] sm:$0xff] }
 0x46b   :  { %v4248_v55 = vpop.f32.mrb[3].mxu1  ;;  %5950 = vmatpush1.bf16.msra.mxu0 %v451_v49  ;;  %16145 = vst [vmem:[#allocation17_spill] sm:$0xff] %v14293_v40  ;;  %v10058_v49 = vcombine.high %v662_v19, %v670_v20  ;;  %6777 = vperm.xlu1 %12095, %v6507_v59   ;;  %v6492_v59 = vld [vmem:[%s16130_s7 + $0x120] sm:$0xff]  ;;  %v798_v40 = vld [vmem:[#allocation2 + $0xa70] sm:$0xff] }
 0x46c   :  { %5951 = vmatprep.subr.bf16.mxu0 %v16135_v0  ;;  %v454_v55 = vpack.c.bf16 %v317_v44, %v316_v51  ;;  %v320_v51 = vld [vmem:[%s16123_s0 + $0x780] sm:$0xff]  ;;  %v930_v44 = vld [vmem:[#allocation2 + $0xe90] sm:$0xff] }
 0x46d   :  { %4747 = vmatmul.mubr.bf16.gmra.mrb[108].mxu1 %v10289_v3 }
 0x46e   :  { %v14322_v10 = vpop.permute.xlu1 %1207 }
 0x46f   :  { %5952 = vmatpush1.bf16.msra.mxu0 %v452_v60  ;;  %v6490_v60 = vld [vmem:[%s16130_s7 + $0x110] sm:$0xff]  ;;  %16147 = vst [vmem:[#allocation19_spill] sm:$0xff] %v14322_v10 }
 0x470   :  { %5953 = vmatprep.subr.bf16.mxu0 %v16135_v0 }
 0x471   :  { %5759 = vmatmul.mubr.bf16.gmra.mrb[36].mxu0 %v10009_v23  ;;  %v6488_v23 = vld [vmem:[%s16130_s7 + $0x100] sm:$0xff] }
 0x472   :  { %5766 = vmatprep.mubr.bf16.mxu0 %v10026_v11  ;;  %v14281_v11 = vpop.f32.mrb[4].mxu1  ;;  %6682 = vperm.xlu0 %12094, %v6488_v23   ;;  %v686_v23 = vld [vmem:[#allocation2 + $0x6f0] sm:$0xff] }
 0x473   :  { %v4253_v17 = vpop.f32.mrb[5].mxu1  ;;  %5954 = vmatpush1.bf16.msra.mxu0 %v453_v27  ;;  %v6491_v27 = vld [vmem:[%s16130_s7 + $0x118] sm:$0xff] }
 0x474   :  { %v14288_v28 = vpop.f32.mrb[6].mxu1  ;;  %5955 = vmatprep.subr.bf16.mxu0 %v16135_v0  ;;  %6697 = vperm.xlu1 %12095, %v6491_v27   ;;  %v702_v27 = vld [vmem:[#allocation2 + $0x770] sm:$0xff] }
 0x475   :  { %v4256_v31 = vpop.f32.mrb[7].mxu1 }
 0x476   :  { %6772 = vperm.xlu0 %12094, %v6506_v43   ;;  %v14317_v18 = vpop.f32.mrb[8].mxu1  ;;  %v10057_v31 = vcombine.low %v662_v19, %v670_v20  ;;  %v10074_v43 = vcombine.high %v678_v7, %v686_v23  ;;  %v321_v19 = vld [vmem:[%s16123_s0 + $0x788] sm:$0xff] }
 0x477   :  { %5956 = vmatpush1.bf16.msra.mxu0 %v454_v55  ;;  %v4261_v3 = vpop.f32.mrb[9].mxu1  ;;  %v456_v20 = vpack.c.bf16 %v321_v19, %v320_v51  ;;  %v938_v55 = vld [vmem:[#allocation2 + $0xed0] sm:$0xff]  ;;  %v10073_v19 = vcombine.low %v678_v7, %v686_v23  ;;  %v325_v7 = vld [vmem:[%s16123_s0 + $0x7a8] sm:$0xff] }
 0x478   :  { %v14324_v17 = vpop.f32.mrb[10].mxu1  ;;  %5957 = vmatprep.subr.bf16.mxu0 %v16135_v0 }
 0x479   :  { %5767 = vmatmul.mubr.bf16.gmra.mrb[40].mxu0 %v10025_v41  ;;  %v914_v41 = vld [vmem:[#allocation2 + $0xe10] sm:$0xff]  ;;  %v4264_v30 = vpop.f32.mrb[11].mxu1 }
 0x47a   :  { %5774 = vmatprep.mubr.bf16.mxu0 %v10042_v9  ;;  %v10306_v9 = vcombine.high %v914_v41, %v922_v56  ;;  %v10305_v58 = vcombine.low %v914_v41, %v922_v56  ;;  %6692 = vperm.xlu0 %12094, %v6490_v60   ;;  %v14342_v41 = vpop.permute.xlu1 %1217  ;;  %v10322_v56 = vcombine.high %v930_v44, %v938_v55  ;;  %v322_v60 = vld [vmem:[%s16123_s0 + $0x790] sm:$0xff]  ;;  %v14353_v61 = vpop.f32.mrb[12].mxu1 }
 0x47b   :  { %5958 = vmatpush1.bf16.msra.mxu0 %v455_v54  ;;  %16149 = vst [vmem:[#allocation21_spill] sm:$0xff] %v14342_v41  ;;  %v4269_v3 = vpop.f32.mrb[13].mxu1  ;;  %v694_v54 = vld [vmem:[#allocation2 + $0x730] sm:$0xff]  ;;  %v457_v30 = vpack.c.bf16 %v323_v63, %v322_v60  ;;  %v6511_v63 = vld [vmem:[%s16130_s7 + $0x1b8] sm:$0xff] }
 0x47c   :  { %4754 = vmatprep.mubr.bf16.mxu1 %v10306_v9  ;;  %5959 = vmatprep.subr.bf16.mxu0 %v16135_v0  ;;  %v10321_v9 = vcombine.low %v930_v44, %v938_v55  ;;  %v10090_v44 = vcombine.high %v694_v54, %v702_v27  ;;  %v6494_v3 = vld [vmem:[%s16130_s7 + $0x130] sm:$0xff] }
 0x47d   :  { %4755 = vmatmul.mubr.bf16.gmra.mrb[112].mxu1 %v10305_v58  ;;  %v6509_v58 = vld [vmem:[%s16130_s7 + $0x1a8] sm:$0xff] }
 0x47e   :  { %4762 = vmatprep.mubr.bf16.mxu1 %v10322_v56  ;;  %6787 = vperm.xlu1 %12095, %v6509_v58   ;;  %v14369_v55 = vpop.permute.xlu1 %1227  ;;  %v324_v56 = vld [vmem:[%s16123_s0 + $0x7a0] sm:$0xff]  ;;  %v954_v58 = vld [vmem:[#allocation2 + $0xf50] sm:$0xff] }
 0x47f   :  { %5960 = vmatpush1.bf16.msra.mxu0 %v456_v20  ;;  %v6510_v20 = vld [vmem:[%s16130_s7 + $0x1b0] sm:$0xff]  ;;  %16151 = vst [vmem:[#allocation23_spill] sm:$0xff] %v14369_v55  ;;  %v458_v23 = vpack.c.bf16 %v325_v7, %v324_v56  ;;  %v16154_v55 = vmov 0  }
 0x480   :  { %5961 = vmatprep.subr.bf16.mxu0 %v16135_v0  ;;  %v710_v56 = vld [vmem:[#allocation2 + $0x7b0] sm:$0xff] }
 0x481   :  { %5775 = vmatmul.mubr.bf16.gmra.mrb[44].mxu0 %v10041_v34  ;;  %v6508_v34 = vld [vmem:[%s16130_s7 + $0x1a0] sm:$0xff]  ;;  %v718_v7 = vld [vmem:[#allocation2 + $0x7f0] sm:$0xff] }
 0x482   :  { %5782 = vmatprep.mubr.bf16.mxu0 %v10058_v49  ;;  %v14333_v49 = vpop.permute.xlu0 %1212  ;;  %6782 = vperm.xlu0 %12094, %v6508_v34   ;;  %v10105_v41 = vcombine.low %v710_v56, %v718_v7 }
 0x483   :  { %16148 = vst [vmem:[#allocation20_spill] sm:$0xff] %v14333_v49  ;;  %5962 = vmatpush1.bf16.msra.mxu0 %v457_v30  ;;  %v326_v30 = vld [vmem:[%s16123_s0 + $0x7b0] sm:$0xff] }
 0x484   :  { %5963 = vmatprep.subr.bf16.mxu0 %v16135_v0 }
 0x485   :  { %4763 = vmatmul.mubr.bf16.gmra.mrb[116].mxu1 %v10321_v9  ;;  %v946_v9 = vld [vmem:[#allocation2 + $0xf10] sm:$0xff] }
 0x486   :  { %v14360_v34 = vpop.permute.xlu0 %1222  ;;  %6702 = vperm.xlu0 %12094, %v6492_v59   ;;  %v10338_v59 = vcombine.high %v946_v9, %v954_v58  ;;  %v10337_v60 = vcombine.low %v946_v9, %v954_v58 }
 0x487   :  { %16150 = vst [vmem:[#allocation22_spill] sm:$0xff] %v14360_v34  ;;  %5964 = vmatpush1.bf16.msra.mxu0 %v458_v23  ;;  %v10089_v23 = vcombine.low %v694_v54, %v702_v27 }
 0x488   :  { %4770 = vmatprep.mubr.bf16.mxu1 %v10338_v59  ;;  %5965 = vmatprep.subr.bf16.mxu0 %v16154_v55  ;;  %v6512_v59 = vld [vmem:[%s16130_s7 + $0x1c0] sm:$0xff] }
 0x489   :  { %5783 = vmatmul.mubr.bf16.gmra.mrb[48].mxu0 %v10057_v31  ;;  %v14358_v31 = vpop.f32.mrb[14].mxu1 }
 0x48a   :  { %5790 = vmatprep.mubr.bf16.mxu0 %v10074_v43  ;;  %v6493_v43 = vld [vmem:[%s16130_s7 + $0x128] sm:$0xff]  ;;  %v4272_v51 = vpop.f32.mrb[15].mxu1  ;;  %6792 = vperm.xlu0 %12094, %v6510_v20  }
 0x48b   :  { %6707 = vperm.xlu1 %12095, %v6493_v43   ;;  %v14387_v43 = vpop.f32.mrb[16].mxu1  ;;  %v14389_v51 = vpop.permute.xlu0 %1232 }
 0x48c   :  { %16152 = vst [vmem:[#allocation24_spill] sm:$0xff] %v14389_v51  ;;  %v4277_v20 = vpop.f32.mrb[17].mxu1  ;;  %v14399_v51 = vpop.permute.xlu1 %1237 }
 0x48d   :  { %v14394_v58 = vpop.f32.mrb[18].mxu1  ;;  %4771 = vmatmul.mubr.bf16.gmra.mrb[120].mxu1 %v10337_v60  ;;  %16153 = vst [vmem:[#allocation25_spill] sm:$0xff] %v14399_v51  ;;  %v328_v60 = vld [vmem:[%s16123_s0 + $0x7c0] sm:$0xff]  ;;  %v330_v51 = vld [vmem:[%s16123_s0 + $0x7d0] sm:$0xff] }
 0x48e   :  { %6712 = vperm.xlu0 %12094, %v6494_v3   ;;  %v4280_v0 = vpop.f32.mrb[19].mxu1  ;;  %v962_v3 = vld [vmem:[#allocation2 + $0xf90] sm:$0xff] }
 0x48f   :  { %6797 = vperm.xlu1 %12095, %v6511_v63   ;;  %v10106_v63 = vcombine.high %v710_v56, %v718_v7  ;;  %v329_v0 = vld [vmem:[%s16123_s0 + $0x7c8] sm:$0xff]  ;;  %v14412_v54 = vpop.permute.xlu0 %1242 }
 0x490   :  { %16155 = vst [vmem:[#allocation26_spill] sm:$0xff] %v14412_v54  ;;  %v460_v27 = vpack.c.bf16 %v329_v0, %v328_v60  ;;  %v14423_v54 = vpop.f32.mrb[20].mxu1  ;;  %v726_v60 = vld [vmem:[#allocation2 + $0x830] sm:$0xff]  ;;  %v333_v56 = vld [vmem:[%s16123_s0 + $0x7e8] sm:$0xff] }
 0x491   :  { %5791 = vmatmul.mubr.bf16.gmra.mrb[52].mxu0 %v10073_v19  ;;  %v327_v19 = vld [vmem:[%s16123_s0 + $0x7b8] sm:$0xff]  ;;  %v734_v0 = vld [vmem:[#allocation2 + $0x870] sm:$0xff] }
 0x492   :  { %5798 = vmatprep.mubr.bf16.mxu0 %v10090_v44  ;;  %v459_v9 = vpack.c.bf16 %v327_v19, %v326_v30  ;;  %v6495_v44 = vld [vmem:[%s16130_s7 + $0x138] sm:$0xff]  ;;  %6802 = vperm.xlu0 %12094, %v6512_v59   ;;  %v970_v30 = vld [vmem:[#allocation2 + $0xfd0] sm:$0xff]  ;;  %v4285_v59 = vpop.f32.mrb[21].mxu1 }
 0x493   :  { %6717 = vperm.xlu1 %12095, %v6495_v44   ;;  %v10354_v19 = vcombine.high %v962_v3, %v970_v30  ;;  %v10353_v20 = vcombine.low %v962_v3, %v970_v30  ;;  %v6496_v44 = vld [vmem:[%s16130_s7 + $0x140] sm:$0xff]  ;;  %v14428_v3 = vpop.permute.xlu1 %1247  ;;  %v14430_v34 = vpop.f32.mrb[22].mxu1  ;;  %v6514_v59 = vld [vmem:[%s16130_s7 + $0x1d0] sm:$0xff] }
 0x494   :  { %5966 = vmatpush1.bf16.msra.mxu0 %v459_v9  ;;  %v6513_v9 = vld [vmem:[%s16130_s7 + $0x1c8] sm:$0xff]  ;;  %16156 = vst [vmem:[#allocation27_spill] sm:$0xff] %v14428_v3  ;;  %v10122_v3 = vcombine.high %v726_v60, %v734_v0 }
 0x495   :  { %5967 = vmatprep.subr.bf16.mxu0 %v16154_v55  ;;  %4778 = vmatprep.mubr.bf16.mxu1 %v10354_v19  ;;  %v14439_v19 = vpop.permute.xlu0 %1252 }
 0x496   :  { %4779 = vmatmul.mubr.bf16.gmra.mrb[124].mxu1 %v10353_v20  ;;  %6722 = vperm.xlu0 %12094, %v6496_v44   ;;  %16157 = vst [vmem:[#allocation28_spill] sm:$0xff] %v14439_v19  ;;  %v6498_v44 = vld [vmem:[%s16130_s7 + $0x150] sm:$0xff]  ;;  %v10121_v19 = vcombine.low %v726_v60, %v734_v0 }
 0x497   :  { %6807 = vperm.xlu1 %12095, %v6513_v9   ;;  %v14448_v20 = vpop.permute.xlu1 %1257  ;;  %v6515_v9 = vld [vmem:[%s16130_s7 + $0x1d8] sm:$0xff] }
 0x498   :  { %5968 = vmatpush1.bf16.msra.mxu0 %v460_v27  ;;  %v4288_v27 = vpop.f32.mrb[23].mxu1  ;;  %16158 = vst [vmem:[#allocation29_spill] sm:$0xff] %v14448_v20 }
 0x499   :  { %5799 = vmatmul.mubr.bf16.gmra.mrb[56].mxu0 %v10089_v23  ;;  %v331_v23 = vld [vmem:[%s16123_s0 + $0x7d8] sm:$0xff]  ;;  %5969 = vmatprep.subr.bf16.mxu0 %v16154_v55  ;;  %v742_v27 = vld [vmem:[#allocation2 + $0x8b0] sm:$0xff]  ;;  %v14467_v20 = vpop.permute.xlu0 %1262 }
 0x49a   :  { %5806 = vmatprep.mubr.bf16.mxu0 %v10106_v63  ;;  %v461_v30 = vpack.c.bf16 %v331_v23, %v330_v51  ;;  %v6497_v63 = vld [vmem:[%s16130_s7 + $0x148] sm:$0xff]  ;;  %v332_v51 = vld [vmem:[%s16123_s0 + $0x7e0] sm:$0xff]  ;;  %6812 = vperm.xlu0 %12094, %v6514_v59   ;;  %v334_v23 = vld [vmem:[%s16123_s0 + $0x7f0] sm:$0xff]  ;;  %16159 = vst [vmem:[#allocation30_spill] sm:$0xff] %v14467_v20 }
 0x49b   :  { %6727 = vperm.xlu1 %12095, %v6497_v63   ;;  %v462_v7 = vpack.c.bf16 %v333_v56, %v332_v51  ;;  %v750_v59 = vld [vmem:[#allocation2 + $0x8f0] sm:$0xff] }
 0x49c   :  { %5970 = vmatpush1.bf16.msra.mxu0 %v461_v30  ;;  %v14459_v30 = vpop.f32.mrb[24].mxu1  ;;  %v10138_v49 = vcombine.high %v742_v27, %v750_v59 }
 0x49d   :  { %5971 = vmatprep.subr.bf16.mxu0 %v16154_v55  ;;  %v4293_v63 = vpop.f32.mrb[25].mxu1  ;;  %v14485_v0 = vpop.permute.xlu0 %1272 }
 0x49e   :  { %v14465_v56 = vpop.f32.mrb[26].mxu1  ;;  %6732 = vperm.xlu0 %12094, %v6498_v44   ;;  %v6516_v63 = vld [vmem:[%s16130_s7 + $0x1e0] sm:$0xff]  ;;  %v6517_v44 = vld [vmem:[%s16130_s7 + $0x1e8] sm:$0xff]  ;;  %16161 = vst [vmem:[#allocation32_spill] sm:$0xff] %v14485_v0 }
 0x49f   :  { %6817 = vperm.xlu1 %12095, %v6515_v9   ;;  %v14475_v9 = vpop.permute.xlu1 %1267 }
 0x4a0   :  { %5972 = vmatpush1.bf16.msra.mxu0 %v462_v7  ;;  %v4296_v7 = vpop.f32.mrb[27].mxu1  ;;  %16160 = vst [vmem:[#allocation31_spill] sm:$0xff] %v14475_v9  ;;  %v10137_v9 = vcombine.low %v742_v27, %v750_v59  ;;  %v6502_v27 = vld [vmem:[%s16130_s7 + $0x170] sm:$0xff] }
 0x4a1   :  { %5807 = vmatmul.mubr.bf16.gmra.mrb[60].mxu0 %v10105_v41  ;;  %v335_v41 = vld [vmem:[%s16123_s0 + $0x7f8] sm:$0xff]  ;;  %5973 = vmatprep.subr.bf16.mxu0 %v16154_v55  ;;  %v14483_v60 = vpop.f32.mrb[28].mxu1  ;;  %v766_v7 = vld [vmem:[#allocation2 + $0x970] sm:$0xff] }
 0x4a2   :  { %5814 = vmatprep.mubr.bf16.mxu0 %v10122_v3  ;;  %v463_v51 = vpack.c.bf16 %v335_v41, %v334_v23  ;;  %v6499_v3 = vld [vmem:[%s16130_s7 + $0x158] sm:$0xff]  ;;  %6822 = vperm.xlu0 %12094, %v6516_v63   ;;  %v6500_v23 = vld [vmem:[%s16130_s7 + $0x160] sm:$0xff]  ;;  %v4301_v41 = vpop.f32.mrb[29].mxu1 }
 0x4a3   :  { %6737 = vperm.xlu1 %12095, %v6499_v3   ;;  %v14487_v3 = vpop.f32.mrb[30].mxu1  ;;  %v14492_v20 = vpop.permute.xlu1 %1277 }
 0x4a4   :  { %5974 = vmatpush1.bf16.msra.mxu0 %v463_v51  ;;  %v758_v51 = vld [vmem:[#allocation2 + $0x930] sm:$0xff]  ;;  %v4304_v63 = vpop.f32.mrb[31].mxu1  ;;  %16162 = vst [vmem:[#allocation33_spill] sm:$0xff] %v14492_v20  ;;  %v14497_v41 = vpop.permute.xlu0 %1282 }
 0x4a5   :  { %v10154_v0 = vcombine.high %v758_v51, %v766_v7  ;;  %16163 = vst [vmem:[#allocation34_spill] sm:$0xff] %v14497_v41  ;;  %v14505_v59 = vpop.f32.mrb[32].mxu1  ;;  %v774_v63 = vld [vmem:[#allocation2 + $0x9b0] sm:$0xff]  ;;  %v10153_v41 = vcombine.low %v758_v51, %v766_v7  ;;  %v8218_v51 = vld [vmem:[%s16131_s8] sm:$0xff] }
 0x4a6   :  { %6742 = vperm.xlu0 %12094, %v6500_v23   ;;  %v4309_v23 = vpop.f32.mrb[33].mxu1  ;;  %v782_v20 = vld [vmem:[#allocation2 + $0x9f0] sm:$0xff] }
 0x4a7   :  { %6827 = vperm.xlu1 %12095, %v6517_v44   ;;  %v6519_v44 = vld [vmem:[%s16130_s7 + $0x1f8] sm:$0xff]  ;;  %v14507_v10 = vpop.permute.xlu1 %1287 }
 0x4a8   :  { %16164 = vst [vmem:[#allocation35_spill] sm:$0xff] %v14507_v10  ;;  %v14517_v23 = vpop.permute.xlu0 %1292  ;;  %v790_v10 = vld [vmem:[#allocation2 + $0xa30] sm:$0xff] }
 0x4a9   :  { %5815 = vmatmul.mubr.bf16.gmra.mrb[64].mxu0 %v10121_v19  ;;  %v6501_v19 = vld [vmem:[%s16130_s7 + $0x168] sm:$0xff]  ;;  %16165 = vst [vmem:[#allocation36_spill] sm:$0xff] %v14517_v23  ;;  %v10169_v23 = vcombine.low %v774_v63, %v782_v20 }
 0x4aa   :  { %5822 = vmatprep.mubr.bf16.mxu0 %v10138_v49  ;;  %v6518_v49 = vld [vmem:[%s16130_s7 + $0x1f0] sm:$0xff] }
 0x4ab   :  { %6747 = vperm.xlu1 %12095, %v6501_v19   ;;  %6832 = vperm.xlu0 %12094, %v6518_v49   ;;  %v14509_v19 = vpop.f32.mrb[34].mxu1 }
 0x4ac   :  { %v4312_v49 = vpop.f32.mrb[35].mxu1 }
 0x4ad   :  { %v14527_v7 = vpop.f32.mrb[36].mxu1 }
 0x4ae   :  { %v4317_v49 = vpop.f32.mrb[37].mxu1 }
 0x4af   :  { %6837 = vperm.xlu1 %12095, %v6519_v44   ;;  %6752 = vperm.xlu0 %12094, %v6502_v27   ;;  %v14519_v44 = vpop.permute.xlu1 %1297  ;;  %v8235_v27 = vld [vmem:[%s16131_s8 + $0x88] sm:$0xff] }
 0x4b0   :  { %16166 = vst [vmem:[#allocation37_spill] sm:$0xff] %v14519_v44 }
 0x4b1   :  { %5823 = vmatmul.mubr.bf16.gmra.mrb[68].mxu0 %v10137_v9  ;;  %v6503_v9 = vld [vmem:[%s16130_s7 + $0x178] sm:$0xff] }
 0x4b2   :  { %5830 = vmatprep.mubr.bf16.mxu0 %v10154_v0  ;;  %v10170_v0 = vcombine.high %v774_v63, %v782_v20 }
 0x4b3   :  { %6757 = vperm.xlu1 %12095, %v6503_v9   ;;  %8332 = vperm.xlu0 %12094, %v8234_v45   ;;  %v14529_v9 = vpop.f32.mrb[38].mxu1  ;;  %v14531_v45 = vpop.permute.xlu0 %1302 }
 0x4b4   :  { %16167 = vst [vmem:[#allocation38_spill] sm:$0xff] %v14531_v45  ;;  %v4320_v44 = vpop.f32.mrb[39].mxu1  ;;  %v14539_v49 = vpop.permute.xlu1 %1307  ;;  %v806_v45 = vld [vmem:[#allocation2 + $0xab0] sm:$0xff] }
 0x4b5   :  { %16168 = vst [vmem:[#allocation39_spill] sm:$0xff] %v14539_v49  ;;  %v14547_v44 = vpop.f32.mrb[40].mxu1  ;;  %v10185_v49 = vcombine.low %v790_v10, %v798_v40 }
 0x4b6   :  { %v4325_v63 = vpop.f32.mrb[41].mxu1 }
 0x4b7   :  { %8337 = vperm.xlu1 %12095, %v8235_v27   ;;  %8252 = vperm.xlu0 %12094, %v8218_v51   ;;  %v8237_v27 = vld [vmem:[%s16131_s8 + $0x98] sm:$0xff]  ;;  %v8220_v51 = vld [vmem:[%s16131_s8 + $0x10] sm:$0xff]  ;;  %v14549_v20 = vpop.permute.xlu0 %1312 }
 0x4b8   :  { %16169 = vst [vmem:[#allocation40_spill] sm:$0xff] %v14549_v20  ;;  %v14556_v50 = vpop.permute.xlu1 %1317  ;;  %v10202_v20 = vcombine.high %v806_v45, %v814_v13 }
 0x4b9   :  { %5831 = vmatmul.mubr.bf16.gmra.mrb[72].mxu0 %v10153_v41  ;;  %v8219_v41 = vld [vmem:[%s16131_s8 + $0x8] sm:$0xff]  ;;  %16170 = vst [vmem:[#allocation41_spill] sm:$0xff] %v14556_v50  ;;  %v830_v50 = vld [vmem:[#allocation2 + $0xb70] sm:$0xff] }
 0x4ba   :  { %5838 = vmatprep.mubr.bf16.mxu0 %v10170_v0  ;;  %v10186_v0 = vcombine.high %v790_v10, %v798_v40  ;;  %v8222_v40 = vld [vmem:[%s16131_s8 + $0x20] sm:$0xff] }
 0x4bb   :  { %8257 = vperm.xlu1 %12095, %v8219_v41   ;;  %8342 = vperm.xlu0 %12094, %v8236_v26   ;;  %v14551_v41 = vpop.f32.mrb[42].mxu1  ;;  %v8221_v26 = vld [vmem:[%s16131_s8 + $0x18] sm:$0xff]  ;;  %v14561_v63 = vpop.permute.xlu0 %1322 }
 0x4bc   :  { %16171 = vst [vmem:[#allocation42_spill] sm:$0xff] %v14561_v63  ;;  %v14571_v29 = vpop.permute.xlu1 %1327  ;;  %v10201_v63 = vcombine.low %v806_v45, %v814_v13  ;;  %v8224_v13 = vld [vmem:[%s16131_s8 + $0x30] sm:$0xff] }
 0x4bd   :  { %16173 = vst [vmem:[#allocation44_spill] sm:$0xff] %v14571_v29  ;;  %v838_v29 = vld [vmem:[#allocation2 + $0xbb0] sm:$0xff] }
 0x4bf   :  { %8347 = vperm.xlu1 %12095, %v8237_v27   ;;  %8262 = vperm.xlu0 %12094, %v8220_v51   ;;  %v8239_v27 = vld [vmem:[%s16131_s8 + $0xa8] sm:$0xff] }
 0x4c1   :  { %5839 = vmatmul.mubr.bf16.gmra.mrb[76].mxu0 %v10169_v23  ;;  %v4328_v23 = vpop.f32.mrb[43].mxu1 }
 0x4c2   :  { %5846 = vmatprep.mubr.bf16.mxu0 %v10186_v0  ;;  %v8238_v0 = vld [vmem:[%s16131_s8 + $0xa0] sm:$0xff]  ;;  %v14569_v10 = vpop.f32.mrb[44].mxu1  ;;  %v822_v23 = vld [vmem:[#allocation2 + $0xb30] sm:$0xff] }
 0x4c3   :  { %8267 = vperm.xlu1 %12095, %v8221_v26   ;;  %8352 = vperm.xlu0 %12094, %v8238_v0   ;;  %16172 = vst [vmem:[#allocation43_spill] sm:$0xff] %v14569_v10  ;;  %v4333_v51 = vpop.f32.mrb[45].mxu1 }
 0x4c4   :  { %v14573_v26 = vpop.f32.mrb[46].mxu1  ;;  %v14581_v51 = vpop.permute.xlu0 %1332 }
 0x4c5   :  { %16174 = vst [vmem:[#allocation45_spill] sm:$0xff] %v14573_v26  ;;  %v4336_v0 = vpop.f32.mrb[47].mxu1  ;;  %16175 = vst [vmem:[#allocation46_spill] sm:$0xff] %v14581_v51  ;;  %v10217_v51 = vcombine.low %v822_v23, %v830_v50 }
 0x4c6   :  { %v14591_v45 = vpop.f32.mrb[48].mxu1 }
 0x4c7   :  { %8357 = vperm.xlu1 %12095, %v8239_v27   ;;  %8272 = vperm.xlu0 %12094, %v8222_v40   ;;  %v14583_v27 = vpop.permute.xlu1 %1337  ;;  %v8241_v40 = vld [vmem:[%s16131_s8 + $0xb8] sm:$0xff]  ;;  %16177 = vst [vmem:[#allocation48_spill] sm:$0xff] %v14591_v45  ;;  %v4341_v0 = vpop.f32.mrb[49].mxu1  ;;  %v8242_v45 = vld [vmem:[%s16131_s8 + $0xc0] sm:$0xff] }
 0x4c8   :  { %16176 = vst [vmem:[#allocation47_spill] sm:$0xff] %v14583_v27 }
 0x4c9   :  { %5847 = vmatmul.mubr.bf16.gmra.mrb[80].mxu0 %v10185_v49  ;;  %v8223_v49 = vld [vmem:[%s16131_s8 + $0x28] sm:$0xff] }
 0x4ca   :  { %5854 = vmatprep.mubr.bf16.mxu0 %v10202_v20  ;;  %v10218_v20 = vcombine.high %v822_v23, %v830_v50 }
 0x4cb   :  { %8277 = vperm.xlu1 %12095, %v8223_v49   ;;  %8362 = vperm.xlu0 %12094, %v8240_v12   ;;  %v14593_v49 = vpop.f32.mrb[50].mxu1  ;;  %v14595_v12 = vpop.permute.xlu0 %1342 }
 0x4cc   :  { %16178 = vst [vmem:[#allocation49_spill] sm:$0xff] %v14593_v49  ;;  %16179 = vst [vmem:[#allocation50_spill] sm:$0xff] %v14595_v12  ;;  %v4344_v27 = vpop.f32.mrb[51].mxu1  ;;  %v14603_v0 = vpop.permute.xlu1 %1347  ;;  %v854_v12 = vld [vmem:[#allocation2 + $0xc30] sm:$0xff] }
 0x4cd   :  { %16180 = vst [vmem:[#allocation51_spill] sm:$0xff] %v14603_v0  ;;  %v14611_v27 = vpop.f32.mrb[52].mxu1  ;;  %v862_v49 = vld [vmem:[#allocation2 + $0xc70] sm:$0xff]  ;;  %v10233_v0 = vcombine.low %v838_v29, %v846_v46 }
 0x4ce   :  { %16181 = vst [vmem:[#allocation52_spill] sm:$0xff] %v14611_v27  ;;  %v4349_v23 = vpop.f32.mrb[53].mxu1 }
 0x4cf   :  { %8367 = vperm.xlu1 %12095, %v8241_v40   ;;  %8282 = vperm.xlu0 %12094, %v8224_v13   ;;  %v8243_v40 = vld [vmem:[%s16131_s8 + $0xc8] sm:$0xff]  ;;  %v8226_v13 = vld [vmem:[%s16131_s8 + $0x40] sm:$0xff]  ;;  %v14613_v50 = vpop.permute.xlu0 %1352 }
 0x4d0   :  { %16182 = vst [vmem:[#allocation53_spill] sm:$0xff] %v14613_v50  ;;  %v14620_v53 = vpop.permute.xlu1 %1357  ;;  %v10250_v50 = vcombine.high %v854_v12, %v862_v49 }
 0x4d1   :  { %5855 = vmatmul.mubr.bf16.gmra.mrb[84].mxu0 %v10201_v63  ;;  %v8225_v63 = vld [vmem:[%s16131_s8 + $0x38] sm:$0xff]  ;;  %16184 = vst [vmem:[#allocation55_spill] sm:$0xff] %v14620_v53  ;;  %v878_v53 = vld [vmem:[#allocation2 + $0xcf0] sm:$0xff] }
 0x4d2   :  { %5862 = vmatprep.mubr.bf16.mxu0 %v10218_v20  ;;  %v10234_v20 = vcombine.high %v838_v29, %v846_v46  ;;  %v8228_v46 = vld [vmem:[%s16131_s8 + $0x50] sm:$0xff] }
 0x4d3   :  { %8287 = vperm.xlu1 %12095, %v8225_v63   ;;  %8372 = vperm.xlu0 %12094, %v8242_v45   ;;  %v14615_v63 = vpop.f32.mrb[54].mxu1  ;;  %v14625_v23 = vpop.permute.xlu0 %6602 }
 0x4d4   :  { %16183 = vst [vmem:[#allocation54_spill] sm:$0xff] %v14615_v63  ;;  %v4352_v45 = vpop.f32.mrb[55].mxu1  ;;  %16185 = vst [vmem:[#allocation56_spill] sm:$0xff] %v14625_v23  ;;  %v14635_v63 = vpop.permute.xlu1 %6607  ;;  %v10249_v23 = vcombine.low %v854_v12, %v862_v49  ;;  %v8230_v49 = vld [vmem:[%s16131_s8 + $0x60] sm:$0xff] }
 0x4d5   :  { %v14633_v29 = vpop.f32.mrb[56].mxu1  ;;  %v870_v45 = vld [vmem:[#allocation2 + $0xcb0] sm:$0xff]  ;;  %16187 = vst [vmem:[#allocation58_spill] sm:$0xff] %v14635_v63 }
 0x4d6   :  { %16186 = vst [vmem:[#allocation57_spill] sm:$0xff] %v14633_v29  ;;  %v8246_v29 = vld [vmem:[%s16131_s8 + $0xe0] sm:$0xff]  ;;  %v886_v63 = vld [vmem:[#allocation2 + $0xd30] sm:$0xff] }
 0x4d7   :  { %8377 = vperm.xlu1 %12095, %v8243_v40   ;;  %8292 = vperm.xlu0 %12094, %v8226_v13   ;;  %v8245_v40 = vld [vmem:[%s16131_s8 + $0xd8] sm:$0xff]  ;;  %v4357_v13 = vpop.f32.mrb[57].mxu1 }
 0x4d8   :  { %v14645_v13 = vpop.permute.xlu0 %6522 }
 0x4d9   :  { %5863 = vmatmul.mubr.bf16.gmra.mrb[88].mxu0 %v10217_v51  ;;  %v8227_v51 = vld [vmem:[%s16131_s8 + $0x48] sm:$0xff]  ;;  %16189 = vst [vmem:[#allocation60_spill] sm:$0xff] %v14645_v13  ;;  %v10265_v13 = vcombine.low %v870_v45, %v878_v53 }
 0x4da   :  { %5870 = vmatprep.mubr.bf16.mxu0 %v10234_v20  ;;  %v8244_v20 = vld [vmem:[%s16131_s8 + $0xd0] sm:$0xff] }
 0x4db   :  { %8297 = vperm.xlu1 %12095, %v8227_v51   ;;  %8382 = vperm.xlu0 %12094, %v8244_v20   ;;  %v14637_v51 = vpop.f32.mrb[58].mxu1 }
 0x4dc   :  { %16188 = vst [vmem:[#allocation59_spill] sm:$0xff] %v14637_v51  ;;  %v4360_v20 = vpop.f32.mrb[59].mxu1  ;;  %v894_v51 = vld [vmem:[#allocation2 + $0xd70] sm:$0xff] }
 0x4dd   :  { %v14655_v12 = vpop.f32.mrb[60].mxu1 }
 0x4de   :  { %16191 = vst [vmem:[#allocation62_spill] sm:$0xff] %v14655_v12  ;;  %v4365_v20 = vpop.f32.mrb[61].mxu1  ;;  %v8248_v12 = vld [vmem:[%s16131_s8 + $0xf0] sm:$0xff] }
 0x4df   :  { %8387 = vperm.xlu1 %12095, %v8245_v40   ;;  %8302 = vperm.xlu0 %12094, %v8228_v46   ;;  %v14647_v40 = vpop.permute.xlu1 %6527  ;;  %v8247_v46 = vld [vmem:[%s16131_s8 + $0xe8] sm:$0xff] }
 0x4e0   :  { %16190 = vst [vmem:[#allocation61_spill] sm:$0xff] %v14647_v40 }
 0x4e1   :  { %5871 = vmatmul.mubr.bf16.gmra.mrb[92].mxu0 %v10233_v0  ;;  %v8229_v0 = vld [vmem:[%s16131_s8 + $0x58] sm:$0xff] }
 0x4e2   :  { %5878 = vmatprep.mubr.bf16.mxu0 %v10250_v50  ;;  %v10266_v50 = vcombine.high %v870_v45, %v878_v53 }
 0x4e3   :  { %8307 = vperm.xlu1 %12095, %v8229_v0   ;;  %8392 = vperm.xlu0 %12094, %v8246_v29   ;;  %v14657_v0 = vpop.f32.mrb[62].mxu1  ;;  %v8231_v29 = vld [vmem:[%s16131_s8 + $0x68] sm:$0xff]  ;;  %v14667_v20 = vpop.permute.xlu1 %6617 }
 0x4e4   :  { %16192 = vst [vmem:[#allocation63_spill] sm:$0xff] %v14657_v0  ;;  %v4368_v40 = vpop.f32.mrb[63].mxu1  ;;  %16194 = vst [vmem:[#allocation65_spill] sm:$0xff] %v14667_v20  ;;  %v910_v0 = vld [vmem:[#allocation2 + $0xdf0] sm:$0xff]  ;;  %v10281_v20 = vcombine.low %v886_v63, %v894_v51 }
 0x4e5   :  { %v14675_v40 = vpop.f32.mrb[64].mxu1 }
 0x4e6   :  { %16195 = vst [vmem:[#allocation66_spill] sm:$0xff] %v14675_v40  ;;  %v4373_v45 = vpop.f32.mrb[65].mxu1 }
 0x4e7   :  { %8397 = vperm.xlu1 %12095, %v8247_v46   ;;  %8312 = vperm.xlu0 %12094, %v8230_v49   ;;  %v8249_v46 = vld [vmem:[%s16131_s8 + $0xf8] sm:$0xff]  ;;  %v8232_v49 = vld [vmem:[%s16131_s8 + $0x70] sm:$0xff]  ;;  %v14684_v27 = vpop.permute.xlu1 %6537 }
 0x4e8   :  { %16198 = vst [vmem:[#allocation69_spill] sm:$0xff] %v14684_v27  ;;  %v926_v27 = vld [vmem:[#allocation2 + $0xe70] sm:$0xff] }
 0x4e9   :  { %5879 = vmatmul.mubr.bf16.gmra.mrb[96].mxu0 %v10249_v23  ;;  %v14659_v23 = vpop.permute.xlu0 %6612 }
 0x4ea   :  { %5886 = vmatprep.mubr.bf16.mxu0 %v10266_v50  ;;  %16193 = vst [vmem:[#allocation64_spill] sm:$0xff] %v14659_v23  ;;  %v10282_v50 = vcombine.high %v886_v63, %v894_v51  ;;  %v902_v23 = vld [vmem:[#allocation2 + $0xdb0] sm:$0xff] }
 0x4eb   :  { %8317 = vperm.xlu1 %12095, %v8231_v29   ;;  %8402 = vperm.xlu0 %12094, %v8248_v12   ;;  %v14679_v29 = vpop.f32.mrb[66].mxu1  ;;  %v9118_v63 = vld [vmem:[%s16132_s9 + $0x10] sm:$0xff] }
 0x4ec   :  { %16197 = vst [vmem:[#allocation68_spill] sm:$0xff] %v14679_v29  ;;  %v4376_v12 = vpop.f32.mrb[67].mxu1  ;;  %v14699_v29 = vpop.permute.xlu1 %6627 }
 0x4ed   :  { %v14677_v53 = vpop.permute.xlu0 %6532  ;;  %v14697_v51 = vpop.f32.mrb[68].mxu1  ;;  %v918_v12 = vld [vmem:[#allocation2 + $0xe30] sm:$0xff]  ;;  %16201 = vst [vmem:[#allocation72_spill] sm:$0xff] %v14699_v29 }
 0x4ee   :  { %16196 = vst [vmem:[#allocation67_spill] sm:$0xff] %v14677_v53  ;;  %v10298_v53 = vcombine.high %v902_v23, %v910_v0  ;;  %16200 = vst [vmem:[#allocation71_spill] sm:$0xff] %v14697_v51  ;;  %v9120_v51 = vld [vmem:[%s16132_s9 + $0x20] sm:$0xff]  ;;  %v934_v29 = vld [vmem:[#allocation2 + $0xeb0] sm:$0xff] }
 0x4ef   :  { %8407 = vperm.xlu1 %12095, %v8249_v46   ;;  %8322 = vperm.xlu0 %12094, %v8232_v49   ;;  %v9117_v46 = vld [vmem:[%s16132_s9 + $0x8] sm:$0xff]  ;;  %v4381_v49 = vpop.f32.mrb[69].mxu1 }
 0x4f1   :  { %5887 = vmatmul.mubr.bf16.gmra.mrb[100].mxu0 %v10265_v13  ;;  %v8233_v13 = vld [vmem:[%s16131_s8 + $0x78] sm:$0xff]  ;;  %v14689_v45 = vpop.permute.xlu0 %6622 }
 0x4f2   :  { %5894 = vmatprep.mubr.bf16.mxu0 %v10282_v50  ;;  %v9116_v50 = vld [vmem:[%s16132_s9] sm:$0xff]  ;;  %16199 = vst [vmem:[#allocation70_spill] sm:$0xff] %v14689_v45  ;;  %v10297_v45 = vcombine.low %v902_v23, %v910_v0  ;;  %v9122_v0 = vld [vmem:[%s16132_s9 + $0x30] sm:$0xff] }
 0x4f3   :  { %8327 = vperm.xlu1 %12095, %v8233_v13   ;;  %9134 = vperm.xlu0 %12094, %v9116_v50   ;;  %v14701_v13 = vpop.f32.mrb[70].mxu1 }
 0x4f4   :  { %16202 = vst [vmem:[#allocation73_spill] sm:$0xff] %v14701_v13  ;;  %v4384_v50 = vpop.f32.mrb[71].mxu1  ;;  %v942_v13 = vld [vmem:[#allocation2 + $0xef0] sm:$0xff] }
 0x4f5   :  { %v14709_v49 = vpop.permute.xlu0 %6542  ;;  %v14719_v23 = vpop.f32.mrb[72].mxu1 }
 0x4f6   :  { %16203 = vst [vmem:[#allocation74_spill] sm:$0xff] %v14709_v49  ;;  %16205 = vst [vmem:[#allocation76_spill] sm:$0xff] %v14719_v23  ;;  %v4389_v50 = vpop.f32.mrb[73].mxu1  ;;  %v10313_v49 = vcombine.low %v918_v12, %v926_v27  ;;  %v9124_v23 = vld [vmem:[%s16132_s9 + $0x40] sm:$0xff] }
 0x4f7   :  { %9139 = vperm.xlu1 %12095, %v9117_v46   ;;  %9144 = vperm.xlu0 %12094, %v9118_v63   ;;  %v14711_v46 = vpop.permute.xlu1 %6547  ;;  %v9121_v63 = vld [vmem:[%s16132_s9 + $0x28] sm:$0xff] }
 0x4f8   :  { %16204 = vst [vmem:[#allocation75_spill] sm:$0xff] %v14711_v46 }
 0x4f9   :  { %5895 = vmatmul.mubr.bf16.gmra.mrb[104].mxu0 %v10281_v20  ;;  %v9119_v20 = vld [vmem:[%s16132_s9 + $0x18] sm:$0xff] }
 0x4fa   :  { %5902 = vmatprep.mubr.bf16.mxu0 %v10298_v53  ;;  %v10314_v53 = vcombine.high %v918_v12, %v926_v27 }
 0x4fb   :  { %9149 = vperm.xlu1 %12095, %v9119_v20   ;;  %9154 = vperm.xlu0 %12094, %v9120_v51   ;;  %v14721_v20 = vpop.f32.mrb[74].mxu1  ;;  %v9123_v51 = vld [vmem:[%s16132_s9 + $0x38] sm:$0xff]  ;;  %v14731_v50 = vpop.permute.xlu1 %6637 }
 0x4fc   :  { %16206 = vst [vmem:[#allocation77_spill] sm:$0xff] %v14721_v20  ;;  %v4392_v46 = vpop.f32.mrb[75].mxu1  ;;  %16208 = vst [vmem:[#allocation79_spill] sm:$0xff] %v14731_v50  ;;  %v958_v20 = vld [vmem:[#allocation2 + $0xf70] sm:$0xff]  ;;  %v10329_v50 = vcombine.low %v934_v29, %v942_v13 }
 0x4fd   :  { %v14739_v46 = vpop.f32.mrb[76].mxu1 }
 0x4fe   :  { %16209 = vst [vmem:[#allocation80_spill] sm:$0xff] %v14739_v46  ;;  %v4397_v12 = vpop.f32.mrb[77].mxu1 }
 0x4ff   :  { %9159 = vperm.xlu1 %12095, %v9121_v63   ;;  %9164 = vperm.xlu0 %12094, %v9122_v0   ;;  %v9125_v63 = vld [vmem:[%s16132_s9 + $0x48] sm:$0xff]  ;;  %v9126_v0 = vld [vmem:[%s16132_s9 + $0x50] sm:$0xff]  ;;  %v14748_v40 = vpop.permute.xlu1 %6557 }
 0x500   :  { %16212 = vst [vmem:[#allocation83_spill] sm:$0xff] %v14748_v40  ;;  %v974_v40 = vld [vmem:[#allocation2 + $0xff0] sm:$0xff] }
 0x501   :  { %5903 = vmatmul.mubr.bf16.gmra.mrb[108].mxu0 %v10297_v45  ;;  %v14723_v45 = vpop.permute.xlu0 %6632 }
 0x502   :  { %5910 = vmatprep.mubr.bf16.mxu0 %v10314_v53  ;;  %16207 = vst [vmem:[#allocation78_spill] sm:$0xff] %v14723_v45  ;;  %v10330_v53 = vcombine.high %v934_v29, %v942_v13  ;;  %v950_v45 = vld [vmem:[#allocation2 + $0xf30] sm:$0xff] }
 0x503   :  { %9169 = vperm.xlu1 %12095, %v9123_v51   ;;  %9174 = vperm.xlu0 %12094, %v9124_v23   ;;  %v14743_v51 = vpop.f32.mrb[78].mxu1  ;;  %v9130_v29 = vld [vmem:[%s16132_s9 + $0x70] sm:$0xff] }
 0x504   :  { %16211 = vst [vmem:[#allocation82_spill] sm:$0xff] %v14743_v51  ;;  %v4400_v23 = vpop.f32.mrb[79].mxu1  ;;  %v14763_v51 = vpop.permute.xlu1 %6647 }
 0x505   :  { %v14741_v27 = vpop.permute.xlu0 %6552  ;;  %v14761_v13 = vpop.f32.mrb[80].mxu1  ;;  %v966_v23 = vld [vmem:[#allocation2 + $0xfb0] sm:$0xff]  ;;  %16215 = vst [vmem:[#allocation86_spill] sm:$0xff] %v14763_v51  ;;  %v471_v51 = vld [vmem:[#allocation2 + $0x38] sm:$0xff] }
 0x506   :  { %16210 = vst [vmem:[#allocation81_spill] sm:$0xff] %v14741_v27  ;;  %v10346_v27 = vcombine.high %v950_v45, %v958_v20  ;;  %16214 = vst [vmem:[#allocation85_spill] sm:$0xff] %v14761_v13  ;;  %v9429_v13 = vld [vmem:[%s16133_s10] sm:$0xff] }
 0x507   :  { %9179 = vperm.xlu1 %12095, %v9125_v63   ;;  %9184 = vperm.xlu0 %12094, %v9126_v0   ;;  %v9129_v63 = vld [vmem:[%s16132_s9 + $0x68] sm:$0xff]  ;;  %v4405_v0 = vpop.f32.mrb[81].mxu1 }
 0x509   :  { %5911 = vmatmul.mubr.bf16.gmra.mrb[112].mxu0 %v10313_v49  ;;  %v9127_v49 = vld [vmem:[%s16132_s9 + $0x58] sm:$0xff]  ;;  %v14753_v12 = vpop.permute.xlu0 %6642 }
 0x50a   :  { %5918 = vmatprep.mubr.bf16.mxu0 %v10330_v53  ;;  %v9128_v53 = vld [vmem:[%s16132_s9 + $0x60] sm:$0xff]  ;;  %16213 = vst [vmem:[#allocation84_spill] sm:$0xff] %v14753_v12  ;;  %v10345_v12 = vcombine.low %v950_v45, %v958_v20  ;;  %v9431_v20 = vld [vmem:[%s16133_s10 + $0x10] sm:$0xff] }
 0x50b   :  { %9189 = vperm.xlu1 %12095, %v9127_v49   ;;  %9194 = vperm.xlu0 %12094, %v9128_v53   ;;  %v14765_v49 = vpop.f32.mrb[82].mxu1 }
 0x50c   :  { %16216 = vst [vmem:[#allocation87_spill] sm:$0xff] %v14765_v49  ;;  %v4408_v53 = vpop.f32.mrb[83].mxu1  ;;  %v479_v49 = vld [vmem:[#allocation2 + $0x78] sm:$0xff] }
 0x50d   :  { %v14773_v0 = vpop.permute.xlu0 %6562  ;;  %v14783_v45 = vpop.f32.mrb[84].mxu1 }
 0x50e   :  { %16217 = vst [vmem:[#allocation88_spill] sm:$0xff] %v14773_v0  ;;  %16219 = vst [vmem:[#allocation90_spill] sm:$0xff] %v14783_v45  ;;  %v4413_v53 = vpop.f32.mrb[85].mxu1  ;;  %v10361_v0 = vcombine.low %v966_v23, %v974_v40  ;;  %v9433_v45 = vld [vmem:[%s16133_s10 + $0x20] sm:$0xff] }
 0x50f   :  { %9199 = vperm.xlu1 %12095, %v9129_v63   ;;  %9204 = vperm.xlu0 %12094, %v9130_v29   ;;  %v14775_v63 = vpop.permute.xlu1 %6567  ;;  %v9430_v29 = vld [vmem:[%s16133_s10 + $0x8] sm:$0xff] }
 0x510   :  { %16218 = vst [vmem:[#allocation89_spill] sm:$0xff] %v14775_v63 }
 0x511   :  { %5919 = vmatmul.mubr.bf16.gmra.mrb[116].mxu0 %v10329_v50  ;;  %v9131_v50 = vld [vmem:[%s16132_s9 + $0x78] sm:$0xff] }
 0x512   :  { %5926 = vmatprep.mubr.bf16.mxu0 %v10346_v27  ;;  %v10362_v27 = vcombine.high %v966_v23, %v974_v40  ;;  %v487_v23 = vld [vmem:[#allocation2 + $0xb8] sm:$0xff] }
 0x513   :  { %9209 = vperm.xlu1 %12095, %v9131_v50   ;;  %9447 = vperm.xlu0 %12094, %v9429_v13   ;;  %v14785_v50 = vpop.f32.mrb[86].mxu1  ;;  %v9432_v13 = vld [vmem:[%s16133_s10 + $0x18] sm:$0xff]  ;;  %v14795_v53 = vpop.permute.xlu1 %6657 }
 0x514   :  { %16220 = vst [vmem:[#allocation91_spill] sm:$0xff] %v14785_v50  ;;  %v4416_v63 = vpop.f32.mrb[87].mxu1  ;;  %16222 = vst [vmem:[#allocation93_spill] sm:$0xff] %v14795_v53  ;;  %v9437_v53 = vld [vmem:[%s16133_s10 + $0x40] sm:$0xff] }
 0x515   :  { %v495_v63 = vld [vmem:[#allocation2 + $0xf8] sm:$0xff]  ;;  %v14813_v50 = vpop.f32.mrb[88].mxu1 }
 0x516   :  { %16225 = vst [vmem:[#allocation96_spill] sm:$0xff] %v14813_v50  ;;  %v511_v50 = vld [vmem:[#allocation2 + $0x178] sm:$0xff] }
 0x517   :  { %9452 = vperm.xlu1 %12095, %v9430_v29   ;;  %9457 = vperm.xlu0 %12094, %v9431_v20   ;;  %v9434_v29 = vld [vmem:[%s16133_s10 + $0x28] sm:$0xff]  ;;  %v9435_v20 = vld [vmem:[%s16133_s10 + $0x30] sm:$0xff] }
 0x519   :  { %5927 = vmatmul.mubr.bf16.gmra.mrb[120].mxu0 %v10345_v12  ;;  %v14787_v12 = vpop.permute.xlu0 %6652 }
 0x51a   :  { %5934 = vmatprep.mubr.bf16.mxu0 %v10362_v27  ;;  %16221 = vst [vmem:[#allocation92_spill] sm:$0xff] %v14787_v12  ;;  %v9868_v27 = vcombine.high %v471_v51, %v479_v49  ;;  %v9884_v12 = vcombine.high %v487_v23, %v495_v63 }
 0x51b   :  { %9462 = vperm.xlu1 %12095, %v9432_v13   ;;  %9467 = vperm.xlu0 %12094, %v9433_v45   ;;  %v9436_v45 = vld [vmem:[%s16133_s10 + $0x38] sm:$0xff]  ;;  %v14808_v13 = vpop.permute.xlu1 %6577 }
 0x51c   :  { %16224 = vst [vmem:[#allocation95_spill] sm:$0xff] %v14808_v13  ;;  %v503_v13 = vld [vmem:[#allocation2 + $0x138] sm:$0xff] }
 0x51d   :  { %v14803_v40 = vpop.permute.xlu0 %6572 }
 0x51e   :  { %16223 = vst [vmem:[#allocation94_spill] sm:$0xff] %v14803_v40  ;;  %v4710_v40 = vpop.f32.mrb[89].mxu1 }
 0x51f   :  { %9472 = vperm.xlu1 %12095, %v9434_v29   ;;  %9477 = vperm.xlu0 %12094, %v9435_v20   ;;  %v14817_v29 = vpop.f32.mrb[90].mxu1  ;;  %v9883_v40 = vcombine.low %v487_v23, %v495_v63  ;;  %v9442_v23 = vld [vmem:[%s16133_s10 + $0x68] sm:$0xff]  ;;  %v9443_v63 = vld [vmem:[%s16133_s10 + $0x70] sm:$0xff] }
 0x520   :  { %16227 = vst [vmem:[#allocation98_spill] sm:$0xff] %v14817_v29  ;;  %v4713_v20 = vpop.f32.mrb[91].mxu1 }
 0x521   :  { %5935 = vmatmul.mubr.bf16.gmra.mrb[124].mxu0 %v10361_v0  ;;  %v9867_v0 = vcombine.low %v471_v51, %v479_v49  ;;  %v9438_v51 = vld [vmem:[%s16133_s10 + $0x48] sm:$0xff]  ;;  %v9439_v49 = vld [vmem:[%s16133_s10 + $0x50] sm:$0xff] }
 0x522   :  { %5975 = vmatprep.mubr.bf16.mxu0 %v9868_v27  ;;  %v14815_v27 = vpop.permute.xlu0 %6662 }
 0x523   :  { %9482 = vperm.xlu1 %12095, %v9436_v45   ;;  %16226 = vst [vmem:[#allocation97_spill] sm:$0xff] %v14815_v27  ;;  %9487 = vperm.xlu0 %12094, %v9437_v53   ;;  %v14825_v45 = vpop.permute.xlu1 %6667  ;;  %v9440_v53 = vld [vmem:[%s16133_s10 + $0x58] sm:$0xff]  ;;  %v9900_v27 = vcombine.high %v503_v13, %v511_v50 }
 0x524   :  { %16228 = vst [vmem:[#allocation99_spill] sm:$0xff] %v14825_v45 }
 0x526   :  { %v14833_v29 = vpop.permute.xlu0 %6582 }
 0x527   :  { %9492 = vperm.xlu1 %12095, %v9438_v51   ;;  %9497 = vperm.xlu0 %12094, %v9439_v49   ;;  %16229 = vst [vmem:[#allocation100_spill] sm:$0xff] %v14833_v29  ;;  %v14837_v51 = vpop.permute.xlu1 %6587  ;;  %v519_v29 = vld [vmem:[#allocation2 + $0x1b8] sm:$0xff] }
 0x528   :  { %16231 = vst [vmem:[#allocation102_spill] sm:$0xff] %v14837_v51 }
 0x529   :  { %5976 = vmatmul.mubr.bf16.vlgmr.msra.gmra.mrb[0].mxu0 %v9867_v0  ;;  %v9441_v0 = vld [vmem:[%s16133_s10 + $0x60] sm:$0xff] }
 0x52a   :  { %5983 = vmatprep.mubr.bf16.mxu0 %v9884_v12  ;;  %v14835_v12 = vpop.f32.mrb[92].mxu1 }
 0x52b   :  { %16230 = vst [vmem:[#allocation101_spill] sm:$0xff] %v14835_v12  ;;  %9502 = vperm.xlu1 %12095, %v9440_v53   ;;  %v4718_v20 = vpop.f32.mrb[93].mxu1  ;;  %9507 = vperm.xlu0 %12094, %v9441_v0   ;;  %v527_v12 = vld [vmem:[#allocation2 + $0x1f8] sm:$0xff]  ;;  %v14847_v53 = vpop.permute.xlu0 %6672  ;;  %v9899_v0 = vcombine.low %v503_v13, %v511_v50 }
 0x52c   :  { %v14839_v49 = vpop.f32.mrb[94].mxu1  ;;  %16233 = vst [vmem:[#allocation104_spill] sm:$0xff] %v14847_v53  ;;  %v9916_v20 = vcombine.high %v519_v29, %v527_v12  ;;  %v14852_v51 = vpop.permute.xlu1 %6677  ;;  %v543_v53 = vld [vmem:[#allocation2 + $0x278] sm:$0xff] }
 0x52d   :  { %16232 = vst [vmem:[#allocation103_spill] sm:$0xff] %v14839_v49  ;;  %v4721_v45 = vpop.f32.mrb[95].mxu1  ;;  %16234 = vst [vmem:[#allocation105_spill] sm:$0xff] %v14852_v51  ;;  %v551_v51 = vld [vmem:[#allocation2 + $0x2b8] sm:$0xff] }
 0x52e   :  { %v14854_v49 = vpop.f32.mrb[96].mxu1 }
 0x52f   :  { %9512 = vperm.xlu1 %12095, %v9442_v23   ;;  %9517 = vperm.xlu0 %12094, %v9443_v63   ;;  %16235 = vst [vmem:[#allocation106_spill] sm:$0xff] %v14854_v49  ;;  %v4726_v46 = vpop.f32.mrb[97].mxu1  ;;  %v535_v23 = vld [vmem:[#allocation2 + $0x238] sm:$0xff]  ;;  %v9915_v63 = vcombine.low %v519_v29, %v527_v12 }
 0x530   :  { %v9932_v26 = vcombine.high %v535_v23, %v543_v53  ;;  %v9931_v46 = vcombine.low %v535_v23, %v543_v53  ;;  %v567_v12 = vld [vmem:[#allocation2 + $0x338] sm:$0xff] }
 0x531   :  { %5984 = vmatmul.mubr.bf16.gmra.mrb[4].mxu0 %v9883_v40  ;;  %v9444_v40 = vld [vmem:[%s16133_s10 + $0x78] sm:$0xff] }
 0x532   :  { %5991 = vmatprep.mubr.bf16.mxu0 %v9900_v27  ;;  %v14856_v27 = vpop.f32.mrb[98].mxu1  ;;  %v583_v23 = vld [vmem:[#allocation2 + $0x3b8] sm:$0xff] }
 0x533   :  { %9522 = vperm.xlu1 %12095, %v9444_v40   ;;  %16236 = vst [vmem:[#allocation107_spill] sm:$0xff] %v14856_v27  ;;  %v4729_v45 = vpop.f32.mrb[99].mxu1  ;;  %v559_v40 = vld [vmem:[#allocation2 + $0x2f8] sm:$0xff] }
 0x534   :  { %v14858_v38 = vpop.f32.mrb[100].mxu1 }
 0x535   :  { %16237 = vst [vmem:[#allocation108_spill] sm:$0xff] %v14858_v38  ;;  %v4734_v10 = vpop.f32.mrb[101].mxu1  ;;  %v575_v38 = vld [vmem:[#allocation2 + $0x378] sm:$0xff] }
 0x536   :  { %v14860_v50 = vpop.f32.mrb[102].mxu1  ;;  %v9947_v10 = vcombine.low %v551_v51, %v559_v40 }
 0x537   :  { %16238 = vst [vmem:[#allocation109_spill] sm:$0xff] %v14860_v50  ;;  %v4737_v13 = vpop.f32.mrb[103].mxu1 }
 0x538   :  { %v14862_v49 = vpop.f32.mrb[104].mxu1 }
 0x539   :  { %5992 = vmatmul.mubr.bf16.gmra.mrb[8].mxu0 %v9899_v0  ;;  %v9948_v0 = vcombine.high %v551_v51, %v559_v40  ;;  %16239 = vst [vmem:[#allocation110_spill] sm:$0xff] %v14862_v49  ;;  %v591_v49 = vld [vmem:[#allocation2 + $0x3f8] sm:$0xff] }
 0x53a   :  { %5999 = vmatprep.mubr.bf16.mxu0 %v9916_v20  ;;  %v4742_v20 = vpop.f32.mrb[105].mxu1  ;;  %v599_v40 = vld [vmem:[#allocation2 + $0x438] sm:$0xff] }
 0x53b   :  { %v14864_v45 = vpop.f32.mrb[106].mxu1  ;;  %v9963_v20 = vcombine.low %v567_v12, %v575_v38 }
 0x53c   :  { %16240 = vst [vmem:[#allocation111_spill] sm:$0xff] %v14864_v45  ;;  %v4745_v29 = vpop.f32.mrb[107].mxu1 }
 0x540   :  { %v14866_v27 = vpop.f32.mrb[108].mxu1 }
 0x541   :  { %6000 = vmatmul.mubr.bf16.gmra.mrb[12].mxu0 %v9915_v63  ;;  %v9964_v63 = vcombine.high %v567_v12, %v575_v38  ;;  %16241 = vst [vmem:[#allocation112_spill] sm:$0xff] %v14866_v27  ;;  %v607_v27 = vld [vmem:[#allocation2 + $0x478] sm:$0xff] }
 0x542   :  { %6007 = vmatprep.mubr.bf16.mxu0 %v9932_v26  ;;  %v4750_v26 = vpop.f32.mrb[109].mxu1  ;;  %v615_v12 = vld [vmem:[#allocation2 + $0x4b8] sm:$0xff] }
 0x543   :  { %v14868_v13 = vpop.f32.mrb[110].mxu1  ;;  %v9979_v26 = vcombine.low %v583_v23, %v591_v49 }
 0x544   :  { %16242 = vst [vmem:[#allocation113_spill] sm:$0xff] %v14868_v13  ;;  %v4753_v53 = vpop.f32.mrb[111].mxu1 }
 0x549   :  { %6008 = vmatmul.mubr.bf16.gmra.mrb[16].mxu0 %v9931_v46  ;;  %v9980_v46 = vcombine.high %v583_v23, %v591_v49  ;;  %v631_v23 = vld [vmem:[#allocation2 + $0x538] sm:$0xff] }
 0x54a   :  { %6015 = vmatprep.mubr.bf16.mxu0 %v9948_v0 }
 0x550   :  { %v14870_v50 = vpop.f32.mrb[112].mxu1 }
 0x551   :  { %6016 = vmatmul.mubr.bf16.gmra.mrb[20].mxu0 %v9947_v10  ;;  %16243 = vst [vmem:[#allocation114_spill] sm:$0xff] %v14870_v50  ;;  %v4758_v0 = vpop.f32.mrb[113].mxu1  ;;  %v9996_v10 = vcombine.high %v599_v40, %v607_v27  ;;  %v623_v50 = vld [vmem:[#allocation2 + $0x4f8] sm:$0xff] }
 0x552   :  { %6023 = vmatprep.mubr.bf16.mxu0 %v9964_v63  ;;  %v14872_v29 = vpop.f32.mrb[114].mxu1  ;;  %v9995_v0 = vcombine.low %v599_v40, %v607_v27  ;;  %v647_v40 = vld [vmem:[#allocation2 + $0x5b8] sm:$0xff] }
 0x553   :  { %16244 = vst [vmem:[#allocation115_spill] sm:$0xff] %v14872_v29  ;;  %v4761_v51 = vpop.f32.mrb[115].mxu1 }
 0x558   :  { %v14874_v45 = vpop.f32.mrb[116].mxu1 }
 0x559   :  { %6024 = vmatmul.mubr.bf16.gmra.mrb[24].mxu0 %v9963_v20  ;;  %16245 = vst [vmem:[#allocation116_spill] sm:$0xff] %v14874_v45  ;;  %v4766_v63 = vpop.f32.mrb[117].mxu1  ;;  %v10012_v20 = vcombine.high %v615_v12, %v623_v50  ;;  %v639_v45 = vld [vmem:[#allocation2 + $0x578] sm:$0xff] }
 0x55a   :  { %6031 = vmatprep.mubr.bf16.mxu0 %v9980_v46  ;;  %v14876_v53 = vpop.f32.mrb[118].mxu1  ;;  %v10011_v63 = vcombine.low %v615_v12, %v623_v50  ;;  %v679_v50 = vld [vmem:[#allocation2 + $0x6b8] sm:$0xff] }
 0x55b   :  { %16246 = vst [vmem:[#allocation117_spill] sm:$0xff] %v14876_v53  ;;  %v4769_v38 = vpop.f32.mrb[119].mxu1  ;;  %v687_v12 = vld [vmem:[#allocation2 + $0x6f8] sm:$0xff] }
 0x560   :  { %v14878_v13 = vpop.f32.mrb[120].mxu1 }
 0x561   :  { %6032 = vmatmul.mubr.bf16.gmra.mrb[28].mxu0 %v9979_v26  ;;  %16247 = vst [vmem:[#allocation118_spill] sm:$0xff] %v14878_v13  ;;  %v4774_v46 = vpop.f32.mrb[121].mxu1  ;;  %v10028_v26 = vcombine.high %v631_v23, %v639_v45  ;;  %v655_v13 = vld [vmem:[#allocation2 + $0x5f8] sm:$0xff] }
 0x562   :  { %6039 = vmatprep.mubr.bf16.mxu0 %v9996_v10  ;;  %v14880_v51 = vpop.f32.mrb[122].mxu1  ;;  %v10027_v46 = vcombine.low %v631_v23, %v639_v45  ;;  %v711_v45 = vld [vmem:[#allocation2 + $0x7b8] sm:$0xff] }
 0x563   :  { %16248 = vst [vmem:[#allocation119_spill] sm:$0xff] %v14880_v51  ;;  %v4777_v49 = vpop.f32.mrb[123].mxu1  ;;  %v10043_v51 = vcombine.low %v647_v40, %v655_v13  ;;  %v719_v23 = vld [vmem:[#allocation2 + $0x7f8] sm:$0xff] }
 0x564   :  { %v671_v49 = vld [vmem:[#allocation2 + $0x678] sm:$0xff] }
 0x569   :  { %6040 = vmatmul.mubr.bf16.gmra.mrb[32].mxu0 %v9995_v0  ;;  %v14882_v29 = vpop.f32.mrb[124].mxu1  ;;  %v10044_v0 = vcombine.high %v647_v40, %v655_v13  ;;  %v727_v13 = vld [vmem:[#allocation2 + $0x838] sm:$0xff] }
 0x56a   :  { %6047 = vmatprep.mubr.bf16.mxu0 %v10012_v20  ;;  %16249 = vst [vmem:[#allocation120_spill] sm:$0xff] %v14882_v29  ;;  %v4782_v10 = vpop.f32.mrb[125].mxu1  ;;  %v663_v20 = vld [vmem:[#allocation2 + $0x638] sm:$0xff] }
 0x56b   :  { %v14884_v38 = vpop.f32.mrb[126].mxu1  ;;  %v10060_v53 = vcombine.high %v663_v20, %v671_v49  ;;  %v10059_v10 = vcombine.low %v663_v20, %v671_v49  ;;  %v743_v20 = vld [vmem:[#allocation2 + $0x8b8] sm:$0xff] }
 0x56c   :  { %16250 = vst [vmem:[#allocation121_spill] sm:$0xff] %v14884_v38  ;;  %v4785_v27 = vpop.f32.mrb[127].mxu1  ;;  %v10075_v38 = vcombine.low %v679_v50, %v687_v12  ;;  %v751_v49 = vld [vmem:[#allocation2 + $0x8f8] sm:$0xff] }
 0x56d   :  { %v703_v27 = vld [vmem:[#allocation2 + $0x778] sm:$0xff] }
 0x571   :  { %6048 = vmatmul.mubr.bf16.gmra.mrb[36].mxu0 %v10011_v63  ;;  %v10076_v63 = vcombine.high %v679_v50, %v687_v12  ;;  %v10139_v50 = vcombine.low %v743_v20, %v751_v49 }
 0x572   :  { %6055 = vmatprep.mubr.bf16.mxu0 %v10028_v26  ;;  %v695_v26 = vld [vmem:[#allocation2 + $0x738] sm:$0xff] }
 0x573   :  { %v10092_v29 = vcombine.high %v695_v26, %v703_v27 }
 0x579   :  { %6056 = vmatmul.mubr.bf16.gmra.mrb[40].mxu0 %v10027_v46  ;;  %v10091_v46 = vcombine.low %v695_v26, %v703_v27  ;;  %v775_v26 = vld [vmem:[#allocation2 + $0x9b8] sm:$0xff] }
 0x57a   :  { %6063 = vmatprep.mubr.bf16.mxu0 %v10044_v0  ;;  %v10108_v0 = vcombine.high %v711_v45, %v719_v23  ;;  %v783_v27 = vld [vmem:[#allocation2 + $0x9f8] sm:$0xff] }
 0x581   :  { %6064 = vmatmul.mubr.bf16.gmra.mrb[44].mxu0 %v10043_v51  ;;  %v10107_v51 = vcombine.low %v711_v45, %v719_v23  ;;  %v791_v45 = vld [vmem:[#allocation2 + $0xa38] sm:$0xff] }
 0x582   :  { %6071 = vmatprep.mubr.bf16.mxu0 %v10060_v53  ;;  %v735_v53 = vld [vmem:[#allocation2 + $0x878] sm:$0xff] }
 0x583   :  { %v10124_v40 = vcombine.high %v727_v13, %v735_v53  ;;  %v799_v23 = vld [vmem:[#allocation2 + $0xa78] sm:$0xff] }
 0x589   :  { %6072 = vmatmul.mubr.bf16.gmra.mrb[48].mxu0 %v10059_v10  ;;  %v10123_v10 = vcombine.low %v727_v13, %v735_v53  ;;  %v807_v13 = vld [vmem:[#allocation2 + $0xab8] sm:$0xff] }
 0x58a   :  { %6079 = vmatprep.mubr.bf16.mxu0 %v10076_v63  ;;  %v10140_v63 = vcombine.high %v743_v20, %v751_v49  ;;  %v815_v53 = vld [vmem:[#allocation2 + $0xaf8] sm:$0xff] }
 0x58b   :  { %v823_v20 = vld [vmem:[#allocation2 + $0xb38] sm:$0xff] }
 0x58c   :  { %v831_v49 = vld [vmem:[#allocation2 + $0xb78] sm:$0xff] }
 0x591   :  { %6080 = vmatmul.mubr.bf16.gmra.mrb[52].mxu0 %v10075_v38  ;;  %v759_v38 = vld [vmem:[#allocation2 + $0x938] sm:$0xff] }
 0x592   :  { %6087 = vmatprep.mubr.bf16.mxu0 %v10092_v29  ;;  %v767_v29 = vld [vmem:[#allocation2 + $0x978] sm:$0xff] }
 0x593   :  { %v10156_v12 = vcombine.high %v759_v38, %v767_v29 }
 0x599   :  { %6088 = vmatmul.mubr.bf16.gmra.mrb[56].mxu0 %v10091_v46  ;;  %v10155_v46 = vcombine.low %v759_v38, %v767_v29  ;;  %v839_v38 = vld [vmem:[#allocation2 + $0xbb8] sm:$0xff] }
 0x59a   :  { %6095 = vmatprep.mubr.bf16.mxu0 %v10108_v0  ;;  %v10172_v0 = vcombine.high %v775_v26, %v783_v27  ;;  %v847_v29 = vld [vmem:[#allocation2 + $0xbf8] sm:$0xff] }
 0x5a1   :  { %6096 = vmatmul.mubr.bf16.gmra.mrb[60].mxu0 %v10107_v51  ;;  %v10171_v51 = vcombine.low %v775_v26, %v783_v27  ;;  %v855_v26 = vld [vmem:[#allocation2 + $0xc38] sm:$0xff] }
 0x5a2   :  { %6103 = vmatprep.mubr.bf16.mxu0 %v10124_v40  ;;  %v10188_v40 = vcombine.high %v791_v45, %v799_v23  ;;  %v863_v27 = vld [vmem:[#allocation2 + $0xc78] sm:$0xff] }
 0x5a9   :  { %6104 = vmatmul.mubr.bf16.gmra.mrb[64].mxu0 %v10123_v10  ;;  %v10187_v10 = vcombine.low %v791_v45, %v799_v23  ;;  %v871_v45 = vld [vmem:[#allocation2 + $0xcb8] sm:$0xff] }
 0x5aa   :  { %6111 = vmatprep.mubr.bf16.mxu0 %v10140_v63  ;;  %v10204_v63 = vcombine.high %v807_v13, %v815_v53  ;;  %v879_v23 = vld [vmem:[#allocation2 + $0xcf8] sm:$0xff] }
 0x5b1   :  { %6112 = vmatmul.mubr.bf16.gmra.mrb[68].mxu0 %v10139_v50  ;;  %v10203_v50 = vcombine.low %v807_v13, %v815_v53  ;;  %v887_v13 = vld [vmem:[#allocation2 + $0xd38] sm:$0xff] }
 0x5b2   :  { %6119 = vmatprep.mubr.bf16.mxu0 %v10156_v12  ;;  %v10220_v12 = vcombine.high %v823_v20, %v831_v49  ;;  %v895_v53 = vld [vmem:[#allocation2 + $0xd78] sm:$0xff] }
 0x5b9   :  { %6120 = vmatmul.mubr.bf16.gmra.mrb[72].mxu0 %v10155_v46  ;;  %v10219_v46 = vcombine.low %v823_v20, %v831_v49  ;;  %v903_v20 = vld [vmem:[#allocation2 + $0xdb8] sm:$0xff] }
 0x5ba   :  { %6127 = vmatprep.mubr.bf16.mxu0 %v10172_v0  ;;  %v10236_v0 = vcombine.high %v839_v38, %v847_v29  ;;  %v911_v49 = vld [vmem:[#allocation2 + $0xdf8] sm:$0xff] }
 0x5c1   :  { %6128 = vmatmul.mubr.bf16.gmra.mrb[76].mxu0 %v10171_v51  ;;  %v10235_v51 = vcombine.low %v839_v38, %v847_v29  ;;  %v10997_v38 = vadd.f32 %v14247_v37, %v14075_v62  ;;  %v919_v29 = vld [vmem:[#allocation2 + $0xe38] sm:$0xff]  ;;  %v11001_v62 = vadd.f32 %v14281_v11, %v14080_v5 }
 0x5c2   :  { %6135 = vmatprep.mubr.bf16.mxu0 %v10188_v40  ;;  %v10252_v40 = vcombine.high %v855_v26, %v863_v27  ;;  %v935_v37 = vld [vmem:[#allocation2 + $0xeb8] sm:$0xff] }
 0x5c9   :  { %6136 = vmatmul.mubr.bf16.gmra.mrb[80].mxu0 %v10187_v10  ;;  %v10251_v10 = vcombine.low %v855_v26, %v863_v27  ;;  %v927_v26 = vld [vmem:[#allocation2 + $0xe78] sm:$0xff] }
 0x5ca   :  { %6143 = vmatprep.mubr.bf16.mxu0 %v10204_v63  ;;  %v10268_v63 = vcombine.high %v871_v45, %v879_v23 }
 0x5d1   :  { %6144 = vmatmul.mubr.bf16.gmra.mrb[84].mxu0 %v10203_v50  ;;  %v10267_v50 = vcombine.low %v871_v45, %v879_v23  ;;  %v10999_v45 = vadd.f32 %v14252_v4, %v14088_v8  ;;  %v10299_v23 = vcombine.low %v903_v20, %v911_v49  ;;  %v11003_v8 = vadd.f32 %v14288_v28, %v14096_v15  ;;  %v951_v15 = vld [vmem:[#allocation2 + $0xf38] sm:$0xff] }
 0x5d2   :  { %6151 = vmatprep.mubr.bf16.mxu0 %v10220_v12  ;;  %v10284_v12 = vcombine.high %v887_v13, %v895_v53  ;;  %v10315_v4 = vcombine.low %v919_v29, %v927_v26  ;;  %v959_v28 = vld [vmem:[#allocation2 + $0xf78] sm:$0xff] }
 0x5d9   :  { %6152 = vmatmul.mubr.bf16.gmra.mrb[88].mxu0 %v10219_v46  ;;  %v10283_v46 = vcombine.low %v887_v13, %v895_v53  ;;  %v943_v13 = vld [vmem:[#allocation2 + $0xef8] sm:$0xff] }
 0x5da   :  { %6159 = vmatprep.mubr.bf16.mxu0 %v10236_v0  ;;  %v10300_v0 = vcombine.high %v903_v20, %v911_v49  ;;  %v10332_v49 = vcombine.high %v935_v37, %v943_v13 }
 0x5e1   :  { %6160 = vmatmul.mubr.bf16.gmra.mrb[92].mxu0 %v10235_v51 }
 0x5e2   :  { %6167 = vmatprep.mubr.bf16.mxu0 %v10252_v40 }
 0x5e9   :  { %6168 = vmatmul.mubr.bf16.gmra.mrb[96].mxu0 %v10251_v10 }
 0x5ea   :  { %6175 = vmatprep.mubr.bf16.mxu0 %v10268_v63  ;;  %v10316_v63 = vcombine.high %v919_v29, %v927_v26 }
 0x5f1   :  { %6176 = vmatmul.mubr.bf16.gmra.mrb[100].mxu0 %v10267_v50 }
 0x5f2   :  { %6183 = vmatprep.mubr.bf16.mxu0 %v10284_v12 }
 0x5f9   :  { %6184 = vmatmul.mubr.bf16.gmra.mrb[104].mxu0 %v10283_v46 }
 0x5fa   :  { %6191 = vmatprep.mubr.bf16.mxu0 %v10300_v0 }
 0x5fc   :  { %v5977_v27 = vpop.f32.mrb[0].mxu0 }
 0x5fd   :  { %v10998_v51 = vadd.f32 %v10997_v38, %v5977_v27  ;;  %v5979_v40 = vpop.f32.mrb[1].mxu0  ;;  %v12098_v38 = vld [vmem:[%s16125_s2 + $0x4] ss:$16 sps:$4 sm:$0xff]  }
 0x5fe   :  { %v5980_v10 = vpop.f32.mrb[2].mxu0  ;;  %7512 = vmatprep.mubr.bf16.mxu1 %v12098_v38  ;;  %v11005_v40 = vadd.f32 %v14317_v18, %v14098_v16 }
 0x5ff   :  { %v11000_v50 = vadd.f32 %v10999_v45, %v5980_v10  ;;  %v5982_v12 = vpop.f32.mrb[3].mxu0  ;;  %12416 = vtanh.f32 %v10998_v51  ;;  %v11007_v10 = vadd.f32 %v14324_v17, %v14100_v21 }
 0x600   :  { %v10348_v12 = vcombine.high %v951_v15, %v959_v28 }
 0x601   :  { %12418 = vtanh.f32 %v11000_v50  ;;  %6192 = vmatmul.mubr.bf16.gmra.mrb[108].mxu0 %v10299_v23 }
 0x602   :  { %6199 = vmatprep.mubr.bf16.mxu0 %v10316_v63  ;;  %v10331_v63 = vcombine.low %v935_v37, %v943_v13 }
 0x604   :  { %v5985_v53 = vpop.f32.mrb[4].mxu0 }
 0x605   :  { %v11002_v46 = vadd.f32 %v11001_v62, %v5985_v53  ;;  %v5987_v0 = vpop.f32.mrb[5].mxu0 }
 0x606   :  { %v5988_v20 = vpop.f32.mrb[6].mxu0  ;;  %v967_v0 = vld [vmem:[#allocation2 + $0xfb8] sm:$0xff] }
 0x607   :  { %v11004_v27 = vadd.f32 %v11003_v8, %v5988_v20  ;;  %v5990_v51 = vpop.f32.mrb[7].mxu0  ;;  %12420 = vtanh.f32 %v11002_v46  ;;  %v11009_v46 = vadd.f32 %v14353_v61, %v14108_v25  ;;  %v975_v8 = vld [vmem:[#allocation2 + $0xff8] sm:$0xff]  ;;  %v10347_v20 = vcombine.low %v951_v15, %v959_v28 }
 0x608   :  { %v10364_v38 = vcombine.high %v967_v0, %v975_v8  ;;  %v11015_v15 = vadd.f32 %v14394_v58, %v14120_v35  ;;  %v10363_v28 = vcombine.low %v967_v0, %v975_v8  ;;  %v11019_v35 = vadd.f32 %v14430_v34, %v14136_v52 }
 0x609   :  { %12422 = vtanh.f32 %v11004_v27  ;;  %6200 = vmatmul.mubr.bf16.gmra.mrb[112].mxu0 %v10315_v4  ;;  %v12417_v5 = vpop.eup %12416  ;;  %v11011_v4 = vadd.f32 %v14358_v31, %v14116_v33  ;;  %v11023_v52 = vadd.f32 %v14465_v56, %v14140_v57  ;;  %v11027_v57 = vadd.f32 %v14487_v3, %v14156_v1 }
 0x60a   :  { %6207 = vmatprep.mubr.bf16.mxu0 %v10332_v49  ;;  %v11031_v1 = vadd.f32 %v14509_v19, %v14160_v48  ;;  %v11035_v48 = vadd.f32 %v14529_v9, %v14176_v22  ;;  %v11039_v22 = vadd.f32 %v14551_v41, %v14180_v32 }
 0x60b   :  { %v12419_v11 = vpop.eup %12418 }
 0x60c   :  { %v5993_v29 = vpop.f32.mrb[8].mxu0  ;;  %v6296_v26 = vpack.c.bf16 %v12419_v11, %v12417_v5  ;;  %v11013_v5 = vadd.f32 %v14387_v43, %v14118_v36  ;;  %v11017_v36 = vadd.f32 %v14423_v54, %v14128_v47  ;;  %v11021_v47 = vadd.f32 %v14459_v30, %v14138_v6 }
 0x60d   :  { %v11006_v45 = vadd.f32 %v11005_v40, %v5993_v29  ;;  %v5995_v23 = vpop.f32.mrb[9].mxu0  ;;  %v11025_v6 = vadd.f32 %v14483_v60, %v14148_v42  ;;  %v11029_v42 = vadd.f32 %v14505_v59, %v14158_v2  ;;  %v11033_v2 = vadd.f32 %v14527_v7, %v14168_v14 }
 0x60e   :  { %v5996_v50 = vpop.f32.mrb[10].mxu0  ;;  %7481 = vmatpush1.bf16.msra.mxu1 %v6296_v26  ;;  %v11037_v14 = vadd.f32 %v14547_v44, %v14178_v24 }
 0x60f   :  { %v11008_v62 = vadd.f32 %v11007_v10, %v5996_v50  ;;  %v5998_v53 = vpop.f32.mrb[11].mxu0  ;;  %7482 = vmatprep.subr.bf16.mxu1 %v16154_v55  ;;  %12424 = vtanh.f32 %v11006_v45 }
 0x611   :  { %12426 = vtanh.f32 %v11008_v62  ;;  %6208 = vmatmul.mubr.bf16.gmra.mrb[116].mxu0 %v10331_v63  ;;  %v12421_v16 = vpop.eup %12420 }
 0x612   :  { %6215 = vmatprep.mubr.bf16.mxu0 %v10348_v12 }
 0x613   :  { %v12423_v18 = vpop.eup %12422 }
 0x614   :  { %v6001_v21 = vpop.f32.mrb[12].mxu0  ;;  %v6297_v17 = vpack.c.bf16 %v12423_v18, %v12421_v16 }
 0x615   :  { %v11010_v37 = vadd.f32 %v11009_v46, %v6001_v21  ;;  %v6003_v13 = vpop.f32.mrb[13].mxu0 }
 0x616   :  { %v6004_v49 = vpop.f32.mrb[14].mxu0  ;;  %7483 = vmatpush1.bf16.msra.mxu1 %v6297_v17 }
 0x617   :  { %v11012_v27 = vadd.f32 %v11011_v4, %v6004_v49  ;;  %v6006_v51 = vpop.f32.mrb[15].mxu0  ;;  %7484 = vmatprep.subr.bf16.mxu1 %v16154_v55  ;;  %12428 = vtanh.f32 %v11010_v37 }
 0x619   :  { %12430 = vtanh.f32 %v11012_v27  ;;  %6216 = vmatmul.mubr.bf16.gmra.mrb[120].mxu0 %v10347_v20  ;;  %v12425_v25 = vpop.eup %12424 }
 0x61a   :  { %6223 = vmatprep.mubr.bf16.mxu0 %v10364_v38 }
 0x61b   :  { %v12427_v61 = vpop.eup %12426 }
 0x61c   :  { %v6009_v11 = vpop.f32.mrb[16].mxu0  ;;  %v6298_v40 = vpack.c.bf16 %v12427_v61, %v12425_v25 }
 0x61d   :  { %v11014_v33 = vadd.f32 %v11013_v5, %v6009_v11  ;;  %v6011_v31 = vpop.f32.mrb[17].mxu0 }
 0x61e   :  { %v6012_v29 = vpop.f32.mrb[18].mxu0  ;;  %7485 = vmatpush1.bf16.msra.mxu1 %v6298_v40 }
 0x61f   :  { %v11016_v26 = vadd.f32 %v11015_v15, %v6012_v29  ;;  %v6014_v45 = vpop.f32.mrb[19].mxu0  ;;  %7486 = vmatprep.subr.bf16.mxu1 %v16154_v55  ;;  %12432 = vtanh.f32 %v11014_v33 }
 0x621   :  { %12434 = vtanh.f32 %v11016_v26  ;;  %6224 = vmatmul.mubr.bf16.gmra.mrb[124].mxu0 %v10363_v28  ;;  %v12429_v23 = vpop.eup %12428 }
 0x623   :  { %v12431_v10 = vpop.eup %12430 }
 0x624   :  { %v6017_v43 = vpop.f32.mrb[20].mxu0  ;;  %v6299_v63 = vpack.c.bf16 %v12431_v10, %v12429_v23 }
 0x625   :  { %v11018_v50 = vadd.f32 %v11017_v36, %v6017_v43  ;;  %v6019_v12 = vpop.f32.mrb[21].mxu0 }
 0x626   :  { %v6020_v58 = vpop.f32.mrb[22].mxu0  ;;  %7487 = vmatpush1.bf16.msra.mxu1 %v6299_v63 }
 0x627   :  { %v11020_v62 = vadd.f32 %v11019_v35, %v6020_v58  ;;  %v6022_v53 = vpop.f32.mrb[23].mxu0  ;;  %7488 = vmatprep.subr.bf16.mxu1 %v16154_v55  ;;  %12436 = vtanh.f32 %v11018_v50 }
 0x628   :  { %v16251_v53 = vld [vmem:[#allocation43_spill] sm:$0xff] }
 0x629   :  { %12438 = vtanh.f32 %v11020_v62  ;;  %v12433_v16 = vpop.eup %12432  ;;  %v11041_v24 = vadd.f32 %v16251_v53, %v14188_v39 }
 0x62b   :  { %v12435_v18 = vpop.eup %12434 }
 0x62c   :  { %v6025_v54 = vpop.f32.mrb[24].mxu0  ;;  %v6300_v46 = vpack.c.bf16 %v12435_v18, %v12433_v16 }
 0x62d   :  { %v11022_v0 = vadd.f32 %v11021_v47, %v6025_v54  ;;  %v6027_v8 = vpop.f32.mrb[25].mxu0  ;;  %v16252_v54 = vld [vmem:[#allocation9_spill] sm:$0xff] }
 0x62e   :  { %v6028_v34 = vpop.f32.mrb[26].mxu0  ;;  %7489 = vmatpush1.bf16.msra.mxu1 %v6300_v46  ;;  %v16253_v46 = vld [vmem:[#allocation45_spill] sm:$0xff] }
 0x62f   :  { %v11024_v21 = vadd.f32 %v11023_v52, %v6028_v34  ;;  %v6030_v17 = vpop.f32.mrb[27].mxu0  ;;  %7490 = vmatprep.subr.bf16.mxu1 %v16154_v55  ;;  %12440 = vtanh.f32 %v11022_v0  ;;  %v11043_v32 = vadd.f32 %v16253_v46, %v16252_v54 }
 0x630   :  { %v16255_v17 = vld [vmem:[#allocation48_spill] sm:$0xff] }
 0x631   :  { %12442 = vtanh.f32 %v11024_v21  ;;  %v12437_v37 = vpop.eup %12436  ;;  %v16254_v21 = vld [vmem:[#allocation10_spill] sm:$0xff] }
 0x632   :  { %v11045_v39 = vadd.f32 %v16255_v17, %v16254_v21 }
 0x633   :  { %v12439_v13 = vpop.eup %12438 }
 0x634   :  { %v6033_v30 = vpop.f32.mrb[28].mxu0  ;;  %v6301_v4 = vpack.c.bf16 %v12439_v13, %v12437_v37 }
 0x635   :  { %v11026_v20 = vadd.f32 %v11025_v6, %v6033_v30  ;;  %v6035_v49 = vpop.f32.mrb[29].mxu0 }
 0x636   :  { %v6036_v56 = vpop.f32.mrb[30].mxu0  ;;  %7491 = vmatpush1.bf16.msra.mxu1 %v6301_v4  ;;  %v16256_v4 = vld [vmem:[#allocation11_spill] sm:$0xff] }
 0x637   :  { %v11028_v38 = vadd.f32 %v11027_v57, %v6036_v56  ;;  %v6038_v27 = vpop.f32.mrb[31].mxu0  ;;  %7492 = vmatprep.subr.bf16.mxu1 %v16154_v55  ;;  %12444 = vtanh.f32 %v11026_v20  ;;  %v16257_v20 = vld [vmem:[#allocation49_spill] sm:$0xff] }
 0x638   :  { %v11047_v49 = vadd.f32 %v16257_v20, %v16256_v4 }
 0x639   :  { %12446 = vtanh.f32 %v11028_v38  ;;  %v12441_v51 = vpop.eup %12440 }
 0x63b   :  { %v12443_v25 = vpop.eup %12442 }
 0x63c   :  { %v6041_v60 = vpop.f32.mrb[32].mxu0  ;;  %v6302_v61 = vpack.c.bf16 %v12443_v25, %v12441_v51  ;;  %v16258_v25 = vld [vmem:[#allocation12_spill] sm:$0xff] }
 0x63d   :  { %v11030_v5 = vadd.f32 %v11029_v42, %v6041_v60  ;;  %v6043_v11 = vpop.f32.mrb[33].mxu0  ;;  %v16259_v42 = vld [vmem:[#allocation52_spill] sm:$0xff] }
 0x63e   :  { %v6044_v3 = vpop.f32.mrb[34].mxu0  ;;  %7493 = vmatpush1.bf16.msra.mxu1 %v6302_v61  ;;  %v11049_v60 = vadd.f32 %v16259_v42, %v16258_v25 }
 0x63f   :  { %v11032_v40 = vadd.f32 %v11031_v1, %v6044_v3  ;;  %v6046_v33 = vpop.f32.mrb[35].mxu0  ;;  %7494 = vmatprep.subr.bf16.mxu1 %v16154_v55  ;;  %12448 = vtanh.f32 %v11030_v5  ;;  %v16260_v3 = vld [vmem:[#allocation13_spill] sm:$0xff] }
 0x641   :  { %12450 = vtanh.f32 %v11032_v40  ;;  %v12445_v31 = vpop.eup %12444  ;;  %v16261_v40 = vld [vmem:[#allocation54_spill] sm:$0xff] }
 0x642   :  { %v11051_v33 = vadd.f32 %v16261_v40, %v16260_v3  ;;  %v12096_v3 = vld [vmem:[%s16125_s2] ss:$16 sps:$4 sm:$0xff]  }
 0x643   :  { %v12447_v15 = vpop.eup %12446 }
 0x644   :  { %v6049_v59 = vpop.f32.mrb[36].mxu0  ;;  %v6303_v28 = vpack.c.bf16 %v12447_v15, %v12445_v31 }
 0x645   :  { %v11034_v29 = vadd.f32 %v11033_v2, %v6049_v59  ;;  %v6051_v26 = vpop.f32.mrb[37].mxu0 }
 0x646   :  { %v6052_v19 = vpop.f32.mrb[38].mxu0  ;;  %7495 = vmatpush1.bf16.msra.mxu1 %v6303_v28  ;;  %v16263_v26 = vld [vmem:[#allocation57_spill] sm:$0xff] }
 0x647   :  { %v11036_v45 = vadd.f32 %v11035_v48, %v6052_v19  ;;  %v6054_v23 = vpop.f32.mrb[39].mxu0  ;;  %7496 = vmatprep.subr.bf16.mxu1 %v16154_v55  ;;  %12452 = vtanh.f32 %v11034_v29  ;;  %v16262_v29 = vld [vmem:[#allocation14_spill] sm:$0xff] }
 0x648   :  { %v11053_v48 = vadd.f32 %v16263_v26, %v16262_v29  ;;  %v16279_v29 = vld [vmem:[#allocation76_spill] sm:$0xff] }
 0x649   :  { %12454 = vtanh.f32 %v11036_v45  ;;  %v12449_v10 = vpop.eup %12448 }
 0x64b   :  { %v12451_v36 = vpop.eup %12450 }
 0x64c   :  { %v6057_v7 = vpop.f32.mrb[40].mxu0  ;;  %v6304_v43 = vpack.c.bf16 %v12451_v36, %v12449_v10  ;;  %v16264_v36 = vld [vmem:[#allocation15_spill] sm:$0xff] }
 0x64d   :  { %v11038_v63 = vadd.f32 %v11037_v14, %v6057_v7  ;;  %v6059_v50 = vpop.f32.mrb[41].mxu0  ;;  %v16265_v14 = vld [vmem:[#allocation59_spill] sm:$0xff] }
 0x64e   :  { %v6060_v9 = vpop.f32.mrb[42].mxu0  ;;  %7497 = vmatpush1.bf16.msra.mxu1 %v6304_v43  ;;  %v11055_v7 = vadd.f32 %v16265_v14, %v16264_v36  ;;  %v16281_v36 = vld [vmem:[#allocation77_spill] sm:$0xff] }
 0x64f   :  { %v11040_v12 = vadd.f32 %v11039_v22, %v6060_v9  ;;  %v6062_v35 = vpop.f32.mrb[43].mxu0  ;;  %7498 = vmatprep.subr.bf16.mxu1 %v16154_v55  ;;  %12456 = vtanh.f32 %v11038_v63 }
 0x650   :  { %v16267_v35 = vld [vmem:[#allocation62_spill] sm:$0xff] }
 0x651   :  { %12458 = vtanh.f32 %v11040_v12  ;;  %v12453_v58 = vpop.eup %12452  ;;  %v16266_v12 = vld [vmem:[#allocation16_spill] sm:$0xff] }
 0x653   :  { %v12455_v62 = vpop.eup %12454 }
 0x654   :  { %v6065_v44 = vpop.f32.mrb[44].mxu0  ;;  %v6305_v16 = vpack.c.bf16 %v12455_v62, %v12453_v58  ;;  %v11057_v58 = vadd.f32 %v16267_v35, %v16266_v12  ;;  %v16282_v35 = vld [vmem:[#allocation24_spill] sm:$0xff] }
 0x655   :  { %v11042_v18 = vadd.f32 %v11041_v24, %v6065_v44  ;;  %v6067_v47 = vpop.f32.mrb[45].mxu0 }
 0x656   :  { %v6068_v41 = vpop.f32.mrb[46].mxu0  ;;  %7499 = vmatpush1.bf16.msra.mxu1 %v6305_v16  ;;  %v16268_v16 = vld [vmem:[#allocation17_spill] sm:$0xff] }
 0x657   :  { %v11044_v0 = vadd.f32 %v11043_v32, %v6068_v41  ;;  %v6070_v8 = vpop.f32.mrb[47].mxu0  ;;  %7500 = vmatprep.subr.bf16.mxu1 %v16154_v55  ;;  %12460 = vtanh.f32 %v11042_v18  ;;  %v16269_v18 = vld [vmem:[#allocation63_spill] sm:$0xff] }
 0x658   :  { %v11059_v47 = vadd.f32 %v16269_v18, %v16268_v16  ;;  %v16270_v8 = vld [vmem:[#allocation18_spill] sm:$0xff]  ;;  %v16284_v18 = vld [vmem:[#allocation25_spill] sm:$0xff] }
 0x659   :  { %12462 = vtanh.f32 %v11044_v0  ;;  %v12457_v52 = vpop.eup %12456 }
 0x65b   :  { %v12459_v34 = vpop.eup %12458 }
 0x65c   :  { %v6073_v37 = vpop.f32.mrb[48].mxu0  ;;  %v6306_v13 = vpack.c.bf16 %v12459_v34, %v12457_v52  ;;  %v16271_v52 = vld [vmem:[#allocation66_spill] sm:$0xff] }
 0x65d   :  { %v11046_v6 = vadd.f32 %v11045_v39, %v6073_v37  ;;  %v6075_v30 = vpop.f32.mrb[49].mxu0  ;;  %v11061_v34 = vadd.f32 %v16271_v52, %v16270_v8 }
 0x65e   :  { %v6076_v57 = vpop.f32.mrb[50].mxu0  ;;  %7501 = vmatpush1.bf16.msra.mxu1 %v6306_v13  ;;  %v16272_v13 = vld [vmem:[#allocation19_spill] sm:$0xff] }
 0x65f   :  { %v11048_v56 = vadd.f32 %v11047_v49, %v6076_v57  ;;  %v6078_v38 = vpop.f32.mrb[51].mxu0  ;;  %7502 = vmatprep.subr.bf16.mxu1 %v16154_v55  ;;  %12464 = vtanh.f32 %v11046_v6  ;;  %v16273_v6 = vld [vmem:[#allocation68_spill] sm:$0xff] }
 0x660   :  { %v11063_v30 = vadd.f32 %v16273_v6, %v16272_v13  ;;  %v16274_v38 = vld [vmem:[#allocation20_spill] sm:$0xff] }
 0x661   :  { %12466 = vtanh.f32 %v11048_v56  ;;  %v12461_v27 = vpop.eup %12460 }
 0x663   :  { %v12463_v51 = vpop.eup %12462 }
 0x664   :  { %v6081_v61 = vpop.f32.mrb[52].mxu0  ;;  %v6307_v5 = vpack.c.bf16 %v12463_v51, %v12461_v27  ;;  %v16275_v27 = vld [vmem:[#allocation71_spill] sm:$0xff] }
 0x665   :  { %v11050_v11 = vadd.f32 %v11049_v60, %v6081_v61  ;;  %v6083_v1 = vpop.f32.mrb[53].mxu0  ;;  %v11065_v51 = vadd.f32 %v16275_v27, %v16274_v38  ;;  %v12108_v38 = vld [vmem:[%s16125_s2 + $0x84] ss:$16 sps:$4 sm:$0xff]  }
 0x666   :  { %v6084_v31 = vpop.f32.mrb[54].mxu0  ;;  %7503 = vmatpush1.bf16.msra.mxu1 %v6307_v5  ;;  %v16276_v5 = vld [vmem:[#allocation21_spill] sm:$0xff] }
 0x667   :  { %v11052_v15 = vadd.f32 %v11051_v33, %v6084_v31  ;;  %v6086_v2 = vpop.f32.mrb[55].mxu0  ;;  %7504 = vmatprep.subr.bf16.mxu1 %v16154_v55  ;;  %12468 = vtanh.f32 %v11050_v11  ;;  %v16277_v11 = vld [vmem:[#allocation73_spill] sm:$0xff] }
 0x668   :  { %v11067_v1 = vadd.f32 %v16277_v11, %v16276_v5  ;;  %v12099_v33 = vld [vmem:[%s16125_s2 + $0x24] ss:$16 sps:$4 sm:$0xff]  }
 0x669   :  { %12470 = vtanh.f32 %v11052_v15  ;;  %v12465_v59 = vpop.eup %12464 }
 0x66b   :  { %v12467_v28 = vpop.eup %12466 }
 0x66c   :  { %v6089_v19 = vpop.f32.mrb[56].mxu0  ;;  %v6308_v45 = vpack.c.bf16 %v12467_v28, %v12465_v59  ;;  %v16278_v28 = vld [vmem:[#allocation22_spill] sm:$0xff] }
 0x66d   :  { %v11054_v23 = vadd.f32 %v11053_v48, %v6089_v19  ;;  %v6091_v10 = vpop.f32.mrb[57].mxu0  ;;  %v11069_v26 = vadd.f32 %v16279_v29, %v16278_v28  ;;  %v12111_v28 = vld [vmem:[%s16125_s2 + $0xa4] ss:$16 sps:$4 sm:$0xff]  }
 0x66e   :  { %v6092_v43 = vpop.f32.mrb[58].mxu0  ;;  %7505 = vmatpush1.bf16.msra.mxu1 %v6308_v45  ;;  %v16280_v10 = vld [vmem:[#allocation23_spill] sm:$0xff] }
 0x66f   :  { %v11056_v63 = vadd.f32 %v11055_v7, %v6092_v43  ;;  %v6094_v50 = vpop.f32.mrb[59].mxu0  ;;  %7506 = vmatprep.subr.bf16.mxu1 %v16154_v55  ;;  %12472 = vtanh.f32 %v11054_v23  ;;  %v11071_v14 = vadd.f32 %v16281_v36, %v16280_v10  ;;  %v12101_v7 = vld [vmem:[%s16125_s2 + $0x20] ss:$16 sps:$4 sm:$0xff]  }
 0x671   :  { %12474 = vtanh.f32 %v11056_v63  ;;  %v12469_v22 = vpop.eup %12468  ;;  %v12102_v63 = vld [vmem:[%s16125_s2 + $0x44] ss:$16 sps:$4 sm:$0xff]  }
 0x673   :  { %v12471_v9 = vpop.eup %12470 }
 0x674   :  { %v6097_v62 = vpop.f32.mrb[60].mxu0  ;;  %v6309_v53 = vpack.c.bf16 %v12471_v9, %v12469_v22 }
 0x675   :  { %v11058_v24 = vadd.f32 %v11057_v58, %v6097_v62  ;;  %v6099_v44 = vpop.f32.mrb[61].mxu0  ;;  %v16283_v58 = vld [vmem:[#allocation80_spill] sm:$0xff] }
 0x676   :  { %v6100_v54 = vpop.f32.mrb[62].mxu0  ;;  %7507 = vmatpush1.bf16.msra.mxu1 %v6309_v53  ;;  %v11073_v62 = vadd.f32 %v16283_v58, %v16282_v35  ;;  %v12114_v35 = vld [vmem:[%s16125_s2 + $0xc4] ss:$16 sps:$4 sm:$0xff]  }
 0x677   :  { %v11060_v46 = vadd.f32 %v11059_v47, %v6100_v54  ;;  %v6102_v32 = vpop.f32.mrb[63].mxu0  ;;  %7508 = vmatprep.subr.bf16.mxu1 %v16154_v55  ;;  %12476 = vtanh.f32 %v11058_v24  ;;  %v16285_v47 = vld [vmem:[#allocation82_spill] sm:$0xff] }
 0x678   :  { %v11075_v54 = vadd.f32 %v16285_v47, %v16284_v18 }
 0x679   :  { %12478 = vtanh.f32 %v11060_v46  ;;  %v12473_v41 = vpop.eup %12472  ;;  %v12104_v46 = vld [vmem:[%s16125_s2 + $0x40] ss:$16 sps:$4 sm:$0xff]  }
 0x67b   :  { %v12475_v0 = vpop.eup %12474 }
 0x67c   :  { %v6105_v21 = vpop.f32.mrb[64].mxu0  ;;  %v6310_v17 = vpack.c.bf16 %v12475_v0, %v12473_v41  ;;  %v12105_v41 = vld [vmem:[%s16125_s2 + $0x64] ss:$16 sps:$4 sm:$0xff]  }
 0x67d   :  { %v11062_v39 = vadd.f32 %v11061_v34, %v6105_v21  ;;  %v6107_v37 = vpop.f32.mrb[65].mxu0  ;;  %v16286_v21 = vld [vmem:[#allocation26_spill] sm:$0xff] }
 0x67e   :  { %v6108_v4 = vpop.f32.mrb[66].mxu0  ;;  %7509 = vmatpush1.bf16.msra.mxu1 %v6310_v17  ;;  %v16287_v17 = vld [vmem:[#allocation85_spill] sm:$0xff] }
 0x67f   :  { %v11064_v20 = vadd.f32 %v11063_v30, %v6108_v4  ;;  %v6110_v49 = vpop.f32.mrb[67].mxu0  ;;  %7510 = vmatprep.subr.bf16.mxu1 %v16154_v55  ;;  %12480 = vtanh.f32 %v11062_v39  ;;  %v11077_v39 = vadd.f32 %v16287_v17, %v16286_v21  ;;  %v16288_v4 = vld [vmem:[#allocation27_spill] sm:$0xff] }
 0x680   :  { %v12117_v21 = vld [vmem:[%s16125_s2 + $0xe4] ss:$16 sps:$4 sm:$0xff]  }
 0x681   :  { %12482 = vtanh.f32 %v11064_v20  ;;  %v12477_v57 = vpop.eup %12476  ;;  %v16289_v20 = vld [vmem:[#allocation87_spill] sm:$0xff] }
 0x682   :  { %v11079_v49 = vadd.f32 %v16289_v20, %v16288_v4 }
 0x683   :  { %v12479_v56 = vpop.eup %12478 }
 0x684   :  { %v6113_v25 = vpop.f32.mrb[68].mxu0  ;;  %v6311_v42 = vpack.c.bf16 %v12479_v56, %v12477_v57  ;;  %v12107_v57 = vld [vmem:[%s16125_s2 + $0x60] ss:$16 sps:$4 sm:$0xff]  }
 0x685   :  { %v11066_v60 = vadd.f32 %v11065_v51, %v6113_v25  ;;  %v6115_v61 = vpop.f32.mrb[69].mxu0 }
 0x686   :  { %v6116_v40 = vpop.f32.mrb[70].mxu0  ;;  %7511 = vmatpush1.bf16.msra.mxu1 %v6311_v42  ;;  %v16291_v61 = vld [vmem:[#allocation90_spill] sm:$0xff] }
 0x687   :  { %v11068_v31 = vadd.f32 %v11067_v1, %v6116_v40  ;;  %v6118_v15 = vpop.f32.mrb[71].mxu0  ;;  %7769 = vmatprep.subr.bf16.mxu1 %v16154_v55  ;;  %12484 = vtanh.f32 %v11066_v60  ;;  %v16290_v60 = vld [vmem:[#allocation28_spill] sm:$0xff] }
 0x688   :  { %v11081_v5 = vadd.f32 %v16291_v61, %v16290_v60  ;;  %v12120_v60 = vld [vmem:[%s16125_s2 + $0x104] ss:$16 sps:$4 sm:$0xff]  }
 0x689   :  { %12486 = vtanh.f32 %v11068_v31  ;;  %7513 = vmatmul.mubr.bf16.vlgmr.msra.gmra.mrb[128].mxu1 %v12096_v3  ;;  %v12481_v2 = vpop.eup %12480  ;;  %v16293_v31 = vld [vmem:[#allocation91_spill] sm:$0xff] }
 0x68a   :  { %7520 = vmatprep.mubr.bf16.mxu1 %v12099_v33  ;;  %v16292_v33 = vld [vmem:[#allocation29_spill] sm:$0xff] }
 0x68b   :  { %v12483_v59 = vpop.eup %12482  ;;  %v11083_v15 = vadd.f32 %v16293_v31, %v16292_v33 }
 0x68c   :  { %v6121_v48 = vpop.f32.mrb[72].mxu0  ;;  %v6312_v19 = vpack.c.bf16 %v12483_v59, %v12481_v2  ;;  %v12110_v2 = vld [vmem:[%s16125_s2 + $0x80] ss:$16 sps:$4 sm:$0xff]  }
 0x68d   :  { %v11070_v45 = vadd.f32 %v11069_v26, %v6121_v48  ;;  %v6123_v23 = vpop.f32.mrb[73].mxu0 }
 0x68e   :  { %v6124_v43 = vpop.f32.mrb[74].mxu0  ;;  %7770 = vmatpush1.bf16.msra.mxu1 %v6312_v19  ;;  %v16295_v23 = vld [vmem:[#allocation96_spill] sm:$0xff] }
 0x68f   :  { %v11072_v50 = vadd.f32 %v11071_v14, %v6124_v43  ;;  %v6126_v22 = vpop.f32.mrb[75].mxu0  ;;  %7771 = vmatprep.subr.bf16.mxu1 %v16154_v55  ;;  %12488 = vtanh.f32 %v11070_v45  ;;  %v16294_v45 = vld [vmem:[#allocation30_spill] sm:$0xff] }
 0x690   :  { %v11085_v10 = vadd.f32 %v16295_v23, %v16294_v45  ;;  %v12123_v45 = vld [vmem:[%s16125_s2 + $0x124] ss:$16 sps:$4 sm:$0xff]  }
 0x691   :  { %12490 = vtanh.f32 %v11072_v50  ;;  %7521 = vmatmul.mubr.bf16.gmra.mrb[132].mxu1 %v12101_v7  ;;  %v12485_v9 = vpop.eup %12484  ;;  %v16297_v50 = vld [vmem:[#allocation98_spill] sm:$0xff] }
 0x692   :  { %7528 = vmatprep.mubr.bf16.mxu1 %v12102_v63  ;;  %v16296_v63 = vld [vmem:[#allocation31_spill] sm:$0xff] }
 0x693   :  { %v12487_v12 = vpop.eup %12486  ;;  %v11087_v22 = vadd.f32 %v16297_v50, %v16296_v63 }
 0x694   :  { %v6129_v53 = vpop.f32.mrb[76].mxu0  ;;  %v6313_v24 = vpack.c.bf16 %v12487_v12, %v12485_v9  ;;  %v12113_v9 = vld [vmem:[%s16125_s2 + $0xa0] ss:$16 sps:$4 sm:$0xff]  }
 0x695   :  { %v11074_v44 = vadd.f32 %v11073_v62, %v6129_v53  ;;  %v6131_v16 = vpop.f32.mrb[77].mxu0 }
 0x696   :  { %v6132_v32 = vpop.f32.mrb[78].mxu0  ;;  %7772 = vmatpush1.bf16.msra.mxu1 %v6313_v24  ;;  %v16299_v16 = vld [vmem:[#allocation101_spill] sm:$0xff] }
 0x697   :  { %v11076_v0 = vadd.f32 %v11075_v54, %v6132_v32  ;;  %v6134_v8 = vpop.f32.mrb[79].mxu0  ;;  %7773 = vmatprep.subr.bf16.mxu1 %v16154_v55  ;;  %12492 = vtanh.f32 %v11074_v44  ;;  %v16298_v44 = vld [vmem:[#allocation32_spill] sm:$0xff] }
 0x698   :  { %v11089_v18 = vadd.f32 %v16299_v16, %v16298_v44  ;;  %v12126_v44 = vld [vmem:[%s16125_s2 + $0x144] ss:$16 sps:$4 sm:$0xff]  }
 0x699   :  { %12494 = vtanh.f32 %v11076_v0  ;;  %7529 = vmatmul.mubr.bf16.gmra.mrb[136].mxu1 %v12104_v46  ;;  %v12489_v52 = vpop.eup %12488  ;;  %v16301_v0 = vld [vmem:[#allocation103_spill] sm:$0xff] }
 0x69a   :  { %7536 = vmatprep.mubr.bf16.mxu1 %v12105_v41  ;;  %v16300_v41 = vld [vmem:[#allocation33_spill] sm:$0xff] }
 0x69b   :  { %v12491_v34 = vpop.eup %12490  ;;  %v11091_v8 = vadd.f32 %v16301_v0, %v16300_v41 }
 0x69c   :  { %v6137_v37 = vpop.f32.mrb[80].mxu0  ;;  %v6314_v13 = vpack.c.bf16 %v12491_v34, %v12489_v52  ;;  %v12116_v52 = vld [vmem:[%s16125_s2 + $0xc0] ss:$16 sps:$4 sm:$0xff]  }
 0x69d   :  { %v11078_v6 = vadd.f32 %v11077_v39, %v6137_v37  ;;  %v6139_v30 = vpop.f32.mrb[81].mxu0 }
 0x69e   :  { %v6140_v56 = vpop.f32.mrb[82].mxu0  ;;  %7774 = vmatpush1.bf16.msra.mxu1 %v6314_v13  ;;  %v16303_v30 = vld [vmem:[#allocation106_spill] sm:$0xff] }
 0x69f   :  { %v11080_v27 = vadd.f32 %v11079_v49, %v6140_v56  ;;  %v6142_v51 = vpop.f32.mrb[83].mxu0  ;;  %7775 = vmatprep.subr.bf16.mxu1 %v16154_v55  ;;  %12496 = vtanh.f32 %v11078_v6  ;;  %v16302_v6 = vld [vmem:[#allocation34_spill] sm:$0xff] }
 0x6a0   :  { %v11093_v4 = vadd.f32 %v16303_v30, %v16302_v6  ;;  %v12129_v6 = vld [vmem:[%s16125_s2 + $0x164] ss:$16 sps:$4 sm:$0xff]  }
 0x6a1   :  { %12498 = vtanh.f32 %v11080_v27  ;;  %7537 = vmatmul.mubr.bf16.gmra.mrb[140].mxu1 %v12107_v57  ;;  %v12493_v25 = vpop.eup %12492  ;;  %v16305_v27 = vld [vmem:[#allocation107_spill] sm:$0xff] }
 0x6a2   :  { %7544 = vmatprep.mubr.bf16.mxu1 %v12108_v38  ;;  %v16304_v38 = vld [vmem:[#allocation35_spill] sm:$0xff] }
 0x6a3   :  { %v12495_v42 = vpop.eup %12494  ;;  %v11095_v51 = vadd.f32 %v16305_v27, %v16304_v38 }
 0x6a4   :  { %v6145_v11 = vpop.f32.mrb[84].mxu0  ;;  %v6315_v1 = vpack.c.bf16 %v12495_v42, %v12493_v25  ;;  %v12119_v25 = vld [vmem:[%s16125_s2 + $0xe0] ss:$16 sps:$4 sm:$0xff]  }
 0x6a5   :  { %v11082_v3 = vadd.f32 %v11081_v5, %v6145_v11  ;;  %v6147_v40 = vpop.f32.mrb[85].mxu0 }
 0x6a6   :  { %v6148_v59 = vpop.f32.mrb[86].mxu0  ;;  %7776 = vmatpush1.bf16.msra.mxu1 %v6315_v1  ;;  %v16307_v40 = vld [vmem:[#allocation108_spill] sm:$0xff] }
 0x6a7   :  { %v11084_v29 = vadd.f32 %v11083_v15, %v6148_v59  ;;  %v6150_v26 = vpop.f32.mrb[87].mxu0  ;;  %7777 = vmatprep.subr.bf16.mxu1 %v16154_v55  ;;  %12500 = vtanh.f32 %v11082_v3  ;;  %v16306_v3 = vld [vmem:[#allocation36_spill] sm:$0xff] }
 0x6a8   :  { %v11097_v33 = vadd.f32 %v16307_v40, %v16306_v3  ;;  %v12132_v3 = vld [vmem:[%s16125_s2 + $0x184] ss:$16 sps:$4 sm:$0xff]  }
 0x6a9   :  { %12502 = vtanh.f32 %v11084_v29  ;;  %7545 = vmatmul.mubr.bf16.gmra.mrb[144].mxu1 %v12110_v2  ;;  %v12497_v48 = vpop.eup %12496  ;;  %v16309_v29 = vld [vmem:[#allocation109_spill] sm:$0xff] }
 0x6aa   :  { %7552 = vmatprep.mubr.bf16.mxu1 %v12111_v28  ;;  %v16308_v28 = vld [vmem:[#allocation37_spill] sm:$0xff] }
 0x6ab   :  { %v12499_v19 = vpop.eup %12498  ;;  %v11099_v26 = vadd.f32 %v16309_v29, %v16308_v28 }
 0x6ac   :  { %v6153_v36 = vpop.f32.mrb[88].mxu0  ;;  %v6316_v14 = vpack.c.bf16 %v12499_v19, %v12497_v48  ;;  %v12122_v48 = vld [vmem:[%s16125_s2 + $0x100] ss:$16 sps:$4 sm:$0xff]  }
 0x6ad   :  { %v11086_v7 = vadd.f32 %v11085_v10, %v6153_v36  ;;  %v6155_v43 = vpop.f32.mrb[89].mxu0 }
 0x6ae   :  { %v6156_v12 = vpop.f32.mrb[90].mxu0  ;;  %7778 = vmatpush1.bf16.msra.mxu1 %v6316_v14  ;;  %v16311_v43 = vld [vmem:[#allocation110_spill] sm:$0xff] }
 0x6af   :  { %v11088_v58 = vadd.f32 %v11087_v22, %v6156_v12  ;;  %v6158_v62 = vpop.f32.mrb[91].mxu0  ;;  %7779 = vmatprep.subr.bf16.mxu1 %v16154_v55  ;;  %12504 = vtanh.f32 %v11086_v7  ;;  %v16310_v7 = vld [vmem:[#allocation38_spill] sm:$0xff] }
 0x6b0   :  { %v11101_v63 = vadd.f32 %v16311_v43, %v16310_v7  ;;  %v12135_v7 = vld [vmem:[%s16125_s2 + $0x1a4] ss:$16 sps:$4 sm:$0xff]  }
 0x6b1   :  { %12506 = vtanh.f32 %v11088_v58  ;;  %7553 = vmatmul.mubr.bf16.gmra.mrb[148].mxu1 %v12113_v9  ;;  %v12501_v53 = vpop.eup %12500  ;;  %v16313_v58 = vld [vmem:[#allocation111_spill] sm:$0xff] }
 0x6b2   :  { %7560 = vmatprep.mubr.bf16.mxu1 %v12114_v35  ;;  %v16312_v35 = vld [vmem:[#allocation39_spill] sm:$0xff] }
 0x6b3   :  { %v12503_v24 = vpop.eup %12502  ;;  %v11103_v62 = vadd.f32 %v16313_v58, %v16312_v35 }
 0x6b4   :  { %v6161_v47 = vpop.f32.mrb[92].mxu0  ;;  %v6317_v54 = vpack.c.bf16 %v12503_v24, %v12501_v53  ;;  %v12125_v53 = vld [vmem:[%s16125_s2 + $0x120] ss:$16 sps:$4 sm:$0xff]  }
 0x6b5   :  { %v11090_v46 = vadd.f32 %v11089_v18, %v6161_v47  ;;  %v6163_v32 = vpop.f32.mrb[93].mxu0 }
 0x6b6   :  { %v6164_v34 = vpop.f32.mrb[94].mxu0  ;;  %7780 = vmatpush1.bf16.msra.mxu1 %v6317_v54  ;;  %v16315_v32 = vld [vmem:[#allocation112_spill] sm:$0xff] }
 0x6b7   :  { %v11092_v17 = vadd.f32 %v11091_v8, %v6164_v34  ;;  %v6166_v39 = vpop.f32.mrb[95].mxu0  ;;  %7781 = vmatprep.subr.bf16.mxu1 %v16154_v55  ;;  %12508 = vtanh.f32 %v11090_v46  ;;  %v16314_v46 = vld [vmem:[#allocation40_spill] sm:$0xff] }
 0x6b8   :  { %v11105_v41 = vadd.f32 %v16315_v32, %v16314_v46  ;;  %v12138_v46 = vld [vmem:[%s16125_s2 + $0x1c4] ss:$16 sps:$4 sm:$0xff]  }
 0x6b9   :  { %12510 = vtanh.f32 %v11092_v17  ;;  %7561 = vmatmul.mubr.bf16.gmra.mrb[152].mxu1 %v12116_v52  ;;  %v12505_v37 = vpop.eup %12504  ;;  %v16317_v17 = vld [vmem:[#allocation113_spill] sm:$0xff] }
 0x6ba   :  { %7568 = vmatprep.mubr.bf16.mxu1 %v12117_v21  ;;  %v16316_v21 = vld [vmem:[#allocation41_spill] sm:$0xff] }
 0x6bb   :  { %v12507_v13 = vpop.eup %12506  ;;  %v11107_v39 = vadd.f32 %v16317_v17, %v16316_v21 }
 0x6bc   :  { %v6169_v20 = vpop.f32.mrb[96].mxu0  ;;  %v6318_v49 = vpack.c.bf16 %v12507_v13, %v12505_v37  ;;  %v12128_v37 = vld [vmem:[%s16125_s2 + $0x140] ss:$16 sps:$4 sm:$0xff]  }
 0x6bd   :  { %v11094_v57 = vadd.f32 %v11093_v4, %v6169_v20  ;;  %v6171_v56 = vpop.f32.mrb[97].mxu0 }
 0x6be   :  { %v6172_v42 = vpop.f32.mrb[98].mxu0  ;;  %7782 = vmatpush1.bf16.msra.mxu1 %v6318_v49  ;;  %v16319_v56 = vld [vmem:[#allocation114_spill] sm:$0xff] }
 0x6bf   :  { %v11096_v61 = vadd.f32 %v11095_v51, %v6172_v42  ;;  %v6174_v5 = vpop.f32.mrb[99].mxu0  ;;  %7783 = vmatprep.subr.bf16.mxu1 %v16154_v55  ;;  %12512 = vtanh.f32 %v11094_v57  ;;  %v16318_v57 = vld [vmem:[#allocation42_spill] sm:$0xff] }
 0x6c0   :  { %v11109_v38 = vadd.f32 %v16319_v56, %v16318_v57  ;;  %v12141_v57 = vld [vmem:[%s16125_s2 + $0x1e4] ss:$16 sps:$4 sm:$0xff]  }
 0x6c1   :  { %12514 = vtanh.f32 %v11096_v61  ;;  %7569 = vmatmul.mubr.bf16.gmra.mrb[156].mxu1 %v12119_v25  ;;  %v12509_v11 = vpop.eup %12508  ;;  %v16321_v61 = vld [vmem:[#allocation115_spill] sm:$0xff] }
 0x6c2   :  { %7576 = vmatprep.mubr.bf16.mxu1 %v12120_v60  ;;  %v16320_v60 = vld [vmem:[#allocation44_spill] sm:$0xff] }
 0x6c3   :  { %v12511_v1 = vpop.eup %12510  ;;  %v11111_v5 = vadd.f32 %v16321_v61, %v16320_v60  ;;  %v12144_v60 = vld [vmem:[%s16125_s2 + $0x204] ss:$16 sps:$4 sm:$0xff]  }
 0x6c4   :  { %v6177_v31 = vpop.f32.mrb[100].mxu0  ;;  %v6319_v15 = vpack.c.bf16 %v12511_v1, %v12509_v11  ;;  %v12131_v11 = vld [vmem:[%s16125_s2 + $0x160] ss:$16 sps:$4 sm:$0xff]  }
 0x6c5   :  { %v11098_v2 = vadd.f32 %v11097_v33, %v6177_v31  ;;  %v6179_v59 = vpop.f32.mrb[101].mxu0 }
 0x6c6   :  { %v6180_v19 = vpop.f32.mrb[102].mxu0  ;;  %7784 = vmatpush1.bf16.msra.mxu1 %v6319_v15  ;;  %v16323_v59 = vld [vmem:[#allocation116_spill] sm:$0xff] }
 0x6c7   :  { %v11100_v23 = vadd.f32 %v11099_v26, %v6180_v19  ;;  %v6182_v10 = vpop.f32.mrb[103].mxu0  ;;  %7785 = vmatprep.subr.bf16.mxu1 %v16154_v55  ;;  %12516 = vtanh.f32 %v11098_v2  ;;  %v16322_v2 = vld [vmem:[#allocation46_spill] sm:$0xff] }
 0x6c8   :  { %v11113_v28 = vadd.f32 %v16323_v59, %v16322_v2  ;;  %v12156_v2 = vld [vmem:[%s16125_s2 + $0x284] ss:$16 sps:$4 sm:$0xff]   ;;  %v12158_v59 = vld [vmem:[%s16125_s2 + $0x280] ss:$16 sps:$4 sm:$0xff]  }
 0x6c9   :  { %12518 = vtanh.f32 %v11100_v23  ;;  %7577 = vmatmul.mubr.bf16.gmra.mrb[160].mxu1 %v12122_v48  ;;  %v12513_v36 = vpop.eup %12512  ;;  %v16325_v23 = vld [vmem:[#allocation117_spill] sm:$0xff] }
 0x6ca   :  { %7584 = vmatprep.mubr.bf16.mxu1 %v12123_v45  ;;  %v16324_v45 = vld [vmem:[#allocation47_spill] sm:$0xff] }
 0x6cb   :  { %v12515_v14 = vpop.eup %12514  ;;  %v11115_v10 = vadd.f32 %v16325_v23, %v16324_v45  ;;  %v12167_v45 = vld [vmem:[%s16125_s2 + $0x2e0] ss:$16 sps:$4 sm:$0xff]   ;;  %v12168_v23 = vld [vmem:[%s16125_s2 + $0x304] ss:$16 sps:$4 sm:$0xff]  }
 0x6cc   :  { %v6185_v50 = vpop.f32.mrb[104].mxu0  ;;  %v6320_v22 = vpack.c.bf16 %v12515_v14, %v12513_v36  ;;  %v12134_v36 = vld [vmem:[%s16125_s2 + $0x180] ss:$16 sps:$4 sm:$0xff]  }
 0x6cd   :  { %v11102_v9 = vadd.f32 %v11101_v63, %v6185_v50  ;;  %v6187_v12 = vpop.f32.mrb[105].mxu0 }
 0x6ce   :  { %v6188_v24 = vpop.f32.mrb[106].mxu0  ;;  %7786 = vmatpush1.bf16.msra.mxu1 %v6320_v22  ;;  %v16327_v12 = vld [vmem:[#allocation118_spill] sm:$0xff] }
 0x6cf   :  { %v11104_v16 = vadd.f32 %v11103_v62, %v6188_v24  ;;  %v6190_v18 = vpop.f32.mrb[107].mxu0  ;;  %7787 = vmatprep.subr.bf16.mxu1 %v16154_v55  ;;  %12520 = vtanh.f32 %v11102_v9  ;;  %v16326_v9 = vld [vmem:[#allocation50_spill] sm:$0xff] }
 0x6d0   :  { %v11117_v35 = vadd.f32 %v16327_v12, %v16326_v9  ;;  %v12182_v9 = vld [vmem:[%s16125_s2 + $0x380] ss:$16 sps:$4 sm:$0xff]   ;;  %v12183_v12 = vld [vmem:[%s16125_s2 + $0x3a4] ss:$16 sps:$4 sm:$0xff]  }
 0x6d1   :  { %12522 = vtanh.f32 %v11104_v16  ;;  %7585 = vmatmul.mubr.bf16.gmra.mrb[164].mxu1 %v12125_v53  ;;  %v12517_v47 = vpop.eup %12516  ;;  %v16329_v16 = vld [vmem:[#allocation119_spill] sm:$0xff] }
 0x6d2   :  { %7592 = vmatprep.mubr.bf16.mxu1 %v12126_v44  ;;  %v16328_v44 = vld [vmem:[#allocation51_spill] sm:$0xff] }
 0x6d3   :  { %v12519_v54 = vpop.eup %12518  ;;  %v11119_v18 = vadd.f32 %v16329_v16, %v16328_v44  ;;  %v12194_v44 = vld [vmem:[%s16125_s2 + $0xc] ss:$16 sps:$4 sm:$0xff]   ;;  %v12192_v16 = vld [vmem:[%s16125_s2 + $0x8] ss:$16 sps:$4 sm:$0xff]  }
 0x6d4   :  { %v6193_v0 = vpop.f32.mrb[108].mxu0  ;;  %v6321_v8 = vpack.c.bf16 %v12519_v54, %v12517_v47  ;;  %v12137_v47 = vld [vmem:[%s16125_s2 + $0x1a0] ss:$16 sps:$4 sm:$0xff]  }
 0x6d5   :  { %v11106_v52 = vadd.f32 %v11105_v41, %v6193_v0  ;;  %v6195_v34 = vpop.f32.mrb[109].mxu0 }
 0x6d6   :  { %v6196_v13 = vpop.f32.mrb[110].mxu0  ;;  %7788 = vmatpush1.bf16.msra.mxu1 %v6321_v8  ;;  %v16331_v34 = vld [vmem:[#allocation120_spill] sm:$0xff] }
 0x6d7   :  { %v11108_v30 = vadd.f32 %v11107_v39, %v6196_v13  ;;  %v6198_v4 = vpop.f32.mrb[111].mxu0  ;;  %7789 = vmatprep.subr.bf16.mxu1 %v16154_v55  ;;  %12524 = vtanh.f32 %v11106_v52  ;;  %v16330_v52 = vld [vmem:[#allocation53_spill] sm:$0xff] }
 0x6d8   :  { %v11121_v21 = vadd.f32 %v16331_v34, %v16330_v52  ;;  %v12207_v52 = vld [vmem:[%s16125_s2 + $0xac] ss:$16 sps:$4 sm:$0xff]   ;;  %v12209_v34 = vld [vmem:[%s16125_s2 + $0xa8] ss:$16 sps:$4 sm:$0xff]  }
 0x6d9   :  { %12526 = vtanh.f32 %v11108_v30  ;;  %7593 = vmatmul.mubr.bf16.gmra.mrb[168].mxu1 %v12128_v37  ;;  %v12521_v20 = vpop.eup %12520  ;;  %v16333_v30 = vld [vmem:[#allocation121_spill] sm:$0xff] }
 0x6da   :  { %7600 = vmatprep.mubr.bf16.mxu1 %v12129_v6  ;;  %v16332_v6 = vld [vmem:[#allocation55_spill] sm:$0xff] }
 0x6db   :  { %v12523_v49 = vpop.eup %12522  ;;  %v11123_v4 = vadd.f32 %v16333_v30, %v16332_v6  ;;  %v12218_v6 = vld [vmem:[%s16125_s2 + $0x108] ss:$16 sps:$4 sm:$0xff]   ;;  %v12219_v30 = vld [vmem:[%s16125_s2 + $0x12c] ss:$16 sps:$4 sm:$0xff]  }
 0x6dc   :  { %v6201_v27 = vpop.f32.mrb[112].mxu0  ;;  %v6322_v51 = vpack.c.bf16 %v12523_v49, %v12521_v20  ;;  %v12140_v20 = vld [vmem:[%s16125_s2 + $0x1c0] ss:$16 sps:$4 sm:$0xff]  }
 0x6dd   :  { %v11110_v25 = vadd.f32 %v11109_v38, %v6201_v27  ;;  %v6203_v42 = vpop.f32.mrb[113].mxu0 }
 0x6de   :  { %v6204_v1 = vpop.f32.mrb[114].mxu0  ;;  %7790 = vmatpush1.bf16.msra.mxu1 %v6322_v51  ;;  %v12143_v42 = vld [vmem:[%s16125_s2 + $0x1e0] ss:$16 sps:$4 sm:$0xff]  }
 0x6df   :  { %v11112_v40 = vadd.f32 %v11111_v5, %v6204_v1  ;;  %v6206_v33 = vpop.f32.mrb[115].mxu0  ;;  %7791 = vmatprep.subr.bf16.mxu1 %v16154_v55  ;;  %12528 = vtanh.f32 %v11110_v25  ;;  %v12146_v1 = vld [vmem:[%s16125_s2 + $0x200] ss:$16 sps:$4 sm:$0xff]  }
 0x6e0   :  { %v12152_v33 = vld [vmem:[%s16125_s2 + $0x240] ss:$16 sps:$4 sm:$0xff]  }
 0x6e1   :  { %12530 = vtanh.f32 %v11112_v40  ;;  %7601 = vmatmul.mubr.bf16.gmra.mrb[172].mxu1 %v12131_v11  ;;  %v12525_v31 = vpop.eup %12524  ;;  %v12150_v40 = vld [vmem:[%s16125_s2 + $0x244] ss:$16 sps:$4 sm:$0xff]  }
 0x6e2   :  { %7608 = vmatprep.mubr.bf16.mxu1 %v12132_v3  ;;  %v12147_v3 = vld [vmem:[%s16125_s2 + $0x224] ss:$16 sps:$4 sm:$0xff]  }
 0x6e3   :  { %v12527_v15 = vpop.eup %12526 }
 0x6e4   :  { %v6209_v29 = vpop.f32.mrb[116].mxu0  ;;  %v6323_v26 = vpack.c.bf16 %v12527_v15, %v12525_v31  ;;  %v12153_v31 = vld [vmem:[%s16125_s2 + $0x264] ss:$16 sps:$4 sm:$0xff]   ;;  %v12155_v15 = vld [vmem:[%s16125_s2 + $0x260] ss:$16 sps:$4 sm:$0xff]  }
 0x6e5   :  { %v11114_v48 = vadd.f32 %v11113_v28, %v6209_v29  ;;  %v6211_v19 = vpop.f32.mrb[117].mxu0  ;;  %v12159_v28 = vld [vmem:[%s16125_s2 + $0x2a4] ss:$16 sps:$4 sm:$0xff]   ;;  %v12161_v29 = vld [vmem:[%s16125_s2 + $0x2a0] ss:$16 sps:$4 sm:$0xff]  }
 0x6e6   :  { %v6212_v14 = vpop.f32.mrb[118].mxu0  ;;  %7792 = vmatpush1.bf16.msra.mxu1 %v6323_v26  ;;  %v12162_v26 = vld [vmem:[%s16125_s2 + $0x2c4] ss:$16 sps:$4 sm:$0xff]  }
 0x6e7   :  { %v11116_v43 = vadd.f32 %v11115_v10, %v6212_v14  ;;  %v6214_v63 = vpop.f32.mrb[119].mxu0  ;;  %7793 = vmatprep.subr.bf16.mxu1 %v16154_v55  ;;  %12532 = vtanh.f32 %v11114_v48  ;;  %v12164_v48 = vld [vmem:[%s16125_s2 + $0x2c0] ss:$16 sps:$4 sm:$0xff]   ;;  %v12165_v19 = vld [vmem:[%s16125_s2 + $0x2e4] ss:$16 sps:$4 sm:$0xff]  }
 0x6e8   :  { %v12170_v10 = vld [vmem:[%s16125_s2 + $0x300] ss:$16 sps:$4 sm:$0xff]   ;;  %v12177_v63 = vld [vmem:[%s16125_s2 + $0x364] ss:$16 sps:$4 sm:$0xff]  }
 0x6e9   :  { %12534 = vtanh.f32 %v11116_v43  ;;  %7609 = vmatmul.mubr.bf16.gmra.mrb[176].mxu1 %v12134_v36  ;;  %v12529_v50 = vpop.eup %12528  ;;  %v12171_v36 = vld [vmem:[%s16125_s2 + $0x324] ss:$16 sps:$4 sm:$0xff]   ;;  %v12173_v14 = vld [vmem:[%s16125_s2 + $0x320] ss:$16 sps:$4 sm:$0xff]  }
 0x6ea   :  { %7616 = vmatprep.mubr.bf16.mxu1 %v12135_v7  ;;  %v12174_v7 = vld [vmem:[%s16125_s2 + $0x344] ss:$16 sps:$4 sm:$0xff]   ;;  %v12176_v43 = vld [vmem:[%s16125_s2 + $0x340] ss:$16 sps:$4 sm:$0xff]  }
 0x6eb   :  { %v12531_v22 = vpop.eup %12530 }
 0x6ec   :  { %v6217_v58 = vpop.f32.mrb[120].mxu0  ;;  %v6324_v62 = vpack.c.bf16 %v12531_v22, %v12529_v50  ;;  %v12179_v50 = vld [vmem:[%s16125_s2 + $0x360] ss:$16 sps:$4 sm:$0xff]   ;;  %v12180_v22 = vld [vmem:[%s16125_s2 + $0x384] ss:$16 sps:$4 sm:$0xff]  }
 0x6ed   :  { %v11118_v53 = vadd.f32 %v11117_v35, %v6217_v58  ;;  %v6219_v24 = vpop.f32.mrb[121].mxu0  ;;  %v12185_v35 = vld [vmem:[%s16125_s2 + $0x3a0] ss:$16 sps:$4 sm:$0xff]   ;;  %v12186_v58 = vld [vmem:[%s16125_s2 + $0x3c4] ss:$16 sps:$4 sm:$0xff]  }
 0x6ee   :  { %v6220_v54 = vpop.f32.mrb[122].mxu0  ;;  %7794 = vmatpush1.bf16.msra.mxu1 %v6324_v62  ;;  %v12188_v62 = vld [vmem:[%s16125_s2 + $0x3c0] ss:$16 sps:$4 sm:$0xff]  }
 0x6ef   :  { %v11120_v32 = vadd.f32 %v11119_v18, %v6220_v54  ;;  %v6222_v41 = vpop.f32.mrb[123].mxu0  ;;  %7795 = vmatprep.subr.bf16.mxu1 %v16154_v55  ;;  %12536 = vtanh.f32 %v11118_v53  ;;  %v12189_v53 = vld [vmem:[%s16125_s2 + $0x3e4] ss:$16 sps:$4 sm:$0xff]   ;;  %v12191_v24 = vld [vmem:[%s16125_s2 + $0x3e0] ss:$16 sps:$4 sm:$0xff]  }
 0x6f0   :  { %v12195_v18 = vld [vmem:[%s16125_s2 + $0x2c] ss:$16 sps:$4 sm:$0xff]   ;;  %v12203_v41 = vld [vmem:[%s16125_s2 + $0x68] ss:$16 sps:$4 sm:$0xff]  }
 0x6f1   :  { %12538 = vtanh.f32 %v11120_v32  ;;  %7617 = vmatmul.mubr.bf16.gmra.mrb[180].mxu1 %v12137_v47  ;;  %v12533_v0 = vpop.eup %12532  ;;  %v12197_v47 = vld [vmem:[%s16125_s2 + $0x28] ss:$16 sps:$4 sm:$0xff]   ;;  %v12198_v54 = vld [vmem:[%s16125_s2 + $0x4c] ss:$16 sps:$4 sm:$0xff]  }
 0x6f2   :  { %7624 = vmatprep.mubr.bf16.mxu1 %v12138_v46  ;;  %v12200_v46 = vld [vmem:[%s16125_s2 + $0x48] ss:$16 sps:$4 sm:$0xff]   ;;  %v12201_v32 = vld [vmem:[%s16125_s2 + $0x6c] ss:$16 sps:$4 sm:$0xff]  }
 0x6f3   :  { %v12535_v8 = vpop.eup %12534 }
 0x6f4   :  { %v6225_v17 = vpop.f32.mrb[124].mxu0  ;;  %v6325_v39 = vpack.c.bf16 %v12535_v8, %v12533_v0  ;;  %v12204_v0 = vld [vmem:[%s16125_s2 + $0x8c] ss:$16 sps:$4 sm:$0xff]   ;;  %v12206_v8 = vld [vmem:[%s16125_s2 + $0x88] ss:$16 sps:$4 sm:$0xff]  }
 0x6f5   :  { %v11122_v37 = vadd.f32 %v11121_v21, %v6225_v17  ;;  %v6227_v13 = vpop.f32.mrb[125].mxu0  ;;  %v12210_v21 = vld [vmem:[%s16125_s2 + $0xcc] ss:$16 sps:$4 sm:$0xff]   ;;  %v12212_v17 = vld [vmem:[%s16125_s2 + $0xc8] ss:$16 sps:$4 sm:$0xff]  }
 0x6f6   :  { %v6228_v49 = vpop.f32.mrb[126].mxu0  ;;  %7796 = vmatpush1.bf16.msra.mxu1 %v6325_v39  ;;  %v12213_v39 = vld [vmem:[%s16125_s2 + $0xec] ss:$16 sps:$4 sm:$0xff]  }
 0x6f7   :  { %v11124_v56 = vadd.f32 %v11123_v4, %v6228_v49  ;;  %v6230_v38 = vpop.f32.mrb[127].mxu0  ;;  %7797 = vmatprep.subr.bf16.mxu1 %v16154_v55  ;;  %12540 = vtanh.f32 %v11122_v37  ;;  %v12215_v37 = vld [vmem:[%s16125_s2 + $0xe8] ss:$16 sps:$4 sm:$0xff]   ;;  %v12216_v13 = vld [vmem:[%s16125_s2 + $0x10c] ss:$16 sps:$4 sm:$0xff]  }
 0x6f8   :  { %v12221_v4 = vld [vmem:[%s16125_s2 + $0x128] ss:$16 sps:$4 sm:$0xff]   ;;  %v12228_v38 = vld [vmem:[%s16125_s2 + $0x18c] ss:$16 sps:$4 sm:$0xff]  }
 0x6f9   :  { %12542 = vtanh.f32 %v11124_v56  ;;  %7625 = vmatmul.mubr.bf16.gmra.mrb[184].mxu1 %v12140_v20  ;;  %v12537_v27 = vpop.eup %12536  ;;  %v12222_v20 = vld [vmem:[%s16125_s2 + $0x14c] ss:$16 sps:$4 sm:$0xff]   ;;  %v12224_v49 = vld [vmem:[%s16125_s2 + $0x148] ss:$16 sps:$4 sm:$0xff]  }
 0x6fa   :  { %7632 = vmatprep.mubr.bf16.mxu1 %v12141_v57  ;;  %v12225_v57 = vld [vmem:[%s16125_s2 + $0x16c] ss:$16 sps:$4 sm:$0xff]   ;;  %v12227_v56 = vld [vmem:[%s16125_s2 + $0x168] ss:$16 sps:$4 sm:$0xff]  }
 0x6fb   :  { %v12539_v51 = vpop.eup %12538 }
 0x6fc   :  { %v6326_v25 = vpack.c.bf16 %v12539_v51, %v12537_v27  ;;  %v12230_v27 = vld [vmem:[%s16125_s2 + $0x188] ss:$16 sps:$4 sm:$0xff]   ;;  %v12231_v51 = vld [vmem:[%s16125_s2 + $0x1ac] ss:$16 sps:$4 sm:$0xff]  }
 0x6fe   :  { %7798 = vmatpush1.bf16.msra.mxu1 %v6326_v25  ;;  %v12233_v25 = vld [vmem:[%s16125_s2 + $0x1a8] ss:$16 sps:$4 sm:$0xff]  }
 0x6ff   :  { %7799 = vmatprep.subr.bf16.mxu1 %v16154_v55  ;;  %v12149_v55 = vld [vmem:[%s16125_s2 + $0x220] ss:$16 sps:$4 sm:$0xff]  }
 0x701   :  { %7633 = vmatmul.mubr.bf16.gmra.mrb[188].mxu1 %v12143_v42  ;;  %v12541_v61 = vpop.eup %12540  ;;  %v12234_v42 = vld [vmem:[%s16125_s2 + $0x1cc] ss:$16 sps:$4 sm:$0xff]  }
 0x702   :  { %7640 = vmatprep.mubr.bf16.mxu1 %v12144_v60  ;;  %v12236_v60 = vld [vmem:[%s16125_s2 + $0x1c8] ss:$16 sps:$4 sm:$0xff]  }
 0x703   :  { %v12543_v5 = vpop.eup %12542 }
 0x704   :  { %v6327_v11 = vpack.c.bf16 %v12543_v5, %v12541_v61  ;;  %v12237_v61 = vld [vmem:[%s16125_s2 + $0x1ec] ss:$16 sps:$4 sm:$0xff]   ;;  %v12239_v5 = vld [vmem:[%s16125_s2 + $0x1e8] ss:$16 sps:$4 sm:$0xff]  }
 0x706   :  { %7800 = vmatpush1.bf16.msra.mxu1 %v6327_v11  ;;  %v12240_v11 = vld [vmem:[%s16125_s2 + $0x20c] ss:$16 sps:$4 sm:$0xff]  }
 0x709   :  { %7641 = vmatmul.mubr.bf16.gmra.mrb[192].mxu1 %v12146_v1  ;;  %v12242_v1 = vld [vmem:[%s16125_s2 + $0x208] ss:$16 sps:$4 sm:$0xff]  }
 0x70a   :  { %7648 = vmatprep.mubr.bf16.mxu1 %v12147_v3  ;;  %v12243_v3 = vld [vmem:[%s16125_s2 + $0x22c] ss:$16 sps:$4 sm:$0xff]  }
 0x711   :  { %7649 = vmatmul.mubr.bf16.gmra.mrb[196].mxu1 %v12149_v55  ;;  %v12245_v55 = vld [vmem:[%s16125_s2 + $0x228] ss:$16 sps:$4 sm:$0xff]  }
 0x712   :  { %7656 = vmatprep.mubr.bf16.mxu1 %v12150_v40  ;;  %v12246_v40 = vld [vmem:[%s16125_s2 + $0x24c] ss:$16 sps:$4 sm:$0xff]  }
 0x719   :  { %7657 = vmatmul.mubr.bf16.gmra.mrb[200].mxu1 %v12152_v33  ;;  %v12248_v33 = vld [vmem:[%s16125_s2 + $0x248] ss:$16 sps:$4 sm:$0xff]  }
 0x71a   :  { %7664 = vmatprep.mubr.bf16.mxu1 %v12153_v31  ;;  %v12249_v31 = vld [vmem:[%s16125_s2 + $0x26c] ss:$16 sps:$4 sm:$0xff]  }
 0x721   :  { %7665 = vmatmul.mubr.bf16.gmra.mrb[204].mxu1 %v12155_v15  ;;  %v12251_v15 = vld [vmem:[%s16125_s2 + $0x268] ss:$16 sps:$4 sm:$0xff]  }
 0x722   :  { %7672 = vmatprep.mubr.bf16.mxu1 %v12156_v2  ;;  %v12252_v2 = vld [vmem:[%s16125_s2 + $0x28c] ss:$16 sps:$4 sm:$0xff]  }
 0x729   :  { %7673 = vmatmul.mubr.bf16.gmra.mrb[208].mxu1 %v12158_v59  ;;  %v12254_v59 = vld [vmem:[%s16125_s2 + $0x288] ss:$16 sps:$4 sm:$0xff]  }
 0x72a   :  { %7680 = vmatprep.mubr.bf16.mxu1 %v12159_v28  ;;  %v12255_v28 = vld [vmem:[%s16125_s2 + $0x2ac] ss:$16 sps:$4 sm:$0xff]  }
 0x731   :  { %7681 = vmatmul.mubr.bf16.gmra.mrb[212].mxu1 %v12161_v29  ;;  %v12257_v29 = vld [vmem:[%s16125_s2 + $0x2a8] ss:$16 sps:$4 sm:$0xff]  }
 0x732   :  { %7688 = vmatprep.mubr.bf16.mxu1 %v12162_v26  ;;  %v12258_v26 = vld [vmem:[%s16125_s2 + $0x2cc] ss:$16 sps:$4 sm:$0xff]  }
 0x739   :  { %7689 = vmatmul.mubr.bf16.gmra.mrb[216].mxu1 %v12164_v48  ;;  %v12260_v48 = vld [vmem:[%s16125_s2 + $0x2c8] ss:$16 sps:$4 sm:$0xff]  }
 0x73a   :  { %7696 = vmatprep.mubr.bf16.mxu1 %v12165_v19  ;;  %v12261_v19 = vld [vmem:[%s16125_s2 + $0x2ec] ss:$16 sps:$4 sm:$0xff]  }
 0x741   :  { %7697 = vmatmul.mubr.bf16.gmra.mrb[220].mxu1 %v12167_v45  ;;  %v12263_v45 = vld [vmem:[%s16125_s2 + $0x2e8] ss:$16 sps:$4 sm:$0xff]  }
 0x742   :  { %7704 = vmatprep.mubr.bf16.mxu1 %v12168_v23  ;;  %v12264_v23 = vld [vmem:[%s16125_s2 + $0x30c] ss:$16 sps:$4 sm:$0xff]  }
 0x749   :  { %7705 = vmatmul.mubr.bf16.gmra.mrb[224].mxu1 %v12170_v10  ;;  %v12266_v10 = vld [vmem:[%s16125_s2 + $0x308] ss:$16 sps:$4 sm:$0xff]  }
 0x74a   :  { %7712 = vmatprep.mubr.bf16.mxu1 %v12171_v36  ;;  %v12267_v36 = vld [vmem:[%s16125_s2 + $0x32c] ss:$16 sps:$4 sm:$0xff]  }
 0x751   :  { %7713 = vmatmul.mubr.bf16.gmra.mrb[228].mxu1 %v12173_v14  ;;  %v12269_v14 = vld [vmem:[%s16125_s2 + $0x328] ss:$16 sps:$4 sm:$0xff]  }
 0x752   :  { %7720 = vmatprep.mubr.bf16.mxu1 %v12174_v7  ;;  %v12270_v7 = vld [vmem:[%s16125_s2 + $0x34c] ss:$16 sps:$4 sm:$0xff]  }
 0x759   :  { %7721 = vmatmul.mubr.bf16.gmra.mrb[232].mxu1 %v12176_v43  ;;  %v12272_v43 = vld [vmem:[%s16125_s2 + $0x348] ss:$16 sps:$4 sm:$0xff]  }
 0x75a   :  { %7728 = vmatprep.mubr.bf16.mxu1 %v12177_v63  ;;  %v12273_v63 = vld [vmem:[%s16125_s2 + $0x36c] ss:$16 sps:$4 sm:$0xff]  }
 0x761   :  { %7729 = vmatmul.mubr.bf16.gmra.mrb[236].mxu1 %v12179_v50 }
 0x762   :  { %7736 = vmatprep.mubr.bf16.mxu1 %v12180_v22  ;;  %v16334_v22 = vld [vmem:[#allocation60_spill] sm:$0xff] }
 0x769   :  { %7737 = vmatmul.mubr.bf16.gmra.mrb[240].mxu1 %v12182_v9 }
 0x76a   :  { %7744 = vmatprep.mubr.bf16.mxu1 %v12183_v12 }
 0x771   :  { %7745 = vmatmul.mubr.bf16.gmra.mrb[244].mxu1 %v12185_v35  ;;  %v12275_v35 = vld [vmem:[%s16125_s2 + $0x368] ss:$16 sps:$4 sm:$0xff]  }
 0x772   :  { %7752 = vmatprep.mubr.bf16.mxu1 %v12186_v58 }
 0x779   :  { %7753 = vmatmul.mubr.bf16.gmra.mrb[248].mxu1 %v12188_v62  ;;  %v12276_v62 = vld [vmem:[%s16125_s2 + $0x38c] ss:$16 sps:$4 sm:$0xff]  }
 0x77a   :  { %7760 = vmatprep.mubr.bf16.mxu1 %v12189_v53  ;;  %v16335_v53 = vld [vmem:[#allocation61_spill] sm:$0xff] }
 0x781   :  { %7761 = vmatmul.mubr.bf16.gmra.mrb[252].mxu1 %v12191_v24 }
 0x782   :  { %7801 = vmatprep.mubr.bf16.mxu1 %v12194_v44 }
 0x789   :  { %7802 = vmatmul.mubr.bf16.vlgmr.msra.gmra.mrb[128].mxu1 %v12192_v16 }
 0x78a   :  { %7809 = vmatprep.mubr.bf16.mxu1 %v12195_v18  ;;  %v16336_v18 = vld [vmem:[#allocation67_spill] sm:$0xff] }
 0x791   :  { %7810 = vmatmul.mubr.bf16.gmra.mrb[132].mxu1 %v12197_v47 }
 0x792   :  { %7817 = vmatprep.mubr.bf16.mxu1 %v12198_v54 }
 0x799   :  { %7818 = vmatmul.mubr.bf16.gmra.mrb[136].mxu1 %v12200_v46  ;;  %v12278_v46 = vld [vmem:[%s16125_s2 + $0x388] ss:$16 sps:$4 sm:$0xff]  }
 0x79a   :  { %7825 = vmatprep.mubr.bf16.mxu1 %v12201_v32 }
 0x7a1   :  { %7826 = vmatmul.mubr.bf16.gmra.mrb[140].mxu1 %v12203_v41  ;;  %v12279_v41 = vld [vmem:[%s16125_s2 + $0x3ac] ss:$16 sps:$4 sm:$0xff]  }
 0x7a2   :  { %7833 = vmatprep.mubr.bf16.mxu1 %v12204_v0  ;;  %v16337_v0 = vld [vmem:[#allocation69_spill] sm:$0xff] }
 0x7a9   :  { %7834 = vmatmul.mubr.bf16.gmra.mrb[144].mxu1 %v12206_v8 }
 0x7aa   :  { %7841 = vmatprep.mubr.bf16.mxu1 %v12207_v52 }
 0x7b1   :  { %7842 = vmatmul.mubr.bf16.gmra.mrb[148].mxu1 %v12209_v34 }
 0x7b2   :  { %7849 = vmatprep.mubr.bf16.mxu1 %v12210_v21 }
 0x7b9   :  { %7850 = vmatmul.mubr.bf16.gmra.mrb[152].mxu1 %v12212_v17 }
 0x7ba   :  { %7857 = vmatprep.mubr.bf16.mxu1 %v12213_v39 }
 0x7c1   :  { %7858 = vmatmul.mubr.bf16.gmra.mrb[156].mxu1 %v12215_v37  ;;  %v16338_v37 = vld [vmem:[#allocation74_spill] sm:$0xff] }
 0x7c2   :  { %7865 = vmatprep.mubr.bf16.mxu1 %v12216_v13 }
 0x7c9   :  { %7866 = vmatmul.mubr.bf16.gmra.mrb[160].mxu1 %v12218_v6 }
 0x7ca   :  { %7873 = vmatprep.mubr.bf16.mxu1 %v12219_v30  ;;  %v12281_v30 = vld [vmem:[%s16125_s2 + $0x3a8] ss:$16 sps:$4 sm:$0xff]  }
 0x7d1   :  { %7874 = vmatmul.mubr.bf16.gmra.mrb[164].mxu1 %v12221_v4 }
 0x7d2   :  { %7881 = vmatprep.mubr.bf16.mxu1 %v12222_v20  ;;  %v12282_v20 = vld [vmem:[%s16125_s2 + $0x3cc] ss:$16 sps:$4 sm:$0xff]  }
 0x7d9   :  { %7882 = vmatmul.mubr.bf16.gmra.mrb[168].mxu1 %v12224_v49  ;;  %v16339_v49 = vld [vmem:[#allocation75_spill] sm:$0xff] }
 0x7da   :  { %7889 = vmatprep.mubr.bf16.mxu1 %v12225_v57 }
 0x7e1   :  { %7890 = vmatmul.mubr.bf16.gmra.mrb[172].mxu1 %v12227_v56 }
 0x7e2   :  { %7897 = vmatprep.mubr.bf16.mxu1 %v12228_v38 }
 0x7e9   :  { %7898 = vmatmul.mubr.bf16.gmra.mrb[176].mxu1 %v12230_v27 }
 0x7ea   :  { %7905 = vmatprep.mubr.bf16.mxu1 %v12231_v51 }
 0x7f1   :  { %7906 = vmatmul.mubr.bf16.gmra.mrb[180].mxu1 %v12233_v25 }
 0x7f2   :  { %7913 = vmatprep.mubr.bf16.mxu1 %v12234_v42  ;;  %v16340_v42 = vld [vmem:[#allocation81_spill] sm:$0xff] }
 0x7f9   :  { %7914 = vmatmul.mubr.bf16.gmra.mrb[184].mxu1 %v12236_v60 }
 0x7fa   :  { %7921 = vmatprep.mubr.bf16.mxu1 %v12237_v61 }
 0x801   :  { %7922 = vmatmul.mubr.bf16.gmra.mrb[188].mxu1 %v12239_v5  ;;  %v12284_v5 = vld [vmem:[%s16125_s2 + $0x3c8] ss:$16 sps:$4 sm:$0xff]  }
 0x802   :  { %7929 = vmatprep.mubr.bf16.mxu1 %v12240_v11 }
 0x809   :  { %7930 = vmatmul.mubr.bf16.gmra.mrb[192].mxu1 %v12242_v1  ;;  %v12285_v1 = vld [vmem:[%s16125_s2 + $0x3ec] ss:$16 sps:$4 sm:$0xff]  }
 0x80a   :  { %7937 = vmatprep.mubr.bf16.mxu1 %v12243_v3  ;;  %v16341_v3 = vld [vmem:[#allocation83_spill] sm:$0xff] }
 0x811   :  { %7938 = vmatmul.mubr.bf16.gmra.mrb[196].mxu1 %v12245_v55 }
 0x812   :  { %7945 = vmatprep.mubr.bf16.mxu1 %v12246_v40 }
 0x819   :  { %7946 = vmatmul.mubr.bf16.gmra.mrb[200].mxu1 %v12248_v33 }
 0x81a   :  { %7953 = vmatprep.mubr.bf16.mxu1 %v12249_v31 }
 0x821   :  { %7954 = vmatmul.mubr.bf16.gmra.mrb[204].mxu1 %v12251_v15 }
 0x822   :  { %7961 = vmatprep.mubr.bf16.mxu1 %v12252_v2 }
 0x829   :  { %7962 = vmatmul.mubr.bf16.gmra.mrb[208].mxu1 %v12254_v59  ;;  %v16342_v59 = vld [vmem:[#allocation88_spill] sm:$0xff] }
 0x82a   :  { %7969 = vmatprep.mubr.bf16.mxu1 %v12255_v28 }
 0x831   :  { %7970 = vmatmul.mubr.bf16.gmra.mrb[212].mxu1 %v12257_v29 }
 0x832   :  { %7977 = vmatprep.mubr.bf16.mxu1 %v12258_v26  ;;  %v12287_v26 = vld [vmem:[%s16125_s2 + $0x3e8] ss:$16 sps:$4 sm:$0xff]  }
 0x839   :  { %7978 = vmatmul.mubr.bf16.gmra.mrb[216].mxu1 %v12260_v48 }
 0x83a   :  { %7985 = vmatprep.mubr.bf16.mxu1 %v12261_v19  ;;  %v12290_v19 = vld [vmem:[%s16126_s3 + $0x4] ss:$16 sps:$4 sm:$0xff]  }
 0x841   :  { %7986 = vmatmul.mubr.bf16.gmra.mrb[220].mxu1 %v12263_v45  ;;  %v16343_v45 = vld [vmem:[#allocation89_spill] sm:$0xff] }
 0x842   :  { %7993 = vmatprep.mubr.bf16.mxu1 %v12264_v23 }
 0x849   :  { %7994 = vmatmul.mubr.bf16.gmra.mrb[224].mxu1 %v12266_v10 }
 0x84a   :  { %8001 = vmatprep.mubr.bf16.mxu1 %v12267_v36 }
 0x851   :  { %8002 = vmatmul.mubr.bf16.gmra.mrb[228].mxu1 %v12269_v14 }
 0x852   :  { %8009 = vmatprep.mubr.bf16.mxu1 %v12270_v7 }
 0x859   :  { %8010 = vmatmul.mubr.bf16.gmra.mrb[232].mxu1 %v12272_v43 }
 0x85a   :  { %8017 = vmatprep.mubr.bf16.mxu1 %v12273_v63  ;;  %v16344_v63 = vld [vmem:[#allocation94_spill] sm:$0xff] }
 0x85c   :  { %v7803_v50 = vpop.f32.mrb[128].mxu1 }
 0x85d   :  { %v11125_v9 = vadd.f32 %v7803_v50, %v16334_v22  ;;  %v7805_v12 = vpop.f32.mrb[129].mxu1 }
 0x85e   :  { %v7806_v58 = vpop.f32.mrb[130].mxu1  ;;  %v16345_v12 = vld [vmem:[#allocation95_spill] sm:$0xff] }
 0x85f   :  { %v11126_v24 = vadd.f32 %v7806_v58, %v16335_v53  ;;  %v7808_v44 = vpop.f32.mrb[131].mxu1  ;;  %12544 = vtanh.f32 %v11125_v9 }
 0x861   :  { %12546 = vtanh.f32 %v11126_v24  ;;  %8018 = vmatmul.mubr.bf16.gmra.mrb[236].mxu1 %v12275_v35 }
 0x862   :  { %8025 = vmatprep.mubr.bf16.mxu1 %v12276_v62 }
 0x864   :  { %v7811_v16 = vpop.f32.mrb[132].mxu1 }
 0x865   :  { %v11127_v47 = vadd.f32 %v7811_v16, %v16336_v18  ;;  %v7813_v54 = vpop.f32.mrb[133].mxu1  ;;  %v16346_v16 = vld [vmem:[#allocation100_spill] sm:$0xff] }
 0x866   :  { %v7814_v32 = vpop.f32.mrb[134].mxu1 }
 0x867   :  { %v11128_v8 = vadd.f32 %v7814_v32, %v16337_v0  ;;  %v7816_v52 = vpop.f32.mrb[135].mxu1  ;;  %12548 = vtanh.f32 %v11127_v47 }
 0x868   :  { %v6593_v52 = vpop.permute.xlu0 %6592 }
 0x869   :  { %12550 = vtanh.f32 %v11128_v8  ;;  %8026 = vmatmul.mubr.bf16.gmra.mrb[240].mxu1 %v12278_v46  ;;  %v15418_v34 = vpop.eup %12544  ;;  %v16347_v46 = vld [vmem:[#allocation102_spill] sm:$0xff] }
 0x86a   :  { %8033 = vmatprep.mubr.bf16.mxu1 %v12279_v41 }
 0x86b   :  { %v15420_v21 = vpop.eup %12546 }
 0x86c   :  { %v7819_v17 = vpop.f32.mrb[136].mxu1  ;;  %v8122_v39 = vpack.c.bf16 %v15420_v21, %v15418_v34  ;;  %v15508_v21 = vpop.permute.xlu0 %6762 }
 0x86d   :  { %v11129_v13 = vadd.f32 %v7819_v17, %v16338_v37  ;;  %v7821_v6 = vpop.f32.mrb[137].mxu1 }
 0x86e   :  { %v7822_v4 = vpop.f32.mrb[138].mxu1 }
 0x86f   :  { %v11130_v57 = vadd.f32 %v7822_v4, %v16339_v49  ;;  %v7824_v56 = vpop.f32.mrb[139].mxu1  ;;  %12552 = vtanh.f32 %v11129_v13 }
 0x871   :  { %12554 = vtanh.f32 %v11130_v57  ;;  %8034 = vmatmul.mubr.bf16.gmra.mrb[244].mxu1 %v12281_v30  ;;  %v15432_v38 = vpop.eup %12548  ;;  %v6598_v30 = vpop.permute.xlu1 %6597 }
 0x872   :  { %8041 = vmatprep.mubr.bf16.mxu1 %v12282_v20 }
 0x873   :  { %v15434_v27 = vpop.eup %12550 }
 0x874   :  { %v7827_v51 = vpop.f32.mrb[140].mxu1  ;;  %v8123_v25 = vpack.c.bf16 %v15434_v27, %v15432_v38  ;;  %v6683_v38 = vpop.permute.xlu0 %6682 }
 0x875   :  { %v11131_v60 = vadd.f32 %v7827_v51, %v16340_v42  ;;  %v7829_v61 = vpop.f32.mrb[141].mxu1 }
 0x876   :  { %v7830_v11 = vpop.f32.mrb[142].mxu1 }
 0x877   :  { %v11132_v55 = vadd.f32 %v7830_v11, %v16341_v3  ;;  %v7832_v40 = vpop.f32.mrb[143].mxu1  ;;  %12556 = vtanh.f32 %v11131_v60  ;;  %v16348_v60 = vld [vmem:[#allocation56_spill] sm:$0xff] }
 0x879   :  { %12558 = vtanh.f32 %v11132_v55  ;;  %8042 = vmatmul.mubr.bf16.gmra.mrb[248].mxu1 %v12284_v5  ;;  %v15446_v33 = vpop.eup %12552 }
 0x87a   :  { %8049 = vmatprep.mubr.bf16.mxu1 %v12285_v1  ;;  %v16349_v1 = vld [vmem:[#allocation58_spill] sm:$0xff] }
 0x87b   :  { %v15448_v31 = vpop.eup %12554 }
 0x87c   :  { %v7835_v15 = vpop.f32.mrb[144].mxu1  ;;  %v8124_v2 = vpack.c.bf16 %v15448_v31, %v15446_v33 }
 0x87d   :  { %v11133_v28 = vadd.f32 %v7835_v15, %v16342_v59  ;;  %v7837_v29 = vpop.f32.mrb[145].mxu1 }
 0x87e   :  { %v7838_v48 = vpop.f32.mrb[146].mxu1  ;;  %v16350_v29 = vld [vmem:[#allocation64_spill] sm:$0xff] }
 0x87f   :  { %v11134_v23 = vadd.f32 %v7838_v48, %v16343_v45  ;;  %v7840_v10 = vpop.f32.mrb[147].mxu1  ;;  %12560 = vtanh.f32 %v11133_v28  ;;  %v16351_v45 = vld [vmem:[#allocation65_spill] sm:$0xff] }
 0x881   :  { %12562 = vtanh.f32 %v11134_v23  ;;  %8050 = vmatmul.mubr.bf16.gmra.mrb[252].mxu1 %v12287_v26  ;;  %v15460_v36 = vpop.eup %12556 }
 0x882   :  { %8762 = vmatprep.mubr.bf16.mxu1 %v12290_v19 }
 0x883   :  { %v15462_v14 = vpop.eup %12558 }
 0x884   :  { %v7843_v7 = vpop.f32.mrb[148].mxu1  ;;  %v8125_v43 = vpack.c.bf16 %v15462_v14, %v15460_v36 }
 0x885   :  { %v11135_v50 = vadd.f32 %v7843_v7, %v16344_v63  ;;  %v7845_v22 = vpop.f32.mrb[149].mxu1 }
 0x886   :  { %v7846_v9 = vpop.f32.mrb[150].mxu1 }
 0x887   :  { %v11136_v35 = vadd.f32 %v7846_v9, %v16345_v12  ;;  %v7848_v58 = vpop.f32.mrb[151].mxu1  ;;  %12564 = vtanh.f32 %v11135_v50  ;;  %v16352_v9 = vld [vmem:[#allocation70_spill] sm:$0xff] }
 0x889   :  { %12566 = vtanh.f32 %v11136_v35  ;;  %v15468_v62 = vpop.eup %12560 }
 0x88b   :  { %v15470_v53 = vpop.eup %12562 }
 0x88c   :  { %v7851_v24 = vpop.f32.mrb[152].mxu1  ;;  %v8126_v44 = vpack.c.bf16 %v15470_v53, %v15468_v62 }
 0x88d   :  { %v11137_v18 = vadd.f32 %v7851_v24, %v16346_v16  ;;  %v7853_v47 = vpop.f32.mrb[153].mxu1  ;;  %v16353_v24 = vld [vmem:[#allocation72_spill] sm:$0xff] }
 0x88e   :  { %v7854_v54 = vpop.f32.mrb[154].mxu1 }
 0x88f   :  { %v11138_v32 = vadd.f32 %v7854_v54, %v16347_v46  ;;  %v7856_v41 = vpop.f32.mrb[155].mxu1  ;;  %12568 = vtanh.f32 %v11137_v18 }
 0x890   :  { %v16354_v41 = vld [vmem:[#allocation78_spill] sm:$0xff] }
 0x891   :  { %12570 = vtanh.f32 %v11138_v32  ;;  %v15476_v0 = vpop.eup %12564 }
 0x893   :  { %v15478_v8 = vpop.eup %12566 }
 0x894   :  { %v7859_v17 = vpop.f32.mrb[156].mxu1  ;;  %v8127_v37 = vpack.c.bf16 %v15478_v8, %v15476_v0 }
 0x895   :  { %v11139_v13 = vadd.f32 %v7859_v17, %v6593_v52  ;;  %v7861_v6 = vpop.f32.mrb[157].mxu1 }
 0x896   :  { %v7862_v4 = vpop.f32.mrb[158].mxu1  ;;  %v16355_v6 = vld [vmem:[#allocation79_spill] sm:$0xff] }
 0x897   :  { %v11140_v20 = vadd.f32 %v7862_v4, %v6598_v30  ;;  %v7864_v49 = vpop.f32.mrb[159].mxu1  ;;  %12572 = vtanh.f32 %v11139_v13 }
 0x899   :  { %12574 = vtanh.f32 %v11140_v20  ;;  %v15482_v57 = vpop.eup %12568  ;;  %v15510_v20 = vpop.permute.xlu1 %6767 }
 0x89b   :  { %v15484_v56 = vpop.eup %12570 }
 0x89c   :  { %v7867_v51 = vpop.f32.mrb[160].mxu1  ;;  %v8128_v42 = vpack.c.bf16 %v15484_v56, %v15482_v57 }
 0x89d   :  { %v11141_v61 = vadd.f32 %v7867_v51, %v16348_v60  ;;  %v7869_v5 = vpop.f32.mrb[161].mxu1  ;;  %v16356_v60 = vld [vmem:[#allocation84_spill] sm:$0xff] }
 0x89e   :  { %v7870_v11 = vpop.f32.mrb[162].mxu1 }
 0x89f   :  { %v11142_v3 = vadd.f32 %v7870_v11, %v16349_v1  ;;  %v7872_v55 = vpop.f32.mrb[163].mxu1  ;;  %12576 = vtanh.f32 %v11141_v61  ;;  %v16357_v1 = vld [vmem:[#allocation86_spill] sm:$0xff] }
 0x8a1   :  { %12578 = vtanh.f32 %v11142_v3  ;;  %v15490_v40 = vpop.eup %12572 }
 0x8a3   :  { %v15492_v15 = vpop.eup %12574 }
 0x8a4   :  { %v7875_v59 = vpop.f32.mrb[164].mxu1  ;;  %v8129_v28 = vpack.c.bf16 %v15492_v15, %v15490_v40 }
 0x8a5   :  { %v11143_v26 = vadd.f32 %v7875_v59, %v16350_v29  ;;  %v7877_v48 = vpop.f32.mrb[165].mxu1 }
 0x8a6   :  { %v7878_v19 = vpop.f32.mrb[166].mxu1  ;;  %v16358_v48 = vld [vmem:[#allocation92_spill] sm:$0xff] }
 0x8a7   :  { %v11144_v23 = vadd.f32 %v7878_v19, %v16351_v45  ;;  %v7880_v10 = vpop.f32.mrb[167].mxu1  ;;  %12580 = vtanh.f32 %v11143_v26 }
 0x8a9   :  { %12582 = vtanh.f32 %v11144_v23  ;;  %v12577_v7 = vpop.eup %12576  ;;  %v15518_v23 = vpop.permute.xlu0 %6772 }
 0x8ab   :  { %v12579_v63 = vpop.eup %12578 }
 0x8ac   :  { %v7883_v50 = vpop.f32.mrb[168].mxu1  ;;  %v8130_v22 = vpack.c.bf16 %v12579_v63, %v12577_v7  ;;  %v16359_v7 = vld [vmem:[#allocation93_spill] sm:$0xff] }
 0x8ad   :  { %v11145_v12 = vadd.f32 %v7883_v50, %v16352_v9  ;;  %v7885_v35 = vpop.f32.mrb[169].mxu1 }
 0x8ae   :  { %v7886_v58 = vpop.f32.mrb[170].mxu1  ;;  %10629 = vmatprep.subr.bf16.mxu1 %v8130_v22  ;;  %v6693_v22 = vpop.permute.xlu0 %6692  ;;  %v16360_v35 = vld [vmem:[#allocation97_spill] sm:$0xff] }
 0x8af   :  { %v11146_v16 = vadd.f32 %v7886_v58, %v16353_v24  ;;  %v7888_v18 = vpop.f32.mrb[171].mxu1  ;;  %10630 = vmatpush3.bf16.msra.mxu1 %v8122_v39  ;;  %12584 = vtanh.f32 %v11145_v12 }
 0x8b1   :  { %12586 = vtanh.f32 %v11146_v16  ;;  %v12581_v47 = vpop.eup %12580 }
 0x8b2   :  { %v15531_v14 = vpop.permute.xlu0 %6782 }
 0x8b3   :  { %v12583_v54 = vpop.eup %12582 }
 0x8b4   :  { %v7891_v46 = vpop.f32.mrb[172].mxu1  ;;  %v8131_v32 = vpack.c.bf16 %v12583_v54, %v12581_v47  ;;  %v16361_v47 = vld [vmem:[#allocation99_spill] sm:$0xff] }
 0x8b5   :  { %v11147_v52 = vadd.f32 %v7891_v46, %v16354_v41  ;;  %v7893_v17 = vpop.f32.mrb[173].mxu1 }
 0x8b6   :  { %v7894_v13 = vpop.f32.mrb[174].mxu1  ;;  %10631 = vmatprep.subr.bf16.mxu1 %v8131_v32  ;;  %v16362_v17 = vld [vmem:[#allocation104_spill] sm:$0xff]  ;;  %v6703_v62 = vpop.permute.xlu0 %6702 }
 0x8b7   :  { %v11148_v30 = vadd.f32 %v7894_v13, %v16355_v6  ;;  %v7896_v4 = vpop.f32.mrb[175].mxu1  ;;  %10632 = vmatpush3.bf16.msra.mxu1 %v8123_v25  ;;  %12588 = vtanh.f32 %v11147_v52  ;;  %v6688_v25 = vpop.permute.xlu1 %6687 }
 0x8b8   :  { %v16363_v4 = vld [vmem:[#allocation105_spill] sm:$0xff] }
 0x8b9   :  { %12590 = vtanh.f32 %v11148_v30  ;;  %v12585_v34 = vpop.eup %12584 }
 0x8bb   :  { %v12587_v39 = vpop.eup %12586  ;;  %v15524_v33 = vpop.permute.xlu1 %6777 }
 0x8bc   :  { %v7899_v49 = vpop.f32.mrb[176].mxu1  ;;  %v8132_v51 = vpack.c.bf16 %v12587_v39, %v12585_v34 }
 0x8bd   :  { %v11149_v61 = vadd.f32 %v7899_v49, %v16356_v60  ;;  %v7901_v5 = vpop.f32.mrb[177].mxu1 }
 0x8be   :  { %v7902_v11 = vpop.f32.mrb[178].mxu1  ;;  %10633 = vmatprep.subr.bf16.mxu1 %v8132_v51 }
 0x8bf   :  { %v11150_v3 = vadd.f32 %v7902_v11, %v16357_v1  ;;  %v7904_v55 = vpop.f32.mrb[179].mxu1  ;;  %10634 = vmatpush3.bf16.msra.mxu1 %v8124_v2  ;;  %12592 = vtanh.f32 %v11149_v61  ;;  %v6698_v16 = vpop.permute.xlu1 %6697 }
 0x8c0   :  { %v15540_v11 = vpop.permute.xlu0 %6792 }
 0x8c1   :  { %12594 = vtanh.f32 %v11150_v3  ;;  %v12589_v27 = vpop.eup %12588 }
 0x8c3   :  { %v12591_v59 = vpop.eup %12590  ;;  %v15533_v32 = vpop.permute.xlu1 %6787 }
 0x8c4   :  { %v7907_v29 = vpop.f32.mrb[180].mxu1  ;;  %v8133_v26 = vpack.c.bf16 %v12591_v59, %v12589_v27  ;;  %v6713_v27 = vpop.permute.xlu0 %6712 }
 0x8c5   :  { %v11151_v19 = vadd.f32 %v7907_v29, %v16358_v48  ;;  %v7909_v45 = vpop.f32.mrb[181].mxu1 }
 0x8c6   :  { %v7910_v10 = vpop.f32.mrb[182].mxu1  ;;  %10635 = vmatprep.subr.bf16.mxu1 %v8133_v26 }
 0x8c7   :  { %v11152_v63 = vadd.f32 %v7910_v10, %v16359_v7  ;;  %v7912_v50 = vpop.f32.mrb[183].mxu1  ;;  %10636 = vmatpush3.bf16.msra.mxu1 %v8125_v43  ;;  %12596 = vtanh.f32 %v11151_v19 }
 0x8c8   :  { %v15558_v10 = vpop.permute.xlu0 %6802 }
 0x8c9   :  { %12598 = vtanh.f32 %v11152_v63  ;;  %v12593_v31 = vpop.eup %12592 }
 0x8cb   :  { %v12595_v2 = vpop.eup %12594 }
 0x8cc   :  { %v7915_v9 = vpop.f32.mrb[184].mxu1  ;;  %v8134_v12 = vpack.c.bf16 %v12595_v2, %v12593_v31  ;;  %v12291_v2 = vld [vmem:[%s16126_s3 + $0x20] ss:$16 sps:$4 sm:$0xff]  }
 0x8cd   :  { %v11153_v58 = vadd.f32 %v7915_v9, %v16360_v35  ;;  %v7917_v24 = vpop.f32.mrb[185].mxu1  ;;  %v6723_v35 = vpop.permute.xlu0 %6722 }
 0x8ce   :  { %v7918_v18 = vpop.f32.mrb[186].mxu1  ;;  %10637 = vmatprep.subr.bf16.mxu1 %v8134_v12  ;;  %v12296_v12 = vld [vmem:[%s16126_s3 + $0x44] ss:$16 sps:$4 sm:$0xff]  }
 0x8cf   :  { %v11154_v54 = vadd.f32 %v7918_v18, %v16361_v47  ;;  %v7920_v46 = vpop.f32.mrb[187].mxu1  ;;  %10638 = vmatpush3.bf16.msra.mxu1 %v8126_v44  ;;  %12600 = vtanh.f32 %v11153_v58  ;;  %v6708_v44 = vpop.permute.xlu1 %6707 }
 0x8d1   :  { %12602 = vtanh.f32 %v11154_v54  ;;  %v12597_v36 = vpop.eup %12596 }
 0x8d3   :  { %v12599_v43 = vpop.eup %12598  ;;  %v15545_v0 = vpop.permute.xlu1 %6797 }
 0x8d4   :  { %v7923_v41 = vpop.f32.mrb[188].mxu1  ;;  %v8135_v52 = vpack.c.bf16 %v12599_v43, %v12597_v36  ;;  %v15578_v36 = vpop.permute.xlu0 %6812 }
 0x8d5   :  { %v11155_v13 = vadd.f32 %v7923_v41, %v16362_v17  ;;  %v7925_v6 = vpop.f32.mrb[189].mxu1  ;;  %v12294_v41 = vld [vmem:[%s16126_s3 + $0x40] ss:$16 sps:$4 sm:$0xff]  }
 0x8d6   :  { %v7926_v30 = vpop.f32.mrb[190].mxu1  ;;  %10639 = vmatprep.subr.bf16.mxu1 %v8135_v52 }
 0x8d7   :  { %v11156_v34 = vadd.f32 %v7926_v30, %v16363_v4  ;;  %v7928_v39 = vpop.f32.mrb[191].mxu1  ;;  %10640 = vmatpush3.bf16.msra.mxu1 %v8127_v37  ;;  %12604 = vtanh.f32 %v11155_v13  ;;  %v6718_v48 = vpop.permute.xlu1 %6717  ;;  %v12299_v13 = vld [vmem:[%s16126_s3 + $0x64] ss:$16 sps:$4 sm:$0xff]  }
 0x8d9   :  { %12606 = vtanh.f32 %v11156_v34  ;;  %v12601_v53 = vpop.eup %12600  ;;  %v6733_v34 = vpop.permute.xlu0 %6732 }
 0x8db   :  { %v12603_v49 = vpop.eup %12602  ;;  %v15562_v63 = vpop.permute.xlu1 %6807 }
 0x8dc   :  { %v7931_v51 = vpop.f32.mrb[192].mxu1  ;;  %v8136_v60 = vpack.c.bf16 %v12603_v49, %v12601_v53 }
 0x8dd   :  { %v11157_v61 = vadd.f32 %v7931_v51, %v6683_v38  ;;  %v7933_v5 = vpop.f32.mrb[193].mxu1 }
 0x8de   :  { %v7934_v1 = vpop.f32.mrb[194].mxu1  ;;  %10641 = vmatprep.subr.bf16.mxu1 %v8136_v60  ;;  %v12297_v60 = vld [vmem:[%s16126_s3 + $0x60] ss:$16 sps:$4 sm:$0xff]  }
 0x8df   :  { %v11158_v3 = vadd.f32 %v7934_v1, %v6688_v25  ;;  %v7936_v55 = vpop.f32.mrb[195].mxu1  ;;  %10642 = vmatpush3.bf16.msra.mxu1 %v8128_v42  ;;  %12608 = vtanh.f32 %v11157_v61  ;;  %v12288_v25 = vld [vmem:[%s16126_s3] ss:$16 sps:$4 sm:$0xff]   ;;  %v12293_v42 = vld [vmem:[%s16126_s3 + $0x24] ss:$16 sps:$4 sm:$0xff]   ;;  %v6728_v24 = vpop.permute.xlu1 %6727 }
 0x8e0   :  { %v12302_v1 = vld [vmem:[%s16126_s3 + $0x84] ss:$16 sps:$4 sm:$0xff]   ;;  %v15602_v55 = vpop.permute.xlu0 %6822 }
 0x8e1   :  { %12610 = vtanh.f32 %v11158_v3  ;;  %v12605_v8 = vpop.eup %12604 }
 0x8e3   :  { %v12607_v37 = vpop.eup %12606  ;;  %v15586_v6 = vpop.permute.xlu1 %6817 }
 0x8e4   :  { %v7939_v59 = vpop.f32.mrb[196].mxu1  ;;  %v8137_v38 = vpack.c.bf16 %v12607_v37, %v12605_v8 }
 0x8e5   :  { %v11159_v29 = vadd.f32 %v7939_v59, %v6693_v22  ;;  %v7941_v26 = vpop.f32.mrb[197].mxu1 }
 0x8e6   :  { %v7942_v19 = vpop.f32.mrb[198].mxu1  ;;  %10643 = vmatprep.subr.bf16.mxu1 %v8137_v38 }
 0x8e7   :  { %v11160_v57 = vadd.f32 %v7942_v19, %v6698_v16  ;;  %v7944_v56 = vpop.f32.mrb[199].mxu1  ;;  %10644 = vmatpush3.bf16.msra.mxu1 %v8129_v28  ;;  %12612 = vtanh.f32 %v11159_v29  ;;  %v6738_v49 = vpop.permute.xlu1 %6737 }
 0x8e8   :  { %v6743_v56 = vpop.permute.xlu0 %6742 }
 0x8e9   :  { %12614 = vtanh.f32 %v11160_v57  ;;  %v15556_v45 = vpop.eup %12608  ;;  %v12305_v57 = vld [vmem:[%s16126_s3 + $0xa4] ss:$16 sps:$4 sm:$0xff]  }
 0x8ea   :  { %8763 = vmatmul.mubr.bf16.vlgmr.msra.gmra.mrb[0].mxu1 %v12288_v25 }
 0x8eb   :  { %v15560_v7 = vpop.eup %12610  ;;  %8770 = vmatprep.mubr.bf16.mxu1 %v12293_v42  ;;  %v15606_v37 = vpop.permute.xlu1 %6827 }
 0x8ec   :  { %v7947_v50 = vpop.f32.mrb[200].mxu1  ;;  %v8138_v40 = vpack.c.bf16 %v15560_v7, %v15556_v45  ;;  %v12318_v45 = vld [vmem:[%s16126_s3 + $0x140] ss:$16 sps:$4 sm:$0xff]  }
 0x8ed   :  { %v11161_v15 = vadd.f32 %v7947_v50, %v6703_v62  ;;  %v7949_v28 = vpop.f32.mrb[201].mxu1 }
 0x8ee   :  { %v7950_v31 = vpop.f32.mrb[202].mxu1 }
 0x8ef   :  { %v11162_v22 = vadd.f32 %v7950_v31, %v6708_v44  ;;  %v7952_v9 = vpop.f32.mrb[203].mxu1  ;;  %12616 = vtanh.f32 %v11161_v15  ;;  %v6748_v50 = vpop.permute.xlu1 %6747 }
 0x8f0   :  { %v15622_v9 = vpop.permute.xlu0 %6832 }
 0x8f1   :  { %12618 = vtanh.f32 %v11162_v22  ;;  %v15572_v58 = vpop.eup %12612 }
 0x8f2   :  { %8771 = vmatmul.mubr.bf16.gmra.mrb[4].mxu1 %v12291_v2 }
 0x8f3   :  { %v15574_v16 = vpop.eup %12614  ;;  %8778 = vmatprep.mubr.bf16.mxu1 %v12296_v12 }
 0x8f4   :  { %v7955_v18 = vpop.f32.mrb[204].mxu1  ;;  %v8139_v47 = vpack.c.bf16 %v15574_v16, %v15572_v58  ;;  %v12321_v58 = vld [vmem:[%s16126_s3 + $0x160] ss:$16 sps:$4 sm:$0xff]  }
 0x8f5   :  { %v11163_v54 = vadd.f32 %v7955_v18, %v6713_v27  ;;  %v7957_v46 = vpop.f32.mrb[205].mxu1 }
 0x8f6   :  { %v7958_v43 = vpop.f32.mrb[206].mxu1  ;;  %v15630_v46 = vpop.permute.xlu1 %6837 }
 0x8f7   :  { %v11164_v52 = vadd.f32 %v7958_v43, %v6718_v48  ;;  %v7960_v17 = vpop.f32.mrb[207].mxu1  ;;  %12620 = vtanh.f32 %v11163_v54  ;;  %v12300_v48 = vld [vmem:[%s16126_s3 + $0x80] ss:$16 sps:$4 sm:$0xff]   ;;  %v12308_v54 = vld [vmem:[%s16126_s3 + $0xc4] ss:$16 sps:$4 sm:$0xff]  }
 0x8f9   :  { %12622 = vtanh.f32 %v11164_v52  ;;  %v15588_v30 = vpop.eup %12616  ;;  %v6753_v52 = vpop.permute.xlu0 %6752 }
 0x8fa   :  { %8779 = vmatmul.mubr.bf16.gmra.mrb[8].mxu1 %v12294_v41 }
 0x8fb   :  { %v15590_v4 = vpop.eup %12618  ;;  %8786 = vmatprep.mubr.bf16.mxu1 %v12299_v13 }
 0x8fc   :  { %v7963_v39 = vpop.f32.mrb[208].mxu1  ;;  %v8140_v62 = vpack.c.bf16 %v15590_v4, %v15588_v30  ;;  %v12324_v30 = vld [vmem:[%s16126_s3 + $0x180] ss:$16 sps:$4 sm:$0xff]  }
 0x8fd   :  { %v11165_v53 = vadd.f32 %v7963_v39, %v6723_v35  ;;  %v7965_v44 = vpop.f32.mrb[209].mxu1  ;;  %v12303_v35 = vld [vmem:[%s16126_s3 + $0xa0] ss:$16 sps:$4 sm:$0xff]  }
 0x8fe   :  { %v7966_v51 = vpop.f32.mrb[210].mxu1 }
 0x8ff   :  { %v11166_v61 = vadd.f32 %v7966_v51, %v6728_v24  ;;  %v7968_v5 = vpop.f32.mrb[211].mxu1  ;;  %12624 = vtanh.f32 %v11165_v53  ;;  %v6758_v53 = vpop.permute.xlu1 %6757 }
 0x901   :  { %12626 = vtanh.f32 %v11166_v61  ;;  %v15600_v3 = vpop.eup %12620  ;;  %v12311_v61 = vld [vmem:[%s16126_s3 + $0xe4] ss:$16 sps:$4 sm:$0xff]  }
 0x902   :  { %8787 = vmatmul.mubr.bf16.gmra.mrb[12].mxu1 %v12297_v60 }
 0x903   :  { %v15604_v8 = vpop.eup %12622  ;;  %8794 = vmatprep.mubr.bf16.mxu1 %v12302_v1 }
 0x904   :  { %v7971_v27 = vpop.f32.mrb[212].mxu1  ;;  %v8141_v59 = vpack.c.bf16 %v15604_v8, %v15600_v3  ;;  %v12327_v3 = vld [vmem:[%s16126_s3 + $0x1a0] ss:$16 sps:$4 sm:$0xff]  }
 0x905   :  { %v11167_v38 = vadd.f32 %v7971_v27, %v6733_v34  ;;  %v7973_v29 = vpop.f32.mrb[213].mxu1 }
 0x906   :  { %v7974_v26 = vpop.f32.mrb[214].mxu1 }
 0x907   :  { %v11168_v19 = vadd.f32 %v7974_v26, %v6738_v49  ;;  %v7976_v25 = vpop.f32.mrb[215].mxu1  ;;  %12628 = vtanh.f32 %v11167_v38  ;;  %v12306_v49 = vld [vmem:[%s16126_s3 + $0xc0] ss:$16 sps:$4 sm:$0xff]  }
 0x909   :  { %12630 = vtanh.f32 %v11168_v19  ;;  %v15616_v42 = vpop.eup %12624  ;;  %v12309_v19 = vld [vmem:[%s16126_s3 + $0xe0] ss:$16 sps:$4 sm:$0xff]  }
 0x90a   :  { %8795 = vmatmul.mubr.bf16.gmra.mrb[16].mxu1 %v12300_v48 }
 0x90b   :  { %v15618_v15 = vpop.eup %12626  ;;  %8802 = vmatprep.mubr.bf16.mxu1 %v12305_v57 }
 0x90c   :  { %v7979_v28 = vpop.f32.mrb[216].mxu1  ;;  %v8142_v31 = vpack.c.bf16 %v15618_v15, %v15616_v42  ;;  %v12330_v42 = vld [vmem:[%s16126_s3 + $0x1c0] ss:$16 sps:$4 sm:$0xff]  }
 0x90d   :  { %v11169_v2 = vadd.f32 %v7979_v28, %v6743_v56  ;;  %v7981_v22 = vpop.f32.mrb[217].mxu1  ;;  %v12314_v56 = vld [vmem:[%s16126_s3 + $0x104] ss:$16 sps:$4 sm:$0xff]  }
 0x90e   :  { %v7982_v12 = vpop.f32.mrb[218].mxu1 }
 0x90f   :  { %v11170_v24 = vadd.f32 %v7982_v12, %v6748_v50  ;;  %v7984_v18 = vpop.f32.mrb[219].mxu1  ;;  %12632 = vtanh.f32 %v11169_v2 }
 0x911   :  { %12634 = vtanh.f32 %v11170_v24  ;;  %v15632_v43 = vpop.eup %12628 }
 0x912   :  { %8803 = vmatmul.mubr.bf16.gmra.mrb[20].mxu1 %v12303_v35  ;;  %v12312_v35 = vld [vmem:[%s16126_s3 + $0x100] ss:$16 sps:$4 sm:$0xff]  }
 0x913   :  { %v15634_v41 = vpop.eup %12630  ;;  %8810 = vmatprep.mubr.bf16.mxu1 %v12308_v54  ;;  %v12317_v54 = vld [vmem:[%s16126_s3 + $0x124] ss:$16 sps:$4 sm:$0xff]  }
 0x914   :  { %v7987_v17 = vpop.f32.mrb[220].mxu1  ;;  %v8143_v13 = vpack.c.bf16 %v15634_v41, %v15632_v43  ;;  %v12338_v43 = vld [vmem:[%s16126_s3 + $0xc] ss:$16 sps:$4 sm:$0xff]  }
 0x915   :  { %v11171_v34 = vadd.f32 %v7987_v17, %v6753_v52  ;;  %v7989_v39 = vpop.f32.mrb[221].mxu1 }
 0x916   :  { %v7990_v44 = vpop.f32.mrb[222].mxu1 }
 0x917   :  { %v11172_v51 = vadd.f32 %v7990_v44, %v6758_v53  ;;  %v7992_v60 = vpop.f32.mrb[223].mxu1  ;;  %12636 = vtanh.f32 %v11171_v34 }
 0x918   :  { %v12320_v60 = vld [vmem:[%s16126_s3 + $0x144] ss:$16 sps:$4 sm:$0xff]  }
 0x919   :  { %12638 = vtanh.f32 %v11172_v51  ;;  %v15644_v5 = vpop.eup %12632 }
 0x91a   :  { %8811 = vmatmul.mubr.bf16.gmra.mrb[24].mxu1 %v12306_v49 }
 0x91b   :  { %v15646_v1 = vpop.eup %12634  ;;  %8818 = vmatprep.mubr.bf16.mxu1 %v12311_v61 }
 0x91c   :  { %v7995_v27 = vpop.f32.mrb[224].mxu1  ;;  %v8144_v38 = vpack.c.bf16 %v15646_v1, %v15644_v5  ;;  %v12341_v5 = vld [vmem:[%s16126_s3 + $0x2c] ss:$16 sps:$4 sm:$0xff]   ;;  %v12339_v1 = vld [vmem:[%s16126_s3 + $0x28] ss:$16 sps:$4 sm:$0xff]  }
 0x91d   :  { %v11173_v29 = vadd.f32 %v7995_v27, %v15508_v21  ;;  %v7997_v26 = vpop.f32.mrb[225].mxu1 }
 0x91e   :  { %v7998_v48 = vpop.f32.mrb[226].mxu1 }
 0x91f   :  { %v11174_v25 = vadd.f32 %v7998_v48, %v15510_v20  ;;  %v8000_v57 = vpop.f32.mrb[227].mxu1  ;;  %12640 = vtanh.f32 %v11173_v29 }
 0x921   :  { %12642 = vtanh.f32 %v11174_v25  ;;  %v15658_v50 = vpop.eup %12636 }
 0x922   :  { %8819 = vmatmul.mubr.bf16.gmra.mrb[28].mxu1 %v12309_v19  ;;  %v12323_v19 = vld [vmem:[%s16126_s3 + $0x164] ss:$16 sps:$4 sm:$0xff]  }
 0x923   :  { %v15660_v28 = vpop.eup %12638  ;;  %8826 = vmatprep.mubr.bf16.mxu1 %v12314_v56 }
 0x924   :  { %v8003_v21 = vpop.f32.mrb[228].mxu1  ;;  %v8145_v2 = vpack.c.bf16 %v15660_v28, %v15658_v50  ;;  %v12342_v50 = vld [vmem:[%s16126_s3 + $0x48] ss:$16 sps:$4 sm:$0xff]   ;;  %v12347_v28 = vld [vmem:[%s16126_s3 + $0x6c] ss:$16 sps:$4 sm:$0xff]  }
 0x925   :  { %v11175_v22 = vadd.f32 %v8003_v21, %v15518_v23  ;;  %v8005_v20 = vpop.f32.mrb[229].mxu1 }
 0x926   :  { %v8006_v12 = vpop.f32.mrb[230].mxu1  ;;  %v12326_v20 = vld [vmem:[%s16126_s3 + $0x184] ss:$16 sps:$4 sm:$0xff]  }
 0x927   :  { %v11176_v24 = vadd.f32 %v8006_v12, %v15524_v33  ;;  %v8008_v18 = vpop.f32.mrb[231].mxu1  ;;  %12644 = vtanh.f32 %v11175_v22  ;;  %v12315_v33 = vld [vmem:[%s16126_s3 + $0x120] ss:$16 sps:$4 sm:$0xff]  }
 0x929   :  { %12646 = vtanh.f32 %v11176_v24  ;;  %v12641_v52 = vpop.eup %12640 }
 0x92a   :  { %8827 = vmatmul.mubr.bf16.gmra.mrb[32].mxu1 %v12312_v35 }
 0x92b   :  { %v12643_v17 = vpop.eup %12642  ;;  %8834 = vmatprep.mubr.bf16.mxu1 %v12317_v54 }
 0x92c   :  { %v8011_v23 = vpop.f32.mrb[232].mxu1  ;;  %v8146_v34 = vpack.c.bf16 %v12643_v17, %v12641_v52  ;;  %v12329_v52 = vld [vmem:[%s16126_s3 + $0x1a4] ss:$16 sps:$4 sm:$0xff]  }
 0x92d   :  { %v11177_v39 = vadd.f32 %v8011_v23, %v15531_v14  ;;  %v8013_v53 = vpop.f32.mrb[233].mxu1 }
 0x92e   :  { %v8014_v44 = vpop.f32.mrb[234].mxu1  ;;  %10741 = vmatprep.subr.bf16.mxu1 %v8146_v34 }
 0x92f   :  { %v11178_v49 = vadd.f32 %v8014_v44, %v15533_v32  ;;  %v8016_v51 = vpop.f32.mrb[235].mxu1  ;;  %10742 = vmatpush3.bf16.msra.mxu1 %v8138_v40  ;;  %12648 = vtanh.f32 %v11177_v39  ;;  %v12332_v44 = vld [vmem:[%s16126_s3 + $0x1c4] ss:$16 sps:$4 sm:$0xff]  }
 0x931   :  { %12650 = vtanh.f32 %v11178_v49  ;;  %v12645_v14 = vpop.eup %12644 }
 0x932   :  { %8835 = vmatmul.mubr.bf16.gmra.mrb[36].mxu1 %v12315_v33 }
 0x933   :  { %v12647_v61 = vpop.eup %12646  ;;  %8842 = vmatprep.mubr.bf16.mxu1 %v12320_v60 }
 0x934   :  { %v8019_v27 = vpop.f32.mrb[236].mxu1  ;;  %v8147_v29 = vpack.c.bf16 %v12647_v61, %v12645_v14  ;;  %v12335_v61 = vld [vmem:[%s16126_s3 + $0x1e4] ss:$16 sps:$4 sm:$0xff]  }
 0x935   :  { %v11179_v26 = vadd.f32 %v8019_v27, %v15540_v11  ;;  %v8021_v32 = vpop.f32.mrb[237].mxu1 }
 0x936   :  { %v8022_v48 = vpop.f32.mrb[238].mxu1  ;;  %10743 = vmatprep.subr.bf16.mxu1 %v8147_v29  ;;  %v12336_v32 = vld [vmem:[%s16126_s3 + $0x8] ss:$16 sps:$4 sm:$0xff]  }
 0x937   :  { %v11180_v7 = vadd.f32 %v8022_v48, %v15545_v0  ;;  %v8024_v40 = vpop.f32.mrb[239].mxu1  ;;  %10744 = vmatpush3.bf16.msra.mxu1 %v8139_v47  ;;  %12652 = vtanh.f32 %v11179_v26  ;;  %v12350_v48 = vld [vmem:[%s16126_s3 + $0x8c] ss:$16 sps:$4 sm:$0xff]  }
 0x938   :  { %v12351_v40 = vld [vmem:[%s16126_s3 + $0xa8] ss:$16 sps:$4 sm:$0xff]  }
 0x939   :  { %12654 = vtanh.f32 %v11180_v7  ;;  %v12649_v11 = vpop.eup %12648  ;;  %v12353_v7 = vld [vmem:[%s16126_s3 + $0xac] ss:$16 sps:$4 sm:$0xff]  }
 0x93a   :  { %8843 = vmatmul.mubr.bf16.gmra.mrb[40].mxu1 %v12318_v45  ;;  %v12348_v45 = vld [vmem:[%s16126_s3 + $0x88] ss:$16 sps:$4 sm:$0xff]  }
 0x93b   :  { %v12651_v25 = vpop.eup %12650  ;;  %8850 = vmatprep.mubr.bf16.mxu1 %v12323_v19  ;;  %v12356_v19 = vld [vmem:[%s16126_s3 + $0xcc] ss:$16 sps:$4 sm:$0xff]  }
 0x93c   :  { %v8027_v57 = vpop.f32.mrb[240].mxu1  ;;  %v8148_v56 = vpack.c.bf16 %v12651_v25, %v12649_v11  ;;  %v12354_v11 = vld [vmem:[%s16126_s3 + $0xc8] ss:$16 sps:$4 sm:$0xff]   ;;  %v12359_v25 = vld [vmem:[%s16126_s3 + $0xec] ss:$16 sps:$4 sm:$0xff]  }
 0x93d   :  { %v11181_v21 = vadd.f32 %v8027_v57, %v15558_v10  ;;  %v8029_v0 = vpop.f32.mrb[241].mxu1  ;;  %v12357_v57 = vld [vmem:[%s16126_s3 + $0xe8] ss:$16 sps:$4 sm:$0xff]  }
 0x93e   :  { %v8030_v22 = vpop.f32.mrb[242].mxu1  ;;  %10745 = vmatprep.subr.bf16.mxu1 %v8148_v56  ;;  %v12362_v56 = vld [vmem:[%s16126_s3 + $0x10c] ss:$16 sps:$4 sm:$0xff]  }
 0x93f   :  { %v11182_v16 = vadd.f32 %v8030_v22, %v15562_v63  ;;  %v8032_v47 = vpop.f32.mrb[243].mxu1  ;;  %10746 = vmatpush3.bf16.msra.mxu1 %v8140_v62  ;;  %12656 = vtanh.f32 %v11181_v21  ;;  %v12360_v21 = vld [vmem:[%s16126_s3 + $0x108] ss:$16 sps:$4 sm:$0xff]   ;;  %v12365_v0 = vld [vmem:[%s16126_s3 + $0x12c] ss:$16 sps:$4 sm:$0xff]  }
 0x940   :  { %v12363_v22 = vld [vmem:[%s16126_s3 + $0x128] ss:$16 sps:$4 sm:$0xff]   ;;  %v12371_v47 = vld [vmem:[%s16126_s3 + $0x16c] ss:$16 sps:$4 sm:$0xff]  }
 0x941   :  { %12658 = vtanh.f32 %v11182_v16  ;;  %v12653_v10 = vpop.eup %12652  ;;  %v12366_v16 = vld [vmem:[%s16126_s3 + $0x148] ss:$16 sps:$4 sm:$0xff]  }
 0x942   :  { %8851 = vmatmul.mubr.bf16.gmra.mrb[44].mxu1 %v12321_v58  ;;  %v12368_v58 = vld [vmem:[%s16126_s3 + $0x14c] ss:$16 sps:$4 sm:$0xff]  }
 0x943   :  { %v12655_v12 = vpop.eup %12654  ;;  %8858 = vmatprep.mubr.bf16.mxu1 %v12326_v20 }
 0x944   :  { %v8035_v35 = vpop.f32.mrb[244].mxu1  ;;  %v8149_v24 = vpack.c.bf16 %v12655_v12, %v12653_v10  ;;  %v12369_v12 = vld [vmem:[%s16126_s3 + $0x168] ss:$16 sps:$4 sm:$0xff]  }
 0x945   :  { %v11183_v18 = vadd.f32 %v8035_v35, %v15578_v36  ;;  %v8037_v63 = vpop.f32.mrb[245].mxu1 }
 0x946   :  { %v8038_v54 = vpop.f32.mrb[246].mxu1  ;;  %10747 = vmatprep.subr.bf16.mxu1 %v8149_v24 }
 0x947   :  { %v11184_v4 = vadd.f32 %v8038_v54, %v15586_v6  ;;  %v8040_v62 = vpop.f32.mrb[247].mxu1  ;;  %10748 = vmatpush3.bf16.msra.mxu1 %v8141_v59  ;;  %12660 = vtanh.f32 %v11183_v18  ;;  %v12374_v18 = vld [vmem:[%s16126_s3 + $0x18c] ss:$16 sps:$4 sm:$0xff]  }
 0x948   :  { %v12372_v62 = vld [vmem:[%s16126_s3 + $0x188] ss:$16 sps:$4 sm:$0xff]  }
 0x949   :  { %12662 = vtanh.f32 %v11184_v4  ;;  %v12657_v36 = vpop.eup %12656 }
 0x94a   :  { %8859 = vmatmul.mubr.bf16.gmra.mrb[48].mxu1 %v12324_v30 }
 0x94b   :  { %v12659_v17 = vpop.eup %12658  ;;  %8866 = vmatprep.mubr.bf16.mxu1 %v12329_v52 }
 0x94c   :  { %v8043_v23 = vpop.f32.mrb[248].mxu1  ;;  %v8150_v34 = vpack.c.bf16 %v12659_v17, %v12657_v36  ;;  %v12377_v17 = vld [vmem:[%s16126_s3 + $0x1ac] ss:$16 sps:$4 sm:$0xff]  }
 0x94d   :  { %v11185_v39 = vadd.f32 %v8043_v23, %v15602_v55  ;;  %v8045_v6 = vpop.f32.mrb[249].mxu1 }
 0x94e   :  { %v8046_v53 = vpop.f32.mrb[250].mxu1  ;;  %10749 = vmatprep.subr.bf16.mxu1 %v8150_v34 }
 0x94f   :  { %v11186_v8 = vadd.f32 %v8046_v53, %v15606_v37  ;;  %v8048_v59 = vpop.f32.mrb[251].mxu1  ;;  %10750 = vmatpush3.bf16.msra.mxu1 %v8142_v31  ;;  %12664 = vtanh.f32 %v11185_v39  ;;  %v12375_v53 = vld [vmem:[%s16126_s3 + $0x1a8] ss:$16 sps:$4 sm:$0xff]  }
 0x950   :  { %v12380_v59 = vld [vmem:[%s16126_s3 + $0x1cc] ss:$16 sps:$4 sm:$0xff]  }
 0x951   :  { %12666 = vtanh.f32 %v11186_v8  ;;  %v12661_v55 = vpop.eup %12660 }
 0x952   :  { %8867 = vmatmul.mubr.bf16.gmra.mrb[52].mxu1 %v12327_v3 }
 0x953   :  { %v12663_v33 = vpop.eup %12662  ;;  %8874 = vmatprep.mubr.bf16.mxu1 %v12332_v44 }
 0x954   :  { %v8051_v49 = vpop.f32.mrb[252].mxu1  ;;  %v8151_v51 = vpack.c.bf16 %v12663_v33, %v12661_v55 }
 0x955   :  { %v11187_v60 = vadd.f32 %v8051_v49, %v15622_v9  ;;  %v8053_v37 = vpop.f32.mrb[253].mxu1 }
 0x956   :  { %v8054_v14 = vpop.f32.mrb[254].mxu1  ;;  %10751 = vmatprep.subr.bf16.mxu1 %v8151_v51  ;;  %v12378_v51 = vld [vmem:[%s16126_s3 + $0x1c8] ss:$16 sps:$4 sm:$0xff]  }
 0x957   :  { %v11188_v15 = vadd.f32 %v8054_v14, %v15630_v46  ;;  %v8056_v31 = vpop.f32.mrb[255].mxu1  ;;  %10752 = vmatpush3.bf16.msra.mxu1 %v8143_v13  ;;  %12668 = vtanh.f32 %v11187_v60  ;;  %v12333_v46 = vld [vmem:[%s16126_s3 + $0x1e0] ss:$16 sps:$4 sm:$0xff]   ;;  %v12383_v14 = vld [vmem:[%s16126_s3 + $0x1ec] ss:$16 sps:$4 sm:$0xff]  }
 0x959   :  { %12670 = vtanh.f32 %v11188_v15  ;;  %v12665_v9 = vpop.eup %12664 }
 0x95a   :  { %8875 = vmatmul.mubr.bf16.gmra.mrb[56].mxu1 %v12330_v42 }
 0x95b   :  { %v12667_v27 = vpop.eup %12666  ;;  %8882 = vmatprep.mubr.bf16.mxu1 %v12335_v61 }
 0x95c   :  { %v8152_v29 = vpack.c.bf16 %v12667_v27, %v12665_v9  ;;  %v12381_v9 = vld [vmem:[%s16126_s3 + $0x1e8] ss:$16 sps:$4 sm:$0xff]  }
 0x95e   :  { %10753 = vmatprep.subr.bf16.mxu1 %v8152_v29 }
 0x95f   :  { %10754 = vmatpush3.bf16.msra.mxu1 %v8144_v38  ;;  %v12344_v38 = vld [vmem:[%s16126_s3 + $0x4c] ss:$16 sps:$4 sm:$0xff]  }
 0x961   :  { %v12669_v41 = vpop.eup %12668 }
 0x962   :  { %8883 = vmatmul.mubr.bf16.gmra.mrb[60].mxu1 %v12333_v46 }
 0x963   :  { %v12671_v13 = vpop.eup %12670  ;;  %8923 = vmatprep.mubr.bf16.mxu1 %v12338_v43 }
 0x964   :  { %v8153_v26 = vpack.c.bf16 %v12671_v13, %v12669_v41 }
 0x966   :  { %10755 = vmatprep.subr.bf16.mxu1 %v8153_v26 }
 0x967   :  { %10756 = vmatpush3.bf16.msra.mxu1 %v8145_v2  ;;  %v12345_v2 = vld [vmem:[%s16126_s3 + $0x68] ss:$16 sps:$4 sm:$0xff]  }
 0x96a   :  { %8924 = vmatmul.mubr.bf16.vlgmr.msra.gmra.mrb[64].mxu1 %v12336_v32 }
 0x96b   :  { %8931 = vmatprep.mubr.bf16.mxu1 %v12341_v5 }
 0x972   :  { %8932 = vmatmul.mubr.bf16.gmra.mrb[68].mxu1 %v12339_v1 }
 0x973   :  { %8939 = vmatprep.mubr.bf16.mxu1 %v12344_v38 }
 0x97a   :  { %8940 = vmatmul.mubr.bf16.gmra.mrb[72].mxu1 %v12342_v50 }
 0x97b   :  { %8947 = vmatprep.mubr.bf16.mxu1 %v12347_v28 }
 0x982   :  { %8948 = vmatmul.mubr.bf16.gmra.mrb[76].mxu1 %v12345_v2 }
 0x983   :  { %8955 = vmatprep.mubr.bf16.mxu1 %v12350_v48 }
 0x98a   :  { %8956 = vmatmul.mubr.bf16.gmra.mrb[80].mxu1 %v12348_v45 }
 0x98b   :  { %8963 = vmatprep.mubr.bf16.mxu1 %v12353_v7 }
 0x992   :  { %8964 = vmatmul.mubr.bf16.gmra.mrb[84].mxu1 %v12351_v40 }
 0x993   :  { %8971 = vmatprep.mubr.bf16.mxu1 %v12356_v19 }
 0x99a   :  { %8972 = vmatmul.mubr.bf16.gmra.mrb[88].mxu1 %v12354_v11 }
 0x99b   :  { %8979 = vmatprep.mubr.bf16.mxu1 %v12359_v25 }
 0x9a2   :  { %8980 = vmatmul.mubr.bf16.gmra.mrb[92].mxu1 %v12357_v57 }
 0x9a3   :  { %8987 = vmatprep.mubr.bf16.mxu1 %v12362_v56 }
 0x9aa   :  { %8988 = vmatmul.mubr.bf16.gmra.mrb[96].mxu1 %v12360_v21 }
 0x9ab   :  { %8995 = vmatprep.mubr.bf16.mxu1 %v12365_v0 }
 0x9b2   :  { %8996 = vmatmul.mubr.bf16.gmra.mrb[100].mxu1 %v12363_v22 }
 0x9b3   :  { %9003 = vmatprep.mubr.bf16.mxu1 %v12368_v58 }
 0x9ba   :  { %9004 = vmatmul.mubr.bf16.gmra.mrb[104].mxu1 %v12366_v16 }
 0x9bb   :  { %9011 = vmatprep.mubr.bf16.mxu1 %v12371_v47 }
 0x9bd   :  { %v10645_v20 = vpop.f32.mrb[0].mxu1 }
 0x9be   :  { %v10646_v10 = vpop.f32.mrb[1].mxu1 }
 0x9bf   :  { %v15819_v35 = vadd.f32 %v10646_v10, %v10645_v20  ;;  %v10648_v24 = vpop.f32.mrb[2].mxu1 }
 0x9c0   :  { %v10649_v63 = vpop.f32.mrb[3].mxu1 }
 0x9c1   :  { %v15824_v54 = vadd.f32 %v10649_v63, %v10648_v24 }
 0x9c2   :  { %9012 = vmatmul.mubr.bf16.gmra.mrb[108].mxu1 %v12369_v12 }
 0x9c3   :  { %9019 = vmatprep.mubr.bf16.mxu1 %v12374_v18 }
 0x9c5   :  { %v10651_v30 = vpop.f32.mrb[4].mxu1 }
 0x9c6   :  { %v10652_v4 = vpop.f32.mrb[5].mxu1 }
 0x9c7   :  { %v15829_v52 = vadd.f32 %v10652_v4, %v10651_v30  ;;  %v10654_v36 = vpop.f32.mrb[6].mxu1 }
 0x9c8   :  { %v10655_v23 = vpop.f32.mrb[7].mxu1 }
 0x9c9   :  { %v15834_v34 = vadd.f32 %v10655_v23, %v10654_v36 }
 0x9ca   :  { %9020 = vmatmul.mubr.bf16.gmra.mrb[112].mxu1 %v12372_v62 }
 0x9cb   :  { %9027 = vmatprep.mubr.bf16.mxu1 %v12377_v17 }
 0x9cd   :  { %v10657_v39 = vpop.f32.mrb[8].mxu1 }
 0x9ce   :  { %v10658_v6 = vpop.f32.mrb[9].mxu1 }
 0x9cf   :  { %v15839_v3 = vadd.f32 %v10658_v6, %v10657_v39  ;;  %v10660_v8 = vpop.f32.mrb[10].mxu1 }
 0x9d0   :  { %v10661_v44 = vpop.f32.mrb[11].mxu1 }
 0x9d1   :  { %v15844_v55 = vadd.f32 %v10661_v44, %v10660_v8  ;;  %v15891_v44 = vpop.permute.xlu0 %8332 }
 0x9d2   :  { %9028 = vmatmul.mubr.bf16.gmra.mrb[116].mxu1 %v12375_v53 }
 0x9d3   :  { %9035 = vmatprep.mubr.bf16.mxu1 %v12380_v59 }
 0x9d5   :  { %v10663_v33 = vpop.f32.mrb[12].mxu1 }
 0x9d6   :  { %v10664_v49 = vpop.f32.mrb[13].mxu1 }
 0x9d7   :  { %v15849_v60 = vadd.f32 %v10664_v49, %v10663_v33  ;;  %v10666_v37 = vpop.f32.mrb[14].mxu1  ;;  %v15893_v49 = vpop.permute.xlu1 %8337 }
 0x9d8   :  { %v10667_v42 = vpop.f32.mrb[15].mxu1 }
 0x9d9   :  { %v15854_v15 = vadd.f32 %v10667_v42, %v10666_v37 }
 0x9da   :  { %9036 = vmatmul.mubr.bf16.gmra.mrb[120].mxu1 %v12378_v51 }
 0x9db   :  { %9043 = vmatprep.mubr.bf16.mxu1 %v12383_v14 }
 0x9dd   :  { %v10669_v31 = vpop.f32.mrb[16].mxu1 }
 0x9de   :  { %v10670_v61 = vpop.f32.mrb[17].mxu1 }
 0x9df   :  { %v15859_v27 = vadd.f32 %v10670_v61, %v10669_v31  ;;  %v10672_v29 = vpop.f32.mrb[18].mxu1  ;;  %v8253_v61 = vpop.permute.xlu0 %8252 }
 0x9e0   :  { %v10673_v46 = vpop.f32.mrb[19].mxu1 }
 0x9e1   :  { %v15861_v43 = vadd.f32 %v10673_v46, %v10672_v29 }
 0x9e2   :  { %9044 = vmatmul.mubr.bf16.gmra.mrb[124].mxu1 %v12381_v9  ;;  %v8258_v9 = vpop.permute.xlu1 %8257 }
 0x9e5   :  { %v10675_v41 = vpop.f32.mrb[20].mxu1 }
 0x9e6   :  { %v10676_v13 = vpop.f32.mrb[21].mxu1 }
 0x9e7   :  { %v15863_v26 = vadd.f32 %v10676_v13, %v10675_v41  ;;  %v10678_v32 = vpop.f32.mrb[22].mxu1 }
 0x9e8   :  { %v10679_v5 = vpop.f32.mrb[23].mxu1 }
 0x9e9   :  { %v15865_v1 = vadd.f32 %v10679_v5, %v10678_v32  ;;  %v15901_v32 = vpop.permute.xlu0 %8342 }
 0x9ed   :  { %v10681_v38 = vpop.f32.mrb[24].mxu1 }
 0x9ee   :  { %v10682_v50 = vpop.f32.mrb[25].mxu1 }
 0x9ef   :  { %v15867_v28 = vadd.f32 %v10682_v50, %v10681_v38  ;;  %v10684_v2 = vpop.f32.mrb[26].mxu1  ;;  %v15905_v50 = vpop.permute.xlu1 %8347 }
 0x9f0   :  { %v10685_v48 = vpop.f32.mrb[27].mxu1 }
 0x9f1   :  { %v15869_v45 = vadd.f32 %v10685_v48, %v10684_v2  ;;  %v8263_v48 = vpop.permute.xlu0 %8262 }
 0x9f5   :  { %v10687_v7 = vpop.f32.mrb[28].mxu1 }
 0x9f6   :  { %v10688_v40 = vpop.f32.mrb[29].mxu1 }
 0x9f7   :  { %v15871_v19 = vadd.f32 %v10688_v40, %v10687_v7  ;;  %v10690_v11 = vpop.f32.mrb[30].mxu1 }
 0x9f8   :  { %v10691_v25 = vpop.f32.mrb[31].mxu1 }
 0x9f9   :  { %v15873_v57 = vadd.f32 %v10691_v25, %v10690_v11  ;;  %v8268_v25 = vpop.permute.xlu1 %8267 }
 0x9fd   :  { %v10693_v56 = vpop.f32.mrb[32].mxu1 }
 0x9fe   :  { %v10694_v21 = vpop.f32.mrb[33].mxu1 }
 0x9ff   :  { %v15875_v0 = vadd.f32 %v10694_v21, %v10693_v56  ;;  %v10696_v22 = vpop.f32.mrb[34].mxu1 }
 0xa00   :  { %v10697_v58 = vpop.f32.mrb[35].mxu1 }
 0xa01   :  { %v15877_v16 = vadd.f32 %v10697_v58, %v10696_v22  ;;  %v15911_v22 = vpop.permute.xlu0 %8352 }
 0xa05   :  { %v10699_v47 = vpop.f32.mrb[36].mxu1 }
 0xa06   :  { %v10700_v20 = vpop.f32.mrb[37].mxu1 }
 0xa07   :  { %v15879_v10 = vadd.f32 %v10700_v20, %v10699_v47  ;;  %v10702_v12 = vpop.f32.mrb[38].mxu1  ;;  %v15913_v47 = vpop.permute.xlu1 %8357 }
 0xa08   :  { %v10703_v24 = vpop.f32.mrb[39].mxu1 }
 0xa09   :  { %v15881_v18 = vadd.f32 %v10703_v24, %v10702_v12 }
 0xa0d   :  { %v10705_v63 = vpop.f32.mrb[40].mxu1 }
 0xa0e   :  { %v10706_v30 = vpop.f32.mrb[41].mxu1 }
 0xa0f   :  { %v15883_v4 = vadd.f32 %v10706_v30, %v10705_v63  ;;  %v10708_v62 = vpop.f32.mrb[42].mxu1 }
 0xa10   :  { %v10709_v36 = vpop.f32.mrb[43].mxu1 }
 0xa11   :  { %v15885_v17 = vadd.f32 %v10709_v36, %v10708_v62  ;;  %v8273_v62 = vpop.permute.xlu0 %8272  ;;  %v8278_v36 = vpop.permute.xlu1 %8277 }
 0xa15   :  { %v10711_v23 = vpop.f32.mrb[44].mxu1 }
 0xa16   :  { %v10712_v39 = vpop.f32.mrb[45].mxu1 }
 0xa17   :  { %v15887_v6 = vadd.f32 %v10712_v39, %v10711_v23  ;;  %v10714_v53 = vpop.f32.mrb[46].mxu1 }
 0xa18   :  { %v10715_v8 = vpop.f32.mrb[47].mxu1 }
 0xa19   :  { %v15889_v59 = vadd.f32 %v10715_v8, %v10714_v53  ;;  %v8765_v53 = vadd.f32 %v15819_v35, %v8253_v61 }
 0xa1d   :  { %v10717_v33 = vpop.f32.mrb[48].mxu1 }
 0xa1e   :  { %v10718_v51 = vpop.f32.mrb[49].mxu1 }
 0xa1f   :  { %v15895_v37 = vadd.f32 %v10718_v51, %v10717_v33  ;;  %v10720_v14 = vpop.f32.mrb[50].mxu1  ;;  %v15920_v51 = vpop.permute.xlu0 %8362 }
 0xa20   :  { %v10721_v42 = vpop.f32.mrb[51].mxu1 }
 0xa21   :  { %v15897_v31 = vadd.f32 %v10721_v42, %v10720_v14  ;;  %v8768_v42 = vadd.f32 %v15824_v54, %v8258_v9 }
 0xa25   :  { %v10723_v29 = vpop.f32.mrb[52].mxu1 }
 0xa26   :  { %v10724_v46 = vpop.f32.mrb[53].mxu1 }
 0xa27   :  { %v15899_v41 = vadd.f32 %v10724_v46, %v10723_v29  ;;  %v10726_v13 = vpop.f32.mrb[54].mxu1 }
 0xa28   :  { %v10727_v5 = vpop.f32.mrb[55].mxu1 }
 0xa29   :  { %v15903_v38 = vadd.f32 %v10727_v5, %v10726_v13  ;;  %v15923_v13 = vpop.permute.xlu1 %8367 }
 0xa2d   :  { %v10729_v2 = vpop.f32.mrb[56].mxu1 }
 0xa2e   :  { %v10730_v7 = vpop.f32.mrb[57].mxu1 }
 0xa2f   :  { %v15907_v40 = vadd.f32 %v10730_v7, %v10729_v2  ;;  %v10732_v11 = vpop.f32.mrb[58].mxu1  ;;  %v8283_v7 = vpop.permute.xlu0 %8282 }
 0xa30   :  { %v10733_v56 = vpop.f32.mrb[59].mxu1 }
 0xa31   :  { %v15909_v21 = vadd.f32 %v10733_v56, %v10732_v11  ;;  %v8773_v56 = vadd.f32 %v15829_v52, %v8263_v48 }
 0xa35   :  { %v10735_v58 = vpop.f32.mrb[60].mxu1 }
 0xa36   :  { %v10736_v20 = vpop.f32.mrb[61].mxu1 }
 0xa37   :  { %v15915_v12 = vadd.f32 %v10736_v20, %v10735_v58  ;;  %v10738_v24 = vpop.f32.mrb[62].mxu1  ;;  %v8288_v58 = vpop.permute.xlu1 %8287 }
 0xa38   :  { %v10739_v63 = vpop.f32.mrb[63].mxu1 }
 0xa39   :  { %v15917_v30 = vadd.f32 %v10739_v63, %v10738_v24  ;;  %v8776_v24 = vadd.f32 %v15834_v34, %v8268_v25 }
 0xa3d   :  { %v10757_v23 = vpop.f32.mrb[64].mxu1 }
 0xa3e   :  { %v10758_v39 = vpop.f32.mrb[65].mxu1 }
 0xa3f   :  { %v10759_v8 = vadd.f32 %v10758_v39, %v10757_v23  ;;  %v10760_v33 = vpop.f32.mrb[66].mxu1  ;;  %v12386_v23 = vld [vmem:[#allocation4 + $0x4] ss:$8 sps:$4 sm:$0xff]   ;;  %v15927_v39 = vpop.permute.xlu0 %8372 }
 0xa40   :  { %v10761_v14 = vpop.f32.mrb[67].mxu1  ;;  %9324 = vmatprep.mubr.bf16.mxu1 %v12386_v23  ;;  %v8792_v23 = vadd.f32 %v15854_v15, %v8288_v58 }
 0xa41   :  { %v8926_v29 = vadd.f32 %v10759_v8, %v8765_v53  ;;  %v10762_v46 = vadd.f32 %v10761_v14, %v10760_v33  ;;  %v15931_v33 = vpop.permute.xlu1 %8377  ;;  %v8781_v14 = vadd.f32 %v15839_v3, %v8273_v62  ;;  %v8789_v62 = vadd.f32 %v15849_v60, %v8283_v7 }
 0xa43   :  { %v8929_v5 = vadd.f32 %v10762_v46, %v8768_v42  ;;  %12672 = vtanh.f32 %v8926_v29  ;;  %v8784_v46 = vadd.f32 %v15844_v55, %v8278_v36 }
 0xa45   :  { %12674 = vtanh.f32 %v8929_v5  ;;  %v10763_v2 = vpop.f32.mrb[68].mxu1 }
 0xa46   :  { %v10764_v11 = vpop.f32.mrb[69].mxu1 }
 0xa47   :  { %v10765_v35 = vadd.f32 %v10764_v11, %v10763_v2  ;;  %v10766_v61 = vpop.f32.mrb[70].mxu1  ;;  %v8293_v11 = vpop.permute.xlu0 %8292 }
 0xa48   :  { %v10767_v20 = vpop.f32.mrb[71].mxu1 }
 0xa49   :  { %v8934_v63 = vadd.f32 %v10765_v35, %v8773_v56  ;;  %v10768_v54 = vadd.f32 %v10767_v20, %v10766_v61  ;;  %v8298_v35 = vpop.permute.xlu1 %8297 }
 0xa4b   :  { %v8937_v9 = vadd.f32 %v10768_v54, %v8776_v24  ;;  %12676 = vtanh.f32 %v8934_v63 }
 0xa4d   :  { %12678 = vtanh.f32 %v8937_v9  ;;  %v10769_v53 = vpop.f32.mrb[72].mxu1  ;;  %v15929_v8 = vpop.eup %12672 }
 0xa4e   :  { %v10770_v52 = vpop.f32.mrb[73].mxu1  ;;  %v15944_v9 = vpop.permute.xlu0 %8382 }
 0xa4f   :  { %v15933_v48 = vpop.eup %12674  ;;  %v10771_v34 = vadd.f32 %v10770_v52, %v10769_v53  ;;  %v10772_v25 = vpop.f32.mrb[74].mxu1 }
 0xa50   :  { %v10773_v42 = vpop.f32.mrb[75].mxu1  ;;  %v9084_v29 = vpack.c.bf16 %v15933_v48, %v15929_v8 }
 0xa51   :  { %v8942_v5 = vadd.f32 %v10771_v34, %v8781_v14  ;;  %v10774_v2 = vadd.f32 %v10773_v42, %v10772_v25  ;;  %v15949_v14 = vpop.permute.xlu1 %8387 }
 0xa52   :  { %v8303_v60 = vpop.permute.xlu0 %8302 }
 0xa53   :  { %v8945_v56 = vadd.f32 %v10774_v2, %v8784_v46  ;;  %12680 = vtanh.f32 %v8942_v5  ;;  %v8797_v5 = vadd.f32 %v15859_v27, %v8293_v11 }
 0xa55   :  { %12682 = vtanh.f32 %v8945_v56  ;;  %v10775_v61 = vpop.f32.mrb[76].mxu1  ;;  %v15939_v20 = vpop.eup %12676 }
 0xa56   :  { %v10776_v24 = vpop.f32.mrb[77].mxu1 }
 0xa57   :  { %v15941_v3 = vpop.eup %12678  ;;  %v10777_v63 = vadd.f32 %v10776_v24, %v10775_v61  ;;  %v10778_v54 = vpop.f32.mrb[78].mxu1  ;;  %v8800_v24 = vadd.f32 %v15861_v43, %v8298_v35 }
 0xa58   :  { %v10779_v55 = vpop.f32.mrb[79].mxu1  ;;  %v8308_v61 = vpop.permute.xlu1 %8307  ;;  %v16364_v48 = vpack.c.bf16 %v15941_v3, %v15939_v20 }
 0xa59   :  { %v8950_v53 = vadd.f32 %v10777_v63, %v8789_v62  ;;  %v10780_v52 = vadd.f32 %v10779_v55, %v10778_v54  ;;  %v15959_v55 = vpop.permute.xlu0 %8392 }
 0xa5b   :  { %v8953_v34 = vadd.f32 %v10780_v52, %v8792_v23  ;;  %12684 = vtanh.f32 %v8950_v53 }
 0xa5c   :  { %v15963_v27 = vpop.permute.xlu1 %8397 }
 0xa5d   :  { %12686 = vtanh.f32 %v8953_v34  ;;  %v10781_v25 = vpop.f32.mrb[80].mxu1  ;;  %v15951_v42 = vpop.eup %12680  ;;  %v8805_v34 = vadd.f32 %v15863_v26, %v8303_v60 }
 0xa5e   :  { %v10782_v7 = vpop.f32.mrb[81].mxu1 }
 0xa5f   :  { %v15953_v46 = vpop.eup %12682  ;;  %v10783_v2 = vadd.f32 %v10782_v7, %v10781_v25  ;;  %v10784_v56 = vpop.f32.mrb[82].mxu1 }
 0xa60   :  { %v10785_v15 = vpop.f32.mrb[83].mxu1  ;;  %v16365_v3 = vpack.c.bf16 %v15953_v46, %v15951_v42 }
 0xa61   :  { %v8958_v62 = vadd.f32 %v10783_v2, %v8797_v5  ;;  %v10786_v63 = vadd.f32 %v10785_v15, %v10784_v56  ;;  %v8808_v5 = vadd.f32 %v15865_v1, %v8308_v61  ;;  %v8313_v15 = vpop.permute.xlu0 %8312 }
 0xa62   :  { %v8813_v60 = vadd.f32 %v15867_v28, %v8313_v15 }
 0xa63   :  { %v8961_v54 = vadd.f32 %v10786_v63, %v8800_v24  ;;  %12688 = vtanh.f32 %v8958_v62  ;;  %v8318_v62 = vpop.permute.xlu1 %8317 }
 0xa65   :  { %12690 = vtanh.f32 %v8961_v54  ;;  %v10787_v23 = vpop.f32.mrb[84].mxu1  ;;  %v15961_v53 = vpop.eup %12684 }
 0xa66   :  { %v10788_v11 = vpop.f32.mrb[85].mxu1  ;;  %v15976_v35 = vpop.permute.xlu0 %8402 }
 0xa67   :  { %v15965_v52 = vpop.eup %12686  ;;  %v10789_v25 = vadd.f32 %v10788_v11, %v10787_v23  ;;  %v10790_v7 = vpop.f32.mrb[86].mxu1 }
 0xa68   :  { %v10791_v43 = vpop.f32.mrb[87].mxu1  ;;  %v16366_v46 = vpack.c.bf16 %v15965_v52, %v15961_v53 }
 0xa69   :  { %v8966_v2 = vadd.f32 %v10789_v25, %v8805_v34  ;;  %v10792_v56 = vadd.f32 %v10791_v43, %v10790_v7  ;;  %v8816_v34 = vadd.f32 %v15869_v45, %v8318_v62  ;;  %v15981_v43 = vpop.permute.xlu1 %8407 }
 0xa6a   :  { %v8323_v28 = vpop.permute.xlu0 %8322 }
 0xa6b   :  { %v8969_v24 = vadd.f32 %v10792_v56, %v8808_v5  ;;  %12692 = vtanh.f32 %v8966_v2 }
 0xa6d   :  { %12694 = vtanh.f32 %v8969_v24  ;;  %v10793_v63 = vpop.f32.mrb[88].mxu1  ;;  %v15971_v54 = vpop.eup %12688  ;;  %v8821_v24 = vadd.f32 %v15871_v19, %v8323_v28  ;;  %v8829_v19 = vadd.f32 %v15875_v0, %v15891_v44  ;;  %v8837_v0 = vadd.f32 %v15879_v10, %v15901_v32 }
 0xa6e   :  { %v10794_v58 = vpop.f32.mrb[89].mxu1  ;;  %v8328_v36 = vpop.permute.xlu1 %8327  ;;  %v8845_v10 = vadd.f32 %v15883_v4, %v15911_v22 }
 0xa6f   :  { %v15973_v26 = vpop.eup %12690  ;;  %v10795_v23 = vadd.f32 %v10794_v58, %v10793_v63  ;;  %v10796_v11 = vpop.f32.mrb[90].mxu1 }
 0xa70   :  { %v10797_v1 = vpop.f32.mrb[91].mxu1  ;;  %v16367_v52 = vpack.c.bf16 %v15973_v26, %v15971_v54 }
 0xa71   :  { %v8974_v25 = vadd.f32 %v10795_v23, %v8813_v60  ;;  %v10798_v7 = vadd.f32 %v10797_v1, %v10796_v11  ;;  %v8824_v60 = vadd.f32 %v15873_v57, %v8328_v36  ;;  %v8832_v36 = vadd.f32 %v15877_v16, %v15893_v49 }
 0xa72   :  { %v8840_v49 = vadd.f32 %v15881_v18, %v15905_v50 }
 0xa73   :  { %v8977_v5 = vadd.f32 %v10798_v7, %v8816_v34  ;;  %12696 = vtanh.f32 %v8974_v25 }
 0xa75   :  { %12698 = vtanh.f32 %v8977_v5  ;;  %v10799_v2 = vpop.f32.mrb[92].mxu1  ;;  %v15983_v56 = vpop.eup %12692 }
 0xa76   :  { %v10800_v58 = vpop.f32.mrb[93].mxu1 }
 0xa77   :  { %v15985_v15 = vpop.eup %12694  ;;  %v10801_v63 = vadd.f32 %v10800_v58, %v10799_v2  ;;  %v10802_v61 = vpop.f32.mrb[94].mxu1 }
 0xa78   :  { %v10803_v45 = vpop.f32.mrb[95].mxu1  ;;  %v9089_v62 = vpack.c.bf16 %v15985_v15, %v15983_v56  ;;  %v12389_v56 = vld [vmem:[#allocation4 + $0x14] ss:$8 sps:$4 sm:$0xff]   ;;  %v12387_v15 = vld [vmem:[#allocation4 + $0x10] ss:$8 sps:$4 sm:$0xff]  }
 0xa79   :  { %v8982_v23 = vadd.f32 %v10801_v63, %v8821_v24  ;;  %v10804_v11 = vadd.f32 %v10803_v45, %v10802_v61 }
 0xa7b   :  { %v8985_v1 = vadd.f32 %v10804_v11, %v8824_v60  ;;  %12700 = vtanh.f32 %v8982_v23 }
 0xa7d   :  { %12702 = vtanh.f32 %v8985_v1  ;;  %v10805_v34 = vpop.f32.mrb[96].mxu1  ;;  %v15991_v25 = vpop.eup %12696 }
 0xa7e   :  { %v10806_v7 = vpop.f32.mrb[97].mxu1 }
 0xa7f   :  { %v15993_v5 = vpop.eup %12698  ;;  %v10807_v2 = vadd.f32 %v10806_v7, %v10805_v34  ;;  %v10808_v28 = vpop.f32.mrb[98].mxu1 }
 0xa80   :  { %v10809_v58 = vpop.f32.mrb[99].mxu1  ;;  %v9090_v57 = vpack.c.bf16 %v15993_v5, %v15991_v25  ;;  %v12393_v25 = vld [vmem:[#allocation4 + $0x30] ss:$8 sps:$4 sm:$0xff]   ;;  %v12398_v5 = vld [vmem:[#allocation4 + $0x44] ss:$8 sps:$4 sm:$0xff]  }
 0xa81   :  { %v8990_v61 = vadd.f32 %v10807_v2, %v8829_v19  ;;  %v10810_v24 = vadd.f32 %v10809_v58, %v10808_v28 }
 0xa83   :  { %v8993_v63 = vadd.f32 %v10810_v24, %v8832_v36  ;;  %12704 = vtanh.f32 %v8990_v61 }
 0xa85   :  { %12706 = vtanh.f32 %v8993_v63  ;;  %v10811_v45 = vpop.f32.mrb[100].mxu1  ;;  %v16001_v60 = vpop.eup %12700 }
 0xa86   :  { %v10812_v23 = vpop.f32.mrb[101].mxu1 }
 0xa87   :  { %v16003_v11 = vpop.eup %12702  ;;  %v10813_v44 = vadd.f32 %v10812_v23, %v10811_v45  ;;  %v10814_v1 = vpop.f32.mrb[102].mxu1  ;;  %v8848_v23 = vadd.f32 %v15885_v17, %v15913_v47 }
 0xa88   :  { %v10815_v34 = vpop.f32.mrb[103].mxu1  ;;  %v9091_v16 = vpack.c.bf16 %v16003_v11, %v16001_v60  ;;  %v12399_v60 = vld [vmem:[#allocation4 + $0x50] ss:$8 sps:$4 sm:$0xff]   ;;  %v12404_v11 = vld [vmem:[#allocation4 + $0x64] ss:$8 sps:$4 sm:$0xff]  }
 0xa89   :  { %v8998_v7 = vadd.f32 %v10813_v44, %v8837_v0  ;;  %v10816_v19 = vadd.f32 %v10815_v34, %v10814_v1  ;;  %v8853_v34 = vadd.f32 %v15887_v6, %v15920_v51 }
 0xa8b   :  { %v9001_v2 = vadd.f32 %v10816_v19, %v8840_v49  ;;  %12708 = vtanh.f32 %v8998_v7  ;;  %v8856_v19 = vadd.f32 %v15889_v59, %v15923_v13 }
 0xa8d   :  { %12710 = vtanh.f32 %v9001_v2  ;;  %v10817_v28 = vpop.f32.mrb[104].mxu1  ;;  %v12705_v58 = vpop.eup %12704 }
 0xa8e   :  { %v10818_v36 = vpop.f32.mrb[105].mxu1 }
 0xa8f   :  { %v12707_v61 = vpop.eup %12706  ;;  %v10819_v32 = vadd.f32 %v10818_v36, %v10817_v28  ;;  %v10820_v24 = vpop.f32.mrb[106].mxu1  ;;  %v8861_v36 = vadd.f32 %v15895_v37, %v15927_v39 }
 0xa90   :  { %v10821_v63 = vpop.f32.mrb[107].mxu1  ;;  %v9092_v45 = vpack.c.bf16 %v12707_v61, %v12705_v58 }
 0xa91   :  { %v9006_v18 = vadd.f32 %v10819_v32, %v8845_v10  ;;  %v10822_v50 = vadd.f32 %v10821_v63, %v10820_v24  ;;  %v8864_v32 = vadd.f32 %v15897_v31, %v15931_v33 }
 0xa92   :  { %10853 = vmatprep.subr.bf16.mxu1 %v9092_v45 }
 0xa93   :  { %v9009_v0 = vadd.f32 %v10822_v50, %v8848_v23  ;;  %10854 = vmatpush3.bf16.msra.mxu1 %v9084_v29  ;;  %12712 = vtanh.f32 %v9006_v18  ;;  %v8869_v18 = vadd.f32 %v15899_v41, %v15944_v9 }
 0xa95   :  { %12714 = vtanh.f32 %v9009_v0  ;;  %v10823_v44 = vpop.f32.mrb[108].mxu1  ;;  %v12709_v1 = vpop.eup %12708 }
 0xa96   :  { %v10824_v4 = vpop.f32.mrb[109].mxu1 }
 0xa97   :  { %v12711_v22 = vpop.eup %12710  ;;  %v10825_v49 = vadd.f32 %v10824_v4, %v10823_v44  ;;  %v10826_v7 = vpop.f32.mrb[110].mxu1  ;;  %v8872_v44 = vadd.f32 %v15903_v38, %v15949_v14 }
 0xa98   :  { %v10827_v17 = vpop.f32.mrb[111].mxu1  ;;  %v9093_v47 = vpack.c.bf16 %v12711_v22, %v12709_v1 }
 0xa99   :  { %v9014_v2 = vadd.f32 %v10825_v49, %v8853_v34  ;;  %v10828_v28 = vadd.f32 %v10827_v17, %v10826_v7  ;;  %v8877_v49 = vadd.f32 %v15907_v40, %v15959_v55 }
 0xa9a   :  { %10855 = vmatprep.subr.bf16.mxu1 %v9093_v47  ;;  %v8880_v47 = vadd.f32 %v15909_v21, %v15963_v27 }
 0xa9b   :  { %v9017_v8 = vadd.f32 %v10828_v28, %v8856_v19  ;;  %10856 = vmatpush3.bf16.msra.mxu1 %v16364_v48  ;;  %12716 = vtanh.f32 %v9014_v2  ;;  %v8885_v48 = vadd.f32 %v15915_v12, %v15976_v35 }
 0xa9d   :  { %12718 = vtanh.f32 %v9017_v8  ;;  %v10829_v29 = vpop.f32.mrb[112].mxu1  ;;  %v12713_v58 = vpop.eup %12712 }
 0xa9e   :  { %v10830_v6 = vpop.f32.mrb[113].mxu1 }
 0xa9f   :  { %v12715_v51 = vpop.eup %12714  ;;  %v10831_v61 = vadd.f32 %v10830_v6, %v10829_v29  ;;  %v10832_v10 = vpop.f32.mrb[114].mxu1  ;;  %v8888_v6 = vadd.f32 %v15917_v30, %v15981_v43 }
 0xaa0   :  { %v10833_v59 = vpop.f32.mrb[115].mxu1  ;;  %v9094_v13 = vpack.c.bf16 %v12715_v51, %v12713_v58 }
 0xaa1   :  { %v9022_v24 = vadd.f32 %v10831_v61, %v8861_v36  ;;  %v10834_v63 = vadd.f32 %v10833_v59, %v10832_v10  ;;  %v12384_v10 = vld [vmem:[#allocation4] ss:$8 sps:$4 sm:$0xff]  }
 0xaa2   :  { %10857 = vmatprep.subr.bf16.mxu1 %v9094_v13  ;;  %v12390_v59 = vld [vmem:[#allocation4 + $0x20] ss:$8 sps:$4 sm:$0xff]   ;;  %v12395_v13 = vld [vmem:[#allocation4 + $0x34] ss:$8 sps:$4 sm:$0xff]  }
 0xaa3   :  { %v9025_v20 = vadd.f32 %v10834_v63, %v8864_v32  ;;  %10858 = vmatpush3.bf16.msra.mxu1 %v16365_v3  ;;  %12720 = vtanh.f32 %v9022_v24  ;;  %v12401_v32 = vld [vmem:[#allocation4 + $0x54] ss:$8 sps:$4 sm:$0xff]   ;;  %v12405_v63 = vld [vmem:[#allocation4 + $0x70] ss:$8 sps:$4 sm:$0xff]  }
 0xaa4   :  { %v12407_v24 = vld [vmem:[#allocation4 + $0x74] ss:$8 sps:$4 sm:$0xff]  }
 0xaa5   :  { %12722 = vtanh.f32 %v9025_v20  ;;  %v10835_v45 = vpop.f32.mrb[116].mxu1  ;;  %v12717_v23 = vpop.eup %12716  ;;  %v12408_v20 = vld [vmem:[#allocation6] sm:$0xff]  }
 0xaa6   :  { %v10836_v37 = vpop.f32.mrb[117].mxu1 }
 0xaa7   :  { %v12719_v39 = vpop.eup %12718  ;;  %v10837_v50 = vadd.f32 %v10836_v37, %v10835_v45  ;;  %v10838_v0 = vpop.f32.mrb[118].mxu1 }
 0xaa8   :  { %v10839_v31 = vpop.f32.mrb[119].mxu1  ;;  %v9095_v33 = vpack.c.bf16 %v12719_v39, %v12717_v23  ;;  %v9135_v39 = vpop.permute.xlu0 %9134 }
 0xaa9   :  { %v9030_v1 = vadd.f32 %v10837_v50, %v8869_v18  ;;  %v10840_v4 = vadd.f32 %v10839_v31, %v10838_v0  ;;  %v9140_v31 = vpop.permute.xlu1 %9139 }
 0xaaa   :  { %10859 = vmatprep.subr.bf16.mxu1 %v9095_v33 }
 0xaab   :  { %v9033_v42 = vadd.f32 %v10840_v4, %v8872_v44  ;;  %10860 = vmatpush3.bf16.msra.mxu1 %v16366_v46  ;;  %12724 = vtanh.f32 %v9030_v1 }
 0xaac   :  { %v9145_v46 = vpop.permute.xlu0 %9144 }
 0xaad   :  { %12726 = vtanh.f32 %v9033_v42  ;;  %v10841_v22 = vpop.f32.mrb[120].mxu1  ;;  %v12721_v34 = vpop.eup %12720 }
 0xaae   :  { %v10842_v41 = vpop.f32.mrb[121].mxu1 }
 0xaaf   :  { %v12723_v9 = vpop.eup %12722  ;;  %v10843_v7 = vadd.f32 %v10842_v41, %v10841_v22  ;;  %v10844_v17 = vpop.f32.mrb[122].mxu1 }
 0xab0   :  { %v10845_v38 = vpop.f32.mrb[123].mxu1  ;;  %v9096_v14 = vpack.c.bf16 %v12723_v9, %v12721_v34  ;;  %v9150_v9 = vpop.permute.xlu1 %9149 }
 0xab1   :  { %v9038_v19 = vadd.f32 %v10843_v7, %v8877_v49  ;;  %v10846_v2 = vadd.f32 %v10845_v38, %v10844_v17 }
 0xab2   :  { %10861 = vmatprep.subr.bf16.mxu1 %v9096_v14 }
 0xab3   :  { %v9041_v53 = vadd.f32 %v10846_v2, %v8880_v47  ;;  %10862 = vmatpush3.bf16.msra.mxu1 %v16367_v52  ;;  %12728 = vtanh.f32 %v9038_v19  ;;  %v9155_v2 = vpop.permute.xlu0 %9154 }
 0xab5   :  { %12730 = vtanh.f32 %v9041_v53  ;;  %v10847_v28 = vpop.f32.mrb[124].mxu1  ;;  %v12725_v8 = vpop.eup %12724 }
 0xab6   :  { %v10848_v40 = vpop.f32.mrb[125].mxu1 }
 0xab7   :  { %v12727_v55 = vpop.eup %12726  ;;  %v10849_v29 = vadd.f32 %v10848_v40, %v10847_v28  ;;  %v10850_v58 = vpop.f32.mrb[126].mxu1 }
 0xab8   :  { %v10851_v21 = vpop.f32.mrb[127].mxu1  ;;  %v9097_v27 = vpack.c.bf16 %v12727_v55, %v12725_v8  ;;  %v9160_v40 = vpop.permute.xlu1 %9159 }
 0xab9   :  { %v9046_v51 = vadd.f32 %v10849_v29, %v8885_v48  ;;  %v10852_v36 = vadd.f32 %v10851_v21, %v10850_v58 }
 0xaba   :  { %10863 = vmatprep.subr.bf16.mxu1 %v9097_v27 }
 0xabb   :  { %v9049_v54 = vadd.f32 %v10852_v36, %v8888_v6  ;;  %10864 = vmatpush3.bf16.msra.mxu1 %v9089_v62  ;;  %12732 = vtanh.f32 %v9046_v51  ;;  %v12392_v62 = vld [vmem:[#allocation4 + $0x24] ss:$8 sps:$4 sm:$0xff]   ;;  %v9165_v51 = vpop.permute.xlu0 %9164 }
 0xabd   :  { %12734 = vtanh.f32 %v9049_v54  ;;  %v12729_v26 = vpop.eup %12728 }
 0xabf   :  { %v12731_v61 = vpop.eup %12730 }
 0xac0   :  { %v9098_v12 = vpack.c.bf16 %v12731_v61, %v12729_v26 }
 0xac2   :  { %10865 = vmatprep.subr.bf16.mxu1 %v9098_v12  ;;  %v9170_v12 = vpop.permute.xlu1 %9169 }
 0xac3   :  { %10866 = vmatpush3.bf16.msra.mxu1 %v9090_v57  ;;  %v12396_v57 = vld [vmem:[#allocation4 + $0x40] ss:$8 sps:$4 sm:$0xff]  }
 0xac5   :  { %v12733_v35 = vpop.eup %12732 }
 0xac7   :  { %v12735_v30 = vpop.eup %12734 }
 0xac8   :  { %v9099_v43 = vpack.c.bf16 %v12735_v30, %v12733_v35 }
 0xaca   :  { %10867 = vmatprep.subr.bf16.mxu1 %v9099_v43 }
 0xacb   :  { %10868 = vmatpush3.bf16.msra.mxu1 %v9091_v16  ;;  %v12402_v16 = vld [vmem:[#allocation4 + $0x60] ss:$8 sps:$4 sm:$0xff]  }
 0xace   :  { %9325 = vmatmul.mubr.bf16.vlgmr.msra.gmra.mrb[128].mxu1 %v12384_v10 }
 0xacf   :  { %9332 = vmatprep.mubr.bf16.mxu1 %v12389_v56 }
 0xad6   :  { %9333 = vmatmul.mubr.bf16.gmra.mrb[132].mxu1 %v12387_v15 }
 0xad7   :  { %9340 = vmatprep.mubr.bf16.mxu1 %v12392_v62 }
 0xade   :  { %9341 = vmatmul.mubr.bf16.gmra.mrb[136].mxu1 %v12390_v59  ;;  %v9175_v59 = vpop.permute.xlu0 %9174 }
 0xadf   :  { %9348 = vmatprep.mubr.bf16.mxu1 %v12395_v13 }
 0xae6   :  { %9349 = vmatmul.mubr.bf16.gmra.mrb[140].mxu1 %v12393_v25 }
 0xae7   :  { %9356 = vmatprep.mubr.bf16.mxu1 %v12398_v5 }
 0xaee   :  { %9357 = vmatmul.mubr.bf16.gmra.mrb[144].mxu1 %v12396_v57 }
 0xaef   :  { %9364 = vmatprep.mubr.bf16.mxu1 %v12401_v32  ;;  %v9180_v32 = vpop.permute.xlu1 %9179 }
 0xaf6   :  { %9365 = vmatmul.mubr.bf16.gmra.mrb[148].mxu1 %v12399_v60 }
 0xaf7   :  { %9372 = vmatprep.mubr.bf16.mxu1 %v12404_v11 }
 0xafe   :  { %9373 = vmatmul.mubr.bf16.gmra.mrb[152].mxu1 %v12402_v16 }
 0xaff   :  { %9380 = vmatprep.mubr.bf16.mxu1 %v12407_v24 }
 0xb06   :  { %9381 = vmatmul.mubr.bf16.gmra.mrb[156].mxu1 %v12405_v63 }
 0xb07   :  { %10949 = vmatprep.mubr.bf16.mxu1 %v12408_v20 }
 0xba1   :  { %v10869_v3 = vpop.f32.mrb[128].mxu1 }
 0xba2   :  { %v10870_v45 = vpop.f32.mrb[129].mxu1 }
 0xba3   :  { %v10871_v23 = vadd.f32 %v10870_v45, %v10869_v3  ;;  %v10872_v37 = vpop.f32.mrb[130].mxu1  ;;  %v9185_v45 = vpop.permute.xlu0 %9184 }
 0xba4   :  { %v10873_v18 = vpop.f32.mrb[131].mxu1 }
 0xba5   :  { %v9327_v50 = vadd.f32 %v10871_v23, %v9135_v39  ;;  %v10874_v0 = vadd.f32 %v10873_v18, %v10872_v37 }
 0xba7   :  { %v9330_v33 = vadd.f32 %v10874_v0, %v9140_v31  ;;  %12736 = vtanh.f32 %v9327_v50  ;;  %v9190_v50 = vpop.permute.xlu1 %9189 }
 0xba9   :  { %12738 = vtanh.f32 %v9330_v33  ;;  %v10875_v44 = vpop.f32.mrb[132].mxu1 }
 0xbaa   :  { %v10876_v1 = vpop.f32.mrb[133].mxu1 }
 0xbab   :  { %v10877_v4 = vadd.f32 %v10876_v1, %v10875_v44  ;;  %v10878_v42 = vpop.f32.mrb[134].mxu1 }
 0xbac   :  { %v10879_v22 = vpop.f32.mrb[135].mxu1 }
 0xbad   :  { %v9335_v34 = vadd.f32 %v10877_v4, %v9145_v46  ;;  %v10880_v41 = vadd.f32 %v10879_v22, %v10878_v42  ;;  %v9195_v46 = vpop.permute.xlu0 %9194 }
 0xbaf   :  { %v9338_v49 = vadd.f32 %v10880_v41, %v9150_v9  ;;  %12740 = vtanh.f32 %v9335_v34 }
 0xbb1   :  { %12742 = vtanh.f32 %v9338_v49  ;;  %v10881_v7 = vpop.f32.mrb[136].mxu1  ;;  %v12737_v17 = vpop.eup %12736 }
 0xbb2   :  { %v10882_v38 = vpop.f32.mrb[137].mxu1  ;;  %v9200_v49 = vpop.permute.xlu1 %9199 }
 0xbb3   :  { %v12739_v14 = vpop.eup %12738  ;;  %v10883_v47 = vadd.f32 %v10882_v38, %v10881_v7  ;;  %v10884_v19 = vpop.f32.mrb[138].mxu1 }
 0xbb4   :  { %v10885_v53 = vpop.f32.mrb[139].mxu1  ;;  %v9405_v52 = vpack.c.bf16 %v12739_v14, %v12737_v17 }
 0xbb5   :  { %v9343_v28 = vadd.f32 %v10883_v47, %v9155_v2  ;;  %v10886_v8 = vadd.f32 %v10885_v53, %v10884_v19  ;;  %v9205_v53 = vpop.permute.xlu0 %9204 }
 0xbb6   :  { %10933 = vmatprep.subr.bf16.mxu1 %v9405_v52 }
 0xbb7   :  { %v9346_v55 = vadd.f32 %v10886_v8, %v9160_v40  ;;  %10934 = vmatpush3.bf16.msra.mxu1 %v9405_v52  ;;  %12744 = vtanh.f32 %v9343_v28 }
 0xbb9   :  { %12746 = vtanh.f32 %v9346_v55  ;;  %v10887_v48 = vpop.f32.mrb[140].mxu1  ;;  %v12741_v29 = vpop.eup %12740 }
 0xbba   :  { %v10888_v58 = vpop.f32.mrb[141].mxu1  ;;  %v9210_v55 = vpop.permute.xlu1 %9209 }
 0xbbb   :  { %v12743_v21 = vpop.eup %12742  ;;  %v10889_v27 = vadd.f32 %v10888_v58, %v10887_v48  ;;  %v10890_v6 = vpop.f32.mrb[142].mxu1 }
 0xbbc   :  { %v10891_v36 = vpop.f32.mrb[143].mxu1  ;;  %v9406_v54 = vpack.c.bf16 %v12743_v21, %v12741_v29 }
 0xbbd   :  { %v9351_v26 = vadd.f32 %v10889_v27, %v9165_v51  ;;  %v10892_v61 = vadd.f32 %v10891_v36, %v10890_v6  ;;  %v12409_v36 = vld [vmem:[#allocation6 + $0x8] sm:$0xff]  }
 0xbbe   :  { %10935 = vmatprep.subr.bf16.mxu1 %v9406_v54 }
 0xbbf   :  { %v9354_v35 = vadd.f32 %v10892_v61, %v9170_v12  ;;  %10936 = vmatpush3.bf16.msra.mxu1 %v9406_v54  ;;  %12748 = vtanh.f32 %v9351_v26  ;;  %v12410_v54 = vld [vmem:[#allocation6 + $0x10] sm:$0xff]   ;;  %v12411_v26 = vld [vmem:[#allocation6 + $0x18] sm:$0xff]   ;;  %v12412_v61 = vld [vmem:[#allocation6 + $0x20] sm:$0xff]  }
 0xbc0   :  { %v12413_v12 = vld [vmem:[#allocation6 + $0x28] sm:$0xff]  }
 0xbc1   :  { %12750 = vtanh.f32 %v9354_v35  ;;  %v10893_v30 = vpop.f32.mrb[144].mxu1  ;;  %v12745_v43 = vpop.eup %12744  ;;  %v12414_v35 = vld [vmem:[#allocation6 + $0x30] sm:$0xff]  }
 0xbc2   :  { %v10894_v10 = vpop.f32.mrb[145].mxu1 }
 0xbc3   :  { %v12747_v56 = vpop.eup %12746  ;;  %v10895_v15 = vadd.f32 %v10894_v10, %v10893_v30  ;;  %v10896_v62 = vpop.f32.mrb[146].mxu1  ;;  %v12415_v30 = vld [vmem:[#allocation6 + $0x38] sm:$0xff]  }
 0xbc4   :  { %v10897_v13 = vpop.f32.mrb[147].mxu1  ;;  %v9407_v25 = vpack.c.bf16 %v12747_v56, %v12745_v43  ;;  %v9448_v43 = vpop.permute.xlu0 %9447 }
 0xbc5   :  { %v9359_v5 = vadd.f32 %v10895_v15, %v9175_v59  ;;  %v10898_v57 = vadd.f32 %v10897_v13, %v10896_v62  ;;  %v9453_v10 = vpop.permute.xlu1 %9452 }
 0xbc6   :  { %10937 = vmatprep.subr.bf16.mxu1 %v9407_v25 }
 0xbc7   :  { %v9362_v60 = vadd.f32 %v10898_v57, %v9180_v32  ;;  %10938 = vmatpush3.bf16.msra.mxu1 %v9407_v25  ;;  %12752 = vtanh.f32 %v9359_v5 }
 0xbc8   :  { %v9458_v56 = vpop.permute.xlu0 %9457 }
 0xbc9   :  { %12754 = vtanh.f32 %v9362_v60  ;;  %v10899_v11 = vpop.f32.mrb[148].mxu1  ;;  %v12749_v16 = vpop.eup %12748 }
 0xbca   :  { %v10900_v24 = vpop.f32.mrb[149].mxu1  ;;  %v9463_v15 = vpop.permute.xlu1 %9462 }
 0xbcb   :  { %v12751_v63 = vpop.eup %12750  ;;  %v10901_v20 = vadd.f32 %v10900_v24, %v10899_v11  ;;  %v10902_v3 = vpop.f32.mrb[150].mxu1 }
 0xbcc   :  { %v10903_v23 = vpop.f32.mrb[151].mxu1  ;;  %v9408_v37 = vpack.c.bf16 %v12751_v63, %v12749_v16  ;;  %v9468_v62 = vpop.permute.xlu0 %9467 }
 0xbcd   :  { %v9367_v39 = vadd.f32 %v10901_v20, %v9185_v45  ;;  %v10904_v18 = vadd.f32 %v10903_v23, %v10902_v3 }
 0xbce   :  { %10939 = vmatprep.subr.bf16.mxu1 %v9408_v37  ;;  %v9473_v59 = vpop.permute.xlu1 %9472 }
 0xbcf   :  { %v9370_v0 = vadd.f32 %v10904_v18, %v9190_v50  ;;  %10940 = vmatpush3.bf16.msra.mxu1 %v9408_v37  ;;  %12756 = vtanh.f32 %v9367_v39 }
 0xbd0   :  { %v9478_v13 = vpop.permute.xlu0 %9477 }
 0xbd1   :  { %12758 = vtanh.f32 %v9370_v0  ;;  %v10905_v31 = vpop.f32.mrb[152].mxu1  ;;  %v12753_v33 = vpop.eup %12752 }
 0xbd2   :  { %v10906_v44 = vpop.f32.mrb[153].mxu1  ;;  %v9483_v32 = vpop.permute.xlu1 %9482 }
 0xbd3   :  { %v12755_v1 = vpop.eup %12754  ;;  %v10907_v4 = vadd.f32 %v10906_v44, %v10905_v31  ;;  %v10908_v42 = vpop.f32.mrb[154].mxu1 }
 0xbd4   :  { %v10909_v22 = vpop.f32.mrb[155].mxu1  ;;  %v9409_v34 = vpack.c.bf16 %v12755_v1, %v12753_v33  ;;  %v9488_v23 = vpop.permute.xlu0 %9487 }
 0xbd5   :  { %v9375_v41 = vadd.f32 %v10907_v4, %v9195_v46  ;;  %v10910_v9 = vadd.f32 %v10909_v22, %v10908_v42 }
 0xbd6   :  { %10941 = vmatprep.subr.bf16.mxu1 %v9409_v34  ;;  %v9493_v39 = vpop.permute.xlu1 %9492 }
 0xbd7   :  { %v9378_v7 = vadd.f32 %v10910_v9, %v9200_v49  ;;  %10942 = vmatpush3.bf16.msra.mxu1 %v9409_v34  ;;  %12760 = vtanh.f32 %v9375_v41 }
 0xbd8   :  { %v9498_v42 = vpop.permute.xlu0 %9497 }
 0xbd9   :  { %12762 = vtanh.f32 %v9378_v7  ;;  %v10911_v17 = vpop.f32.mrb[156].mxu1  ;;  %v12757_v38 = vpop.eup %12756 }
 0xbda   :  { %v10912_v14 = vpop.f32.mrb[157].mxu1  ;;  %v9503_v41 = vpop.permute.xlu1 %9502 }
 0xbdb   :  { %v12759_v47 = vpop.eup %12758  ;;  %v10913_v19 = vadd.f32 %v10912_v14, %v10911_v17  ;;  %v10914_v2 = vpop.f32.mrb[158].mxu1 }
 0xbdc   :  { %v10915_v52 = vpop.f32.mrb[159].mxu1  ;;  %v9410_v28 = vpack.c.bf16 %v12759_v47, %v12757_v38 }
 0xbdd   :  { %v9383_v8 = vadd.f32 %v10913_v19, %v9205_v53  ;;  %v10916_v40 = vadd.f32 %v10915_v52, %v10914_v2  ;;  %v9508_v52 = vpop.permute.xlu0 %9507 }
 0xbde   :  { %10943 = vmatprep.subr.bf16.mxu1 %v9410_v28 }
 0xbdf   :  { %v9386_v48 = vadd.f32 %v10916_v40, %v9210_v55  ;;  %10944 = vmatpush3.bf16.msra.mxu1 %v9410_v28  ;;  %12764 = vtanh.f32 %v9383_v8 }
 0xbe1   :  { %12766 = vtanh.f32 %v9386_v48  ;;  %v12761_v29 = vpop.eup %12760 }
 0xbe3   :  { %v12763_v58 = vpop.eup %12762 }
 0xbe4   :  { %v9411_v21 = vpack.c.bf16 %v12763_v58, %v12761_v29 }
 0xbe6   :  { %10945 = vmatprep.subr.bf16.mxu1 %v9411_v21 }
 0xbe7   :  { %10946 = vmatpush3.bf16.msra.mxu1 %v9411_v21  ;;  %v9513_v21 = vpop.permute.xlu1 %9512 }
 0xbe9   :  { %v12765_v27 = vpop.eup %12764 }
 0xbeb   :  { %v12767_v6 = vpop.eup %12766 }
 0xbec   :  { %v9412_v51 = vpack.c.bf16 %v12767_v6, %v12765_v27 }
 0xbee   :  { %10947 = vmatprep.subr.bf16.mxu1 %v9412_v51 }
 0xbef   :  { %10948 = vmatpush3.bf16.msra.mxu1 %v9412_v51 }
 0xbf2   :  { %10950 = vmatmul.mubr.bf16.vlgmr.msra.gmra.mrb[160].mxu1 %v12409_v36 }
 0xbf3   :  { %10953 = vmatprep.mubr.bf16.mxu1 %v12410_v54 }
 0xbfa   :  { %10954 = vmatmul.mubr.bf16.gmra.mrb[164].mxu1 %v12411_v26 }
 0xbfb   :  { %10957 = vmatprep.mubr.bf16.mxu1 %v12412_v61  ;;  %v9518_v61 = vpop.permute.xlu0 %9517 }
 0xc02   :  { %10958 = vmatmul.mubr.bf16.gmra.mrb[168].mxu1 %v12413_v12 }
 0xc03   :  { %10961 = vmatprep.mubr.bf16.mxu1 %v12414_v35 }
 0xc0a   :  { %10962 = vmatmul.mubr.bf16.gmra.mrb[172].mxu1 %v12415_v30 }
 0xcc5   :  { %v10951_v25 = vpop.f32.mrb[160].mxu1 }
 0xcc6   :  { %v9616_v5 = vadd.f32 %v10951_v25, %v9458_v56  ;;  %v9607_v57 = vpop.f32.mrb[161].mxu1 }
 0xcc7   :  { %v9608_v60 = vadd.f32 %v9607_v57, %v9448_v43  ;;  %v10952_v11 = vpop.f32.mrb[162].mxu1 }
 0xcc8   :  { %v10583_v16 = vmul.f32 -1.442695, %v9616_v5  ;;  %v9619_v24 = vadd.f32 %v10952_v11, %v9463_v15  ;;  %v9610_v63 = vpop.f32.mrb[163].mxu1 }
 0xcc9   :  { %v10581_v20 = vmul.f32 -1.442695, %v9608_v60  ;;  %v9611_v3 = vadd.f32 %v9610_v63, %v9453_v10 }
 0xcca   :  { %12768 = vpow2.f32 %v10583_v16  ;;  %v10584_v45 = vmul.f32 -1.442695, %v9619_v24 }
 0xccb   :  { %12770 = vpow2.f32 %v10581_v20  ;;  %v10582_v37 = vmul.f32 -1.442695, %v9611_v3 }
 0xccc   :  { %12772 = vpow2.f32 %v10584_v45 }
 0xccd   :  { %12774 = vpow2.f32 %v10582_v37  ;;  %v10955_v18 = vpop.f32.mrb[164].mxu1 }
 0xcce   :  { %v9632_v50 = vadd.f32 %v10955_v18, %v9478_v13  ;;  %v9623_v0 = vpop.f32.mrb[165].mxu1 }
 0xccf   :  { %v9624_v31 = vadd.f32 %v9623_v0, %v9468_v62  ;;  %v10956_v33 = vpop.f32.mrb[166].mxu1  ;;  %v9523_v62 = vpop.permute.xlu1 %9522 }
 0xcd0   :  { %v10587_v44 = vmul.f32 -1.442695, %v9632_v50  ;;  %v9635_v1 = vadd.f32 %v10956_v33, %v9483_v32  ;;  %v9626_v4 = vpop.f32.mrb[167].mxu1 }
 0xcd1   :  { %v10585_v46 = vmul.f32 -1.442695, %v9624_v31  ;;  %v9627_v22 = vadd.f32 %v9626_v4, %v9473_v59 }
 0xcd2   :  { %12776 = vpow2.f32 %v10587_v44  ;;  %v10588_v34 = vmul.f32 -1.442695, %v9635_v1 }
 0xcd3   :  { %12778 = vpow2.f32 %v10585_v46  ;;  %v10586_v9 = vmul.f32 -1.442695, %v9627_v22 }
 0xcd4   :  { %v12769_v49 = vpop.eup %12768  ;;  %12780 = vpow2.f32 %v10588_v34 }
 0xcd5   :  { %v12771_v7 = vpop.eup %12770  ;;  %v9720_v17 = vadd.f32 1.0, %v12769_v49  ;;  %12782 = vpow2.f32 %v10586_v9  ;;  %v10959_v38 = vpop.f32.mrb[168].mxu1 }
 0xcd6   :  { %v12773_v14 = vpop.eup %12772  ;;  %v9718_v47 = vadd.f32 1.0, %v12771_v7  ;;  %v9648_v19 = vadd.f32 %v10959_v38, %v9498_v42  ;;  %v9639_v2 = vpop.f32.mrb[169].mxu1 }
 0xcd7   :  { %v12775_v53 = vpop.eup %12774  ;;  %12784 = vrcp.f32 %v9720_v17  ;;  %v9721_v28 = vadd.f32 1.0, %v12773_v14  ;;  %v9640_v8 = vadd.f32 %v9639_v2, %v9488_v23  ;;  %v10960_v40 = vpop.f32.mrb[170].mxu1 }
 0xcd8   :  { %12786 = vrcp.f32 %v9718_v47  ;;  %v9719_v55 = vadd.f32 1.0, %v12775_v53  ;;  %v10591_v48 = vmul.f32 -1.442695, %v9648_v19  ;;  %v9651_v29 = vadd.f32 %v10960_v40, %v9503_v41  ;;  %v9642_v58 = vpop.f32.mrb[171].mxu1 }
 0xcd9   :  { %12788 = vrcp.f32 %v9721_v28  ;;  %v10589_v27 = vmul.f32 -1.442695, %v9640_v8  ;;  %v9643_v6 = vadd.f32 %v9642_v58, %v9493_v39 }
 0xcda   :  { %12790 = vrcp.f32 %v9719_v55  ;;  %v10592_v51 = vmul.f32 -1.442695, %v9651_v29 }
 0xcdb   :  { %12792 = vpow2.f32 %v10591_v48  ;;  %v10590_v36 = vmul.f32 -1.442695, %v9643_v6 }
 0xcdc   :  { %v12777_v54 = vpop.eup %12776  ;;  %12794 = vpow2.f32 %v10589_v27 }
 0xcdd   :  { %v12779_v26 = vpop.eup %12778  ;;  %v9724_v12 = vadd.f32 1.0, %v12777_v54  ;;  %12796 = vpow2.f32 %v10592_v51  ;;  %v10963_v35 = vpop.f32.mrb[172].mxu1 }
 0xcde   :  { %v12781_v30 = vpop.eup %12780  ;;  %v9722_v43 = vadd.f32 1.0, %v12779_v26  ;;  %12798 = vpow2.f32 %v10590_v36  ;;  %v9664_v10 = vadd.f32 %v10963_v35, %v9518_v61  ;;  %v9655_v56 = vpop.f32.mrb[173].mxu1 }
 0xcdf   :  { %v12783_v15 = vpop.eup %12782  ;;  %12800 = vrcp.f32 %v9724_v12  ;;  %v9725_v59 = vadd.f32 1.0, %v12781_v30  ;;  %v9656_v13 = vadd.f32 %v9655_v56, %v9508_v52  ;;  %v10964_v25 = vpop.f32.mrb[174].mxu1 }
 0xce0   :  { %12802 = vrcp.f32 %v9722_v43  ;;  %v9723_v5 = vadd.f32 1.0, %v12783_v15  ;;  %v10595_v57 = vmul.f32 -1.442695, %v9664_v10  ;;  %v9667_v32 = vadd.f32 %v10964_v25, %v9523_v62  ;;  %v9658_v60 = vpop.f32.mrb[175].mxu1 }
 0xce1   :  { %v12785_v11 = vpop.eup %12784  ;;  %12804 = vrcp.f32 %v9725_v59  ;;  %v10593_v16 = vmul.f32 -1.442695, %v9656_v13  ;;  %v9659_v24 = vadd.f32 %v9658_v60, %v9513_v21 }
 0xce2   :  { %v12787_v63 = vpop.eup %12786  ;;  %v10615_v20 = vpack.c.bf16 %v12785_v11, %v12785_v11  ;;  %12806 = vrcp.f32 %v9723_v5  ;;  %v10596_v3 = vmul.f32 -1.442695, %v9667_v32 }
 0xce3   :  { %v12789_v45 = vpop.eup %12788  ;;  %v10613_v23 = vpack.c.bf16 %v12787_v63, %v12787_v63  ;;  %12808 = vpow2.f32 %v10595_v57  ;;  %v10594_v37 = vmul.f32 -1.442695, %v9659_v24 }
 0xce4   :  { %v12791_v39 = vpop.eup %12790  ;;  %9833 = vst.msk [vmem:[%s16134_s11 + $0x8] sm:$0xf] %vm9830_vm0, %v10615_v20  ;;  %v10616_v18 = vpack.c.bf16 %v12789_v45, %v12789_v45  ;;  %12810 = vpow2.f32 %v10593_v16 }
 0xce5   :  { %v12793_v50 = vpop.eup %12792  ;;  %9831 = vst.msk [vmem:[%s16134_s11] sm:$0xf] %vm9830_vm0, %v10613_v23  ;;  %v10614_v0 = vpack.c.bf16 %v12791_v39, %v12791_v39  ;;  %12812 = vpow2.f32 %v10596_v3 }
 0xce6   :  { %v12795_v31 = vpop.eup %12794  ;;  %9834 = vst.msk [vmem:[%s16134_s11 + $0xc] sm:$0xf] %vm9830_vm0, %v10616_v18  ;;  %v9728_v33 = vadd.f32 1.0, %v12793_v50  ;;  %12814 = vpow2.f32 %v10594_v37 }
 0xce7   :  { %v12797_v44 = vpop.eup %12796  ;;  %9832 = vst.msk [vmem:[%s16134_s11 + $0x4] sm:$0xf] %vm9830_vm0, %v10614_v0  ;;  %v9726_v1 = vadd.f32 1.0, %v12795_v31 }
 0xce8   :  { %v12799_v4 = vpop.eup %12798  ;;  %12816 = vrcp.f32 %v9728_v33  ;;  %v9729_v42 = vadd.f32 1.0, %v12797_v44 }
 0xce9   :  { %v12801_v46 = vpop.eup %12800  ;;  %12818 = vrcp.f32 %v9726_v1  ;;  %v9727_v22 = vadd.f32 1.0, %v12799_v4 }
 0xcea   :  { %v12803_v34 = vpop.eup %12802  ;;  %v10619_v41 = vpack.c.bf16 %v12801_v46, %v12801_v46  ;;  %12820 = vrcp.f32 %v9729_v42 }
 0xceb   :  { %v12805_v9 = vpop.eup %12804  ;;  %v10617_v49 = vpack.c.bf16 %v12803_v34, %v12803_v34  ;;  %12822 = vrcp.f32 %v9727_v22 }
 0xcec   :  { %v12807_v7 = vpop.eup %12806  ;;  %9837 = vst.msk [vmem:[%s16134_s11 + $0x18] sm:$0xf] %vm9830_vm0, %v10619_v41  ;;  %v10620_v17 = vpack.c.bf16 %v12805_v9, %v12805_v9 }
 0xced   :  { %v12809_v38 = vpop.eup %12808  ;;  %9835 = vst.msk [vmem:[%s16134_s11 + $0x10] sm:$0xf] %vm9830_vm0, %v10617_v49  ;;  %v10618_v14 = vpack.c.bf16 %v12807_v7, %v12807_v7 }
 0xcee   :  { %v12811_v47 = vpop.eup %12810  ;;  %9838 = vst.msk [vmem:[%s16134_s11 + $0x1c] sm:$0xf] %vm9830_vm0, %v10620_v17  ;;  %v9732_v19 = vadd.f32 1.0, %v12809_v38 }
 0xcef   :  { %v12813_v2 = vpop.eup %12812  ;;  %9836 = vst.msk [vmem:[%s16134_s11 + $0x14] sm:$0xf] %vm9830_vm0, %v10618_v14  ;;  %v9730_v53 = vadd.f32 1.0, %v12811_v47 }
 0xcf0   :  { %v12815_v52 = vpop.eup %12814  ;;  %12824 = vrcp.f32 %v9732_v19  ;;  %v9733_v28 = vadd.f32 1.0, %v12813_v2 }
 0xcf1   :  { %12826 = vrcp.f32 %v9730_v53  ;;  %v9731_v8 = vadd.f32 1.0, %v12815_v52 }
 0xcf2   :  { %v12817_v40 = vpop.eup %12816  ;;  %12828 = vrcp.f32 %v9733_v28 }
 0xcf3   :  { %v12819_v55 = vpop.eup %12818  ;;  %v10623_v48 = vpack.c.bf16 %v12817_v40, %v12817_v40  ;;  %12830 = vrcp.f32 %v9731_v8 }
 0xcf4   :  { %v12821_v29 = vpop.eup %12820  ;;  %v10621_v58 = vpack.c.bf16 %v12819_v55, %v12819_v55 }
 0xcf5   :  { %v12823_v21 = vpop.eup %12822  ;;  %9841 = vst.msk [vmem:[%s16134_s11 + $0x28] sm:$0xf] %vm9830_vm0, %v10623_v48  ;;  %v10624_v27 = vpack.c.bf16 %v12821_v29, %v12821_v29 }
 0xcf6   :  { %9839 = vst.msk [vmem:[%s16134_s11 + $0x20] sm:$0xf] %vm9830_vm0, %v10621_v58  ;;  %v10622_v6 = vpack.c.bf16 %v12823_v21, %v12823_v21 }
 0xcf7   :  { %9842 = vst.msk [vmem:[%s16134_s11 + $0x2c] sm:$0xf] %vm9830_vm0, %v10624_v27 }
 0xcf8   :  { %9840 = vst.msk [vmem:[%s16134_s11 + $0x24] sm:$0xf] %vm9830_vm0, %v10622_v6 }
 0xcfa   :  { %v12825_v51 = vpop.eup %12824 }
 0xcfb   :  { %v12827_v36 = vpop.eup %12826  ;;  %v10627_v54 = vpack.c.bf16 %v12825_v51, %v12825_v51 }
 0xcfc   :  { %v12829_v26 = vpop.eup %12828  ;;  %v10625_v61 = vpack.c.bf16 %v12827_v36, %v12827_v36 }
 0xcfd   :  { %v12831_v12 = vpop.eup %12830  ;;  %9845 = vst.msk [vmem:[%s16134_s11 + $0x38] sm:$0xf] %vm9830_vm0, %v10627_v54  ;;  %v10628_v35 = vpack.c.bf16 %v12829_v26, %v12829_v26 }
 0xcfe   :  { %9843 = vst.msk [vmem:[%s16134_s11 + $0x30] sm:$0xf] %vm9830_vm0, %v10625_v61  ;;  %v10626_v30 = vpack.c.bf16 %v12831_v12, %v12831_v12 }
 0xcff   :  { %9846 = vst.msk [vmem:[%s16134_s11 + $0x3c] sm:$0xf] %vm9830_vm0, %v10628_v35 }
 0xd00   :  { %9844 = vst.msk [vmem:[%s16134_s11 + $0x34] sm:$0xf] %vm9830_vm0, %v10626_v30 }
 0xd01   :  { %9851 = vsyncpa [#allocation3], 1 }
 0xd02   :  { %9852 = vsyncpa [#allocation5], 1 }

</bundles_post_ra>
